<compile_context>
chip_gen: v7x
topology: tpu7x:2x2x1
jax: 0.10.0
libtpu: 0.0.40
codegen_flags: <defaults>
</compile_context>

<pallas_src>
import functools

import jax
import jax.numpy as jnp
from jax.experimental import pallas as pl
from jax.experimental.pallas import tpu as pltpu

LANE = 128


def _round_up(x, m):
    return (x + m - 1) // m * m


def _tpu_vmem_caps():
    """(tile-selection budget, vmem_limit_bytes), TPU-generation aware."""
    try:
        cap = int(pltpu.get_tpu_info().vmem_capacity_bytes)
    except Exception:
        cap = 64 * 1024 * 1024          # conservative v7x-sized fallback
    return int(cap * 0.45), int(cap * 0.85)


def _use_per_tap_dots():
    """v5e's MXU is 4x128x128: a 128-deep contraction is already full depth,
    so skip the im2col width/height concat there and use K*K per-tap dots."""
    try:
        kind = jax.devices()[0].device_kind.lower()
    except Exception:
        return False
    return ("v5 lite" in kind) or ("v5e" in kind) or ("v5litepod" in kind)


# -----------------------------------------------------------------------------
# Kernel: one (batch, output-row-band) tile of a KxK "same" conv with fused
# bias + SiLU + optional residual shortcut (identity or 1x1 conv).
# -----------------------------------------------------------------------------
def _make_conv_kernel(TH, W, K, Cin_p, Cout_p, sc_pad, apply_silu,
                      shortcut_mode, per_tap):
    def kernel(*refs):
        if shortcut_mode == "conv1x1":
            x_ref, w_ref, b_ref, xs_ref, ws_ref, bs_ref, o_ref = refs
        elif shortcut_mode == "identity":
            x_ref, w_ref, b_ref, xs_ref, o_ref = refs
        else:
            x_ref, w_ref, b_ref, o_ref = refs

        # Top row of this output band inside the spatially padded input image.
        r0 = pl.program_id(1) * TH

        if per_tap:
            # v5e path: K*K dots of contraction depth Cin_p (already full MXU
            # depth there); accumulation stays in values, no scratch ref.
            out = None
            for kh in range(K):
                for kw in range(K):
                    lhs = x_ref[0, pl.ds(r0 + kh, TH), kw:kw + W, :]
                    lhs = lhs.reshape(TH * W, Cin_p)
                    c = jnp.dot(lhs, w_ref[kh * K + kw],
                                preferred_element_type=jnp.float32)
                    out = c if out is None else out + c
        else:
            # v6e/v7x path: single long-contraction dot; accumulation happens
            # inside the MXU result path, no f32 VMEM accumulator round-trips.
            lhs = jnp.concatenate(
                [x_ref[0, pl.ds(r0 + kh, TH), kw:kw + W, :]
                 for kh in range(K) for kw in range(K)],
                axis=-1).reshape(TH * W, K * K * Cin_p)
            out = jnp.dot(lhs, w_ref[...].reshape(K * K * Cin_p, Cout_p),
                          preferred_element_type=jnp.float32)

        out = out + b_ref[...]                          # (TH*W, Cout_p) f32
        if apply_silu:
            out = out * jax.nn.sigmoid(out)             # SiLU fused in-kernel

        if shortcut_mode == "conv1x1":
            xs = xs_ref[0, pl.ds(r0 + sc_pad, TH), sc_pad:sc_pad + W, :]
            xs = xs.reshape(TH * W, xs.shape[-1])
            out = out + jnp.dot(xs, ws_ref[...],
                                preferred_element_type=jnp.float32)
            out = out + bs_ref[...]
        elif shortcut_mode == "identity":
            xs = xs_ref[0, pl.ds(r0 + sc_pad, TH), sc_pad:sc_pad + W, :]
            out = out + xs.reshape(TH * W, Cout_p).astype(jnp.float32)

        o_ref[...] = out.reshape(1, TH, W, Cout_p).astype(o_ref.dtype)

    return kernel


def _pick_row_tile(H, W, K, Cin_p, Cout_p, fixed_bytes, budget, wide,
                   out_itemsize):
    """Largest row-band TH (divisor of H) whose per-step VMEM footprint fits
    the generation-aware budget.  fixed_bytes already counts the resident
    (double-buffered) input image, conv weights and shortcut operands."""
    best = 1
    lhs_depth = (K * K if wide else 1) * Cin_p
    for th in range(1, H + 1):
        if H % th:
            continue
        lhs = th * W * lhs_depth * 2                    # bf16 im2col slab
        f32tmp = 2 * th * W * Cout_p * 4                # dot result + act temps
        outb = 2 * th * W * Cout_p * out_itemsize       # double-buffered output
        if fixed_bytes + lhs + f32tmp + outb <= budget:
            best = th
    return best


# -----------------------------------------------------------------------------
# One "same" KxK conv (+bias, +SiLU, +fused residual) as a single pallas_call.
# -----------------------------------------------------------------------------
def _conv_block(xp, w_taps, bias_p, *, apply_silu, shortcut_xp=None, sc_pad=1,
                shortcut_w=None, shortcut_b=None, out_dtype=jnp.bfloat16):
    """
    xp:          (N, H+K-1, W+K-1, Cin_p)  bf16, spatially + channel padded input
    w_taps:      (K*K, Cin_p, Cout_p)      bf16 modulated weight, tap-major
    bias_p:      (1, Cout_p)               f32
    shortcut_xp: (N, H+2*sc_pad, W+2*sc_pad, Cs_p) bf16 padded residual input, or None
    shortcut_w:  (Cs_p, Cout_p) bf16 1x1-conv weight, or None for identity shortcut
    shortcut_b:  (1, Cout_p) f32 (only with shortcut_w)
    returns:     (N, H, W, Cout_p) in out_dtype (channels kept padded)
    """
    N, Hp, Wp, Cin_p = xp.shape
    KK, _, Cout_p = w_taps.shape
    K = int(round(KK ** 0.5))
    assert KK == K * K
    H, W = Hp - (K - 1), Wp - (K - 1)

    budget, vmem_limit = _tpu_vmem_caps()
    per_tap = _use_per_tap_dots()

    # Resident (per-grid-step) VMEM that does not scale with the row tile.
    fixed = 2 * Hp * Wp * Cin_p * 2                 # padded input image (x2 bufs)
    fixed += 2 * KK * Cin_p * Cout_p * 2            # conv weights (x2 bufs)
    if shortcut_xp is not None:
        _, Hs, Ws, Cs_p = shortcut_xp.shape
        fixed += 2 * Hs * Ws * Cs_p * 2             # padded residual image
        if shortcut_w is not None:
            fixed += 2 * Cs_p * Cout_p * 2

    TH = _pick_row_tile(H, W, K, Cin_p, Cout_p, fixed, budget,
                        wide=not per_tap,
                        out_itemsize=jnp.dtype(out_dtype).itemsize)
    nH = H // TH
    # TODO(synk): for images whose padded activation no longer fits VMEM,
    # switch the input spec to overlapping row bands (pl.Element on the row
    # dim / manual make_async_copy) instead of keeping the full image resident.

    inputs = [xp, w_taps, bias_p]
    in_specs = [
        pl.BlockSpec((1, Hp, Wp, Cin_p), lambda n, ih: (n, 0, 0, 0)),
        pl.BlockSpec((KK, Cin_p, Cout_p), lambda n, ih: (0, 0, 0)),
        pl.BlockSpec((1, Cout_p), lambda n, ih: (0, 0)),
    ]

    if shortcut_xp is None:
        shortcut_mode = None
    else:
        _, Hs, Ws, Cs_p = shortcut_xp.shape
        inputs.append(shortcut_xp)
        in_specs.append(
            pl.BlockSpec((1, Hs, Ws, Cs_p), lambda n, ih: (n, 0, 0, 0)))
        if shortcut_w is not None:
            shortcut_mode = "conv1x1"
            inputs += [shortcut_w, shortcut_b]
            in_specs += [
                pl.BlockSpec(shortcut_w.shape, lambda n, ih: (0, 0)),
                pl.BlockSpec((1, Cout_p), lambda n, ih: (0, 0)),
            ]
        else:
            shortcut_mode = "identity"

    kernel = _make_conv_kernel(TH, W, K, Cin_p, Cout_p, sc_pad,
                               apply_silu, shortcut_mode, per_tap)

    return pl.pallas_call(
        kernel,
        out_shape=jax.ShapeDtypeStruct((N, H, W, Cout_p), out_dtype),
        grid=(N, nH),
        in_specs=in_specs,
        out_specs=pl.BlockSpec((1, TH, W, Cout_p), lambda n, ih: (n, ih, 0, 0)),
        compiler_params=pltpu.CompilerParams(
            dimension_semantics=("parallel", "parallel"),
            vmem_limit_bytes=vmem_limit,
        ),
    )(*inputs)


# -----------------------------------------------------------------------------
# Weight modulation (mirrors modulated_conv2d's weight math exactly).
# -----------------------------------------------------------------------------
def _modulate_weight(w_oikk, scales, gain, eps=1e-8):
    w_scale = jax.lax.rsqrt(jnp.mean(w_oikk ** 2, axis=(1, 2, 3), keepdims=True))
    w = w_oikk * w_scale
    s_scale = jax.lax.rsqrt(jnp.mean(scales ** 2))
    s = scales * s_scale
    w = w * s.reshape(1, -1, 1, 1)
    dcoefs = jax.lax.rsqrt(jnp.sum(w ** 2, axis=(1, 2, 3), keepdims=True) + eps)
    w = w * dcoefs
    w = w * gain[0]                                     # scalar input_gain
    return w


def _prep_conv_weight(p, Cin_p, Cout_p):
    w = _modulate_weight(p["weight"], p["scales"], p["gain"])   # (O, I, K, K)
    O, I, K, _ = w.shape
    w = jnp.transpose(w, (2, 3, 1, 0))                          # (K, K, I, O)
    w = jnp.pad(w, ((0, 0), (0, 0), (0, Cin_p - I), (0, Cout_p - O)))
    w = w.reshape(K * K, Cin_p, Cout_p).astype(jnp.bfloat16)
    b = jnp.pad(p["bias"], (0, Cout_p - O)).reshape(1, Cout_p).astype(jnp.float32)
    return w, b


# -----------------------------------------------------------------------------
# ResnetBlock forward: conv1 -> SiLU -> (dropout=Identity) -> conv2 -> SiLU,
# plus (1x1 nin_shortcut | identity) residual.  dropout=0, conv_shortcut=False.
# -----------------------------------------------------------------------------
def resnet_block_forward(x_nchw, params):
    in_ch = params["in_channels"]
    out_ch = params["out_channels"]
    Cin_p = _round_up(in_ch, LANE)
    Cout_p = _round_up(out_ch, LANE)

    # TODO(synk): keep the surrounding decoder NHWC / channel-padded so this
    # transpose + pad and the final slice + transpose are paid once per network.
    x_nhwc = jnp.transpose(x_nchw, (0, 2, 3, 1))

    p1 = params["conv1"]["padding"]
    w1, b1 = _prep_conv_weight(params["conv1"], Cin_p, Cout_p)
    # Single fused pass over x: bf16 cast + channel pad + spatial halo pad.
    xp = jnp.pad(x_nhwc.astype(jnp.bfloat16),
                 ((0, 0), (p1, p1), (p1, p1), (0, Cin_p - in_ch)))

    h = _conv_block(xp, w1, b1, apply_silu=True)        # (N, H, W, Cout_p) bf16

    p2 = params["conv2"]["padding"]
    w2, b2 = _prep_conv_weight(params["conv2"], Cout_p, Cout_p)
    # TODO(synk): fold this halo pad into conv1's output store (write into a
    # pre-padded buffer) to drop one bf16 pass over h.
    hp = jnp.pad(h, ((0, 0), (p2, p2), (p2, p2), (0, 0)))

    if in_ch != out_ch:
        ns = params["nin_shortcut"]
        sw = jnp.pad(jnp.transpose(ns["weight"][:, :, 0, 0]),
                     ((0, Cin_p - in_ch), (0, Cout_p - out_ch))).astype(jnp.bfloat16)
        sb = jnp.pad(ns["bias"], (0, Cout_p - out_ch)).reshape(1, Cout_p).astype(jnp.float32)
        out = _conv_block(hp, w2, b2, apply_silu=True,
                          shortcut_xp=xp, sc_pad=p1,
                          shortcut_w=sw, shortcut_b=sb)
    else:
        out = _conv_block(hp, w2, b2, apply_silu=True,
                          shortcut_xp=xp, sc_pad=p1)

    # One pass: un-pad channels + NHWC -> NCHW + cast back to the input dtype.
    return jnp.transpose(out[..., :out_ch], (0, 3, 1, 2)).astype(x_nchw.dtype)


# -----------------------------------------------------------------------------
# Deterministic parameter construction (synthetic, not a checkpoint load).
# -----------------------------------------------------------------------------
def init_resnet_block_params(key, in_channels, out_channels):
    ks = jax.random.split(key, 6)

    def smc_params(kw, kb, cin, cout, ksize):
        return {
            "weight": 0.1 * jax.random.normal(kw, (cout, cin, ksize, ksize), jnp.float32),
            "bias": 0.05 * jax.random.normal(kb, (cout,), jnp.float32),
            "gain": jnp.ones((1,), jnp.float32),
            "scales": jnp.ones((cin,), jnp.float32),
            "padding": ksize // 2,
        }

    params = {
        "in_channels": in_channels,
        "out_channels": out_channels,
        "conv1": smc_params(ks[0], ks[1], in_channels, out_channels, 3),
        "conv2": smc_params(ks[2], ks[3], out_channels, out_channels, 3),
    }
    if in_channels != out_channels:
        params["nin_shortcut"] = {
            "weight": 0.1 * jax.random.normal(ks[4], (out_channels, in_channels, 1, 1), jnp.float32),
            "bias": 0.05 * jax.random.normal(ks[5], (out_channels,), jnp.float32),
        }
    return params


def reference_forward(x_nchw, params):
    """Pure-JAX f32 reference of the PyTorch module (for validation only)."""
    def smc(x, p):
        w = _modulate_weight(p["weight"], p["scales"], p["gain"])
        y = jax.lax.conv_general_dilated(
            x, w, window_strides=(1, 1),
            padding=[(p["padding"], p["padding"])] * 2,
            dimension_numbers=("NCHW", "OIHW", "NCHW"))
        return y + p["bias"].reshape(1, -1, 1, 1)

    h = jax.nn.silu(smc(x_nchw, params["conv1"]))
    h = jax.nn.silu(smc(h, params["conv2"]))
    if params["in_channels"] != params["out_channels"]:
        ns = params["nin_shortcut"]
        sc = jax.lax.conv_general_dilated(
            x_nchw, ns["weight"], (1, 1), [(0, 0), (0, 0)],
            dimension_numbers=("NCHW", "OIHW", "NCHW")) + ns["bias"].reshape(1, -1, 1, 1)
    else:
        sc = x_nchw
    return sc + h


if __name__ == "__main__":
    key = jax.random.PRNGKey(0)
    k_x, k_p = jax.random.split(key)

    N, C_in, C_out, H, W = 2, 4, 8, 16, 16
    x = jax.random.normal(k_x, (N, C_in, H, W), jnp.float32)   # NCHW like PyTorch
    params = init_resnet_block_params(k_p, C_in, C_out)

    fwd = jax.jit(functools.partial(resnet_block_forward, params=params))
    out = fwd(x)
    jax.block_until_ready(out)

    assert out.shape == (N, C_out, H, W), out.shape
    assert bool(jnp.all(jnp.isfinite(out)))

    # bf16 MXU operands / bf16 intermediates, f32 accumulation: compare loosely.
    ref = reference_forward(x, params)
    max_err = float(jnp.max(jnp.abs(out.astype(jnp.float32) - ref)))
    assert max_err < 0.3, f"max abs err vs f32 reference too large: {max_err}"

    print("KERNEL_OK")
</pallas_src>

<mosaic_0001>
module attributes {stable_mosaic.version = 11 : i64} {
  func.func @kernel(%arg0: i32, %arg1: i32, %arg2: memref<1x18x18x128xbf16, #tpu.memory_space<vmem>>, %arg3: memref<9x128x128xbf16, #tpu.memory_space<vmem>>, %arg4: memref<1x128xf32, #tpu.memory_space<vmem>>, %arg5: memref<1x16x16x128xbf16, #tpu.memory_space<vmem>>) attributes {dimension_semantics = [#tpu.dimension_semantics<parallel>, #tpu.dimension_semantics<parallel>], iteration_bounds = array<i64: 2, 1>, scalar_prefetch = 0 : i64, scratch_operands = 0 : i64, tpu.core_type = #tpu.core_type<tc>, window_params = [{transform_indices = @transform_0, window_bounds = array<i64: 1, 18, 18, 128>}, {pipeline_mode = #tpu.pipeline_mode<synchronous>, transform_indices = @transform_1, window_bounds = array<i64: 9, 128, 128>}, {pipeline_mode = #tpu.pipeline_mode<synchronous>, transform_indices = @transform_2, window_bounds = array<i64: 1, 128>}, {transform_indices = @transform_3, window_bounds = array<i64: 1, 16, 16, 128>}]} {
    %c16_i32 = arith.constant 16 : i32
    %0 = arith.muli %arg1, %c16_i32 : i32
    %c0_i32 = arith.constant 0 : i32
    %1 = arith.addi %0, %c0_i32 : i32
    %c0 = arith.constant 0 : index
    %2 = arith.index_cast %1 : i32 to index
    %c0_0 = arith.constant 0 : index
    %c0_1 = arith.constant 0 : index
    %3 = vector.load %arg2[%c0, %2, %c0_0, %c0_1] : memref<1x18x18x128xbf16, #tpu.memory_space<vmem>>, vector<1x16x16x128xbf16>
    %4 = vector.shape_cast %3 : vector<1x16x16x128xbf16> to vector<16x16x128xbf16>
    %c0_i32_2 = arith.constant 0 : i32
    %5 = arith.addi %0, %c0_i32_2 : i32
    %c0_3 = arith.constant 0 : index
    %6 = arith.index_cast %5 : i32 to index
    %c1 = arith.constant 1 : index
    %c0_4 = arith.constant 0 : index
    %7 = vector.load %arg2[%c0_3, %6, %c1, %c0_4] : memref<1x18x18x128xbf16, #tpu.memory_space<vmem>>, vector<1x16x16x128xbf16>
    %8 = vector.shape_cast %7 : vector<1x16x16x128xbf16> to vector<16x16x128xbf16>
    %c0_i32_5 = arith.constant 0 : i32
    %9 = arith.addi %0, %c0_i32_5 : i32
    %c0_6 = arith.constant 0 : index
    %10 = arith.index_cast %9 : i32 to index
    %c2 = arith.constant 2 : index
    %c0_7 = arith.constant 0 : index
    %11 = vector.load %arg2[%c0_6, %10, %c2, %c0_7] : memref<1x18x18x128xbf16, #tpu.memory_space<vmem>>, vector<1x16x16x128xbf16>
    %12 = vector.shape_cast %11 : vector<1x16x16x128xbf16> to vector<16x16x128xbf16>
    %c1_i32 = arith.constant 1 : i32
    %13 = arith.addi %0, %c1_i32 : i32
    %c0_8 = arith.constant 0 : index
    %14 = arith.index_cast %13 : i32 to index
    %c0_9 = arith.constant 0 : index
    %c0_10 = arith.constant 0 : index
    %15 = vector.load %arg2[%c0_8, %14, %c0_9, %c0_10] : memref<1x18x18x128xbf16, #tpu.memory_space<vmem>>, vector<1x16x16x128xbf16>
    %16 = vector.shape_cast %15 : vector<1x16x16x128xbf16> to vector<16x16x128xbf16>
    %c1_i32_11 = arith.constant 1 : i32
    %17 = arith.addi %0, %c1_i32_11 : i32
    %c0_12 = arith.constant 0 : index
    %18 = arith.index_cast %17 : i32 to index
    %c1_13 = arith.constant 1 : index
    %c0_14 = arith.constant 0 : index
    %19 = vector.load %arg2[%c0_12, %18, %c1_13, %c0_14] : memref<1x18x18x128xbf16, #tpu.memory_space<vmem>>, vector<1x16x16x128xbf16>
    %20 = vector.shape_cast %19 : vector<1x16x16x128xbf16> to vector<16x16x128xbf16>
    %c1_i32_15 = arith.constant 1 : i32
    %21 = arith.addi %0, %c1_i32_15 : i32
    %c0_16 = arith.constant 0 : index
    %22 = arith.index_cast %21 : i32 to index
    %c2_17 = arith.constant 2 : index
    %c0_18 = arith.constant 0 : index
    %23 = vector.load %arg2[%c0_16, %22, %c2_17, %c0_18] : memref<1x18x18x128xbf16, #tpu.memory_space<vmem>>, vector<1x16x16x128xbf16>
    %24 = vector.shape_cast %23 : vector<1x16x16x128xbf16> to vector<16x16x128xbf16>
    %c2_i32 = arith.constant 2 : i32
    %25 = arith.addi %0, %c2_i32 : i32
    %c0_19 = arith.constant 0 : index
    %26 = arith.index_cast %25 : i32 to index
    %c0_20 = arith.constant 0 : index
    %c0_21 = arith.constant 0 : index
    %27 = vector.load %arg2[%c0_19, %26, %c0_20, %c0_21] : memref<1x18x18x128xbf16, #tpu.memory_space<vmem>>, vector<1x16x16x128xbf16>
    %28 = vector.shape_cast %27 : vector<1x16x16x128xbf16> to vector<16x16x128xbf16>
    %c2_i32_22 = arith.constant 2 : i32
    %29 = arith.addi %0, %c2_i32_22 : i32
    %c0_23 = arith.constant 0 : index
    %30 = arith.index_cast %29 : i32 to index
    %c1_24 = arith.constant 1 : index
    %c0_25 = arith.constant 0 : index
    %31 = vector.load %arg2[%c0_23, %30, %c1_24, %c0_25] : memref<1x18x18x128xbf16, #tpu.memory_space<vmem>>, vector<1x16x16x128xbf16>
    %32 = vector.shape_cast %31 : vector<1x16x16x128xbf16> to vector<16x16x128xbf16>
    %c2_i32_26 = arith.constant 2 : i32
    %33 = arith.addi %0, %c2_i32_26 : i32
    %c0_27 = arith.constant 0 : index
    %34 = arith.index_cast %33 : i32 to index
    %c2_28 = arith.constant 2 : index
    %c0_29 = arith.constant 0 : index
    %35 = vector.load %arg2[%c0_27, %34, %c2_28, %c0_29] : memref<1x18x18x128xbf16, #tpu.memory_space<vmem>>, vector<1x16x16x128xbf16>
    %36 = vector.shape_cast %35 : vector<1x16x16x128xbf16> to vector<16x16x128xbf16>
    %37 = tpu.concatenate %4, %8, %12, %16, %20, %24, %28, %32, %36 in 2 : vector<16x16x128xbf16>, vector<16x16x128xbf16>, vector<16x16x128xbf16>, vector<16x16x128xbf16>, vector<16x16x128xbf16>, vector<16x16x128xbf16>, vector<16x16x128xbf16>, vector<16x16x128xbf16>, vector<16x16x128xbf16> -> vector<16x16x1152xbf16>
    %38 = vector.shape_cast %37 : vector<16x16x1152xbf16> to vector<256x1152xbf16>
    %c0_30 = arith.constant 0 : index
    %c0_31 = arith.constant 0 : index
    %c0_32 = arith.constant 0 : index
    %39 = vector.load %arg3[%c0_30, %c0_31, %c0_32] : memref<9x128x128xbf16, #tpu.memory_space<vmem>>, vector<9x128x128xbf16>
    %40 = vector.shape_cast %39 : vector<9x128x128xbf16> to vector<1152x128xbf16>
    %cst = arith.constant dense<0.000000e+00> : vector<256x128xf32>
    %41 = tpu.matmul %38, %40, %cst {dimension_numbers = #tpu.dot_dimension_numbers<[1], [0], [0], [1], [0, 0, 1, 1], [], []>} : vector<256x1152xbf16>, vector<1152x128xbf16>, vector<256x128xf32> -> vector<256x128xf32>
    %c0_33 = arith.constant 0 : index
    %c0_34 = arith.constant 0 : index
    %42 = vector.load %arg4[%c0_33, %c0_34] : memref<1x128xf32, #tpu.memory_space<vmem>>, vector<1x128xf32>
    %43 = vector.broadcast %42 : vector<1x128xf32> to vector<256x128xf32>
    %44 = arith.addf %41, %43 : vector<256x128xf32>
    %45 = arith.negf %44 : vector<256x128xf32>
    %46 = math.exp %45 : vector<256x128xf32>
    %cst_35 = arith.constant 1.000000e+00 : f32
    %47 = vector.broadcast %cst_35 : f32 to vector<256x128xf32>
    %48 = arith.addf %47, %46 : vector<256x128xf32>
    %49 = arith.divf %47, %48 : vector<256x128xf32>
    %50 = arith.mulf %44, %49 : vector<256x128xf32>
    %51 = vector.shape_cast %50 : vector<256x128xf32> to vector<1x16x16x128xf32>
    %52 = arith.truncf %51 : vector<1x16x16x128xf32> to vector<1x16x16x128xbf16>
    %c0_36 = arith.constant 0 : index
    %c0_37 = arith.constant 0 : index
    %c0_38 = arith.constant 0 : index
    %c0_39 = arith.constant 0 : index
    %53 = vector.load %arg5[%c0_36, %c0_37, %c0_38, %c0_39] : memref<1x16x16x128xbf16, #tpu.memory_space<vmem>>, vector<1x16x16x128xbf16>
    tpu.vector_store %arg5[%c0_36, %c0_37, %c0_38, %c0_39], %52 {strides = array<i32>} : memref<1x16x16x128xbf16, #tpu.memory_space<vmem>>, vector<1x16x16x128xbf16>,
    return
  }
  func.func @transform_0(%arg0: i32, %arg1: i32) -> (i32, i32, i32, i32) {
    %c0_i32 = arith.constant 0 : i32
    %c0_i32_0 = arith.constant 0 : i32
    %c0_i32_1 = arith.constant 0 : i32
    %c0_i32_2 = arith.constant 0 : i32
    return %arg0, %c0_i32, %c0_i32_0, %c0_i32_1 : i32, i32, i32, i32
  }
  func.func @transform_1(%arg0: i32, %arg1: i32) -> (i32, i32, i32) {
    %c0_i32 = arith.constant 0 : i32
    %c0_i32_0 = arith.constant 0 : i32
    %c0_i32_1 = arith.constant 0 : i32
    %c0_i32_2 = arith.constant 0 : i32
    return %c0_i32, %c0_i32_0, %c0_i32_1 : i32, i32, i32
  }
  func.func @transform_2(%arg0: i32, %arg1: i32) -> (i32, i32) {
    %c0_i32 = arith.constant 0 : i32
    %c0_i32_0 = arith.constant 0 : i32
    %c0_i32_1 = arith.constant 0 : i32
    return %c0_i32, %c0_i32_0 : i32, i32
  }
  func.func @transform_3(%arg0: i32, %arg1: i32) -> (i32, i32, i32, i32) {
    %c0_i32 = arith.constant 0 : i32
    %c0_i32_0 = arith.constant 0 : i32
    %c0_i32_1 = arith.constant 0 : i32
    return %arg0, %arg1, %c0_i32, %c0_i32_0 : i32, i32, i32, i32
  }
}

module attributes {stable_mosaic.version = 11 : i64} {
  func.func @kernel(%arg0: i32, %arg1: i32, %arg2: memref<1x18x18x128xbf16, #tpu.memory_space<vmem>>, %arg3: memref<9x128x128xbf16, #tpu.memory_space<vmem>>, %arg4: memref<1x128xf32, #tpu.memory_space<vmem>>, %arg5: memref<1x18x18x128xbf16, #tpu.memory_space<vmem>>, %arg6: memref<128x128xbf16, #tpu.memory_space<vmem>>, %arg7: memref<1x128xf32, #tpu.memory_space<vmem>>, %arg8: memref<1x16x16x128xbf16, #tpu.memory_space<vmem>>) attributes {dimension_semantics = [#tpu.dimension_semantics<parallel>, #tpu.dimension_semantics<parallel>], iteration_bounds = array<i64: 2, 1>, scalar_prefetch = 0 : i64, scratch_operands = 0 : i64, tpu.core_type = #tpu.core_type<tc>, window_params = [{transform_indices = @transform_0, window_bounds = array<i64: 1, 18, 18, 128>}, {pipeline_mode = #tpu.pipeline_mode<synchronous>, transform_indices = @transform_1, window_bounds = array<i64: 9, 128, 128>}, {pipeline_mode = #tpu.pipeline_mode<synchronous>, transform_indices = @transform_2, window_bounds = array<i64: 1, 128>}, {transform_indices = @transform_3, window_bounds = array<i64: 1, 18, 18, 128>}, {pipeline_mode = #tpu.pipeline_mode<synchronous>, transform_indices = @transform_4, window_bounds = array<i64: 128, 128>}, {pipeline_mode = #tpu.pipeline_mode<synchronous>, transform_indices = @transform_5, window_bounds = array<i64: 1, 128>}, {transform_indices = @transform_6, window_bounds = array<i64: 1, 16, 16, 128>}]} {
    %c16_i32 = arith.constant 16 : i32
    %0 = arith.muli %arg1, %c16_i32 : i32
    %c0_i32 = arith.constant 0 : i32
    %1 = arith.addi %0, %c0_i32 : i32
    %c0 = arith.constant 0 : index
    %2 = arith.index_cast %1 : i32 to index
    %c0_0 = arith.constant 0 : index
    %c0_1 = arith.constant 0 : index
    %3 = vector.load %arg2[%c0, %2, %c0_0, %c0_1] : memref<1x18x18x128xbf16, #tpu.memory_space<vmem>>, vector<1x16x16x128xbf16>
    %4 = vector.shape_cast %3 : vector<1x16x16x128xbf16> to vector<16x16x128xbf16>
    %c0_i32_2 = arith.constant 0 : i32
    %5 = arith.addi %0, %c0_i32_2 : i32
    %c0_3 = arith.constant 0 : index
    %6 = arith.index_cast %5 : i32 to index
    %c1 = arith.constant 1 : index
    %c0_4 = arith.constant 0 : index
    %7 = vector.load %arg2[%c0_3, %6, %c1, %c0_4] : memref<1x18x18x128xbf16, #tpu.memory_space<vmem>>, vector<1x16x16x128xbf16>
    %8 = vector.shape_cast %7 : vector<1x16x16x128xbf16> to vector<16x16x128xbf16>
    %c0_i32_5 = arith.constant 0 : i32
    %9 = arith.addi %0, %c0_i32_5 : i32
    %c0_6 = arith.constant 0 : index
    %10 = arith.index_cast %9 : i32 to index
    %c2 = arith.constant 2 : index
    %c0_7 = arith.constant 0 : index
    %11 = vector.load %arg2[%c0_6, %10, %c2, %c0_7] : memref<1x18x18x128xbf16, #tpu.memory_space<vmem>>, vector<1x16x16x128xbf16>
    %12 = vector.shape_cast %11 : vector<1x16x16x128xbf16> to vector<16x16x128xbf16>
    %c1_i32 = arith.constant 1 : i32
    %13 = arith.addi %0, %c1_i32 : i32
    %c0_8 = arith.constant 0 : index
    %14 = arith.index_cast %13 : i32 to index
    %c0_9 = arith.constant 0 : index
    %c0_10 = arith.constant 0 : index
    %15 = vector.load %arg2[%c0_8, %14, %c0_9, %c0_10] : memref<1x18x18x128xbf16, #tpu.memory_space<vmem>>, vector<1x16x16x128xbf16>
    %16 = vector.shape_cast %15 : vector<1x16x16x128xbf16> to vector<16x16x128xbf16>
    %c1_i32_11 = arith.constant 1 : i32
    %17 = arith.addi %0, %c1_i32_11 : i32
    %c0_12 = arith.constant 0 : index
    %18 = arith.index_cast %17 : i32 to index
    %c1_13 = arith.constant 1 : index
    %c0_14 = arith.constant 0 : index
    %19 = vector.load %arg2[%c0_12, %18, %c1_13, %c0_14] : memref<1x18x18x128xbf16, #tpu.memory_space<vmem>>, vector<1x16x16x128xbf16>
    %20 = vector.shape_cast %19 : vector<1x16x16x128xbf16> to vector<16x16x128xbf16>
    %c1_i32_15 = arith.constant 1 : i32
    %21 = arith.addi %0, %c1_i32_15 : i32
    %c0_16 = arith.constant 0 : index
    %22 = arith.index_cast %21 : i32 to index
    %c2_17 = arith.constant 2 : index
    %c0_18 = arith.constant 0 : index
    %23 = vector.load %arg2[%c0_16, %22, %c2_17, %c0_18] : memref<1x18x18x128xbf16, #tpu.memory_space<vmem>>, vector<1x16x16x128xbf16>
    %24 = vector.shape_cast %23 : vector<1x16x16x128xbf16> to vector<16x16x128xbf16>
    %c2_i32 = arith.constant 2 : i32
    %25 = arith.addi %0, %c2_i32 : i32
    %c0_19 = arith.constant 0 : index
    %26 = arith.index_cast %25 : i32 to index
    %c0_20 = arith.constant 0 : index
    %c0_21 = arith.constant 0 : index
    %27 = vector.load %arg2[%c0_19, %26, %c0_20, %c0_21] : memref<1x18x18x128xbf16, #tpu.memory_space<vmem>>, vector<1x16x16x128xbf16>
    %28 = vector.shape_cast %27 : vector<1x16x16x128xbf16> to vector<16x16x128xbf16>
    %c2_i32_22 = arith.constant 2 : i32
    %29 = arith.addi %0, %c2_i32_22 : i32
    %c0_23 = arith.constant 0 : index
    %30 = arith.index_cast %29 : i32 to index
    %c1_24 = arith.constant 1 : index
    %c0_25 = arith.constant 0 : index
    %31 = vector.load %arg2[%c0_23, %30, %c1_24, %c0_25] : memref<1x18x18x128xbf16, #tpu.memory_space<vmem>>, vector<1x16x16x128xbf16>
    %32 = vector.shape_cast %31 : vector<1x16x16x128xbf16> to vector<16x16x128xbf16>
    %c2_i32_26 = arith.constant 2 : i32
    %33 = arith.addi %0, %c2_i32_26 : i32
    %c0_27 = arith.constant 0 : index
    %34 = arith.index_cast %33 : i32 to index
    %c2_28 = arith.constant 2 : index
    %c0_29 = arith.constant 0 : index
    %35 = vector.load %arg2[%c0_27, %34, %c2_28, %c0_29] : memref<1x18x18x128xbf16, #tpu.memory_space<vmem>>, vector<1x16x16x128xbf16>
    %36 = vector.shape_cast %35 : vector<1x16x16x128xbf16> to vector<16x16x128xbf16>
    %37 = tpu.concatenate %4, %8, %12, %16, %20, %24, %28, %32, %36 in 2 : vector<16x16x128xbf16>, vector<16x16x128xbf16>, vector<16x16x128xbf16>, vector<16x16x128xbf16>, vector<16x16x128xbf16>, vector<16x16x128xbf16>, vector<16x16x128xbf16>, vector<16x16x128xbf16>, vector<16x16x128xbf16> -> vector<16x16x1152xbf16>
    %38 = vector.shape_cast %37 : vector<16x16x1152xbf16> to vector<256x1152xbf16>
    %c0_30 = arith.constant 0 : index
    %c0_31 = arith.constant 0 : index
    %c0_32 = arith.constant 0 : index
    %39 = vector.load %arg3[%c0_30, %c0_31, %c0_32] : memref<9x128x128xbf16, #tpu.memory_space<vmem>>, vector<9x128x128xbf16>
    %40 = vector.shape_cast %39 : vector<9x128x128xbf16> to vector<1152x128xbf16>
    %cst = arith.constant dense<0.000000e+00> : vector<256x128xf32>
    %41 = tpu.matmul %38, %40, %cst {dimension_numbers = #tpu.dot_dimension_numbers<[1], [0], [0], [1], [0, 0, 1, 1], [], []>} : vector<256x1152xbf16>, vector<1152x128xbf16>, vector<256x128xf32> -> vector<256x128xf32>
    %c0_33 = arith.constant 0 : index
    %c0_34 = arith.constant 0 : index
    %42 = vector.load %arg4[%c0_33, %c0_34] : memref<1x128xf32, #tpu.memory_space<vmem>>, vector<1x128xf32>
    %43 = vector.broadcast %42 : vector<1x128xf32> to vector<256x128xf32>
    %44 = arith.addf %41, %43 : vector<256x128xf32>
    %45 = arith.negf %44 : vector<256x128xf32>
    %46 = math.exp %45 : vector<256x128xf32>
    %cst_35 = arith.constant 1.000000e+00 : f32
    %47 = vector.broadcast %cst_35 : f32 to vector<256x128xf32>
    %48 = arith.addf %47, %46 : vector<256x128xf32>
    %49 = arith.divf %47, %48 : vector<256x128xf32>
    %50 = arith.mulf %44, %49 : vector<256x128xf32>
    %c1_i32_36 = arith.constant 1 : i32
    %51 = arith.addi %0, %c1_i32_36 : i32
    %c0_37 = arith.constant 0 : index
    %52 = arith.index_cast %51 : i32 to index
    %c1_38 = arith.constant 1 : index
    %c0_39 = arith.constant 0 : index
    %53 = vector.load %arg5[%c0_37, %52, %c1_38, %c0_39] : memref<1x18x18x128xbf16, #tpu.memory_space<vmem>>, vector<1x16x16x128xbf16>
    %54 = vector.shape_cast %53 : vector<1x16x16x128xbf16> to vector<16x16x128xbf16>
    %55 = vector.shape_cast %54 : vector<16x16x128xbf16> to vector<256x128xbf16>
    %c0_40 = arith.constant 0 : index
    %c0_41 = arith.constant 0 : index
    %56 = vector.load %arg6[%c0_40, %c0_41] : memref<128x128xbf16, #tpu.memory_space<vmem>>, vector<128x128xbf16>
    %cst_42 = arith.constant dense<0.000000e+00> : vector<256x128xf32>
    %57 = tpu.matmul %55, %56, %cst_42 {dimension_numbers = #tpu.dot_dimension_numbers<[1], [0], [0], [1], [0, 0, 1, 1], [], []>} : vector<256x128xbf16>, vector<128x128xbf16>, vector<256x128xf32> -> vector<256x128xf32>
    %58 = arith.addf %50, %57 : vector<256x128xf32>
    %c0_43 = arith.constant 0 : index
    %c0_44 = arith.constant 0 : index
    %59 = vector.load %arg7[%c0_43, %c0_44] : memref<1x128xf32, #tpu.memory_space<vmem>>, vector<1x128xf32>
    %60 = vector.broadcast %59 : vector<1x128xf32> to vector<256x128xf32>
    %61 = arith.addf %58, %60 : vector<256x128xf32>
    %62 = vector.shape_cast %61 : vector<256x128xf32> to vector<1x16x16x128xf32>
    %63 = arith.truncf %62 : vector<1x16x16x128xf32> to vector<1x16x16x128xbf16>
    %c0_45 = arith.constant 0 : index
    %c0_46 = arith.constant 0 : index
    %c0_47 = arith.constant 0 : index
    %c0_48 = arith.constant 0 : index
    %64 = vector.load %arg8[%c0_45, %c0_46, %c0_47, %c0_48] : memref<1x16x16x128xbf16, #tpu.memory_space<vmem>>, vector<1x16x16x128xbf16>
    tpu.vector_store %arg8[%c0_45, %c0_46, %c0_47, %c0_48], %63 {strides = array<i32>} : memref<1x16x16x128xbf16, #tpu.memory_space<vmem>>, vector<1x16x16x128xbf16>,
    return
  }
  func.func @transform_0(%arg0: i32, %arg1: i32) -> (i32, i32, i32, i32) {
    %c0_i32 = arith.constant 0 : i32
    %c0_i32_0 = arith.constant 0 : i32
    %c0_i32_1 = arith.constant 0 : i32
    %c0_i32_2 = arith.constant 0 : i32
    return %arg0, %c0_i32, %c0_i32_0, %c0_i32_1 : i32, i32, i32, i32
  }
  func.func @transform_1(%arg0: i32, %arg1: i32) -> (i32, i32, i32) {
    %c0_i32 = arith.constant 0 : i32
    %c0_i32_0 = arith.constant 0 : i32
    %c0_i32_1 = arith.constant 0 : i32
    %c0_i32_2 = arith.constant 0 : i32
    return %c0_i32, %c0_i32_0, %c0_i32_1 : i32, i32, i32
  }
  func.func @transform_2(%arg0: i32, %arg1: i32) -> (i32, i32) {
    %c0_i32 = arith.constant 0 : i32
    %c0_i32_0 = arith.constant 0 : i32
    %c0_i32_1 = arith.constant 0 : i32
    return %c0_i32, %c0_i32_0 : i32, i32
  }
  func.func @transform_3(%arg0: i32, %arg1: i32) -> (i32, i32, i32, i32) {
    %c0_i32 = arith.constant 0 : i32
    %c0_i32_0 = arith.constant 0 : i32
    %c0_i32_1 = arith.constant 0 : i32
    %c0_i32_2 = arith.constant 0 : i32
    return %arg0, %c0_i32, %c0_i32_0, %c0_i32_1 : i32, i32, i32, i32
  }
  func.func @transform_4(%arg0: i32, %arg1: i32) -> (i32, i32) {
    %c0_i32 = arith.constant 0 : i32
    %c0_i32_0 = arith.constant 0 : i32
    %c0_i32_1 = arith.constant 0 : i32
    return %c0_i32, %c0_i32_0 : i32, i32
  }
  func.func @transform_5(%arg0: i32, %arg1: i32) -> (i32, i32) {
    %c0_i32 = arith.constant 0 : i32
    %c0_i32_0 = arith.constant 0 : i32
    %c0_i32_1 = arith.constant 0 : i32
    return %c0_i32, %c0_i32_0 : i32, i32
  }
  func.func @transform_6(%arg0: i32, %arg1: i32) -> (i32, i32, i32, i32) {
    %c0_i32 = arith.constant 0 : i32
    %c0_i32_0 = arith.constant 0 : i32
    %c0_i32_1 = arith.constant 0 : i32
    return %arg0, %arg1, %c0_i32, %c0_i32_0 : i32, i32, i32, i32
  }
}

</mosaic_0001>

<bundles_post_ra>
// kernel: resnet_block_forward.2
= control target key start
LH: loop header
LB: loop body
LE: loop exit
PB: predicated region body
PF: predicated region fallthrough
CT: control target
= control target key end

     0   :  { %s5168_s12 = smov 0   ;;  %s5170_s13 = smov 0   ;;  %s6742_s0 = inlined_call_operand.vmem [shape: bf16[2,18,18,128], index: 0, kind: input, shape index: {}]   ;;  %s6743_s1 = inlined_call_operand.vmem [shape: bf16[9,128,128], index: 1, kind: input, shape index: {}]   ;;  %s6744_s2 = inlined_call_operand.vmem [shape: f32[1,128], index: 2, kind: input, shape index: {}]   ;;  %s6745_s3 = inlined_call_operand.vmem [shape: bf16[2,16,16,128], index: 3, kind: output, shape index: {}]  }
   0x1   :  { %s5172_s14 = smov 0  }
   0x2 LB: > { %s25_s15 = sadd.s32 1, %s5142_s13  ;;  %p3668_p0 = scmp.ge.s32.totalorder %s5146_s14, 1  ;;  %s5146_s14 = sphi %s5172_s14, %s13_s14   ;;  %s5142_s13 = sphi %s5170_s13, %s6747_s13   ;;  %s5138_s12 = sphi %s5168_s12, %s6746_s12  }
   0x3   : > { %p27_p1 = scmp.ge.s32.totalorder %s25_s15, 2  ;;  %p151_p2 = scmp.lt.s32.totalorder %s5146_s14, 3 }
   0x5   : > { %s6749_s15 = smov (%p27_p1, %s25_s15), 0  ;;  %p152_p3 = pnand %p3668_p0, %p151_p2 }
   0x6   : > { %v4772_v0 = vld [vmem:[%s6743_s1 + $0x40] sm:$0xff] (!%p152_p3)   ;;  %p180_p4 = scmp.lt.s32.totalorder (!%p152_p3), %s5138_s12, 1  ;;  %v4774_v2 = vld [vmem:[%s6743_s1 + $0x48] sm:$0xff] (!%p152_p3)   ;;  %v4776_v4 = vld [vmem:[%s6743_s1 + $0x50] sm:$0xff] (!%p152_p3)   ;;  %vm545_vm0 = vsmask.f32 (!%p152_p3), 7424 }
   0x7   : > { %155 = sbr.rel (%p152_p3) target bundleno = 574 (0x23e), region = 32  ;;  %v4773_v1 = vld [vmem:[%s6743_s1] sm:$0xff] (!%p152_p3)   ;;  %4211 = vmatprep.subr.bf16.mxu0 (!%p152_p3), %v4772_v0  ;;  %4731 = vmatprep.subr.bf16.mxu1 (!%p152_p3), %v4772_v0  ;;  %v4775_v3 = vld [vmem:[%s6743_s1 + $0x8] sm:$0xff] (!%p152_p3)   ;;  %v4777_v5 = vld [vmem:[%s6743_s1 + $0x10] sm:$0xff] (!%p152_p3)   ;;  %vm802_vm1 = vcmask (!%p152_p3), 1046528  }
   0x8   : > { %4212 = vmatpush3.bf16.msra.mxu0 (!%p152_p3), %v4773_v1  ;;  %4739 = vmatpush3.bf16.msra.mxu1 (!%p152_p3), %v4773_v1  ;;  %v4778_v6 = vld [vmem:[%s6743_s1 + $0x58] sm:$0xff] (!%p152_p3)   ;;  %v4780_v8 = vld [vmem:[%s6743_s1 + $0x60] sm:$0xff] (!%p152_p3)   ;;  %v4782_v10 = vld [vmem:[%s6743_s1 + $0x68] sm:$0xff] (!%p152_p3)  }
   0x9   : > { %4213 = vmatprep.subr.bf16.mxu0 (!%p152_p3), %v4774_v2  ;;  %4732 = vmatprep.subr.bf16.mxu1 (!%p152_p3), %v4774_v2  ;;  %v4779_v7 = vld [vmem:[%s6743_s1 + $0x18] sm:$0xff] (!%p152_p3)   ;;  %v4781_v9 = vld [vmem:[%s6743_s1 + $0x20] sm:$0xff] (!%p152_p3)   ;;  %v4783_v17 = vld [vmem:[%s6743_s1 + $0x28] sm:$0xff] (!%p152_p3)  }
   0xa   : > { %v4784_v21 = vld [vmem:[%s6743_s1 + $0x70] sm:$0xff] (!%p152_p3)   ;;  %v4786_v31 = vld [vmem:[%s6743_s1 + $0x78] sm:$0xff] (!%p152_p3)   ;;  %v4792_v37 = vld [vmem:[%s6743_s1 + $0xc0] sm:$0xff] (!%p152_p3)  }
   0xb   : > { %v4785_v26 = vld [vmem:[%s6743_s1 + $0x30] sm:$0xff] (!%p152_p3)   ;;  %v4787_v34 = vld [vmem:[%s6743_s1 + $0x38] sm:$0xff] (!%p152_p3)   ;;  %v4795_v40 = vld [vmem:[%s6743_s1 + $0x140] sm:$0xff] (!%p152_p3)  }
   0xc   : > { %4214 = vmatpush3.bf16.msra.mxu0 (!%p152_p3), %v4775_v3  ;;  %4740 = vmatpush3.bf16.msra.mxu1 (!%p152_p3), %v4775_v3  ;;  %v4793_v46 = vld [vmem:[%s6743_s1 + $0x80] sm:$0xff] (!%p152_p3)   ;;  %v4794_v57 = vld [vmem:[%s6743_s1 + $0xc8] sm:$0xff] (!%p152_p3)   ;;  %v4802_v3 = vld [vmem:[%s6743_s1 + $0xd0] sm:$0xff] (!%p152_p3)  }
   0xd   : > { %4215 = vmatprep.subr.bf16.mxu0 (!%p152_p3), %v4776_v4  ;;  %4733 = vmatprep.subr.bf16.mxu1 (!%p152_p3), %v4776_v4  ;;  %v4797_v47 = vld [vmem:[%s6743_s1 + $0x100] sm:$0xff] (!%p152_p3)   ;;  %v4796_v61 = vld [vmem:[%s6743_s1 + $0x88] sm:$0xff] (!%p152_p3)  }
   0xe   : > { %s6751_s12 = smov (!%p180_p4, %s5138_s12), 1 }
   0xf   : > { %s4747_s30 = smul.u32 216, %s6751_s12 }
  0x10   : > { %4216 = vmatpush3.bf16.msra.mxu0 %v4777_v5  ;;  %4741 = vmatpush3.bf16.msra.mxu1 %v4777_v5 }
  0x11   : > { %4217 = vmatprep.subr.bf16.mxu0 %v4778_v6  ;;  %4734 = vmatprep.subr.bf16.mxu1 %v4778_v6  ;;  %s5219_s10 = scalar_lea.vmem %s6742_s0, %s4747_s30 }
  0x12   : > { %v201_v11 = vld [vmem:[%s5219_s10] sm:$0xf]  ;;  %v5229_v12 = vld [vmem:[%s5219_s10 + $0x4] sm:$0xf]  ;;  %v225_v15 = vld [vmem:[%s5219_s10 + $0x90] sm:$0xf] }
  0x13   : > { %v5232_v13 = vcombine.low %v201_v11, %v5229_v12  ;;  %v5235_v14 = vld [vmem:[%s5219_s10 + $0x8] ss:$0 sps:$4 sm:$0x11]   ;;  %v226_v16 = vld [vmem:[%s5219_s10 + $0x94] sm:$0xf] }
  0x14   : > { %4218 = vmatpush3.bf16.msra.mxu0 %v4779_v7  ;;  %4742 = vmatpush3.bf16.msra.mxu1 %v4779_v7  ;;  %v554_v20 = vshll.u32 %v5235_v14, 16  ;;  %v3812_v22 = vcombine.low %v225_v15, %v226_v16  ;;  %v4791_v23 = vld [vmem:[%s5219_s10 + $0x98] ss:$0 sps:$4 sm:$0x11]   ;;  %v203_v38 = vld [vmem:[%s5219_s10 + $0xc] sm:$0xf] }
  0x15   : > { %4219 = vmatprep.subr.bf16.mxu0 %v4780_v8  ;;  %4735 = vmatprep.subr.bf16.mxu1 %v4780_v8  ;;  %v547_v18 = vshrl.u32 %v5232_v13, 16  ;;  %v549_v19 = vshll.u32 %v5232_v13, 16  ;;  %v698_v29 = vshll.u32 %v4791_v23, 16  ;;  %v5264_v39 = vld [vmem:[%s5219_s10 + $0x10] sm:$0xf]  ;;  %v4804_v16 = vld [vmem:[%s6743_s1 + $0xd8] sm:$0xff]  }
  0x16   : > { %v556_v25 = vrot.slane %v554_v20, 1  ;;  %v691_v27 = vshrl.u32 %v3812_v22, 16  ;;  %v693_v28 = vshll.u32 %v3812_v22, 16  ;;  %v5270_v41 = vcombine.low %v203_v38, %v5264_v39  ;;  %v5273_v42 = vld [vmem:[%s5219_s10 + $0x14] ss:$0 sps:$4 sm:$0x11]  }
  0x17   : > { %v551_v24 = vrot.slane %v549_v19, 1  ;;  %v700_v33 = vrot.slane %v698_v29, 1  ;;  %v227_v44 = vld [vmem:[%s5219_s10 + $0x9c] sm:$0xf]  ;;  %v228_v45 = vld [vmem:[%s5219_s10 + $0xa0] sm:$0xf] }
  0x18   : > { %4220 = vmatpush3.bf16.msra.mxu0 %v4781_v9  ;;  %4743 = vmatpush3.bf16.msra.mxu1 %v4781_v9  ;;  %v695_v32 = vrot.slane %v693_v28, 1  ;;  %v559_v48 = vshrl.u32 %v5270_v41, 16  ;;  %v561_v49 = vshll.u32 %v5270_v41, 16  ;;  %v566_v50 = vshll.u32 %v5273_v42, 16  ;;  %v205_v63 = vld [vmem:[%s5219_s10 + $0x18] sm:$0xf] }
  0x19   : > { %4221 = vmatprep.subr.bf16.mxu0 %v4782_v10  ;;  %4736 = vmatprep.subr.bf16.mxu1 %v4782_v10  ;;  %v552_v30 = vor.u32 %v551_v24, %v547_v18  ;;  %v3813_v51 = vcombine.low %v227_v44, %v228_v45  ;;  %v4801_v52 = vld [vmem:[%s5219_s10 + $0xa4] ss:$0 sps:$4 sm:$0x11]   ;;  %v5297_v0 = vld [vmem:[%s5219_s10 + $0x1c] sm:$0xf]  ;;  %v4803_v9 = vld [vmem:[%s6743_s1 + $0x90] sm:$0xff]  }
  0x1a   : > { %v696_v36 = vor.u32 %v695_v32, %v691_v27  ;;  %v563_v53 = vrot.slane %v561_v49, 1  ;;  %v568_v54 = vrot.slane %v566_v50, 1  ;;  %v710_v58 = vshll.u32 %v4801_v52, 16  ;;  %v5305_v5 = vld [vmem:[%s5219_s10 + $0x20] ss:$0 sps:$4 sm:$0x11]  }
  0x1b   : > { %v557_v35 = vsel %vm545_vm0, %v552_v30, %v556_v25  ;;  %v703_v55 = vshrl.u32 %v3813_v51, 16  ;;  %v705_v56 = vshll.u32 %v3813_v51, 16  ;;  %v3802_v4 = vcombine.low %v205_v63, %v5297_v0  ;;  %v229_v6 = vld [vmem:[%s5219_s10 + $0xa8] sm:$0xf]  ;;  %v230_v7 = vld [vmem:[%s5219_s10 + $0xac] sm:$0xf] }
  0x1c   : > { %4222 = vmatpush3.bf16.msra.mxu0 %v4783_v17  ;;  %4744 = vmatpush3.bf16.msra.mxu1 %v4783_v17  ;;  %v701_v43 = vsel %vm545_vm0, %v696_v36, %v700_v33  ;;  %v564_v59 = vor.u32 %v563_v53, %v559_v48  ;;  %v712_v62 = vrot.slane %v710_v58, 1  ;;  %v4809_v15 = vld [vmem:[%s5219_s10 + $0xb0] ss:$0 sps:$4 sm:$0x11]   ;;  %v3814_v17 = vcombine.low %v229_v6, %v230_v7  ;;  %v4813_v27 = vld [vmem:[%s6743_s1 + $0x108] sm:$0xff]   ;;  %v4805_v28 = vld [vmem:[%s6743_s1 + $0x98] sm:$0xff]  }
  0x1d   : > { %4223 = vmatprep.subr.bf16.mxu0 %v4784_v21  ;;  %4737 = vmatprep.subr.bf16.mxu1 %v4784_v21  ;;  %v707_v60 = vrot.slane %v705_v56, 1  ;;  %v571_v10 = vshrl.u32 %v3802_v4, 16  ;;  %v573_v11 = vshll.u32 %v3802_v4, 16  ;;  %v722_v20 = vshll.u32 %v4809_v15, 16  ;;  %v4811_v21 = vld [vmem:[%s6743_s1 + $0x148] sm:$0xff]   ;;  %v4820_v56 = vld [vmem:[%s6743_s1 + $0xf0] sm:$0xff]  }
  0x1e   : > { %2410 = vmatprep.mubr.bf16.mxu0 %v557_v35  ;;  %2506 = vmatprep.mubr.bf16.mxu1 %v701_v43  ;;  %v569_v1 = vsel %vm545_vm0, %v564_v59, %v568_v54  ;;  %v717_v23 = vshll.u32 %v3814_v17, 16  ;;  %v207_v32 = vld [vmem:[%s5219_s10 + $0x24] sm:$0xf]  ;;  %v5334_v33 = vld [vmem:[%s5219_s10 + $0x28] sm:$0xf]  ;;  %v4823_v58 = vld [vmem:[%s6743_s1 + $0x150] sm:$0xff]  }
  0x1f   : > { %v708_v2 = vor.u32 %v707_v60, %v703_v55  ;;  %v575_v18 = vrot.slane %v573_v11, 1  ;;  %v724_v25 = vrot.slane %v722_v20, 1  ;;  %v3803_v35 = vcombine.low %v207_v32, %v5334_v33  ;;  %v5341_v36 = vld [vmem:[%s5219_s10 + $0x2c] ss:$0 sps:$4 sm:$0x11]   ;;  %v4822_v7 = vld [vmem:[%s6743_s1 + $0xf8] sm:$0xff]  }
  0x20   : > { %4224 = vmatpush3.bf16.msra.mxu0 %v4785_v26  ;;  %4745 = vmatpush3.bf16.msra.mxu1 %v4785_v26  ;;  %v719_v26 = vrot.slane %v717_v23, 1  ;;  %v4814_v38 = vld [vmem:[%s6743_s1 + $0xe8] sm:$0xff]   ;;  %v590_v45 = vshll.u32 %v5341_v36, 16  ;;  %v5366_v63 = vld [vmem:[%s5219_s10 + $0x34] sm:$0xf]  ;;  %v804_v6 = vrot.slane %v5235_v14, 1 }
  0x21   : > { %4225 = vmatprep.subr.bf16.mxu0 %v4786_v31  ;;  %4738 = vmatprep.subr.bf16.mxu1 %v4786_v31  ;;  %v713_v8 = vsel %vm545_vm0, %v708_v2, %v712_v62  ;;  %v576_v24 = vor.u32 %v575_v18, %v571_v10  ;;  %v4810_v31 = vld [vmem:[%s6743_s1 + $0xe0] sm:$0xff]   ;;  %v583_v43 = vshrl.u32 %v3803_v35, 16  ;;  %v585_v44 = vshll.u32 %v3803_v35, 16  ;;  %v4815_v52 = vld [vmem:[%s6743_s1 + $0xa8] sm:$0xff]   ;;  %v209_v62 = vld [vmem:[%s5219_s10 + $0x30] sm:$0xf] }
  0x22   : > { %v592_v49 = vrot.slane %v590_v45, 1  ;;  %v4821_v2 = vld [vmem:[%s6743_s1 + $0xb0] sm:$0xff]   ;;  %v249_v14 = vld [vmem:[%s5219_s10] sm:$0xe]  ;;  %v4838_v23 = vld [vmem:[%s6743_s1 + $0x158] sm:$0xff]  }
  0x23   : > { %v587_v48 = vrot.slane %v585_v44, 1  ;;  %v4831_v20 = vld [vmem:[%s6743_s1 + $0x1c0] sm:$0xff]   ;;  %v213_v45 = vld [vmem:[%s5219_s10 + $0x48] sm:$0xf] }
  0x24   : > { %4226 = vmatpush3.bf16.msra.mxu0 %v4787_v34  ;;  %4746 = vmatpush3.bf16.msra.mxu1 %v4787_v34  ;;  %v4812_v34 = vld [vmem:[%s6743_s1 + $0xa0] sm:$0xff]  }
  0x25   : > { %4323 = vmatprep.subr.bf16.mxu1 %v4792_v37  ;;  %4435 = vmatprep.subr.bf16.mxu0 %v4795_v40  ;;  %v231_v40 = vld [vmem:[%s5219_s10 + $0xb4] sm:$0xf]  ;;  %v588_v54 = vor.u32 %v587_v48, %v583_v43  ;;  %v5429_v48 = vld [vmem:[%s5219_s10 + $0x4c] sm:$0xf] }
  0x27   : > { %2411 = vmatmul.mubr.bf16.vlgmr.msra.gmra.mrb[0].mxu0 %v5232_v13  ;;  %2507 = vmatmul.mubr.bf16.vlgmr.msra.gmra.mrb[0].mxu1 %v3812_v22  ;;  %v578_v13 = vshll.u32 %v5305_v5, 16  ;;  %v715_v22 = vshrl.u32 %v3814_v17, 16  ;;  %v593_v59 = vsel %vm545_vm0, %v588_v54, %v592_v49  ;;  %v251_v54 = vld [vmem:[%s5219_s10 + $0x18] sm:$0xe] }
  0x28   : > { %4324 = vmatpush3.bf16.msra.mxu1 %v4793_v46  ;;  %4436 = vmatpush3.bf16.msra.mxu0 %v4797_v47  ;;  %v4819_v47 = vld [vmem:[%s5219_s10 + $0xbc] ss:$0 sps:$4 sm:$0x11]  }
  0x29   : > { %4325 = vmatprep.subr.bf16.mxu1 %v4794_v57  ;;  %2418 = vmatprep.mubr.bf16.mxu0 %v569_v1  ;;  %v580_v19 = vrot.slane %v578_v13, 1  ;;  %v720_v30 = vor.u32 %v719_v26, %v715_v22  ;;  %v734_v53 = vshll.u32 %v4819_v47, 16  ;;  %v211_v22 = vld [vmem:[%s5219_s10 + $0x3c] sm:$0xf]  ;;  %v807_v47 = vrot.slane %v5273_v42, 1 }
  0x2a   : > { %2514 = vmatprep.mubr.bf16.mxu1 %v713_v8  ;;  %4437 = vmatprep.subr.bf16.mxu0 %v4811_v21  ;;  %v3672_v8 = vld [vmem:[%s5219_s10 + $0xc] sm:$0xf]  ;;  %v5406_v26 = vld [vmem:[%s5219_s10 + $0x44] ss:$0 sps:$4 sm:$0x11]  }
  0x2b   : > { %v581_v29 = vsel %vm545_vm0, %v576_v24, %v580_v19  ;;  %v725_v37 = vsel %vm545_vm0, %v720_v30, %v724_v25  ;;  %v736_v57 = vrot.slane %v734_v53, 1  ;;  %v5414_v30 = vld [vmem:[%s5219_s10 + $0x1c] sm:$0xf]  ;;  %v5441_v53 = vld [vmem:[%s5219_s10 + $0x28] sm:$0xf] }
  0x2c   : > { %4326 = vmatpush3.bf16.msra.mxu1 %v4796_v61  ;;  %4438 = vmatpush3.bf16.msra.mxu0 %v4813_v27  ;;  %v4825_v61 = vld [vmem:[%s6743_s1 + $0x110] sm:$0xff]  }
  0x2d   : > { %4327 = vmatprep.subr.bf16.mxu1 %v4802_v3  ;;  %4439 = vmatprep.subr.bf16.mxu0 %v4823_v58  ;;  %v3804_v3 = vcombine.low %v209_v62, %v5366_v63  ;;  %v4846_v58 = vld [vmem:[%s6743_s1 + $0x188] sm:$0xff]  }
  0x2f   : > { %2419 = vmatmul.mubr.bf16.gmra.mrb[4].mxu0 %v5270_v41  ;;  %2515 = vmatmul.mubr.bf16.gmra.mrb[4].mxu1 %v3813_v51  ;;  %v232_v41 = vld [vmem:[%s5219_s10 + $0xb8] sm:$0xf]  ;;  %v595_v10 = vshrl.u32 %v3804_v3, 16  ;;  %v597_v11 = vshll.u32 %v3804_v3, 16 }
  0x30   : > { %4328 = vmatpush3.bf16.msra.mxu1 %v4803_v9  ;;  %2426 = vmatprep.mubr.bf16.mxu0 %v581_v29  ;;  %v3815_v46 = vcombine.low %v231_v40, %v232_v41  ;;  %v5382_v9 = vld [vmem:[%s5219_s10 + $0x10] sm:$0xf]  ;;  %v3674_v29 = vld [vmem:[%s5219_s10 + $0x18] sm:$0xf] }
  0x31   : > { %4329 = vmatprep.subr.bf16.mxu1 %v4804_v16  ;;  %2522 = vmatprep.mubr.bf16.mxu1 %v725_v37  ;;  %v5386_v15 = vcombine.low %v3672_v8, %v5382_v9  ;;  %v3832_v16 = vcombine.low %v249_v14, %v5229_v12  ;;  %v599_v18 = vrot.slane %v597_v11, 1  ;;  %v5399_v12 = vld [vmem:[%s5219_s10 + $0x40] sm:$0xf]  ;;  %v250_v37 = vld [vmem:[%s5219_s10 + $0xc] sm:$0xe]  ;;  %v5423_v40 = vcombine.low %v3674_v29, %v5414_v30 }
  0x32   : > { %v727_v50 = vshrl.u32 %v3815_v46, 16  ;;  %v729_v51 = vshll.u32 %v3815_v46, 16  ;;  %4440 = vmatpush3.bf16.msra.mxu0 %v4825_v61  ;;  %v3805_v25 = vcombine.low %v211_v22, %v5399_v12  ;;  %v3833_v41 = vcombine.low %v250_v37, %v5264_v39  ;;  %v5462_v8 = vld [vmem:[%s5219_s10 + $0x58] sm:$0xf]  ;;  %v4859_v22 = vld [vmem:[%s6743_s1 + $0x168] sm:$0xff]  }
  0x33   : > { %v803_v21 = vrot.slane %v3832_v16, 1  ;;  %v600_v24 = vor.u32 %v599_v18, %v595_v10  ;;  %4441 = vmatprep.subr.bf16.mxu0 %v4838_v23  ;;  %v3806_v39 = vcombine.low %v213_v45, %v5429_v48  ;;  %v5466_v10 = vld [vmem:[%s5219_s10 + $0x5c] ss:$0 sps:$4 sm:$0x11]   ;;  %v810_v14 = vrot.slane %v5305_v5, 1 }
  0x34   : > { %4330 = vmatpush3.bf16.msra.mxu1 %v4805_v28  ;;  %v731_v55 = vrot.slane %v729_v51, 1  ;;  %v4832_v28 = vld [vmem:[%s6743_s1 + $0x180] sm:$0xff]   ;;  %v607_v32 = vshrl.u32 %v3805_v25, 16  ;;  %v4845_v51 = vld [vmem:[%s6743_s1 + $0x1c8] sm:$0xff]   ;;  %v3678_v16 = vld [vmem:[%s5219_s10 + $0x30] sm:$0xf] }
  0x35   : > { %4331 = vmatprep.subr.bf16.mxu1 %v4810_v31  ;;  %v805_v27 = vsel %vm802_vm1, %v803_v21, %v804_v6  ;;  %v252_v21 = vld [vmem:[%s5219_s10 + $0x24] sm:$0xe]  ;;  %v217_v23 = vld [vmem:[%s5219_s10 + $0x60] sm:$0xf] }
  0x36   : > { %v732_v60 = vor.u32 %v731_v55, %v727_v50  ;;  %v5434_v50 = vld [vmem:[%s5219_s10 + $0x50] ss:$0 sps:$4 sm:$0x11]   ;;  %v619_v55 = vshrl.u32 %v3806_v39, 16 }
  0x37   : > { %2427 = vmatmul.mubr.bf16.gmra.mrb[8].mxu0 %v3802_v4  ;;  %2523 = vmatmul.mubr.bf16.gmra.mrb[8].mxu1 %v3814_v17  ;;  %v5374_v4 = vld [vmem:[%s5219_s10 + $0x38] ss:$0 sps:$4 sm:$0x11]  }
  0x38   : > { %4332 = vmatpush3.bf16.msra.mxu1 %v4812_v34  ;;  %2434 = vmatprep.mubr.bf16.mxu0 %v593_v59  ;;  %v737_v1 = vsel %vm545_vm0, %v732_v60, %v736_v57  ;;  %v602_v13 = vshll.u32 %v5374_v4, 16  ;;  %v4824_v17 = vld [vmem:[%s6743_s1 + $0xb8] sm:$0xff]   ;;  %v609_v34 = vshll.u32 %v3805_v25, 16  ;;  %v626_v57 = vshll.u32 %v5434_v50, 16 }
  0x39   : > { %4333 = vmatprep.subr.bf16.mxu1 %v4814_v38  ;;  %2530 = vmatprep.mubr.bf16.mxu1 %v737_v1  ;;  %v4839_v38 = vld [vmem:[%s6743_s1 + $0x118] sm:$0xff]   ;;  %v3834_v1 = vcombine.low %v251_v54, %v5297_v0 }
  0x3a   : > { %v604_v19 = vrot.slane %v602_v13, 1  ;;  %v611_v43 = vrot.slane %v609_v34, 1  ;;  %4442 = vmatpush3.bf16.msra.mxu0 %v4839_v38  ;;  %v628_v61 = vrot.slane %v626_v57, 1  ;;  %v4860_v34 = vld [vmem:[%s6743_s1 + $0x1d0] sm:$0xff]  }
  0x3b   : > { %v809_v13 = vrot.slane %v3834_v1, 1  ;;  %v4868_v57 = vld [vmem:[%s6743_s1 + $0x170] sm:$0xff]  }
  0x3c   : > { %4334 = vmatpush3.bf16.msra.mxu1 %v4815_v52  ;;  %v605_v31 = vsel %vm545_vm0, %v600_v24, %v604_v19  ;;  %v612_v49 = vor.u32 %v611_v43, %v607_v32  ;;  %v3676_v52 = vld [vmem:[%s5219_s10 + $0x24] sm:$0xf]  ;;  %v3835_v32 = vcombine.low %v252_v21, %v5334_v33  ;;  %v4861_v43 = vld [vmem:[%s6743_s1 + $0x128] sm:$0xff]  }
  0x3d   : > { %4335 = vmatprep.subr.bf16.mxu1 %v4820_v56  ;;  %v621_v56 = vshll.u32 %v3806_v39, 16  ;;  %v5451_v62 = vcombine.low %v3676_v52, %v5441_v53  ;;  %v5482_v24 = vld [vmem:[%s5219_s10 + $0x64] sm:$0xf]  ;;  %v811_v29 = vsel %vm802_vm1, %v809_v13, %v810_v14  ;;  %v5543_v13 = vld [vmem:[%s5219_s10 + $0x4c] sm:$0xf] }
  0x3e   : > { %v254_v14 = vld [vmem:[%s5219_s10 + $0x3c] sm:$0xe] }
  0x3f   : > { %2435 = vmatmul.mubr.bf16.gmra.mrb[12].mxu0 %v3803_v35  ;;  %2531 = vmatmul.mubr.bf16.gmra.mrb[12].mxu1 %v3815_v46  ;;  %v614_v35 = vshll.u32 %v5406_v26, 16  ;;  %v806_v46 = vrot.slane %v3833_v41, 1  ;;  %v623_v60 = vrot.slane %v621_v56, 1  ;;  %v5523_v56 = vld [vmem:[%s5219_s10 + $0x74] ss:$0 sps:$4 sm:$0x11]  }
  0x40   : > { %4336 = vmatpush3.bf16.msra.mxu1 %v4821_v2  ;;  %2571 = vmatprep.mubr.bf16.mxu1 %v5386_v15  ;;  %v4847_v2 = vld [vmem:[%s6743_s1 + $0x160] sm:$0xff]  }
  0x41   : > { %4337 = vmatprep.subr.bf16.mxu1 %v4822_v7  ;;  %2442 = vmatprep.mubr.bf16.mxu0 %v605_v31  ;;  %v616_v44 = vrot.slane %v614_v35, 1  ;;  %v808_v59 = vsel %vm802_vm1, %v806_v46, %v807_v47  ;;  %v624_v6 = vor.u32 %v623_v60, %v619_v55  ;;  %v215_v7 = vld [vmem:[%s5219_s10 + $0x54] sm:$0xf]  ;;  %v3680_v46 = vld [vmem:[%s5219_s10 + $0x3c] sm:$0xf] }
  0x42   : > { %v3807_v0 = vcombine.low %v215_v7, %v5462_v8  ;;  %4443 = vmatprep.subr.bf16.mxu0 %v4847_v2  ;;  %v5508_v47 = vld [vmem:[%s5219_s10 + $0x40] sm:$0xf]  ;;  %v816_v7 = vrot.slane %v5374_v4, 1 }
  0x43   : > { %v617_v42 = vsel %vm545_vm0, %v612_v49, %v616_v44  ;;  %v629_v11 = vsel %vm545_vm0, %v624_v6, %v628_v61  ;;  %v813_v44 = vrot.slane %v5341_v36, 1  ;;  %v253_v49 = vld [vmem:[%s5219_s10 + $0x30] sm:$0xe] }
  0x44   : > { %4338 = vmatpush3.bf16.msra.mxu1 %v4824_v17  ;;  %v5473_v17 = vld [vmem:[%s5219_s10 + $0x34] sm:$0xf]  ;;  %v631_v18 = vshrl.u32 %v3807_v0, 16  ;;  %v633_v19 = vshll.u32 %v3807_v0, 16  ;;  %v5517_v36 = vld [vmem:[%s5219_s10 + $0x70] sm:$0xf]  ;;  %v3836_v60 = vcombine.low %v253_v49, %v5366_v63 }
  0x45   : > { %4547 = vmatprep.subr.bf16.mxu1 %v4831_v20  ;;  %v638_v20 = vshll.u32 %v5466_v10, 16  ;;  %v5492_v31 = vcombine.low %v3678_v16, %v5473_v17  ;;  %v4869_v6 = vld [vmem:[%s6743_s1 + $0x130] sm:$0xff]   ;;  %v221_v16 = vld [vmem:[%s5219_s10 + $0x78] sm:$0xf] }
  0x46   : > { %v635_v5 = vrot.slane %v633_v19, 1  ;;  %v5549_v19 = vld [vmem:[%s5219_s10 + $0x7c] sm:$0xf]  ;;  %v5586_v49 = vld [vmem:[%s5219_s10 + $0x58] sm:$0xf] }
  0x47   : > { %2443 = vmatmul.mubr.bf16.gmra.mrb[16].mxu0 %v3804_v3  ;;  %2572 = vmatmul.mubr.bf16.vlgmr.msra.gmra.mrb[16].mxu1 %v805_v27  ;;  %v4848_v3 = vld [vmem:[%s6743_s1 + $0x120] sm:$0xff]   ;;  %v5485_v27 = vcombine.low %v217_v23, %v5482_v24  ;;  %v5555_v4 = vcombine.low %v221_v16, %v5549_v19  ;;  %v4876_v23 = vld [vmem:[%s6743_s1 + $0x198] sm:$0xff]  }
  0x48   : > { %4548 = vmatpush3.bf16.msra.mxu1 %v4832_v28  ;;  %2579 = vmatprep.mubr.bf16.mxu1 %v5423_v40  ;;  %v5488_v28 = vld [vmem:[%s5219_s10 + $0x68] ss:$0 sps:$4 sm:$0x11]   ;;  %v636_v35 = vor.u32 %v635_v5, %v631_v18  ;;  %v815_v18 = vrot.slane %v3836_v60, 1  ;;  %v3837_v5 = vcombine.low %v254_v14, %v5399_v12  ;;  %v5621_v16 = vld [vmem:[%s5219_s10 + $0x64] sm:$0xf] }
  0x49   : > { %4549 = vmatprep.subr.bf16.mxu1 %v4845_v51  ;;  %2450 = vmatprep.mubr.bf16.mxu0 %v617_v42  ;;  %v643_v37 = vshrl.u32 %v5485_v27, 16  ;;  %v645_v38 = vshll.u32 %v5485_v27, 16  ;;  %v650_v41 = vshll.u32 %v5488_v28, 16  ;;  %v812_v51 = vrot.slane %v3835_v32, 1  ;;  %v219_v42 = vld [vmem:[%s5219_s10 + $0x6c] sm:$0xf] }
  0x4a   : > { %4444 = vmatpush3.bf16.msra.mxu0 %v4848_v3  ;;  %v5520_v55 = vcombine.low %v219_v42, %v5517_v36  ;;  %v662_v3 = vshll.u32 %v5523_v56, 16  ;;  %v4882_v32 = vld [vmem:[%s6743_s1 + $0x178] sm:$0xff]   ;;  %v667_v12 = vshrl.u32 %v5555_v4, 16 }
  0x4b   : > { %4445 = vmatprep.subr.bf16.mxu0 %v4859_v22  ;;  %v647_v45 = vrot.slane %v645_v38, 1  ;;  %v652_v54 = vrot.slane %v650_v41, 1  ;;  %v5558_v22 = vld [vmem:[%s5219_s10 + $0x80] ss:$0 sps:$4 sm:$0x11]  }
  0x4c   : > { %4550 = vmatpush3.bf16.msra.mxu1 %v4846_v58  ;;  %v814_v58 = vsel %vm802_vm1, %v812_v51, %v813_v44  ;;  %v655_v1 = vshrl.u32 %v5520_v55, 16  ;;  %v657_v2 = vshll.u32 %v5520_v55, 16  ;;  %v664_v21 = vrot.slane %v662_v3, 1  ;;  %v223_v41 = vld [vmem:[%s5219_s10 + $0x84] sm:$0xf] }
  0x4d   : > { %4551 = vmatprep.subr.bf16.mxu1 %v4860_v34  ;;  %v648_v52 = vor.u32 %v647_v45, %v643_v37  ;;  %v817_v34 = vsel %vm802_vm1, %v815_v18, %v816_v7  ;;  %v818_v44 = vrot.slane %v3837_v5, 1  ;;  %v819_v45 = vrot.slane %v5406_v26, 1  ;;  %v4888_v3 = vld [vmem:[%s6743_s1 + $0x1e0] sm:$0xff]   ;;  %v256_v18 = vld [vmem:[%s5219_s10 + $0x54] sm:$0xe] }
  0x4e   : > { %4446 = vmatpush3.bf16.msra.mxu0 %v4861_v43  ;;  %v659_v63 = vrot.slane %v657_v2, 1  ;;  %v5577_v43 = vld [vmem:[%s5219_s10 + $0x88] sm:$0xf]  ;;  %v3686_v7 = vld [vmem:[%s5219_s10 + $0x60] sm:$0xf] }
  0x4f   : > { %2451 = vmatmul.mubr.bf16.gmra.mrb[20].mxu0 %v3805_v25  ;;  %2580 = vmatmul.mubr.bf16.gmra.mrb[20].mxu1 %v808_v59  ;;  %v640_v25 = vrot.slane %v638_v20, 1  ;;  %v5530_v59 = vcombine.low %v3680_v46, %v5508_v47  ;;  %v653_v61 = vsel %vm545_vm0, %v648_v52, %v652_v54  ;;  %v3684_v46 = vld [vmem:[%s5219_s10 + $0x54] sm:$0xf]  ;;  %v5591_v52 = vld [vmem:[%s5219_s10 + $0x8c] ss:$0 sps:$4 sm:$0x11]   ;;  %v820_v26 = vsel %vm802_vm1, %v818_v44, %v819_v45 }
  0x50   : > { %2587 = vmatprep.mubr.bf16.mxu1 %v5451_v62  ;;  %2458 = vmatprep.mubr.bf16.mxu0 %v629_v11  ;;  %v3682_v11 = vld [vmem:[%s5219_s10 + $0x48] sm:$0xf]  ;;  %v660_v20 = vor.u32 %v659_v63, %v655_v1  ;;  %v686_v2 = vshll.u32 %v5591_v52, 16  ;;  %v3721_v45 = vld [vmem:[%s5219_s10 + $0x18] sm:$0xe] }
  0x51   : > { %v641_v33 = vsel %vm545_vm0, %v636_v35, %v640_v25  ;;  %4447 = vmatprep.subr.bf16.mxu0 %v4868_v57  ;;  %v669_v25 = vshll.u32 %v5555_v4, 16  ;;  %v5571_v35 = vcombine.low %v3682_v11, %v5543_v13  ;;  %v5599_v57 = vcombine.low %v3684_v46, %v5586_v49  ;;  %v5618_v11 = vld [vmem:[%s6743_s1 + $0x200] sm:$0xff]  }
  0x52   : > { %4448 = vmatpush3.bf16.msra.mxu0 %v4869_v6  ;;  %v665_v37 = vsel %vm545_vm0, %v660_v20, %v664_v21  ;;  %v822_v6 = vrot.slane %v5434_v50, 1  ;;  %v688_v50 = vrot.slane %v686_v2, 1  ;;  %v5628_v20 = vcombine.low %v3686_v7, %v5621_v16  ;;  %v3722_v2 = vld [vmem:[%s5219_s10 + $0x24] sm:$0xe] }
  0x53   : > { %v671_v38 = vrot.slane %v669_v25, 1  ;;  %4449 = vmatprep.subr.bf16.mxu0 %v4882_v32  ;;  %v3839_v21 = vcombine.low %v256_v18, %v5462_v8  ;;  %v4886_v25 = vld [vmem:[%s5219_s10 + $0x14] ss:$0 sps:$4 sm:$0x11]   ;;  %v1014_v32 = vshll.u32 %v5386_v15, 16  ;;  %v1024_v18 = vshrl.u32 %v5423_v40, 16 }
  0x54   : > { %v257_v8 = vld [vmem:[%s5219_s10 + $0x60] sm:$0xe]  ;;  %v1268_v44 = vrot.slane %v4886_v25, 1  ;;  %v1019_v46 = vshll.u32 %v4886_v25, 16 }
  0x55   : > { %v672_v54 = vor.u32 %v671_v38, %v667_v12  ;;  %v5642_v12 = vld [vmem:[%s5219_s10 + $0x70] sm:$0xf]  ;;  %v4900_v38 = vld [vmem:[%s6743_s1 + $0x1a8] sm:$0xff]  }
  0x57   : > { %2459 = vmatmul.mubr.bf16.gmra.mrb[24].mxu0 %v3806_v39  ;;  %2588 = vmatmul.mubr.bf16.gmra.mrb[24].mxu1 %v811_v29  ;;  %v4862_v39 = vld [vmem:[%s6743_s1 + $0x190] sm:$0xff]   ;;  %v674_v29 = vshll.u32 %v5558_v22, 16 }
  0x58   : > { %2466 = vmatprep.mubr.bf16.mxu0 %v641_v33  ;;  %2595 = vmatprep.mubr.bf16.mxu1 %v5492_v31  ;;  %v5580_v33 = vcombine.low %v223_v41, %v5577_v43 }
  0x59   : > { %4552 = vmatpush3.bf16.msra.mxu1 %v4862_v39  ;;  %v676_v51 = vrot.slane %v674_v29, 1  ;;  %v255_v39 = vld [vmem:[%s5219_s10 + $0x48] sm:$0xe] }
  0x5a   : > { %v681_v42 = vshll.u32 %v5580_v33, 16  ;;  %v4899_v29 = vld [vmem:[%s6743_s1 + $0x1e8] sm:$0xff]  }
  0x5b   : > { %v677_v60 = vsel %vm545_vm0, %v672_v54, %v676_v51  ;;  %v3840_v51 = vcombine.low %v257_v8, %v5482_v24  ;;  %v828_v24 = vrot.slane %v5488_v28, 1  ;;  %v4911_v28 = vld [vmem:[%s6743_s1 + $0x1b0] sm:$0xff]   ;;  %v4921_v8 = vld [vmem:[%s6743_s1 + $0x1f8] sm:$0xff]  }
  0x5c   : > { %v683_v1 = vrot.slane %v681_v42, 1 }
  0x5f   : > { %2467 = vmatmul.mubr.bf16.gmra.mrb[28].mxu0 %v3807_v0  ;;  %2596 = vmatmul.mubr.bf16.gmra.mrb[28].mxu1 %v814_v58  ;;  %v4875_v0 = vld [vmem:[%s6743_s1 + $0x1d8] sm:$0xff]   ;;  %v3838_v58 = vcombine.low %v255_v39, %v5429_v48  ;;  %v4889_v48 = vld [vmem:[%s6743_s1 + $0x1a0] sm:$0xff]  }
  0x60   : > { %2474 = vmatprep.mubr.bf16.mxu0 %v653_v61  ;;  %2603 = vmatprep.mubr.bf16.mxu1 %v5530_v59  ;;  %v679_v61 = vshrl.u32 %v5580_v33, 16 }
  0x61   : > { %4553 = vmatprep.subr.bf16.mxu1 %v4875_v0  ;;  %v821_v63 = vrot.slane %v3838_v58, 1  ;;  %v827_v58 = vrot.slane %v3840_v51, 1 }
  0x62   : > { %4554 = vmatpush3.bf16.msra.mxu1 %v4876_v23  ;;  %v684_v14 = vor.u32 %v683_v1, %v679_v61  ;;  %v1021_v61 = vrot.slane %v1019_v46, 1  ;;  %v4910_v1 = vld [vmem:[%s6743_s1 + $0x1f0] sm:$0xff]   ;;  %v4904_v46 = vld [vmem:[%s5219_s10 + $0x38] ss:$0 sps:$4 sm:$0x11]  }
  0x63   : > { %4555 = vmatprep.subr.bf16.mxu1 %v4888_v3  ;;  %v823_v0 = vsel %vm802_vm1, %v821_v63, %v822_v6  ;;  %v3690_v3 = vld [vmem:[%s5219_s10 + $0x78] sm:$0xf]  ;;  %v258_v6 = vld [vmem:[%s5219_s10 + $0x6c] sm:$0xe]  ;;  %v829_v7 = vsel %vm802_vm1, %v827_v58, %v828_v24  ;;  %v834_v58 = vrot.slane %v5558_v22, 1  ;;  %v1050_v24 = vshll.u32 %v5492_v31, 16 }
  0x64   : > { %v689_v5 = vsel %vm545_vm0, %v684_v14, %v688_v50  ;;  %v3841_v50 = vcombine.low %v258_v6, %v5517_v36  ;;  %v3692_v36 = vld [vmem:[%s5219_s10 + $0x84] sm:$0xf]  ;;  %v1277_v6 = vrot.slane %v4904_v46, 1 }
  0x66   : > { %4556 = vmatpush3.bf16.msra.mxu1 %v4889_v48 }
  0x67   : > { %2475 = vmatmul.mubr.bf16.gmra.mrb[32].mxu0 %v5485_v27  ;;  %2604 = vmatmul.mubr.bf16.gmra.mrb[32].mxu1 %v817_v34  ;;  %v4883_v27 = vld [vmem:[%s6743_s1 + $0x138] sm:$0xff]   ;;  %v825_v34 = vrot.slane %v5466_v10, 1  ;;  %v1012_v10 = vshrl.u32 %v5386_v15, 16  ;;  %v3881_v15 = vcombine.low %v3721_v45, %v5414_v30  ;;  %v1036_v45 = vshrl.u32 %v5451_v62, 16 }
  0x68   : > { %2482 = vmatprep.mubr.bf16.mxu0 %v665_v37  ;;  %2611 = vmatprep.mubr.bf16.mxu1 %v5571_v35  ;;  %v3688_v37 = vld [vmem:[%s5219_s10 + $0x6c] sm:$0xf]  ;;  %v5669_v30 = vld [vmem:[%s5219_s10 + $0x7c] sm:$0xf] }
  0x69   : > { %4450 = vmatpush3.bf16.msra.mxu0 %v4883_v27  ;;  %4557 = vmatprep.subr.bf16.mxu1 %v4899_v29  ;;  %v5654_v54 = vcombine.low %v3688_v37, %v5642_v12  ;;  %v1026_v27 = vshll.u32 %v5423_v40, 16  ;;  %v5678_v14 = vcombine.low %v3690_v3, %v5669_v30  ;;  %v1038_v29 = vshll.u32 %v5451_v62, 16  ;;  %v5691_v40 = vld [vmem:[%s5219_s10 + $0x88] sm:$0xf]  ;;  %v4923_v62 = vld [vmem:[%s6743_s1 + $0x218] sm:$0xff]  }
  0x6a   : > { %4683 = vmatprep.subr.bf16.mxu0 %v5618_v11  ;;  %4558 = vmatpush3.bf16.msra.mxu1 %v4900_v38 }
  0x6b   : > { %4559 = vmatprep.subr.bf16.mxu1 %v4910_v1  ;;  %v260_v1 = vld [vmem:[%s5219_s10 + $0x84] sm:$0xe] }
  0x6c   : > { %v3843_v22 = vcombine.low %v260_v1, %v5577_v43 }
  0x6e   : > { %4560 = vmatpush3.bf16.msra.mxu1 %v4911_v28  ;;  %v1048_v28 = vshrl.u32 %v5492_v31, 16  ;;  %v836_v31 = vrot.slane %v3843_v22, 1 }
  0x6f   : > { %2483 = vmatmul.mubr.bf16.gmra.mrb[36].mxu0 %v5520_v55  ;;  %2612 = vmatmul.mubr.bf16.gmra.mrb[36].mxu1 %v820_v26  ;;  %v3720_v55 = vld [vmem:[%s5219_s10 + $0xc] sm:$0xe]  ;;  %v4893_v26 = vld [vmem:[%s5219_s10 + $0x20] ss:$0 sps:$4 sm:$0x11]  }
  0x70   : > { %2490 = vmatprep.mubr.bf16.mxu0 %v677_v60  ;;  %2619 = vmatprep.mubr.bf16.mxu1 %v5599_v57  ;;  %v3880_v23 = vcombine.low %v3720_v55, %v5382_v9  ;;  %v824_v9 = vrot.slane %v3839_v21, 1  ;;  %v1271_v48 = vrot.slane %v4893_v26, 1  ;;  %v1028_v55 = vrot.slane %v1026_v27, 1 }
  0x71   : > { %v3882_v21 = vcombine.low %v3722_v2, %v5441_v53  ;;  %v830_v53 = vrot.slane %v3841_v50, 1  ;;  %4561 = vmatprep.subr.bf16.mxu1 %v4921_v8  ;;  %v5726_v2 = vld [vmem:[%s5219_s10 + $0x94] sm:$0xf]  ;;  %v1052_v50 = vrot.slane %v1050_v24, 1 }
  0x72   : > { %v1267_v41 = vrot.slane %v3880_v23, 1  ;;  %v826_v39 = vsel %vm802_vm1, %v824_v9, %v825_v34  ;;  %v4897_v23 = vld [vmem:[%s5219_s10 + $0x2c] ss:$0 sps:$4 sm:$0x11]   ;;  %v1029_v34 = vor.u32 %v1028_v55, %v1024_v18  ;;  %v259_v9 = vld [vmem:[%s5219_s10 + $0x78] sm:$0xe] }
  0x73   : > { %v1273_v38 = vrot.slane %v3882_v21, 1  ;;  %v1043_v27 = vshll.u32 %v4897_v23, 16  ;;  %v1055_v18 = vshll.u32 %v4904_v46, 16  ;;  %v4908_v55 = vld [vmem:[%s5219_s10 + $0x44] ss:$0 sps:$4 sm:$0x11]  }
  0x74   : > { %v1269_v42 = vsel %vm802_vm1, %v1267_v41, %v1268_v44  ;;  %v1274_v41 = vrot.slane %v4897_v23, 1  ;;  %v3723_v44 = vld [vmem:[%s5219_s10 + $0x30] sm:$0xe]  ;;  %v837_v23 = vrot.slane %v5591_v52, 1  ;;  %v4938_v52 = vld [vmem:[%s6743_s1 + $0x228] sm:$0xff]  }
  0x75   : > { %v4915_v46 = vld [vmem:[%s5219_s10 + $0x50] ss:$0 sps:$4 sm:$0x11]  }
  0x76   : > { %v1283_v24 = vrot.slane %v4915_v46, 1 }
  0x77   : > { %2491 = vmatmul.mubr.bf16.gmra.mrb[40].mxu0 %v5555_v4  ;;  %2620 = vmatmul.mubr.bf16.gmra.mrb[40].mxu1 %v823_v0  ;;  %v1016_v4 = vrot.slane %v1014_v32, 1  ;;  %v1031_v0 = vshll.u32 %v4893_v26, 16  ;;  %v831_v32 = vrot.slane %v5523_v56, 1  ;;  %v4922_v56 = vld [vmem:[%s6743_s1 + $0x1b8] sm:$0xff]   ;;  %v1275_v26 = vsel %vm802_vm1, %v1273_v38, %v1274_v41  ;;  %v5116_v38 = vld [vmem:[%s5219_s10 + $0x94] sm:$0xf] }
  0x78   : > { %2498 = vmatprep.mubr.bf16.mxu0 %v689_v5  ;;  %2627 = vmatprep.mubr.bf16.mxu1 %v5628_v20  ;;  %v4901_v5 = vld [vmem:[%s6743_s1 + $0x208] sm:$0xff]  }
  0x79   : > { %v1017_v60 = vor.u32 %v1016_v4, %v1012_v10  ;;  %v1033_v37 = vrot.slane %v1031_v0, 1  ;;  %v5708_v10 = vcombine.low %v3692_v36, %v5691_v40  ;;  %v3842_v4 = vcombine.low %v259_v9, %v5549_v19  ;;  %4562 = vmatpush3.bf16.msra.mxu1 %v4922_v56  ;;  %v4931_v0 = vld [vmem:[%s6743_s1 + $0x220] sm:$0xff]  }
  0x7a   : > { %v832_v51 = vsel %vm802_vm1, %v830_v53, %v831_v32  ;;  %v1057_v36 = vrot.slane %v1055_v18, 1  ;;  %v261_v53 = vld [vmem:[%s5219_s10 + $0x90] sm:$0xe]  ;;  %v838_v9 = vsel %vm802_vm1, %v836_v31, %v837_v23  ;;  %v1060_v56 = vshrl.u32 %v5530_v59, 16  ;;  %v3700_v31 = vld [vmem:[%s5219_s10 + $0xb4] sm:$0xf] }
  0x7b   : > { %v1022_v63 = vsel %vm545_vm0, %v1017_v60, %v1021_v61  ;;  %v833_v19 = vrot.slane %v3842_v4, 1  ;;  %v3694_v61 = vld [vmem:[%s5219_s10 + $0x90] sm:$0xf]  ;;  %v3844_v41 = vcombine.low %v261_v53, %v5116_v38  ;;  %v5794_v23 = vld [vmem:[%s5219_s10 + $0xb8] sm:$0xf] }
  0x7f   : > { %2499 = vmatmul.mubr.bf16.gmra.mrb[44].mxu0 %v5580_v33  ;;  %2628 = vmatmul.mubr.bf16.gmra.mrb[44].mxu1 %v826_v39  ;;  %v1270_v33 = vrot.slane %v3881_v15, 1  ;;  %v1034_v39 = vsel %vm545_vm0, %v1029_v34, %v1033_v37  ;;  %v3883_v15 = vcombine.low %v3723_v44, %v5473_v17  ;;  %v1045_v17 = vrot.slane %v1043_v27, 1  ;;  %v3725_v37 = vld [vmem:[%s5219_s10 + $0x48] sm:$0xe] }
  0x80   : > { %2635 = vmatprep.mubr.bf16.mxu1 %v5654_v54  ;;  %2732 = vmatprep.mubr.bf16.mxu0 %v1269_v42  ;;  %v1040_v42 = vrot.slane %v1038_v29, 1  ;;  %v1062_v29 = vshll.u32 %v5530_v59, 16  ;;  %v1280_v34 = vrot.slane %v4908_v55, 1  ;;  %v5117_v27 = vld [vmem:[%s5219_s10 + $0x98] ss:$0 sps:$4 sm:$0x11]  }
  0x81   : > { %v1272_v25 = vsel %vm802_vm1, %v1270_v33, %v1271_v48  ;;  %v1276_v3 = vrot.slane %v3883_v15, 1  ;;  %v3724_v33 = vld [vmem:[%s5219_s10 + $0x3c] sm:$0xe]  ;;  %v835_v48 = vsel %vm802_vm1, %v833_v19, %v834_v58  ;;  %v840_v15 = vrot.slane %v5117_v27, 1  ;;  %v5772_v19 = vld [vmem:[%s5219_s10 + $0xac] sm:$0xf] }
  0x82   : > { %v1041_v60 = vor.u32 %v1040_v42, %v1036_v45  ;;  %v3884_v21 = vcombine.low %v3724_v33, %v5508_v47  ;;  %v1053_v47 = vor.u32 %v1052_v50, %v1048_v28  ;;  %v1064_v4 = vrot.slane %v1062_v29, 1 }
  0x83   : > { %v1278_v43 = vsel %vm802_vm1, %v1276_v3, %v1277_v6  ;;  %v1067_v45 = vshll.u32 %v4908_v55, 16  ;;  %v839_v42 = vrot.slane %v3844_v41, 1  ;;  %v1074_v59 = vshll.u32 %v5571_v35, 16  ;;  %v4919_v55 = vld [vmem:[%s5219_s10 + $0x5c] ss:$0 sps:$4 sm:$0x11]  }
  0x84   : > { %v1279_v32 = vrot.slane %v3884_v21, 1  ;;  %v1058_v44 = vsel %vm545_vm0, %v1053_v47, %v1057_v36  ;;  %v1072_v6 = vshrl.u32 %v5571_v35, 16  ;;  %v3727_v35 = vld [vmem:[%s5219_s10 + $0x60] sm:$0xe]  ;;  %v1286_v53 = vrot.slane %v4919_v55, 1 }
  0x85   : > { %v841_v1 = vsel %vm802_vm1, %v839_v42, %v840_v15  ;;  %v1076_v28 = vrot.slane %v1074_v59, 1  ;;  %v5119_v21 = vld [vmem:[%s5219_s10 + $0xa4] ss:$0 sps:$4 sm:$0x11]   ;;  %v1091_v41 = vshll.u32 %v4919_v55, 16 }
  0x86   : > { %v5121_v42 = vld [vmem:[%s5219_s10 + $0xb0] ss:$0 sps:$4 sm:$0x11]   ;;  %v3702_v59 = vld [vmem:[%s5219_s10 + $0xc0] sm:$0xf] }
  0x87   : > { %2636 = vmatmul.mubr.bf16.gmra.mrb[48].mxu1 %v829_v7  ;;  %2733 = vmatmul.mubr.bf16.vlgmr.msra.gmra.mrb[48].mxu0 %v1022_v63  ;;  %v1046_v7 = vsel %vm545_vm0, %v1041_v60, %v1045_v17  ;;  %v5734_v63 = vcombine.low %v3694_v61, %v5726_v2  ;;  %v262_v60 = vld [vmem:[%s5219_s10 + $0x9c] sm:$0xe]  ;;  %v3726_v17 = vld [vmem:[%s5219_s10 + $0x54] sm:$0xe]  ;;  %v1077_v29 = vor.u32 %v1076_v28, %v1072_v6  ;;  %v846_v27 = vrot.slane %v5121_v42, 1 }
  0x88   : > { %4684 = vmatpush3.bf16.msra.mxu0 %v5618_v11  ;;  %2643 = vmatprep.mubr.bf16.mxu1 %v5678_v14  ;;  %v4912_v11 = vld [vmem:[%s6743_s1 + $0x210] sm:$0xff]   ;;  %v4952_v61 = vld [vmem:[%s6743_s1 + $0x238] sm:$0xff]   ;;  %v3886_v50 = vcombine.low %v3726_v17, %v5586_v49  ;;  %v1096_v17 = vshrl.u32 %v5628_v20, 16 }
  0x89   : > { %2740 = vmatprep.mubr.bf16.mxu0 %v1272_v25  ;;  %4685 = vmatprep.subr.bf16.mxu0 %v4901_v5  ;;  %v5745_v25 = vld [vmem:[%s5219_s10 + $0xa0] sm:$0xf]  ;;  %v5122_v6 = vld [vmem:[%s5219_s10 + $0xb8] sm:$0xf] }
  0x8a   : > { %v1285_v36 = vrot.slane %v3886_v50, 1 }
  0x8c   : > { %4686 = vmatpush3.bf16.msra.mxu0 %v4901_v5  ;;  %v3696_v5 = vld [vmem:[%s5219_s10 + $0x9c] sm:$0xf] }
  0x8d   : > { %4687 = vmatprep.subr.bf16.mxu0 %v4912_v11  ;;  %v5756_v8 = vcombine.low %v3696_v5, %v5745_v25  ;;  %v263_v5 = vld [vmem:[%s5219_s10 + $0xa8] sm:$0xe] }
  0x8f   : > { %2644 = vmatmul.mubr.bf16.gmra.mrb[52].mxu1 %v832_v51  ;;  %2741 = vmatmul.mubr.bf16.gmra.mrb[52].mxu0 %v1034_v39  ;;  %v3885_v51 = vcombine.low %v3725_v37, %v5543_v13  ;;  %v1281_v39 = vsel %vm802_vm1, %v1279_v32, %v1280_v34  ;;  %v3698_v13 = vld [vmem:[%s5219_s10 + $0xa8] sm:$0xf]  ;;  %v3736_v32 = vld [vmem:[%s5219_s10 + $0x18] sm:$0xf]  ;;  %v5800_v34 = vld [vmem:[%s5219_s10 + $0x1c] sm:$0xf]  ;;  %v3887_v37 = vcombine.low %v3727_v35, %v5621_v16 }
  0x90   : > { %2651 = vmatprep.mubr.bf16.mxu1 %v5708_v10  ;;  %2748 = vmatprep.mubr.bf16.mxu0 %v1275_v26  ;;  %v1065_v26 = vor.u32 %v1064_v4, %v1060_v56  ;;  %v5781_v3 = vcombine.low %v3698_v13, %v5772_v19  ;;  %v1084_v56 = vshrl.u32 %v5599_v57, 16  ;;  %v5813_v16 = vcombine.low %v3736_v32, %v5800_v34 }
  0x91   : > { %4688 = vmatpush3.bf16.msra.mxu0 %v4912_v11  ;;  %v4945_v11 = vld [vmem:[%s6743_s1 + $0x230] sm:$0xff]   ;;  %v1282_v58 = vrot.slane %v3885_v51, 1  ;;  %v1098_v51 = vshll.u32 %v5628_v20, 16 }
  0x92   : > { %4689 = vmatprep.subr.bf16.mxu0 %v4923_v62 }
  0x93   : > { %v1284_v18 = vsel %vm802_vm1, %v1282_v58, %v1283_v24  ;;  %v1288_v58 = vrot.slane %v3887_v37, 1  ;;  %v4930_v24 = vld [vmem:[%s5219_s10 + $0x20] ss:$0 sps:$4 sm:$0x11]  }
  0x94   : > { %v1732_v42 = vrot.slane %v4930_v24, 1 }
  0x95   : > { %4690 = vmatpush3.bf16.msra.mxu0 %v4923_v62  ;;  %v1069_v62 = vrot.slane %v1067_v45, 1  ;;  %v1287_v45 = vsel %vm802_vm1, %v1285_v36, %v1286_v53 }
  0x96   : > { %4691 = vmatprep.subr.bf16.mxu0 %v4931_v0 }
  0x97   : > { %2652 = vmatmul.mubr.bf16.gmra.mrb[56].mxu1 %v835_v48  ;;  %2749 = vmatmul.mubr.bf16.gmra.mrb[56].mxu0 %v1046_v7  ;;  %v1070_v33 = vsel %vm545_vm0, %v1065_v26, %v1069_v62  ;;  %v5118_v48 = vld [vmem:[%s5219_s10 + $0xa0] sm:$0xf]  ;;  %v1079_v7 = vshll.u32 %v4915_v46, 16  ;;  %v4926_v46 = vld [vmem:[%s5219_s10 + $0x68] ss:$0 sps:$4 sm:$0x11]  }
  0x98   : > { %2659 = vmatprep.mubr.bf16.mxu1 %v5734_v63  ;;  %2756 = vmatprep.mubr.bf16.mxu0 %v1278_v43  ;;  %v3845_v22 = vcombine.low %v262_v60, %v5118_v48  ;;  %v843_v43 = vrot.slane %v5119_v21, 1  ;;  %v5820_v26 = vld [vmem:[%s5219_s10 + $0xc4] sm:$0xf]  ;;  %v264_v62 = vld [vmem:[%s5219_s10 + $0xb4] sm:$0xe]  ;;  %v1289_v60 = vrot.slane %v4926_v46, 1 }
  0x99   : > { %4692 = vmatpush3.bf16.msra.mxu0 %v4931_v0  ;;  %v1086_v0 = vshll.u32 %v5599_v57, 16  ;;  %v1081_v47 = vrot.slane %v1079_v7, 1  ;;  %v1093_v57 = vrot.slane %v1091_v41, 1  ;;  %v3738_v48 = vld [vmem:[%s5219_s10 + $0x24] sm:$0xf]  ;;  %v1100_v7 = vrot.slane %v1098_v51, 1 }
  0x9a   : > { %4693 = vmatprep.subr.bf16.mxu0 %v4938_v52  ;;  %v842_v49 = vrot.slane %v3845_v22, 1  ;;  %v3739_v22 = vld [vmem:[%s5219_s10 + $0x28] sm:$0xf]  ;;  %v1103_v50 = vshll.u32 %v4926_v46, 16  ;;  %v5837_v20 = vcombine.low %v3702_v59, %v5820_v26  ;;  %v1290_v35 = vsel %vm802_vm1, %v1288_v58, %v1289_v60 }
  0x9b   : > { %v1088_v4 = vrot.slane %v1086_v0, 1  ;;  %v1483_v0 = vshll.u32 %v4930_v24, 16  ;;  %v1476_v21 = vshrl.u32 %v5813_v16, 16  ;;  %v1101_v36 = vor.u32 %v1100_v7, %v1096_v17 }
  0x9c   : > { %v1105_v53 = vrot.slane %v1103_v50, 1  ;;  %v1108_v51 = vshrl.u32 %v5654_v54, 16 }
  0x9d   : > { %4694 = vmatpush3.bf16.msra.mxu0 %v4938_v52  ;;  %v5804_v52 = vcombine.low %v3700_v31, %v5794_v23  ;;  %v1089_v13 = vor.u32 %v1088_v4, %v1084_v56  ;;  %v5841_v31 = vcombine.low %v3738_v48, %v3739_v22  ;;  %v3740_v56 = vld [vmem:[%s5219_s10 + $0x30] sm:$0xf]  ;;  %v3730_v48 = vld [vmem:[%s5219_s10 + $0x84] sm:$0xe] }
  0x9e   : > { %4695 = vmatprep.subr.bf16.mxu0 %v4945_v11 }
  0x9f   : > { %2660 = vmatmul.mubr.bf16.gmra.mrb[60].mxu1 %v838_v9  ;;  %2757 = vmatmul.mubr.bf16.gmra.mrb[60].mxu0 %v1058_v44  ;;  %v5120_v9 = vld [vmem:[%s5219_s10 + $0xac] sm:$0xf]  ;;  %v1082_v44 = vsel %vm545_vm0, %v1077_v29, %v1081_v47  ;;  %v1094_v55 = vsel %vm545_vm0, %v1089_v13, %v1093_v57  ;;  %v3729_v47 = vld [vmem:[%s5219_s10 + $0x78] sm:$0xe] }
  0xa0   : > { %2667 = vmatprep.mubr.bf16.mxu1 %v5756_v8  ;;  %2764 = vmatprep.mubr.bf16.mxu0 %v1281_v39  ;;  %v3846_v38 = vcombine.low %v263_v5, %v5120_v9  ;;  %v3728_v39 = vld [vmem:[%s5219_s10 + $0x6c] sm:$0xe]  ;;  %v1485_v9 = vrot.slane %v1483_v0, 1  ;;  %v4932_v13 = vld [vmem:[%s5219_s10 + $0x80] ss:$0 sps:$4 sm:$0x11]  }
  0xa1   : > { %4696 = vmatpush3.bf16.msra.mxu0 %v4945_v11  ;;  %v844_v11 = vsel %vm802_vm1, %v842_v49, %v843_v43  ;;  %v3888_v28 = vcombine.low %v3728_v39, %v5642_v12  ;;  %v1110_v12 = vshll.u32 %v5654_v54, 16  ;;  %v5123_v49 = vld [vmem:[%s5219_s10 + $0xbc] ss:$0 sps:$4 sm:$0x11]   ;;  %v5857_v39 = vld [vmem:[%s5219_s10 + $0x34] sm:$0xf] }
  0xa2   : > { %4697 = vmatprep.subr.bf16.mxu0 %v4952_v61  ;;  %v845_v15 = vrot.slane %v3846_v38, 1  ;;  %v849_v29 = vrot.slane %v5123_v49, 1  ;;  %v3784_v38 = vld [vmem:[%s5219_s10 + $0x18] sm:$0xe]  ;;  %v5867_v24 = vcombine.low %v3740_v56, %v5857_v39  ;;  %v1295_v50 = vrot.slane %v4932_v13, 1 }
  0xa3   : > { %v1291_v32 = vrot.slane %v3888_v28, 1  ;;  %v3928_v4 = vcombine.low %v3784_v38, %v5800_v34  ;;  %v1112_v59 = vrot.slane %v1110_v12, 1  ;;  %v1488_v34 = vshrl.u32 %v5841_v31, 16  ;;  %v5883_v12 = vld [vmem:[%s5219_s10 + $0x40] sm:$0xf] }
  0xa5   : > { %4698 = vmatpush3.bf16.msra.mxu0 %v4952_v61  ;;  %v5827_v61 = vld [vmem:[%s5219_s10 + $0x74] ss:$0 sps:$4 sm:$0x11]  }
  0xa6   : > { %v1292_v37 = vrot.slane %v5827_v61, 1 }
  0xa7   : > { %2668 = vmatmul.mubr.bf16.gmra.mrb[64].mxu1 %v841_v1  ;;  %2765 = vmatmul.mubr.bf16.gmra.mrb[64].mxu0 %v1070_v33  ;;  %v1478_v1 = vshll.u32 %v5813_v16, 16  ;;  %v3847_v33 = vcombine.low %v264_v62, %v5122_v6  ;;  %v1115_v62 = vshll.u32 %v5827_v61, 16  ;;  %v1122_v61 = vshll.u32 %v5678_v14, 16 }
  0xa8   : > { %2675 = vmatprep.mubr.bf16.mxu1 %v5781_v3  ;;  %2772 = vmatprep.mubr.bf16.mxu0 %v1284_v18  ;;  %v847_v18 = vsel %vm802_vm1, %v845_v15, %v846_v27  ;;  %v3785_v27 = vld [vmem:[%s5219_s10 + $0x24] sm:$0xe]  ;;  %v1106_v15 = vsel %vm545_vm0, %v1101_v36, %v1105_v53  ;;  %v1293_v57 = vsel %vm802_vm1, %v1291_v32, %v1292_v37  ;;  %v4935_v32 = vld [vmem:[%s5219_s10 + $0x8c] ss:$0 sps:$4 sm:$0x11]   ;;  %v1500_v37 = vshrl.u32 %v5867_v24, 16 }
  0xa9   : > { %v1480_v43 = vrot.slane %v1478_v1, 1  ;;  %v848_v5 = vrot.slane %v3847_v33, 1  ;;  %v3929_v58 = vcombine.low %v3785_v27, %v3739_v22  ;;  %v1113_v22 = vor.u32 %v1112_v59, %v1108_v51 }
  0xaa   : > { %v1117_v28 = vrot.slane %v1115_v62, 1  ;;  %v1124_v49 = vrot.slane %v1122_v61, 1  ;;  %v1132_v59 = vshrl.u32 %v5708_v10, 16  ;;  %v1139_v62 = vshll.u32 %v4935_v32, 16 }
  0xab   : > { %v1481_v41 = vor.u32 %v1480_v43, %v1476_v21  ;;  %v850_v46 = vsel %vm802_vm1, %v848_v5, %v849_v29  ;;  %v1734_v33 = vrot.slane %v3929_v58, 1  ;;  %v1502_v21 = vshll.u32 %v5867_v24, 16  ;;  %v3742_v43 = vld [vmem:[%s5219_s10 + $0x3c] sm:$0xf] }
  0xac   : > { %v1120_v5 = vshrl.u32 %v5678_v14, 16  ;;  %v1127_v29 = vshll.u32 %v4932_v13, 16  ;;  %v1118_v36 = vsel %vm545_vm0, %v1113_v22, %v1117_v28  ;;  %v5894_v14 = vcombine.low %v3742_v43, %v5883_v12  ;;  %v4939_v58 = vld [vmem:[%s5219_s10 + $0x98] ss:$0 sps:$4 sm:$0x11]  }
  0xad   : > { %v1486_v54 = vsel %vm545_vm0, %v1481_v41, %v1485_v9  ;;  %v1504_v38 = vrot.slane %v1502_v21, 1  ;;  %v1301_v28 = vrot.slane %v4939_v58, 1  ;;  %v3746_v21 = vld [vmem:[%s5219_s10 + $0x54] sm:$0xf]  ;;  %v5927_v43 = vld [vmem:[%s5219_s10 + $0x58] sm:$0xf] }
  0xae   : > { %v1129_v56 = vrot.slane %v1127_v29, 1  ;;  %v1514_v27 = vshll.u32 %v5894_v14, 16 }
  0xaf   : > { %2676 = vmatmul.mubr.bf16.gmra.mrb[68].mxu1 %v844_v11  ;;  %2773 = vmatmul.mubr.bf16.gmra.mrb[68].mxu0 %v1082_v44  ;;  %v4934_v11 = vld [vmem:[%s5219_s10 + $0x2c] ss:$0 sps:$4 sm:$0x11]   ;;  %v1490_v44 = vshll.u32 %v5841_v31, 16 }
  0xb0   : > { %2683 = vmatprep.mubr.bf16.mxu1 %v5804_v52  ;;  %2780 = vmatprep.mubr.bf16.mxu0 %v1287_v45  ;;  %v3889_v45 = vcombine.low %v3729_v47, %v5669_v30  ;;  %v1731_v30 = vrot.slane %v3928_v4, 1  ;;  %v1735_v60 = vrot.slane %v4934_v11, 1  ;;  %v1495_v1 = vshll.u32 %v4934_v11, 16  ;;  %v3731_v11 = vld [vmem:[%s5219_s10 + $0x90] sm:$0xe] }
  0xb1   : > { %v1492_v17 = vrot.slane %v1490_v44, 1  ;;  %v3890_v47 = vcombine.low %v3730_v48, %v5691_v40  ;;  %v1134_v40 = vshll.u32 %v5708_v10, 16  ;;  %v1125_v44 = vor.u32 %v1124_v49, %v1120_v5 }
  0xb2   : > { %v5870_v6 = vsel %vm802_vm1, %v1731_v30, %v1732_v42  ;;  %v1294_v7 = vrot.slane %v3889_v45, 1  ;;  %v1497_v0 = vrot.slane %v1495_v1, 1  ;;  %v1298_v45 = vrot.slane %v4935_v32, 1  ;;  %v5900_v42 = vld [vmem:[%s5219_s10 + $0x44] ss:$0 sps:$4 sm:$0x11]  }
  0xb3   : > { %v1297_v4 = vrot.slane %v3890_v47, 1  ;;  %v3891_v13 = vcombine.low %v3731_v11, %v5726_v2  ;;  %v1519_v1 = vshll.u32 %v5900_v42, 16  ;;  %v1146_v2 = vshll.u32 %v5734_v63, 16 }
  0xb4   : > { %v1296_v53 = vsel %vm802_vm1, %v1294_v7, %v1295_v50  ;;  %v1141_v48 = vrot.slane %v1139_v62, 1  ;;  %v1144_v5 = vshrl.u32 %v5734_v63, 16  ;;  %v1151_v49 = vshll.u32 %v4939_v58, 16 }
  0xb5   : > { %v1299_v30 = vsel %vm802_vm1, %v1297_v4, %v1298_v45  ;;  %v1300_v22 = vrot.slane %v3891_v13, 1  ;;  %v1521_v50 = vrot.slane %v1519_v1, 1  ;;  %v5938_v63 = vcombine.low %v3746_v21, %v5927_v43  ;;  %v5944_v4 = vld [vmem:[%s5219_s10 + $0x5c] ss:$0 sps:$4 sm:$0x11]  }
  0xb6   : > { %v1158_v11 = vshll.u32 %v5756_v8, 16  ;;  %v3734_v1 = vld [vmem:[%s5219_s10 + $0xb4] sm:$0xe]  ;;  %v5971_v21 = vld [vmem:[%s5219_s10 + $0x70] sm:$0xf] }
  0xb7   : > { %2684 = vmatmul.mubr.bf16.gmra.mrb[72].mxu1 %v847_v18  ;;  %2781 = vmatmul.mubr.bf16.gmra.mrb[72].mxu0 %v1094_v55  ;;  %v5875_v18 = vsel %vm802_vm1, %v1734_v33, %v1735_v60  ;;  %v1493_v55 = vor.u32 %v1492_v17, %v1488_v34  ;;  %v1130_v34 = vsel %vm545_vm0, %v1125_v44, %v1129_v56  ;;  %v1512_v60 = vshrl.u32 %v5894_v14, 16  ;;  %v3732_v33 = vld [vmem:[%s5219_s10 + $0x9c] sm:$0xe] }
  0xb8   : > { %2691 = vmatprep.mubr.bf16.mxu1 %v5837_v20  ;;  %2788 = vmatprep.mubr.bf16.mxu0 %v1290_v35  ;;  %v5878_v35 = vld [vmem:[%s5219_s10 + $0x38] ss:$0 sps:$4 sm:$0x11]   ;;  %v1516_v17 = vrot.slane %v1514_v27, 1  ;;  %v3892_v29 = vcombine.low %v3732_v33, %v5745_v25  ;;  %v3748_v27 = vld [vmem:[%s5219_s10 + $0x60] sm:$0xf] }
  0xb9   : > { %v1498_v9 = vsel %vm545_vm0, %v1493_v55, %v1497_v0  ;;  %v1507_v41 = vshll.u32 %v5878_v35, 16  ;;  %v5922_v55 = vld [vmem:[%s5219_s10 + $0x50] ss:$0 sps:$4 sm:$0x11]   ;;  %v1160_v13 = vrot.slane %v1158_v11, 1 }
  0xba   : > { %v1517_v7 = vor.u32 %v1516_v17, %v1512_v60  ;;  %v1303_v44 = vrot.slane %v3892_v29, 1  ;;  %v4946_v60 = vld [vmem:[%s5219_s10 + $0xb0] ss:$0 sps:$4 sm:$0x11]  }
  0xbb   : > { %v1509_v51 = vrot.slane %v1507_v41, 1  ;;  %v3733_v41 = vld [vmem:[%s5219_s10 + $0xa8] sm:$0xe] }
  0xbf   : > { %2692 = vmatmul.mubr.bf16.gmra.mrb[76].mxu1 %v850_v46  ;;  %2789 = vmatmul.mubr.bf16.gmra.mrb[76].mxu0 %v1106_v15  ;;  %v1505_v46 = vor.u32 %v1504_v38, %v1500_v37  ;;  %v3744_v15 = vld [vmem:[%s5219_s10 + $0x48] sm:$0xf]  ;;  %v1522_v37 = vsel %vm545_vm0, %v1517_v7, %v1521_v50  ;;  %v1531_v38 = vshll.u32 %v5922_v55, 16 }
  0xc0   : > { %2796 = vmatprep.mubr.bf16.mxu0 %v1293_v57  ;;  %2893 = vmatprep.mubr.bf16.mxu1 %v1486_v54  ;;  %v5905_v57 = vld [vmem:[%s5219_s10 + $0x4c] sm:$0xf] }
  0xc1   : > { %v1510_v54 = vsel %vm545_vm0, %v1505_v46, %v1509_v51  ;;  %v5916_v10 = vcombine.low %v3744_v15, %v5905_v57  ;;  %v1533_v46 = vrot.slane %v1531_v38, 1  ;;  %v1538_v51 = vshll.u32 %v5938_v63, 16  ;;  %v5949_v15 = vld [vmem:[%s5219_s10 + $0x64] sm:$0xf] }
  0xc3   : > { %v1526_v0 = vshll.u32 %v5916_v10, 16  ;;  %v1524_v32 = vshrl.u32 %v5916_v10, 16  ;;  %v1540_v17 = vrot.slane %v1538_v51, 1  ;;  %v3752_v51 = vld [vmem:[%s5219_s10 + $0x78] sm:$0xf] }
  0xc7   : > { %2797 = vmatmul.mubr.bf16.gmra.mrb[80].mxu0 %v1118_v36  ;;  %2894 = vmatmul.mubr.bf16.vlgmr.msra.gmra.mrb[80].mxu1 %v5813_v16  ;;  %v1136_v16 = vrot.slane %v1134_v40, 1  ;;  %v1302_v36 = vsel %vm802_vm1, %v1300_v22, %v1301_v28  ;;  %v1153_v40 = vrot.slane %v1151_v49, 1  ;;  %v1307_v28 = vrot.slane %v4946_v60, 1 }
  0xc8   : > { %2804 = vmatprep.mubr.bf16.mxu0 %v1296_v53  ;;  %2901 = vmatprep.mubr.bf16.mxu1 %v1498_v9  ;;  %v4942_v53 = vld [vmem:[%s5219_s10 + $0xa4] ss:$0 sps:$4 sm:$0x11]   ;;  %v1528_v9 = vrot.slane %v1526_v0, 1  ;;  %v3750_v0 = vld [vmem:[%s5219_s10 + $0x6c] sm:$0xf] }
  0xc9   : > { %v1137_v61 = vor.u32 %v1136_v16, %v1132_v59  ;;  %v1304_v56 = vrot.slane %v4942_v53, 1  ;;  %v1156_v16 = vshrl.u32 %v5756_v8, 16  ;;  %v1170_v8 = vshll.u32 %v5781_v3, 16 }
  0xca   : > { %v1529_v45 = vor.u32 %v1528_v9, %v1524_v32  ;;  %v1175_v49 = vshll.u32 %v4946_v60, 16 }
  0xcb   : > { %v1142_v47 = vsel %vm545_vm0, %v1137_v61, %v1141_v48  ;;  %v1305_v62 = vsel %vm802_vm1, %v1303_v44, %v1304_v56  ;;  %v5966_v61 = vld [vmem:[%s5219_s10 + $0x68] ss:$0 sps:$4 sm:$0x11]  }
  0xcc   : > { %v1534_v58 = vsel %vm545_vm0, %v1529_v45, %v1533_v46  ;;  %v1555_v32 = vshll.u32 %v5966_v61, 16  ;;  %v5988_v45 = vld [vmem:[%s5219_s10 + $0x74] ss:$0 sps:$4 sm:$0x11]  }
  0xce   : > { %v1557_v56 = vrot.slane %v1555_v32, 1 }
  0xcf   : > { %2805 = vmatmul.mubr.bf16.gmra.mrb[84].mxu0 %v1130_v34  ;;  %2902 = vmatmul.mubr.bf16.gmra.mrb[84].mxu1 %v5841_v31  ;;  %v1148_v31 = vrot.slane %v1146_v2, 1  ;;  %v1163_v34 = vshll.u32 %v4942_v53, 16  ;;  %v1161_v2 = vor.u32 %v1160_v13, %v1156_v16 }
  0xd0   : > { %2812 = vmatprep.mubr.bf16.mxu0 %v1299_v30  ;;  %2909 = vmatprep.mubr.bf16.mxu1 %v1510_v54  ;;  %v5956_v30 = vcombine.low %v3748_v27, %v5949_v15  ;;  %v1536_v54 = vshrl.u32 %v5938_v63, 16  ;;  %v5993_v27 = vld [vmem:[%s5219_s10 + $0x7c] sm:$0xf] }
  0xd1   : > { %v1149_v25 = vor.u32 %v1148_v31, %v1144_v5  ;;  %v1165_v33 = vrot.slane %v1163_v34, 1  ;;  %v3894_v5 = vcombine.low %v3734_v1, %v5794_v23  ;;  %v1172_v31 = vrot.slane %v1170_v8, 1 }
  0xd2   : > { %v1550_v48 = vshll.u32 %v5956_v30, 16  ;;  %v1541_v7 = vor.u32 %v1540_v17, %v1536_v54  ;;  %v5982_v23 = vcombine.low %v3750_v0, %v5971_v21  ;;  %v1567_v17 = vshll.u32 %v5988_v45, 16 }
  0xd3   : > { %v1154_v59 = vsel %vm545_vm0, %v1149_v25, %v1153_v40  ;;  %v1166_v29 = vsel %vm545_vm0, %v1161_v2, %v1165_v33  ;;  %v3735_v25 = vld [vmem:[%s5219_s10 + $0xc0] sm:$0xe]  ;;  %v1309_v40 = vrot.slane %v3894_v5, 1  ;;  %v1192_v0 = vshrl.u32 %v5837_v20, 16 }
  0xd4   : > { %v1552_v53 = vrot.slane %v1550_v48, 1  ;;  %v1562_v46 = vshll.u32 %v5982_v23, 16  ;;  %v1560_v60 = vshrl.u32 %v5982_v23, 16  ;;  %v1569_v48 = vrot.slane %v1567_v17, 1 }
  0xd6   : > { %v1564_v54 = vrot.slane %v1562_v46, 1 }
  0xd7   : > { %2813 = vmatmul.mubr.bf16.gmra.mrb[88].mxu0 %v1142_v47  ;;  %2910 = vmatmul.mubr.bf16.gmra.mrb[88].mxu1 %v5867_v24  ;;  %v3893_v24 = vcombine.low %v3733_v41, %v5772_v19  ;;  %v1543_v19 = vshll.u32 %v5944_v4, 16  ;;  %v4949_v47 = vld [vmem:[%s5219_s10 + $0xbc] ss:$0 sps:$4 sm:$0x11]   ;;  %v1177_v41 = vrot.slane %v1175_v49, 1 }
  0xd8   : > { %2820 = vmatprep.mubr.bf16.mxu0 %v1302_v36  ;;  %2917 = vmatprep.mubr.bf16.mxu1 %v1522_v37  ;;  %v1548_v36 = vshrl.u32 %v5956_v30, 16  ;;  %v1310_v11 = vrot.slane %v4949_v47, 1  ;;  %v1187_v34 = vshll.u32 %v4949_v47, 16  ;;  %v1565_v33 = vor.u32 %v1564_v54, %v1560_v60 }
  0xd9   : > { %v1306_v22 = vrot.slane %v3893_v24, 1  ;;  %v1545_v50 = vrot.slane %v1543_v19, 1  ;;  %v3895_v24 = vcombine.low %v3735_v25, %v5820_v26  ;;  %v6004_v26 = vcombine.low %v3752_v51, %v5993_v27 }
  0xda   : > { %v1553_v44 = vor.u32 %v1552_v53, %v1548_v36  ;;  %v1311_v16 = vsel %vm802_vm1, %v1309_v40, %v1310_v11  ;;  %v1189_v8 = vrot.slane %v1187_v34, 1  ;;  %v3756_v11 = vld [vmem:[%s5219_s10 + $0x90] sm:$0xf] }
  0xdb   : > { %v1308_v37 = vsel %vm802_vm1, %v1306_v22, %v1307_v28  ;;  %v1546_v9 = vsel %vm545_vm0, %v1541_v7, %v1545_v50  ;;  %v1312_v1 = vrot.slane %v3895_v24, 1  ;;  %v6009_v22 = vld [vmem:[%s5219_s10 + $0x80] ss:$0 sps:$4 sm:$0x11]   ;;  %v1574_v28 = vshll.u32 %v6004_v26, 16 }
  0xdc   : > { %v3754_v7 = vld [vmem:[%s5219_s10 + $0x84] sm:$0xf]  ;;  %v6014_v50 = vld [vmem:[%s5219_s10 + $0x88] sm:$0xf]  ;;  %v1572_v49 = vshrl.u32 %v6004_v26, 16  ;;  %v1579_v36 = vshll.u32 %v6009_v22, 16 }
  0xdd   : > { %v1576_v47 = vrot.slane %v1574_v28, 1  ;;  %v6023_v53 = vcombine.low %v3754_v7, %v6014_v50  ;;  %v6057_v28 = vld [vmem:[%s5219_s10 + $0x98] ss:$0 sps:$4 sm:$0x11]  }
  0xdf   : > { %2821 = vmatmul.mubr.bf16.gmra.mrb[92].mxu0 %v1154_v59  ;;  %2918 = vmatmul.mubr.bf16.gmra.mrb[92].mxu1 %v5894_v14  ;;  %v1168_v14 = vshrl.u32 %v5781_v3, 16  ;;  %v1182_v3 = vshll.u32 %v5804_v52, 16  ;;  %v1180_v59 = vshrl.u32 %v5804_v52, 16  ;;  %v1194_v52 = vshll.u32 %v5837_v20, 16 }
  0xe0   : > { %2828 = vmatprep.mubr.bf16.mxu0 %v1305_v62  ;;  %2925 = vmatprep.mubr.bf16.mxu1 %v1534_v58  ;;  %v1558_v62 = vsel %vm545_vm0, %v1553_v44, %v1557_v56  ;;  %v4953_v58 = vld [vmem:[%s5219_s10 + $0xc8] ss:$0 sps:$4 sm:$0x11]   ;;  %v6033_v44 = vld [vmem:[%s5219_s10 + $0x94] sm:$0xf] }
  0xe1   : > { %v1173_v38 = vor.u32 %v1172_v31, %v1168_v14  ;;  %v1184_v13 = vrot.slane %v1182_v3, 1  ;;  %v1313_v2 = vrot.slane %v4953_v58, 1  ;;  %v1196_v5 = vrot.slane %v1194_v52, 1 }
  0xe2   : > { %v1581_v3 = vrot.slane %v1579_v36, 1  ;;  %v6045_v17 = vcombine.low %v3756_v11, %v6033_v44 }
  0xe3   : > { %v1185_v19 = vor.u32 %v1184_v13, %v1180_v59  ;;  %v1314_v31 = vsel %vm802_vm1, %v1312_v1, %v1313_v2  ;;  %v1197_v20 = vor.u32 %v1196_v5, %v1192_v0  ;;  %v3787_v1 = vld [vmem:[%s5219_s10 + $0x3c] sm:$0xe]  ;;  %v3788_v2 = vld [vmem:[%s5219_s10 + $0x48] sm:$0xe] }
  0xe4   : > { %v1598_v7 = vshll.u32 %v6045_v17, 16 }
  0xe5   : > { %v1190_v14 = vsel %vm545_vm0, %v1185_v19, %v1189_v8  ;;  %v1738_v8 = vrot.slane %v5878_v35, 1 }
  0xe7   : > { %2829 = vmatmul.mubr.bf16.gmra.mrb[96].mxu0 %v1166_v29  ;;  %2926 = vmatmul.mubr.bf16.gmra.mrb[96].mxu1 %v5916_v10  ;;  %v1178_v10 = vsel %vm545_vm0, %v1173_v38, %v1177_v41  ;;  %v1570_v29 = vsel %vm545_vm0, %v1565_v33, %v1569_v48  ;;  %v6028_v38 = vld [vmem:[%s5219_s10 + $0x8c] ss:$0 sps:$4 sm:$0x11]   ;;  %v1586_v41 = vshll.u32 %v6023_v53, 16 }
  0xe8   : > { %2836 = vmatprep.mubr.bf16.mxu0 %v1308_v37  ;;  %2933 = vmatprep.mubr.bf16.mxu1 %v1546_v9  ;;  %v3786_v37 = vld [vmem:[%s5219_s10 + $0x30] sm:$0xe]  ;;  %v1577_v9 = vor.u32 %v1576_v47, %v1572_v49  ;;  %v1591_v54 = vshll.u32 %v6028_v38, 16  ;;  %v3932_v49 = vcombine.low %v3788_v2, %v5905_v57 }
  0xe9   : > { %v1588_v60 = vrot.slane %v1586_v41, 1  ;;  %v1600_v41 = vrot.slane %v1598_v7, 1 }
  0xea   : > { %v1593_v48 = vrot.slane %v1591_v54, 1 }
  0xef   : > { %2837 = vmatmul.mubr.bf16.gmra.mrb[100].mxu0 %v1178_v10  ;;  %2934 = vmatmul.mubr.bf16.gmra.mrb[100].mxu1 %v5938_v63  ;;  %v1199_v63 = vshll.u32 %v4953_v58, 16  ;;  %v1582_v58 = vsel %vm545_vm0, %v1577_v9, %v1581_v3 }
  0xf0   : > { %2844 = vmatprep.mubr.bf16.mxu0 %v1311_v16  ;;  %2941 = vmatprep.mubr.bf16.mxu1 %v1558_v62  ;;  %v1584_v16 = vshrl.u32 %v6023_v53, 16  ;;  %v3930_v62 = vcombine.low %v3786_v37, %v5857_v39 }
  0xf1   : > { %v1201_v32 = vrot.slane %v1199_v63, 1  ;;  %v3758_v63 = vld [vmem:[%s5219_s10 + $0x9c] sm:$0xf] }
  0xf2   : > { %v1737_v39 = vrot.slane %v3930_v62, 1  ;;  %v1589_v33 = vor.u32 %v1588_v60, %v1584_v16  ;;  %v6093_v60 = vld [vmem:[%s5219_s10 + $0xac] sm:$0xf] }
  0xf4   : > { %v1594_v3 = vsel %vm545_vm0, %v1589_v33, %v1593_v48 }
  0xf7   : > { %2845 = vmatmul.mubr.bf16.gmra.mrb[104].mxu0 %v1190_v14  ;;  %2942 = vmatmul.mubr.bf16.gmra.mrb[104].mxu1 %v5956_v30  ;;  %v1202_v30 = vsel %vm545_vm0, %v1197_v20, %v1201_v32  ;;  %v6062_v14 = vld [vmem:[%s5219_s10 + $0xa0] sm:$0xf]  ;;  %v1739_v20 = vsel %vm802_vm1, %v1737_v39, %v1738_v8  ;;  %v1596_v32 = vshrl.u32 %v6045_v17, 16 }
  0xf8   : > { %2852 = vmatprep.mubr.bf16.mxu0 %v1314_v31  ;;  %2949 = vmatprep.mubr.bf16.mxu1 %v1570_v29  ;;  %v6075_v57 = vcombine.low %v3758_v63, %v6062_v14 }
  0xf9   : > { %v1601_v16 = vor.u32 %v1600_v41, %v1596_v32  ;;  %v1750_v32 = vrot.slane %v5966_v61, 1 }
  0xfa   : > { %v4299_v25 = vpop.f32.mrb[0].mxu1  ;;  %v4227_v40 = vpop.f32.mrb[0].mxu0  ;;  %v1608_v7 = vshrl.u32 %v6075_v57, 16 }
  0xfb   : > { %v4300_v56 = vpop.f32.mrb[1].mxu1  ;;  %v4228_v46 = vpop.f32.mrb[1].mxu0 }
  0xfc   : > { %v6036_v51 = vadd.f32 %v4300_v56, %v4299_v25  ;;  %v4302_v24 = vpop.f32.mrb[2].mxu1  ;;  %v6038_v10 = vadd.f32 %v4228_v46, %v4227_v40  ;;  %v4230_v59 = vpop.f32.mrb[2].mxu0  ;;  %v1741_v56 = vrot.slane %v5900_v42, 1  ;;  %v1743_v46 = vrot.slane %v3932_v49, 1 }
  0xfd   : > { %v4303_v13 = vpop.f32.mrb[3].mxu1  ;;  %v4231_v34 = vpop.f32.mrb[3].mxu0 }
  0xfe   : > { %v6047_v52 = vadd.f32 %v4303_v13, %v4302_v24  ;;  %v6049_v19 = vadd.f32 %v4231_v34, %v4230_v59  ;;  %v3789_v24 = vld [vmem:[%s5219_s10 + $0x54] sm:$0xe]  ;;  %v3790_v59 = vld [vmem:[%s5219_s10 + $0x60] sm:$0xe] }
  0xff   : > { %2853 = vmatmul.mubr.bf16.gmra.mrb[108].mxu0 %v1202_v30  ;;  %2950 = vmatmul.mubr.bf16.gmra.mrb[108].mxu1 %v5982_v23  ;;  %v1744_v30 = vrot.slane %v5922_v55, 1  ;;  %v6088_v13 = vld [vmem:[%s5219_s10 + $0xa4] ss:$0 sps:$4 sm:$0x11]   ;;  %v3933_v8 = vcombine.low %v3789_v24, %v5927_v43 }
 0x100   : > { %2957 = vmatprep.mubr.bf16.mxu1 %v1582_v58  ;;  %4699 = vmatprep.mubr.bf16.mxu0 %v5870_v6  ;;  %v3931_v6 = vcombine.low %v3787_v1, %v5883_v12  ;;  %v1603_v12 = vshll.u32 %v6057_v28, 16 }
 0x101   : > { %v1745_v55 = vsel %vm802_vm1, %v1743_v46, %v1744_v30  ;;  %v3762_v46 = vld [vmem:[%s5219_s10 + $0xb4] sm:$0xf]  ;;  %v6124_v30 = vld [vmem:[%s5219_s10 + $0xb8] sm:$0xf] }
 0x102   : > { %v4305_v0 = vpop.f32.mrb[4].mxu1  ;;  %v4233_v5 = vpop.f32.mrb[4].mxu0  ;;  %v1740_v11 = vrot.slane %v3931_v6, 1  ;;  %v1605_v62 = vrot.slane %v1603_v12, 1  ;;  %v1615_v6 = vshll.u32 %v6088_v13, 16 }
 0x103   : > { %v4306_v23 = vpop.f32.mrb[5].mxu1  ;;  %v4234_v31 = vpop.f32.mrb[5].mxu0  ;;  %v6119_v12 = vld [vmem:[%s5219_s10 + $0xb0] ss:$0 sps:$4 sm:$0x11]  }
 0x104   : > { %v6066_v35 = vadd.f32 %v4306_v23, %v4305_v0  ;;  %v4308_v29 = vpop.f32.mrb[6].mxu1  ;;  %v6068_v47 = vadd.f32 %v4234_v31, %v4233_v5  ;;  %v4236_v36 = vpop.f32.mrb[6].mxu0  ;;  %v1742_v39 = vsel %vm802_vm1, %v1740_v11, %v1741_v56  ;;  %v3934_v0 = vcombine.low %v3790_v59, %v5949_v15 }
 0x105   : > { %v4309_v37 = vpop.f32.mrb[7].mxu1  ;;  %v4237_v9 = vpop.f32.mrb[7].mxu0  ;;  %v1606_v23 = vsel %vm545_vm0, %v1601_v16, %v1605_v62  ;;  %v1746_v15 = vrot.slane %v3933_v8, 1  ;;  %v1617_v41 = vrot.slane %v1615_v6, 1 }
 0x106   : > { %v6077_v25 = vadd.f32 %v4309_v37, %v4308_v29  ;;  %v6079_v40 = vadd.f32 %v4237_v9, %v4236_v36  ;;  %v1747_v36 = vrot.slane %v5944_v4, 1  ;;  %v3791_v37 = vld [vmem:[%s5219_s10 + $0x6c] sm:$0xe]  ;;  %v3792_v9 = vld [vmem:[%s5219_s10 + $0x78] sm:$0xe] }
 0x107   : > { %2958 = vmatmul.mubr.bf16.gmra.mrb[112].mxu1 %v6004_v26  ;;  %4700 = vmatmul.mubr.bf16.vlgmr.msra.gmra.mrb[112].mxu0 %v5875_v18  ;;  %v1610_v26 = vshll.u32 %v6075_v57, 16  ;;  %v3760_v18 = vld [vmem:[%s5219_s10 + $0xa8] sm:$0xf]  ;;  %v3935_v16 = vcombine.low %v3791_v37, %v5971_v21  ;;  %v3936_v61 = vcombine.low %v3792_v9, %v5993_v27  ;;  %v1627_v21 = vshll.u32 %v6119_v12, 16  ;;  %v3764_v37 = vld [vmem:[%s5219_s10 + $0xc0] sm:$0xf] }
 0x108   : > { %2965 = vmatprep.mubr.bf16.mxu1 %v1594_v3  ;;  %4703 = vmatprep.mubr.bf16.mxu0 %v1739_v20  ;;  %v6107_v43 = vcombine.low %v3760_v18, %v6093_v60  ;;  %v1749_v20 = vrot.slane %v3934_v0, 1  ;;  %v1748_v59 = vsel %vm802_vm1, %v1746_v15, %v1747_v36  ;;  %v6138_v27 = vcombine.low %v3762_v46, %v6124_v30  ;;  %v6150_v36 = vld [vmem:[%s5219_s10 + $0xbc] ss:$0 sps:$4 sm:$0x11]   ;;  %v6155_v9 = vld [vmem:[%s5219_s10 + $0xc4] sm:$0xf] }
 0x109   : > { %v1612_v31 = vrot.slane %v1610_v26, 1  ;;  %v1753_v0 = vrot.slane %v5988_v45, 1  ;;  %v1629_v15 = vrot.slane %v1627_v21, 1  ;;  %v6160_v45 = vld [vmem:[%s6744_s2] ss:$0 sm:$0xff]  ;;  %v1759_v21 = vrot.slane %v6028_v38, 1 }
 0x10a   : > { %v4311_v34 = vpop.f32.mrb[8].mxu1  ;;  %v4239_v58 = vpop.f32.mrb[8].mxu0  ;;  %v1622_v11 = vshll.u32 %v6107_v43, 16  ;;  %v1751_v18 = vsel %vm802_vm1, %v1749_v20, %v1750_v32  ;;  %v1634_v20 = vshll.u32 %v6138_v27, 16  ;;  %v2413_v46 = vadd.f32 %v6038_v10, %v6160_v45 }
 0x10b   : > { %v4312_v54 = vpop.f32.mrb[9].mxu1  ;;  %v4240_v42 = vpop.f32.mrb[9].mxu0  ;;  %v1613_v3 = vor.u32 %v1612_v31, %v1608_v7  ;;  %v1752_v7 = vrot.slane %v3935_v16, 1  ;;  %v3794_v31 = vld [vmem:[%s5219_s10 + $0x90] sm:$0xe]  ;;  %v2416_v10 = vadd.f32 %v6049_v19, %v6160_v45 }
 0x10c   : > { %v6098_v1 = vadd.f32 %v4312_v54, %v4311_v34  ;;  %v4314_v2 = vpop.f32.mrb[10].mxu1  ;;  %v6100_v33 = vadd.f32 %v4240_v42, %v4239_v58  ;;  %v4242_v48 = vpop.f32.mrb[10].mxu0  ;;  %v1620_v54 = vshrl.u32 %v6107_v43, 16  ;;  %v1624_v8 = vrot.slane %v1622_v11, 1  ;;  %v3795_v19 = vld [vmem:[%s5219_s10 + $0x9c] sm:$0xe] }
 0x10d   : > { %v4315_v5 = vpop.f32.mrb[11].mxu1  ;;  %v4243_v63 = vpop.f32.mrb[11].mxu0 }
 0x10e   : > { %v6109_v49 = vadd.f32 %v4315_v5, %v4314_v2  ;;  %v6111_v29 = vadd.f32 %v4243_v63, %v4242_v48  ;;  %v1755_v5 = vrot.slane %v3936_v61, 1  ;;  %v1756_v63 = vrot.slane %v6009_v22, 1 }
 0x10f   : > { %2966 = vmatmul.mubr.bf16.gmra.mrb[116].mxu1 %v6023_v53  ;;  %4704 = vmatmul.mubr.bf16.gmra.mrb[116].mxu0 %v1742_v39  ;;  %v1625_v6 = vor.u32 %v1624_v8, %v1620_v54  ;;  %v1632_v61 = vshrl.u32 %v6138_v27, 16  ;;  %v1636_v54 = vrot.slane %v1634_v20, 1 }
 0x110   : > { %2973 = vmatprep.mubr.bf16.mxu1 %v1606_v23  ;;  %4707 = vmatprep.mubr.bf16.mxu0 %v1745_v55  ;;  %v1618_v55 = vsel %vm545_vm0, %v1613_v3, %v1617_v41  ;;  %v3793_v23 = vld [vmem:[%s5219_s10 + $0x84] sm:$0xe]  ;;  %v1754_v41 = vsel %vm802_vm1, %v1752_v7, %v1753_v0  ;;  %v1757_v11 = vsel %vm802_vm1, %v1755_v5, %v1756_v63  ;;  %v1762_v0 = vrot.slane %v6057_v28, 1  ;;  %v3796_v63 = vld [vmem:[%s5219_s10 + $0xa8] sm:$0xe] }
 0x112   : > { %v4317_v53 = vpop.f32.mrb[12].mxu1  ;;  %v4245_v56 = vpop.f32.mrb[12].mxu0 }
 0x113   : > { %v4318_v24 = vpop.f32.mrb[13].mxu1  ;;  %v4246_v4 = vpop.f32.mrb[13].mxu0 }
 0x114   : > { %v6129_v62 = vadd.f32 %v4318_v24, %v4317_v53  ;;  %v4320_v26 = vpop.f32.mrb[14].mxu1  ;;  %v6131_v34 = vadd.f32 %v4246_v4, %v4245_v56  ;;  %v4248_v58 = vpop.f32.mrb[14].mxu0  ;;  %v3937_v53 = vcombine.low %v3793_v23, %v6014_v50  ;;  %v3938_v56 = vcombine.low %v3794_v31, %v6033_v44 }
 0x115   : > { %v4321_v42 = vpop.f32.mrb[15].mxu1  ;;  %v4249_v39 = vpop.f32.mrb[15].mxu0  ;;  %v1639_v50 = vshll.u32 %v6150_v36, 16  ;;  %v6174_v44 = vcombine.low %v3764_v37, %v6155_v9  ;;  %v1637_v23 = vor.u32 %v1636_v54, %v1632_v61 }
 0x116   : > { %v6140_v2 = vadd.f32 %v4321_v42, %v4320_v26  ;;  %v6142_v48 = vadd.f32 %v4249_v39, %v4248_v58  ;;  %v1758_v8 = vrot.slane %v3937_v53, 1  ;;  %v1761_v7 = vrot.slane %v3938_v56, 1 }
 0x117   : > { %2974 = vmatmul.mubr.bf16.gmra.mrb[120].mxu1 %v6045_v17  ;;  %4708 = vmatmul.mubr.bf16.gmra.mrb[120].mxu0 %v1748_v59  ;;  %v1641_v31 = vrot.slane %v1639_v50, 1 }
 0x118   : > { %2981 = vmatprep.mubr.bf16.mxu1 %v1618_v55  ;;  %4711 = vmatprep.mubr.bf16.mxu0 %v1751_v18  ;;  %v1630_v18 = vsel %vm545_vm0, %v1625_v6, %v1629_v15  ;;  %v6190_v6 = vld [vmem:[%s5219_s10 + $0xc8] ss:$0 sps:$4 sm:$0x11]   ;;  %v1760_v28 = vsel %vm802_vm1, %v1758_v8, %v1759_v21  ;;  %v1768_v21 = vrot.slane %v6119_v12, 1 }
 0x11a   : > { %v4339_v17 = vpop.f32.mrb[16].mxu1  ;;  %v4251_v32 = vpop.f32.mrb[16].mxu0 }
 0x11b   : > { %v4340_v22 = vpop.f32.mrb[17].mxu1  ;;  %v4252_v3 = vpop.f32.mrb[17].mxu0 }
 0x11c   : > { %v4341_v24 = vadd.f32 %v4340_v22, %v4339_v17  ;;  %v4342_v4 = vpop.f32.mrb[18].mxu1  ;;  %v6168_v59 = vadd.f32 %v4252_v3, %v4251_v32  ;;  %v4254_v16 = vpop.f32.mrb[18].mxu0  ;;  %v3766_v17 = vld [vmem:[%s5219_s10 + $0xcc] sm:$0xf]  ;;  %v6195_v32 = vld [vmem:[%s5219_s10 + $0xd0] sm:$0xf]  ;;  %v1763_v22 = vsel %vm802_vm1, %v1761_v7, %v1762_v0  ;;  %v3939_v3 = vcombine.low %v3795_v19, %v6062_v14 }
 0x11d   : > { %v4343_v26 = vpop.f32.mrb[19].mxu1  ;;  %v4255_v58 = vpop.f32.mrb[19].mxu0  ;;  %v1651_v14 = vshll.u32 %v6190_v6, 16  ;;  %v3798_v0 = vld [vmem:[%s5219_s10 + $0xc0] sm:$0xe] }
 0x11e   : > { %v6178_v42 = vadd.f32 %v4341_v24, %v2413_v46  ;;  %v4344_v39 = vadd.f32 %v4343_v26, %v4342_v4  ;;  %v6180_v55 = vadd.f32 %v4255_v58, %v4254_v16  ;;  %v1644_v4 = vshrl.u32 %v6174_v44, 16 }
 0x11f   : > { %2982 = vmatmul.mubr.bf16.gmra.mrb[124].mxu1 %v6075_v57  ;;  %4712 = vmatmul.mubr.bf16.gmra.mrb[124].mxu0 %v1754_v41  ;;  %v1646_v57 = vshll.u32 %v6174_v44, 16  ;;  %v3940_v41 = vcombine.low %v3796_v63, %v6093_v60  ;;  %v1642_v26 = vsel %vm545_vm0, %v1637_v23, %v1641_v31  ;;  %v6209_v60 = vcombine.low %v3766_v17, %v6195_v32  ;;  %v6225_v23 = vld [vmem:[%s5219_s10 + $0xd4] ss:$0 sps:$4 sm:$0x11]  }
 0x120   : > { %v6185_v5 = vadd.f32 %v4344_v39, %v2416_v10  ;;  %2989 = vmatprep.mubr.bf16.mxu1 %v1630_v18  ;;  %4715 = vmatprep.mubr.bf16.mxu0 %v1757_v11  ;;  %v2421_v11 = vadd.f32 %v6068_v47, %v6160_v45  ;;  %v2424_v47 = vadd.f32 %v6079_v40, %v6160_v45  ;;  %v1764_v10 = vrot.slane %v3939_v3, 1  ;;  %v3797_v40 = vld [vmem:[%s5219_s10 + $0xb4] sm:$0xe] }
 0x121   : > { %v1648_v58 = vrot.slane %v1646_v57, 1  ;;  %v1765_v39 = vrot.slane %v6088_v13, 1  ;;  %v1767_v8 = vrot.slane %v3940_v41, 1  ;;  %v1653_v63 = vrot.slane %v1651_v14, 1 }
 0x122   : > { %v4345_v15 = vpop.f32.mrb[20].mxu1  ;;  %v4257_v20 = vpop.f32.mrb[20].mxu0  ;;  %v1658_v31 = vshll.u32 %v6209_v60, 16  ;;  %v3941_v17 = vcombine.low %v3797_v40, %v6124_v30  ;;  %v3942_v41 = vcombine.low %v3798_v0, %v6155_v9 }
 0x123   : > { %v4346_v38 = vpop.f32.mrb[21].mxu1  ;;  %v4258_v37 = vpop.f32.mrb[21].mxu0  ;;  %v1649_v19 = vor.u32 %v1648_v58, %v1644_v4  ;;  %v1766_v13 = vsel %vm802_vm1, %v1764_v10, %v1765_v39  ;;  %v1769_v12 = vsel %vm802_vm1, %v1767_v8, %v1768_v21  ;;  %v1771_v58 = vrot.slane %v6150_v36, 1  ;;  %v3799_v39 = vld [vmem:[%s5219_s10 + $0xcc] sm:$0xe]  ;;  %s4083_s10 = sshll.u32 %s6751_s12, 7 }
 0x124   : > { %v4347_v53 = vadd.f32 %v4346_v38, %v4345_v15  ;;  %v4348_v56 = vpop.f32.mrb[22].mxu1  ;;  %v6203_v46 = vadd.f32 %v4258_v37, %v4257_v20  ;;  %v4260_v24 = vpop.f32.mrb[22].mxu0  ;;  %v2429_v38 = vadd.f32 %v6100_v33, %v6160_v45  ;;  %v1660_v4 = vrot.slane %v1658_v31, 1  ;;  %s6616_s7 = scalar_lea.vmem %s6745_s3, %s4083_s10 }
 0x125   : > { %v4349_v16 = vpop.f32.mrb[23].mxu1  ;;  %v4261_v61 = vpop.f32.mrb[23].mxu0  ;;  %v2432_v33 = vadd.f32 %v6111_v29, %v6160_v45  ;;  %v1770_v9 = vrot.slane %v3941_v17, 1  ;;  %v1773_v10 = vrot.slane %v3942_v41, 1  ;;  %v1774_v29 = vrot.slane %v6190_v6, 1 }
 0x126   : > { %v6213_v18 = vadd.f32 %v4347_v53, %v2421_v11  ;;  %v4350_v54 = vadd.f32 %v4349_v16, %v4348_v56  ;;  %v6215_v50 = vadd.f32 %v4261_v61, %v4260_v24  ;;  %v1654_v56 = vsel %vm545_vm0, %v1649_v19, %v1653_v63 }
 0x127   : > { %2990 = vmatmul.mubr.bf16.gmra.mrb[128].mxu1 %v6107_v43  ;;  %4716 = vmatmul.mubr.bf16.gmra.mrb[128].mxu0 %v1760_v28  ;;  %v1656_v24 = vshrl.u32 %v6209_v60, 16  ;;  %v1663_v16 = vshll.u32 %v6225_v23, 16  ;;  %v2437_v19 = vadd.f32 %v6131_v34, %v6160_v45 }
 0x128   : > { %v6220_v7 = vadd.f32 %v4350_v54, %v2424_v47  ;;  %2997 = vmatprep.mubr.bf16.mxu1 %v1642_v26  ;;  %4719 = vmatprep.mubr.bf16.mxu0 %v1763_v22 }
 0x129   : > { %v1661_v47 = vor.u32 %v1660_v4, %v1656_v24  ;;  %v1665_v54 = vrot.slane %v1663_v16, 1 }
 0x12a   : > { %v4351_v43 = vpop.f32.mrb[24].mxu1  ;;  %v4263_v57 = vpop.f32.mrb[24].mxu0 }
 0x12b   : > { %v4352_v15 = vpop.f32.mrb[25].mxu1  ;;  %v4264_v20 = vpop.f32.mrb[25].mxu0  ;;  %v1666_v6 = vsel %vm545_vm0, %v1661_v47, %v1665_v54 }
 0x12c   : > { %v4353_v37 = vadd.f32 %v4352_v15, %v4351_v43  ;;  %v4354_v28 = vpop.f32.mrb[26].mxu1  ;;  %v6233_v22 = vadd.f32 %v4264_v20, %v4263_v57  ;;  %v4266_v3 = vpop.f32.mrb[26].mxu0  ;;  %v3943_v57 = vcombine.low %v3799_v39, %v6195_v32 }
 0x12d   : > { %v4355_v11 = vpop.f32.mrb[27].mxu1  ;;  %v4267_v53 = vpop.f32.mrb[27].mxu0 }
 0x12e   : > { %v6241_v30 = vadd.f32 %v4353_v37, %v2429_v38  ;;  %v4356_v61 = vadd.f32 %v4355_v11, %v4354_v28  ;;  %v6243_v26 = vadd.f32 %v4267_v53, %v4266_v3  ;;  %v1776_v32 = vrot.slane %v3943_v57, 1 }
 0x12f   : > { %2998 = vmatmul.mubr.bf16.gmra.mrb[132].mxu1 %v6138_v27  ;;  %4720 = vmatmul.mubr.bf16.gmra.mrb[132].mxu0 %v1766_v13  ;;  %v1772_v27 = vsel %vm802_vm1, %v1770_v9, %v1771_v58  ;;  %v1775_v13 = vsel %vm802_vm1, %v1773_v10, %v1774_v29  ;;  %v1777_v28 = vrot.slane %v6225_v23, 1  ;;  %v2448_v9 = vadd.f32 %v6180_v55, %v6160_v45 }
 0x130   : > { %v6247_v14 = vadd.f32 %v4356_v61, %v2432_v33  ;;  %3005 = vmatprep.mubr.bf16.mxu1 %v1654_v56  ;;  %4723 = vmatprep.mubr.bf16.mxu0 %v1769_v12  ;;  %v2440_v12 = vadd.f32 %v6142_v48, %v6160_v45  ;;  %v2445_v48 = vadd.f32 %v6168_v59, %v6160_v45 }
 0x131   : > { %v1778_v16 = vsel %vm802_vm1, %v1776_v32, %v1777_v28 }
 0x132   : > { %v4357_v8 = vpop.f32.mrb[28].mxu1  ;;  %v4269_v21 = vpop.f32.mrb[28].mxu0 }
 0x133   : > { %v4358_v40 = vpop.f32.mrb[29].mxu1  ;;  %v4270_v0 = vpop.f32.mrb[29].mxu0 }
 0x134   : > { %v4359_v36 = vadd.f32 %v4358_v40, %v4357_v8  ;;  %v4360_v63 = vpop.f32.mrb[30].mxu1  ;;  %v6254_v31 = vadd.f32 %v4270_v0, %v4269_v21  ;;  %v4272_v43 = vpop.f32.mrb[30].mxu0  ;;  %v2453_v8 = vadd.f32 %v6203_v46, %v6160_v45 }
 0x135   : > { %v4361_v15 = vpop.f32.mrb[31].mxu1  ;;  %v4273_v20 = vpop.f32.mrb[31].mxu0 }
 0x136   : > { %v6261_v17 = vadd.f32 %v4359_v36, %v2437_v19  ;;  %v4362_v38 = vadd.f32 %v4361_v15, %v4360_v63  ;;  %v6263_v34 = vadd.f32 %v4273_v20, %v4272_v43 }
 0x137   : > { %3006 = vmatmul.mubr.bf16.gmra.mrb[136].mxu1 %v6174_v44  ;;  %4724 = vmatmul.mubr.bf16.gmra.mrb[136].mxu0 %v1772_v27 }
 0x138   : > { %v6266_v37 = vadd.f32 %v4362_v38, %v2440_v12  ;;  %3013 = vmatprep.mubr.bf16.mxu1 %v1666_v6  ;;  %4727 = vmatprep.mubr.bf16.mxu0 %v1775_v13  ;;  %v2461_v13 = vadd.f32 %v6233_v22, %v6160_v45 }
 0x13a   : > { %v4363_v3 = vpop.f32.mrb[32].mxu1  ;;  %v4275_v41 = vpop.f32.mrb[32].mxu0 }
 0x13b   : > { %v4364_v11 = vpop.f32.mrb[33].mxu1  ;;  %v4276_v53 = vpop.f32.mrb[33].mxu0 }
 0x13c   : > { %v4365_v56 = vadd.f32 %v4364_v11, %v4363_v3  ;;  %v4366_v24 = vpop.f32.mrb[34].mxu1  ;;  %v6271_v4 = vadd.f32 %v4276_v53, %v4275_v41  ;;  %v4278_v44 = vpop.f32.mrb[34].mxu0  ;;  %v2464_v41 = vadd.f32 %v6243_v26, %v6160_v45 }
 0x13d   : > { %v4367_v33 = vpop.f32.mrb[35].mxu1  ;;  %v4279_v61 = vpop.f32.mrb[35].mxu0 }
 0x13e   : > { %v6276_v23 = vadd.f32 %v4365_v56, %v2445_v48  ;;  %v4368_v58 = vadd.f32 %v4367_v33, %v4366_v24  ;;  %v4280_v47 = vadd.f32 %v4279_v61, %v4278_v44  ;;  %v2469_v33 = vadd.f32 %v6254_v31, %v6160_v45 }
 0x13f   : > { %3014 = vmatmul.mubr.bf16.gmra.mrb[140].mxu1 %v6209_v60  ;;  %4728 = vmatmul.mubr.bf16.gmra.mrb[140].mxu0 %v1778_v16  ;;  %v2456_v60 = vadd.f32 %v6215_v50, %v6160_v45 }
 0x140   : > { %v6279_v59 = vadd.f32 %v4368_v58, %v2448_v9 }
 0x142   : > { %v4369_v54 = vpop.f32.mrb[36].mxu1  ;;  %v4281_v10 = vpop.f32.mrb[36].mxu0 }
 0x143   : > { %v4370_v29 = vpop.f32.mrb[37].mxu1  ;;  %v4282_v39 = vpop.f32.mrb[37].mxu0 }
 0x144   : > { %v4371_v21 = vadd.f32 %v4370_v29, %v4369_v54  ;;  %v4372_v40 = vpop.f32.mrb[38].mxu1  ;;  %v6283_v0 = vadd.f32 %v4282_v39, %v4281_v10  ;;  %v4284_v55 = vpop.f32.mrb[38].mxu0  ;;  %v2472_v29 = vadd.f32 %v6263_v34, %v6160_v45  ;;  %v2480_v34 = vadd.f32 %v4280_v47, %v6160_v45 }
 0x145   : > { %v4373_v27 = vpop.f32.mrb[39].mxu1  ;;  %v4285_v19 = vpop.f32.mrb[39].mxu0 }
 0x146   : > { %v6287_v36 = vadd.f32 %v4371_v21, %v2453_v8  ;;  %v4374_v63 = vadd.f32 %v4373_v27, %v4372_v40  ;;  %v4286_v43 = vadd.f32 %v4285_v19, %v4284_v55  ;;  %v2485_v47 = vadd.f32 %v6283_v0, %v6160_v45 }
 0x148   : > { %v6289_v57 = vadd.f32 %v4374_v63, %v2456_v60  ;;  %v2477_v60 = vadd.f32 %v6271_v4, %v6160_v45 }
 0x14a   : > { %v4375_v15 = vpop.f32.mrb[40].mxu1  ;;  %v4287_v20 = vpop.f32.mrb[40].mxu0 }
 0x14b   : > { %v4376_v6 = vpop.f32.mrb[41].mxu1  ;;  %v4288_v46 = vpop.f32.mrb[41].mxu0 }
 0x14c   : > { %v4377_v12 = vadd.f32 %v4376_v6, %v4375_v15  ;;  %v4378_v38 = vpop.f32.mrb[42].mxu1  ;;  %v6293_v32 = vadd.f32 %v4288_v46, %v4287_v20  ;;  %v4290_v28 = vpop.f32.mrb[42].mxu0 }
 0x14d   : > { %v4379_v3 = vpop.f32.mrb[43].mxu1  ;;  %v4291_v50 = vpop.f32.mrb[43].mxu0 }
 0x14e   : > { %v6297_v11 = vadd.f32 %v4377_v12, %v2461_v13  ;;  %v4380_v53 = vadd.f32 %v4379_v3, %v4378_v38  ;;  %v6299_v48 = vadd.f32 %v4291_v50, %v4290_v28 }
 0x150   : > { %v6301_v56 = vadd.f32 %v4380_v53, %v2464_v41 }
 0x152   : > { %v4381_v24 = vpop.f32.mrb[44].mxu1  ;;  %v4293_v44 = vpop.f32.mrb[44].mxu0 }
 0x153   : > { %v4382_v22 = vpop.f32.mrb[45].mxu1  ;;  %v4294_v16 = vpop.f32.mrb[45].mxu0 }
 0x154   : > { %v4383_v61 = vadd.f32 %v4382_v22, %v4381_v24  ;;  %v4384_v9 = vpop.f32.mrb[46].mxu1  ;;  %v6305_v58 = vadd.f32 %v4294_v16, %v4293_v44  ;;  %v4296_v54 = vpop.f32.mrb[46].mxu0 }
 0x155   : > { %v4385_v26 = vpop.f32.mrb[47].mxu1  ;;  %v4297_v10 = vpop.f32.mrb[47].mxu0 }
 0x156   : > { %v6309_v39 = vadd.f32 %v4383_v61, %v2469_v33  ;;  %v4386_v8 = vadd.f32 %v4385_v26, %v4384_v9  ;;  %v6311_v21 = vadd.f32 %v4297_v10, %v4296_v54 }
 0x158   : > { %v6313_v40 = vadd.f32 %v4386_v8, %v2472_v29 }
 0x15a   : > { %v4387_v55 = vpop.f32.mrb[48].mxu1  ;;  %v4451_v27 = vpop.f32.mrb[48].mxu0 }
 0x15b   : > { %v4388_v31 = vpop.f32.mrb[49].mxu1  ;;  %v4452_v19 = vpop.f32.mrb[49].mxu0 }
 0x15c   : > { %v4389_v63 = vadd.f32 %v4388_v31, %v4387_v55  ;;  %v4453_v15 = vadd.f32 %v4452_v19, %v4451_v27  ;;  %v4390_v20 = vpop.f32.mrb[50].mxu1  ;;  %v4454_v6 = vpop.f32.mrb[50].mxu0 }
 0x15d   : > { %v4391_v46 = vpop.f32.mrb[51].mxu1  ;;  %v4455_v13 = vpop.f32.mrb[51].mxu0 }
 0x15e   : > { %v6318_v12 = vadd.f32 %v4389_v63, %v2477_v60  ;;  %v6321_v38 = vadd.f32 %v4453_v15, %v6178_v42  ;;  %v4392_v28 = vadd.f32 %v4391_v46, %v4390_v20  ;;  %v4456_v3 = vadd.f32 %v4455_v13, %v4454_v6 }
 0x15f   : > { %v2488_v42 = vadd.f32 %v4286_v43, %v6160_v45  ;;  %v2493_v43 = vadd.f32 %v6293_v32, %v6160_v45 }
 0x160   : > { %v6323_v50 = vadd.f32 %v4392_v28, %v2480_v34  ;;  %v6326_v41 = vadd.f32 %v4456_v3, %v6185_v5 }
 0x162   : > { %v4393_v4 = vpop.f32.mrb[52].mxu1  ;;  %v4457_v53 = vpop.f32.mrb[52].mxu0 }
 0x163   : > { %v4394_v24 = vpop.f32.mrb[53].mxu1  ;;  %v4458_v44 = vpop.f32.mrb[53].mxu0 }
 0x164   : > { %v4395_v22 = vadd.f32 %v4394_v24, %v4393_v4  ;;  %v4459_v16 = vadd.f32 %v4458_v44, %v4457_v53  ;;  %v4396_v33 = vpop.f32.mrb[54].mxu1  ;;  %v4460_v61 = vpop.f32.mrb[54].mxu0 }
 0x165   : > { %v4397_v9 = vpop.f32.mrb[55].mxu1  ;;  %v4461_v54 = vpop.f32.mrb[55].mxu0 }
 0x166   : > { %v6331_v26 = vadd.f32 %v4395_v22, %v2485_v47  ;;  %v6334_v5 = vadd.f32 %v4459_v16, %v6213_v18  ;;  %v4398_v10 = vadd.f32 %v4397_v9, %v4396_v33  ;;  %v4462_v29 = vadd.f32 %v4461_v54, %v4460_v61 }
 0x167   : > { %v2496_v18 = vadd.f32 %v6299_v48, %v6160_v45  ;;  %v2501_v48 = vadd.f32 %v6305_v58, %v6160_v45 }
 0x168   : > { %v6336_v8 = vadd.f32 %v4398_v10, %v2488_v42  ;;  %v6339_v55 = vadd.f32 %v4462_v29, %v6220_v7 }
 0x16a   : > { %v4399_v0 = vpop.f32.mrb[56].mxu1  ;;  %v4463_v27 = vpop.f32.mrb[56].mxu0 }
 0x16b   : > { %v4400_v31 = vpop.f32.mrb[57].mxu1  ;;  %v4464_v19 = vpop.f32.mrb[57].mxu0 }
 0x16c   : > { %v4401_v60 = vadd.f32 %v4400_v31, %v4399_v0  ;;  %v4465_v63 = vadd.f32 %v4464_v19, %v4463_v27  ;;  %v4402_v15 = vpop.f32.mrb[58].mxu1  ;;  %v4466_v20 = vpop.f32.mrb[58].mxu0 }
 0x16d   : > { %v4403_v6 = vpop.f32.mrb[59].mxu1  ;;  %v4467_v34 = vpop.f32.mrb[59].mxu0 }
 0x16e   : > { %v6345_v46 = vadd.f32 %v4401_v60, %v2493_v43  ;;  %v6348_v7 = vadd.f32 %v4465_v63, %v6241_v30  ;;  %v4404_v13 = vadd.f32 %v4403_v6, %v4402_v15  ;;  %v4468_v28 = vadd.f32 %v4467_v34, %v4466_v20 }
 0x16f   : > { %v2504_v30 = vadd.f32 %v6311_v21, %v6160_v45  ;;  %v2509_v21 = vadd.f32 %v6036_v51, %v6160_v45 }
 0x170   : > { %v6350_v3 = vadd.f32 %v4404_v13, %v2496_v18  ;;  %v6353_v32 = vadd.f32 %v4468_v28, %v6247_v14 }
 0x172   : > { %v4405_v4 = vpop.f32.mrb[60].mxu1  ;;  %v4469_v53 = vpop.f32.mrb[60].mxu0 }
 0x173   : > { %v4406_v24 = vpop.f32.mrb[61].mxu1  ;;  %v4470_v44 = vpop.f32.mrb[61].mxu0 }
 0x174   : > { %v4407_v47 = vadd.f32 %v4406_v24, %v4405_v4  ;;  %v4471_v22 = vadd.f32 %v4470_v44, %v4469_v53  ;;  %v4408_v16 = vpop.f32.mrb[62].mxu1  ;;  %v4472_v33 = vpop.f32.mrb[62].mxu0 }
 0x175   : > { %v4409_v61 = vpop.f32.mrb[63].mxu1  ;;  %v4473_v42 = vpop.f32.mrb[63].mxu0 }
 0x176   : > { %v6359_v9 = vadd.f32 %v4407_v47, %v2501_v48  ;;  %v6362_v14 = vadd.f32 %v4471_v22, %v6261_v17  ;;  %v4410_v54 = vadd.f32 %v4409_v61, %v4408_v16  ;;  %v4474_v10 = vadd.f32 %v4473_v42, %v4472_v33 }
 0x177   : > { %v2512_v17 = vadd.f32 %v6047_v52, %v6160_v45  ;;  %v2517_v52 = vadd.f32 %v6066_v35, %v6160_v45 }
 0x178   : > { %v6364_v29 = vadd.f32 %v4410_v54, %v2504_v30  ;;  %v6367_v58 = vadd.f32 %v4474_v10, %v6266_v37 }
 0x17a   : > { %v4411_v0 = vpop.f32.mrb[64].mxu1  ;;  %v4475_v27 = vpop.f32.mrb[64].mxu0 }
 0x17b   : > { %v4412_v31 = vpop.f32.mrb[65].mxu1  ;;  %v4476_v19 = vpop.f32.mrb[65].mxu0 }
 0x17c   : > { %v4413_v43 = vadd.f32 %v4412_v31, %v4411_v0  ;;  %v4477_v60 = vadd.f32 %v4476_v19, %v4475_v27  ;;  %v4414_v63 = vpop.f32.mrb[66].mxu1  ;;  %v4478_v15 = vpop.f32.mrb[66].mxu0 }
 0x17d   : > { %v4415_v20 = vpop.f32.mrb[67].mxu1  ;;  %v4479_v18 = vpop.f32.mrb[67].mxu0 }
 0x17e   : > { %v6373_v6 = vadd.f32 %v4413_v43, %v2509_v21  ;;  %v6376_v37 = vadd.f32 %v4477_v60, %v6276_v23  ;;  %v4416_v34 = vadd.f32 %v4415_v20, %v4414_v63  ;;  %v4480_v13 = vadd.f32 %v4479_v18, %v4478_v15 }
 0x17f   : > { %v2520_v23 = vadd.f32 %v6077_v25, %v6160_v45  ;;  %v2525_v25 = vadd.f32 %v6098_v1, %v6160_v45 }
 0x180   : > { %v6378_v28 = vadd.f32 %v4416_v34, %v2512_v17  ;;  %v6381_v51 = vadd.f32 %v4480_v13, %v6279_v59 }
 0x182   : > { %v4417_v4 = vpop.f32.mrb[68].mxu1  ;;  %v4481_v53 = vpop.f32.mrb[68].mxu0 }
 0x183   : > { %v4418_v24 = vpop.f32.mrb[69].mxu1  ;;  %v4482_v44 = vpop.f32.mrb[69].mxu0 }
 0x184   : > { %v4419_v48 = vadd.f32 %v4418_v24, %v4417_v4  ;;  %v4483_v47 = vadd.f32 %v4482_v44, %v4481_v53  ;;  %v4420_v22 = vpop.f32.mrb[70].mxu1  ;;  %v4484_v16 = vpop.f32.mrb[70].mxu0 }
 0x185   : > { %v4421_v33 = vpop.f32.mrb[71].mxu1  ;;  %v4485_v30 = vpop.f32.mrb[71].mxu0 }
 0x186   : > { %v6387_v61 = vadd.f32 %v4419_v48, %v2517_v52  ;;  %v6390_v59 = vadd.f32 %v4483_v47, %v6287_v36  ;;  %v4422_v42 = vadd.f32 %v4421_v33, %v4420_v22  ;;  %v4486_v54 = vadd.f32 %v4485_v30, %v4484_v16 }
 0x187   : > { %v2528_v36 = vadd.f32 %v6109_v49, %v6160_v45  ;;  %v2533_v49 = vadd.f32 %v6129_v62, %v6160_v45 }
 0x188   : > { %v6392_v10 = vadd.f32 %v4422_v42, %v2520_v23  ;;  %v6395_v35 = vadd.f32 %v4486_v54, %v6289_v57 }
 0x18a   : > { %v4423_v0 = vpop.f32.mrb[72].mxu1  ;;  %v4487_v27 = vpop.f32.mrb[72].mxu0 }
 0x18b   : > { %v4424_v31 = vpop.f32.mrb[73].mxu1  ;;  %v4488_v19 = vpop.f32.mrb[73].mxu0 }
 0x18c   : > { %v4425_v21 = vadd.f32 %v4424_v31, %v4423_v0  ;;  %v4489_v43 = vadd.f32 %v4488_v19, %v4487_v27  ;;  %v4426_v60 = vpop.f32.mrb[74].mxu1  ;;  %v4490_v63 = vpop.f32.mrb[74].mxu0 }
 0x18d   : > { %v4427_v15 = vpop.f32.mrb[75].mxu1  ;;  %v4491_v17 = vpop.f32.mrb[75].mxu0 }
 0x18e   : > { %v6401_v20 = vadd.f32 %v4425_v21, %v2525_v25  ;;  %v6404_v57 = vadd.f32 %v4489_v43, %v6297_v11  ;;  %v4428_v18 = vadd.f32 %v4427_v15, %v4426_v60  ;;  %v4492_v34 = vadd.f32 %v4491_v17, %v4490_v63 }
 0x18f   : > { %v2536_v11 = vadd.f32 %v6140_v2, %v6160_v45 }
 0x190   : > { %v6406_v13 = vadd.f32 %v4428_v18, %v2528_v36  ;;  %v6409_v1 = vadd.f32 %v4492_v34, %v6301_v56 }
 0x192   : > { %v4429_v4 = vpop.f32.mrb[76].mxu1  ;;  %v4493_v53 = vpop.f32.mrb[76].mxu0 }
 0x193   : > { %v4430_v24 = vpop.f32.mrb[77].mxu1  ;;  %v4494_v44 = vpop.f32.mrb[77].mxu0 }
 0x194   : > { %v4431_v52 = vadd.f32 %v4430_v24, %v4429_v4  ;;  %v4495_v48 = vadd.f32 %v4494_v44, %v4493_v53  ;;  %v4432_v47 = vpop.f32.mrb[78].mxu1  ;;  %v4496_v22 = vpop.f32.mrb[78].mxu0 }
 0x195   : > { %v4433_v16 = vpop.f32.mrb[79].mxu1  ;;  %v4497_v23 = vpop.f32.mrb[79].mxu0 }
 0x196   : > { %v6415_v33 = vadd.f32 %v4431_v52, %v2533_v49  ;;  %v6418_v56 = vadd.f32 %v4495_v48, %v6309_v39  ;;  %v4434_v30 = vadd.f32 %v4433_v16, %v4432_v47  ;;  %v4498_v42 = vadd.f32 %v4497_v23, %v4496_v22 }
 0x198   : > { %v6420_v54 = vadd.f32 %v4434_v30, %v2536_v11  ;;  %v6423_v62 = vadd.f32 %v4498_v42, %v6313_v40 }
 0x19a   : > { %v4499_v0 = vpop.f32.mrb[80].mxu0  ;;  %v4563_v27 = vpop.f32.mrb[80].mxu1 }
 0x19b   : > { %v4500_v31 = vpop.f32.mrb[81].mxu0  ;;  %v4564_v19 = vpop.f32.mrb[81].mxu1 }
 0x19c   : > { %v4501_v25 = vadd.f32 %v4500_v31, %v4499_v0  ;;  %v4565_v2 = vadd.f32 %v4564_v19, %v4563_v27  ;;  %v4502_v45 = vpop.f32.mrb[82].mxu0  ;;  %v4566_v21 = vpop.f32.mrb[82].mxu1 }
 0x19d   : > { %v4503_v43 = vpop.f32.mrb[83].mxu0  ;;  %v4567_v60 = vpop.f32.mrb[83].mxu1 }
 0x19e   : > { %v6426_v39 = vadd.f32 %v4501_v25, %v6318_v12  ;;  %v4504_v63 = vadd.f32 %v4503_v43, %v4502_v45  ;;  %v4568_v36 = vadd.f32 %v4567_v60, %v4566_v21  ;;  %v6429_v15 = vadd.f32 %v4565_v2, %v6321_v38 }
 0x1a0   : > { %v6432_v40 = vadd.f32 %v4504_v63, %v6323_v50  ;;  %v6435_v17 = vadd.f32 %v4568_v36, %v6326_v41 }
 0x1a2   : > { %v4505_v18 = vpop.f32.mrb[84].mxu0  ;;  %v4569_v34 = vpop.f32.mrb[84].mxu1 }
 0x1a3   : > { %v4506_v4 = vpop.f32.mrb[85].mxu0  ;;  %v4570_v53 = vpop.f32.mrb[85].mxu1 }
 0x1a4   : > { %v4507_v24 = vadd.f32 %v4506_v4, %v4505_v18  ;;  %v4571_v44 = vadd.f32 %v4570_v53, %v4569_v34  ;;  %v4508_v49 = vpop.f32.mrb[86].mxu0  ;;  %v4572_v12 = vpop.f32.mrb[86].mxu1 }
 0x1a5   : > { %v4509_v52 = vpop.f32.mrb[87].mxu0  ;;  %v4573_v48 = vpop.f32.mrb[87].mxu1 }
 0x1a6   : > { %v6438_v47 = vadd.f32 %v4507_v24, %v6331_v26  ;;  %v4510_v38 = vadd.f32 %v4509_v52, %v4508_v49  ;;  %v4574_v22 = vadd.f32 %v4573_v48, %v4572_v12  ;;  %v6441_v50 = vadd.f32 %v4571_v44, %v6334_v5 }
 0x1a8   : > { %v6444_v41 = vadd.f32 %v4510_v38, %v6336_v8  ;;  %v6447_v11 = vadd.f32 %v4574_v22, %v6339_v55 }
 0x1aa   : > { %v4511_v16 = vpop.f32.mrb[88].mxu0  ;;  %v4575_v23 = vpop.f32.mrb[88].mxu1 }
 0x1ab   : > { %v4512_v30 = vpop.f32.mrb[89].mxu0  ;;  %v4576_v42 = vpop.f32.mrb[89].mxu1 }
 0x1ac   : > { %v4513_v0 = vadd.f32 %v4512_v30, %v4511_v16  ;;  %v4577_v27 = vadd.f32 %v4576_v42, %v4575_v23  ;;  %v4514_v31 = vpop.f32.mrb[90].mxu0  ;;  %v4578_v26 = vpop.f32.mrb[90].mxu1 }
 0x1ad   : > { %v4515_v19 = vpop.f32.mrb[91].mxu0  ;;  %v4579_v25 = vpop.f32.mrb[91].mxu1 }
 0x1ae   : > { %v6450_v2 = vadd.f32 %v4513_v0, %v6345_v46  ;;  %v4516_v5 = vadd.f32 %v4515_v19, %v4514_v31  ;;  %v4580_v45 = vadd.f32 %v4579_v25, %v4578_v26  ;;  %v6453_v8 = vadd.f32 %v4577_v27, %v6348_v7 }
 0x1b0   : > { %v6456_v55 = vadd.f32 %v4516_v5, %v6350_v3  ;;  %v6459_v21 = vadd.f32 %v4580_v45, %v6353_v32 }
 0x1b2   : > { %v4517_v43 = vpop.f32.mrb[92].mxu0  ;;  %v4581_v60 = vpop.f32.mrb[92].mxu1 }
 0x1b3   : > { %v4518_v63 = vpop.f32.mrb[93].mxu0  ;;  %v4582_v36 = vpop.f32.mrb[93].mxu1 }
 0x1b4   : > { %v4519_v18 = vadd.f32 %v4518_v63, %v4517_v43  ;;  %v4583_v34 = vadd.f32 %v4582_v36, %v4581_v60  ;;  %v4520_v4 = vpop.f32.mrb[94].mxu0  ;;  %v4584_v46 = vpop.f32.mrb[94].mxu1 }
 0x1b5   : > { %v4521_v53 = vpop.f32.mrb[95].mxu0  ;;  %v4585_v24 = vpop.f32.mrb[95].mxu1 }
 0x1b6   : > { %v6462_v44 = vadd.f32 %v4519_v18, %v6359_v9  ;;  %v4522_v7 = vadd.f32 %v4521_v53, %v4520_v4  ;;  %v4586_v49 = vadd.f32 %v4585_v24, %v4584_v46  ;;  %v6465_v3 = vadd.f32 %v4583_v34, %v6362_v14 }
 0x1b8   : > { %v6468_v32 = vadd.f32 %v4522_v7, %v6364_v29  ;;  %v6471_v12 = vadd.f32 %v4586_v49, %v6367_v58 }
 0x1ba   : > { %v4523_v52 = vpop.f32.mrb[96].mxu0  ;;  %v4587_v48 = vpop.f32.mrb[96].mxu1 }
 0x1bb   : > { %v4524_v38 = vpop.f32.mrb[97].mxu0  ;;  %v4588_v22 = vpop.f32.mrb[97].mxu1 }
 0x1bc   : > { %v4525_v16 = vadd.f32 %v4524_v38, %v4523_v52  ;;  %v4589_v23 = vadd.f32 %v4588_v22, %v4587_v48  ;;  %v4526_v30 = vpop.f32.mrb[98].mxu0  ;;  %v4590_v9 = vpop.f32.mrb[98].mxu1 }
 0x1bd   : > { %v4527_v42 = vpop.f32.mrb[99].mxu0  ;;  %v4591_v0 = vpop.f32.mrb[99].mxu1 }
 0x1be   : > { %v6474_v27 = vadd.f32 %v4525_v16, %v6373_v6  ;;  %v4528_v14 = vadd.f32 %v4527_v42, %v4526_v30  ;;  %v4592_v31 = vadd.f32 %v4591_v0, %v4590_v9  ;;  %v6477_v29 = vadd.f32 %v4589_v23, %v6376_v37 }
 0x1c0   : > { %v6480_v58 = vadd.f32 %v4528_v14, %v6378_v28  ;;  %v6483_v26 = vadd.f32 %v4592_v31, %v6381_v51 }
 0x1c2   : > { %v4529_v19 = vpop.f32.mrb[100].mxu0  ;;  %v4593_v25 = vpop.f32.mrb[100].mxu1 }
 0x1c3   : > { %v4530_v5 = vpop.f32.mrb[101].mxu0  ;;  %v4594_v45 = vpop.f32.mrb[101].mxu1 }
 0x1c4   : > { %v4531_v43 = vadd.f32 %v4530_v5, %v4529_v19  ;;  %v4595_v60 = vadd.f32 %v4594_v45, %v4593_v25  ;;  %v4532_v63 = vpop.f32.mrb[102].mxu0  ;;  %v4596_v6 = vpop.f32.mrb[102].mxu1 }
 0x1c5   : > { %v4533_v36 = vpop.f32.mrb[103].mxu0  ;;  %v4597_v18 = vpop.f32.mrb[103].mxu1 }
 0x1c6   : > { %v6486_v34 = vadd.f32 %v4531_v43, %v6387_v61  ;;  %v4534_v37 = vadd.f32 %v4533_v36, %v4532_v63  ;;  %v4598_v4 = vadd.f32 %v4597_v18, %v4596_v6  ;;  %v6489_v28 = vadd.f32 %v4595_v60, %v6390_v59 }
 0x1c8   : > { %v6492_v51 = vadd.f32 %v4534_v37, %v6392_v10  ;;  %v6495_v46 = vadd.f32 %v4598_v4, %v6395_v35 }
 0x1ca   : > { %v4535_v53 = vpop.f32.mrb[104].mxu0  ;;  %v4599_v24 = vpop.f32.mrb[104].mxu1 }
 0x1cb   : > { %v4536_v7 = vpop.f32.mrb[105].mxu0  ;;  %v4600_v49 = vpop.f32.mrb[105].mxu1 }
 0x1cc   : > { %v4537_v52 = vadd.f32 %v4536_v7, %v4535_v53  ;;  %v4601_v48 = vadd.f32 %v4600_v49, %v4599_v24  ;;  %v4538_v38 = vpop.f32.mrb[106].mxu0  ;;  %v4602_v61 = vpop.f32.mrb[106].mxu1 }
 0x1cd   : > { %v4539_v22 = vpop.f32.mrb[107].mxu0  ;;  %v4603_v16 = vpop.f32.mrb[107].mxu1 }
 0x1ce   : > { %v6498_v23 = vadd.f32 %v4537_v52, %v6401_v20  ;;  %v4540_v59 = vadd.f32 %v4539_v22, %v4538_v38  ;;  %v4604_v30 = vadd.f32 %v4603_v16, %v4602_v61  ;;  %v6501_v10 = vadd.f32 %v4601_v48, %v6404_v57 }
 0x1d0   : > { %v6504_v35 = vadd.f32 %v4540_v59, %v6406_v13  ;;  %v6507_v9 = vadd.f32 %v4604_v30, %v6409_v1 }
 0x1d2   : > { %v4541_v42 = vpop.f32.mrb[108].mxu0  ;;  %v4605_v0 = vpop.f32.mrb[108].mxu1 }
 0x1d3   : > { %v4542_v14 = vpop.f32.mrb[109].mxu0  ;;  %v4606_v31 = vpop.f32.mrb[109].mxu1 }
 0x1d4   : > { %v4543_v19 = vadd.f32 %v4542_v14, %v4541_v42  ;;  %v4607_v25 = vadd.f32 %v4606_v31, %v4605_v0  ;;  %v4544_v5 = vpop.f32.mrb[110].mxu0  ;;  %v4608_v20 = vpop.f32.mrb[110].mxu1 }
 0x1d5   : > { %v4545_v45 = vpop.f32.mrb[111].mxu0  ;;  %v4609_v43 = vpop.f32.mrb[111].mxu1 }
 0x1d6   : > { %v6510_v60 = vadd.f32 %v4543_v19, %v6415_v33  ;;  %v4546_v57 = vadd.f32 %v4545_v45, %v4544_v5  ;;  %v4610_v63 = vadd.f32 %v4609_v43, %v4608_v20  ;;  %v6513_v13 = vadd.f32 %v4607_v25, %v6418_v56 }
 0x1d8   : > { %v6516_v1 = vadd.f32 %v4546_v57, %v6420_v54  ;;  %v6519_v6 = vadd.f32 %v4610_v63, %v6423_v62 }
 0x1da   : > { %v4611_v36 = vpop.f32.mrb[112].mxu1  ;;  %v4701_v18 = vpop.f32.mrb[112].mxu0 }
 0x1db   : > { %v6522_v37 = vadd.f32 %v4701_v18, %v6441_v50  ;;  %v4612_v4 = vpop.f32.mrb[113].mxu1  ;;  %v3056_v53 = vpop.f32.mrb[113].mxu0 }
 0x1dc   : > { %v4613_v33 = vadd.f32 %v4612_v4, %v4611_v36  ;;  %v6525_v24 = vadd.f32 %v3056_v53, %v6429_v15  ;;  %v4614_v7 = vpop.f32.mrb[114].mxu1  ;;  %v4702_v56 = vpop.f32.mrb[114].mxu0 }
 0x1dd   : > { %v4019_v49 = vmul.f32 -1.442695, %v6522_v37  ;;  %v6529_v54 = vadd.f32 %v4702_v56, %v6447_v11  ;;  %v4615_v62 = vpop.f32.mrb[115].mxu1  ;;  %v3059_v52 = vpop.f32.mrb[115].mxu0 }
 0x1de   : > { %v4017_v48 = vmul.f32 -1.442695, %v6525_v24  ;;  %v4616_v38 = vadd.f32 %v4615_v62, %v4614_v7  ;;  %v6533_v50 = vadd.f32 %v3059_v52, %v6435_v17  ;;  %v6536_v61 = vadd.f32 %v4613_v33, %v6426_v39 }
 0x1df   : > { %4988 = vpow2.f32 %v4019_v49  ;;  %v4020_v15 = vmul.f32 -1.442695, %v6529_v54 }
 0x1e0   : > { %4990 = vpow2.f32 %v4017_v48  ;;  %v4018_v22 = vmul.f32 -1.442695, %v6533_v50  ;;  %v6541_v11 = vadd.f32 %v4616_v38, %v6432_v40 }
 0x1e1   : > { %4992 = vpow2.f32 %v4020_v15 }
 0x1e2   : > { %4994 = vpow2.f32 %v4018_v22  ;;  %v4617_v16 = vpop.f32.mrb[116].mxu1  ;;  %v4705_v59 = vpop.f32.mrb[116].mxu0 }
 0x1e3   : > { %v6544_v30 = vadd.f32 %v4705_v59, %v6465_v3  ;;  %v4618_v17 = vpop.f32.mrb[117].mxu1  ;;  %v3072_v42 = vpop.f32.mrb[117].mxu0 }
 0x1e4   : > { %v4619_v39 = vadd.f32 %v4618_v17, %v4617_v16  ;;  %v6547_v0 = vadd.f32 %v3072_v42, %v6453_v8  ;;  %v4620_v14 = vpop.f32.mrb[118].mxu1  ;;  %v4706_v31 = vpop.f32.mrb[118].mxu0 }
 0x1e5   : > { %v4023_v19 = vmul.f32 -1.442695, %v6544_v30  ;;  %v6551_v40 = vadd.f32 %v4706_v31, %v6471_v12  ;;  %v4621_v25 = vpop.f32.mrb[119].mxu1  ;;  %v3075_v5 = vpop.f32.mrb[119].mxu0 }
 0x1e6   : > { %v4021_v20 = vmul.f32 -1.442695, %v6547_v0  ;;  %v4622_v45 = vadd.f32 %v4621_v25, %v4620_v14  ;;  %v6555_v3 = vadd.f32 %v3075_v5, %v6459_v21  ;;  %v6558_v43 = vadd.f32 %v4619_v39, %v6438_v47 }
 0x1e7   : > { %4996 = vpow2.f32 %v4023_v19  ;;  %v4024_v8 = vmul.f32 -1.442695, %v6551_v40 }
 0x1e8   : > { %4998 = vpow2.f32 %v4021_v20  ;;  %v4022_v57 = vmul.f32 -1.442695, %v6555_v3  ;;  %v6563_v12 = vadd.f32 %v4622_v45, %v6444_v41 }
 0x1e9   : > { %v4989_v63 = vpop.eup %4988  ;;  %5000 = vpow2.f32 %v4024_v8 }
 0x1ea   : > { %v4991_v36 = vpop.eup %4990  ;;  %v3281_v18 = vadd.f32 1.0, %v4989_v63  ;;  %5002 = vpow2.f32 %v4022_v57  ;;  %v4623_v4 = vpop.f32.mrb[120].mxu1 }
 0x1eb   : > { %v4709_v21 = vpop.f32.mrb[120].mxu0  ;;  %v4993_v53 = vpop.eup %4992  ;;  %v3279_v33 = vadd.f32 1.0, %v4991_v36 }
 0x1ec   : > { %v6566_v47 = vadd.f32 %v4709_v21, %v6489_v28  ;;  %v4624_v7 = vpop.f32.mrb[121].mxu1  ;;  %v3088_v56 = vpop.f32.mrb[121].mxu0  ;;  %5004 = vrcp.f32 %v3281_v18  ;;  %v3282_v62 = vadd.f32 1.0, %v4993_v53 }
 0x1ed   : > { %v4995_v49 = vpop.eup %4994  ;;  %v4625_v52 = vadd.f32 %v4624_v7, %v4623_v4  ;;  %v6569_v41 = vadd.f32 %v3088_v56, %v6477_v29  ;;  %v4626_v48 = vpop.f32.mrb[122].mxu1  ;;  %5006 = vrcp.f32 %v3279_v33 }
 0x1ee   : > { %v4710_v38 = vpop.f32.mrb[122].mxu0  ;;  %v3280_v15 = vadd.f32 1.0, %v4995_v49  ;;  %v4027_v22 = vmul.f32 -1.442695, %v6566_v47  ;;  %v4627_v28 = vpop.f32.mrb[123].mxu1  ;;  %5008 = vrcp.f32 %v3282_v62 }
 0x1ef   : > { %v6573_v16 = vadd.f32 %v4710_v38, %v6495_v46  ;;  %v3091_v59 = vpop.f32.mrb[123].mxu0  ;;  %v4025_v17 = vmul.f32 -1.442695, %v6569_v41  ;;  %v4628_v42 = vadd.f32 %v4627_v28, %v4626_v48  ;;  %v6581_v14 = vadd.f32 %v4625_v52, %v6450_v2 }
 0x1f0   : > { %v6577_v39 = vadd.f32 %v3091_v59, %v6483_v26  ;;  %5010 = vrcp.f32 %v3280_v15 }
 0x1f1   : > { %v4028_v29 = vmul.f32 -1.442695, %v6573_v16  ;;  %5012 = vpow2.f32 %v4027_v22  ;;  %v6585_v46 = vadd.f32 %v4628_v42, %v6456_v55  ;;  %v4997_v19 = vpop.eup %4996 }
 0x1f2   : > { %v4026_v31 = vmul.f32 -1.442695, %v6577_v39  ;;  %5014 = vpow2.f32 %v4025_v17  ;;  %v4999_v25 = vpop.eup %4998  ;;  %v3285_v5 = vadd.f32 1.0, %v4997_v19  ;;  %v4629_v20 = vpop.f32.mrb[124].mxu1 }
 0x1f3   : > { %5016 = vpow2.f32 %v4028_v29  ;;  %v4713_v26 = vpop.f32.mrb[124].mxu0  ;;  %v5001_v45 = vpop.eup %5000  ;;  %v3283_v8 = vadd.f32 1.0, %v4999_v25 }
 0x1f4   : > { %5018 = vpow2.f32 %v4026_v31  ;;  %v6588_v57 = vadd.f32 %v4713_v26, %v6513_v13  ;;  %v4630_v2 = vpop.f32.mrb[125].mxu1  ;;  %v3104_v63 = vpop.f32.mrb[125].mxu0  ;;  %v3286_v18 = vadd.f32 1.0, %v5001_v45 }
 0x1f5   : > { %v5003_v36 = vpop.eup %5002  ;;  %5020 = vrcp.f32 %v3285_v5  ;;  %v4631_v55 = vadd.f32 %v4630_v2, %v4629_v20  ;;  %v6591_v4 = vadd.f32 %v3104_v63, %v6501_v10  ;;  %v4632_v21 = vpop.f32.mrb[126].mxu1 }
 0x1f6   : > { %v4714_v53 = vpop.f32.mrb[126].mxu0  ;;  %5022 = vrcp.f32 %v3283_v8  ;;  %v3284_v33 = vadd.f32 1.0, %v5003_v36  ;;  %v4031_v7 = vmul.f32 -1.442695, %v6588_v57  ;;  %v4633_v13 = vpop.f32.mrb[127].mxu1 }
 0x1f7   : > { %v6595_v56 = vadd.f32 %v4714_v53, %v6519_v6  ;;  %v3107_v49 = vpop.f32.mrb[127].mxu0  ;;  %v5005_v62 = vpop.eup %5004  ;;  %5024 = vrcp.f32 %v3286_v18  ;;  %v4029_v52 = vmul.f32 -1.442695, %v6591_v4  ;;  %v4634_v48 = vadd.f32 %v4633_v13, %v4632_v21 }
 0x1f8   : > { %v6599_v38 = vadd.f32 %v3107_v49, %v6507_v9  ;;  %v5007_v10 = vpop.eup %5006  ;;  %5026 = vrcp.f32 %v3284_v33  ;;  %v6604_v22 = vadd.f32 %v4631_v55, %v6462_v44  ;;  %v3377_v42 = vmul.f32 %v5005_v62, %v6522_v37 }
 0x1f9   : > { %v4032_v15 = vmul.f32 -1.442695, %v6595_v56  ;;  %v5009_v6 = vpop.eup %5008  ;;  %5028 = vpow2.f32 %v4031_v7  ;;  %v6608_v59 = vadd.f32 %v4634_v48, %v6468_v32  ;;  %v3375_v31 = vmul.f32 %v5007_v10, %v6525_v24 }
 0x1fa   : > { %v4030_v28 = vmul.f32 -1.442695, %v6599_v38  ;;  %v5011_v17 = vpop.eup %5010  ;;  %v3378_v9 = vmul.f32 %v5009_v6, %v6529_v54  ;;  %5030 = vpow2.f32 %v4029_v52  ;;  %v4635_v19 = vpop.f32.mrb[128].mxu1 }
 0x1fb   : > { %v5013_v29 = vpop.eup %5012  ;;  %v3376_v44 = vmul.f32 %v5011_v17, %v6533_v50  ;;  %5032 = vpow2.f32 %v4032_v15  ;;  %v4717_v32 = vpop.f32.mrb[128].mxu0 }
 0x1fc   : > { %v5015_v25 = vpop.eup %5014  ;;  %v4124_v5 = vpack.c.bf16 %v3378_v9, %v3377_v42  ;;  %v3289_v37 = vadd.f32 1.0, %v5013_v29  ;;  %5034 = vpow2.f32 %v4030_v28  ;;  %v6620_v54 = vadd.f32 %v4717_v32, %v6558_v43  ;;  %v4636_v20 = vpop.f32.mrb[129].mxu1 }
 0x1fd   : > { %v3120_v24 = vpop.f32.mrb[129].mxu0  ;;  %v5017_v26 = vpop.eup %5016  ;;  %v4119_v45 = vpack.c.bf16 %v3376_v44, %v3375_v31  ;;  %v3287_v8 = vadd.f32 1.0, %v5015_v25  ;;  %v4637_v2 = vadd.f32 %v4636_v20, %v4635_v19 }
 0x1fe   : > { %v6623_v50 = vadd.f32 %v3120_v24, %v6536_v61  ;;  %v4638_v63 = vpop.f32.mrb[130].mxu1  ;;  %v4718_v36 = vpop.f32.mrb[130].mxu0  ;;  %4196 = vst [vmem:[%s6616_s7 + $0x8] sm:$0xff] %v4124_v5   ;;  %5036 = vrcp.f32 %v3289_v37  ;;  %v3290_v55 = vadd.f32 1.0, %v5017_v26  ;;  %v4035_v21 = vmul.f32 -1.442695, %v6620_v54 }
 0x1ff   : > { %v5019_v18 = vpop.eup %5018  ;;  %v6628_v43 = vadd.f32 %v4718_v36, %v6563_v12  ;;  %v4639_v53 = vpop.f32.mrb[131].mxu1  ;;  %4120 = vst [vmem:[%s6616_s7] sm:$0xff] %v4119_v45   ;;  %5038 = vrcp.f32 %v3287_v8  ;;  %v6637_v12 = vadd.f32 %v4637_v2, %v6474_v27 }
 0x200   : > { %v3123_v33 = vpop.f32.mrb[131].mxu0  ;;  %v5021_v7 = vpop.eup %5020  ;;  %v3288_v13 = vadd.f32 1.0, %v5019_v18  ;;  %v4033_v61 = vmul.f32 -1.442695, %v6623_v50  ;;  %v4640_v49 = vadd.f32 %v4639_v53, %v4638_v63  ;;  %5040 = vrcp.f32 %v3290_v55 }
 0x201   : > { %v5023_v62 = vpop.eup %5022  ;;  %v4036_v52 = vmul.f32 -1.442695, %v6628_v43  ;;  %v6634_v48 = vadd.f32 %v3123_v33, %v6541_v11  ;;  %v3381_v28 = vmul.f32 %v5021_v7, %v6544_v30 }
 0x202   : > { %v5025_v10 = vpop.eup %5024  ;;  %5042 = vrcp.f32 %v3288_v13  ;;  %v6640_v15 = vadd.f32 %v4640_v49, %v6480_v58  ;;  %v3379_v11 = vmul.f32 %v5023_v62, %v6547_v0  ;;  %v4641_v31 = vpop.f32.mrb[132].mxu1 }
 0x203   : > { %v5027_v6 = vpop.eup %5026  ;;  %v3382_v17 = vmul.f32 %v5025_v10, %v6551_v40  ;;  %5044 = vpow2.f32 %v4035_v21  ;;  %v4034_v42 = vmul.f32 -1.442695, %v6634_v48  ;;  %v4721_v27 = vpop.f32.mrb[132].mxu0 }
 0x204   : > { %v5029_v9 = vpop.eup %5028  ;;  %v3380_v29 = vmul.f32 %v5027_v6, %v6555_v3  ;;  %5046 = vpow2.f32 %v4033_v61  ;;  %v6648_v30 = vadd.f32 %v4721_v27, %v6604_v22  ;;  %v4642_v40 = vpop.f32.mrb[133].mxu1 }
 0x205   : > { %v5031_v44 = vpop.eup %5030  ;;  %v4134_v58 = vpack.c.bf16 %v3382_v17, %v3381_v28  ;;  %v3293_v19 = vadd.f32 1.0, %v5029_v9  ;;  %5048 = vpow2.f32 %v4036_v52  ;;  %v3136_v32 = vpop.f32.mrb[133].mxu0  ;;  %v4643_v0 = vadd.f32 %v4642_v40, %v4641_v31 }
 0x206   : > { %v5033_v25 = vpop.eup %5032  ;;  %v4129_v5 = vpack.c.bf16 %v3380_v29, %v3379_v11  ;;  %v3291_v37 = vadd.f32 1.0, %v5031_v44  ;;  %5050 = vpow2.f32 %v4034_v42  ;;  %v4644_v3 = vpop.f32.mrb[134].mxu1  ;;  %v4039_v45 = vmul.f32 -1.442695, %v6648_v30 }
 0x207   : > { %v4722_v20 = vpop.f32.mrb[134].mxu0  ;;  %v5035_v24 = vpop.eup %5034  ;;  %4198 = vst [vmem:[%s6616_s7 + $0x18] sm:$0xff] %v4134_v58   ;;  %5052 = vrcp.f32 %v3293_v19  ;;  %v3294_v26 = vadd.f32 1.0, %v5033_v25  ;;  %v6653_v8 = vadd.f32 %v3136_v32, %v6581_v14  ;;  %v3000_v33 = vadd.f32 %v4643_v0, %v6486_v34 }
 0x208   : > { %v4645_v22 = vpop.f32.mrb[135].mxu1  ;;  %v3139_v2 = vpop.f32.mrb[135].mxu0  ;;  %4197 = vst [vmem:[%s6616_s7 + $0x10] sm:$0xff] %v4129_v5   ;;  %5054 = vrcp.f32 %v3291_v37  ;;  %v3292_v63 = vadd.f32 1.0, %v5035_v24  ;;  %v6657_v36 = vadd.f32 %v4722_v20, %v6608_v59 }
 0x209   : > { %v4646_v18 = vadd.f32 %v4645_v22, %v4644_v3  ;;  %v5037_v55 = vpop.eup %5036  ;;  %5056 = vrcp.f32 %v3294_v26  ;;  %v4037_v21 = vmul.f32 -1.442695, %v6653_v8  ;;  %v6661_v53 = vadd.f32 %v3139_v2, %v6585_v46 }
 0x20a   : > { %v5039_v14 = vpop.eup %5038  ;;  %5058 = vrcp.f32 %v3292_v63  ;;  %v4040_v7 = vmul.f32 -1.442695, %v6657_v36  ;;  %v3385_v62 = vmul.f32 %v5037_v55, %v6566_v47  ;;  %v4647_v46 = vpop.f32.mrb[136].mxu1 }
 0x20b   : > { %v3003_v13 = vadd.f32 %v4646_v18, %v6492_v51  ;;  %v5041_v61 = vpop.eup %5040  ;;  %5060 = vpow2.f32 %v4039_v45  ;;  %v4038_v59 = vmul.f32 -1.442695, %v6661_v53  ;;  %v4725_v10 = vpop.f32.mrb[136].mxu0  ;;  %v3383_v34 = vmul.f32 %v5039_v14, %v6569_v41 }
 0x20c   : > { %v5043_v49 = vpop.eup %5042  ;;  %v3386_v52 = vmul.f32 %v5041_v61, %v6573_v16  ;;  %5062 = vpow2.f32 %v4037_v21  ;;  %v6671_v17 = vadd.f32 %v4725_v10, %v3000_v33  ;;  %v4648_v51 = vpop.f32.mrb[137].mxu1 }
 0x20d   : > { %v5045_v6 = vpop.eup %5044  ;;  %v3384_v28 = vmul.f32 %v5043_v49, %v6577_v39  ;;  %5064 = vpow2.f32 %v4040_v7  ;;  %v3152_v42 = vpop.f32.mrb[137].mxu0  ;;  %v4649_v47 = vadd.f32 %v4648_v51, %v4647_v46 }
 0x20e   : > { %v5047_v9 = vpop.eup %5046  ;;  %v4144_v11 = vpack.c.bf16 %v3386_v52, %v3385_v62  ;;  %v3297_v29 = vadd.f32 1.0, %v5045_v6  ;;  %5066 = vpow2.f32 %v4038_v59  ;;  %v4650_v16 = vpop.f32.mrb[138].mxu1  ;;  %v4043_v41 = vmul.f32 -1.442695, %v6671_v17 }
 0x20f   : > { %v4726_v31 = vpop.f32.mrb[138].mxu0  ;;  %v5049_v27 = vpop.eup %5048  ;;  %v4139_v44 = vpack.c.bf16 %v3384_v28, %v3383_v34  ;;  %v3295_v58 = vadd.f32 1.0, %v5047_v9  ;;  %v6675_v39 = vadd.f32 %v3152_v42, %v6637_v12  ;;  %v3008_v45 = vadd.f32 %v4649_v47, %v6498_v23 }
 0x210   : > { %v4651_v19 = vpop.f32.mrb[139].mxu1  ;;  %v3155_v40 = vpop.f32.mrb[139].mxu0  ;;  %4200 = vst [vmem:[%s6616_s7 + $0x28] sm:$0xff] %v4144_v11   ;;  %5068 = vrcp.f32 %v3297_v29  ;;  %v3298_v25 = vadd.f32 1.0, %v5049_v27  ;;  %v6678_v5 = vadd.f32 %v4726_v31, %v3003_v13 }
 0x211   : > { %v5051_v32 = vpop.eup %5050  ;;  %v4652_v37 = vadd.f32 %v4651_v19, %v4650_v16  ;;  %4199 = vst [vmem:[%s6616_s7 + $0x20] sm:$0xff] %v4139_v44   ;;  %5070 = vrcp.f32 %v3295_v58  ;;  %v4041_v20 = vmul.f32 -1.442695, %v6675_v39  ;;  %v6683_v24 = vadd.f32 %v3155_v40, %v6640_v15 }
 0x212   : > { %v5053_v0 = vpop.eup %5052  ;;  %v3296_v3 = vadd.f32 1.0, %v5051_v32  ;;  %5072 = vrcp.f32 %v3298_v25  ;;  %v4044_v26 = vmul.f32 -1.442695, %v6678_v5  ;;  %v4653_v15 = vpop.f32.mrb[140].mxu1 }
 0x213   : > { %v5055_v12 = vpop.eup %5054  ;;  %v4042_v2 = vmul.f32 -1.442695, %v6683_v24  ;;  %v3011_v63 = vadd.f32 %v4652_v37, %v6504_v35  ;;  %v3389_v55 = vmul.f32 %v5053_v0, %v6588_v57  ;;  %v4729_v33 = vpop.f32.mrb[140].mxu0 }
 0x214   : > { %v5057_v22 = vpop.eup %5056  ;;  %5074 = vrcp.f32 %v3296_v3  ;;  %v3387_v7 = vmul.f32 %v5055_v12, %v6591_v4  ;;  %v4654_v23 = vpop.f32.mrb[141].mxu1 }
 0x215   : > { %v5059_v18 = vpop.eup %5058  ;;  %v3390_v21 = vmul.f32 %v5057_v22, %v6595_v56  ;;  %5076 = vpow2.f32 %v4043_v41  ;;  %v3168_v61 = vpop.f32.mrb[141].mxu0  ;;  %v4655_v62 = vadd.f32 %v4654_v23, %v4653_v15 }
 0x216   : > { %v5061_v14 = vpop.eup %5060  ;;  %v3388_v13 = vmul.f32 %v5059_v18, %v6599_v38  ;;  %5078 = vpow2.f32 %v4041_v20  ;;  %v4656_v57 = vpop.f32.mrb[142].mxu1  ;;  %v6693_v6 = vadd.f32 %v3168_v61, %v3008_v45 }
 0x217   : > { %v5063_v59 = vpop.eup %5062  ;;  %v4154_v49 = vpack.c.bf16 %v3390_v21, %v3389_v55  ;;  %v3301_v35 = vadd.f32 1.0, %v5061_v14  ;;  %5080 = vpow2.f32 %v4044_v26  ;;  %v4730_v56 = vpop.f32.mrb[142].mxu0  ;;  %v3016_v51 = vadd.f32 %v4655_v62, %v6510_v60 }
 0x218   : > { %v5065_v52 = vpop.eup %5064  ;;  %v4149_v46 = vpack.c.bf16 %v3388_v13, %v3387_v7  ;;  %v3299_v10 = vadd.f32 1.0, %v5063_v59  ;;  %5082 = vpow2.f32 %v4042_v2  ;;  %v4657_v4 = vpop.f32.mrb[143].mxu1  ;;  %v4045_v11 = vmul.f32 -1.442695, %v6693_v6 }
 0x219   : > { %v3171_v38 = vpop.f32.mrb[143].mxu0  ;;  %v5067_v34 = vpop.eup %5066  ;;  %4202 = vst [vmem:[%s6616_s7 + $0x38] sm:$0xff] %v4154_v49   ;;  %5084 = vrcp.f32 %v3301_v35  ;;  %v3302_v28 = vadd.f32 1.0, %v5065_v52  ;;  %v4658_v42 = vadd.f32 %v4657_v4, %v4656_v57  ;;  %v6701_v16 = vadd.f32 %v4729_v33, %v3016_v51 }
 0x21a   : > { %4201 = vst [vmem:[%s6616_s7 + $0x30] sm:$0xff] %v4149_v46   ;;  %5086 = vrcp.f32 %v3299_v10  ;;  %v3300_v9 = vadd.f32 1.0, %v5067_v34  ;;  %v6699_v29 = vadd.f32 %v3171_v38, %v3011_v63  ;;  %v5069_v47 = vpop.eup %5068 }
 0x21b   : > { %5088 = vrcp.f32 %v3302_v28  ;;  %v3019_v31 = vadd.f32 %v4658_v42, %v6516_v1  ;;  %v5071_v27 = vpop.eup %5070  ;;  %v4047_v60 = vmul.f32 -1.442695, %v6701_v16  ;;  %v3393_v40 = vmul.f32 %v5069_v47, %v6620_v54 }
 0x21c   : > { %5090 = vrcp.f32 %v3300_v9  ;;  %v4046_v44 = vmul.f32 -1.442695, %v6699_v29  ;;  %v5073_v58 = vpop.eup %5072  ;;  %v3391_v1 = vmul.f32 %v5071_v27, %v6623_v50 }
 0x21d   : > { %5092 = vpow2.f32 %v4045_v11  ;;  %v6706_v41 = vadd.f32 %v4730_v56, %v3019_v31  ;;  %v3394_v32 = vmul.f32 %v5073_v58, %v6628_v43 }
 0x21e   : > { %v5075_v19 = vpop.eup %5074  ;;  %5094 = vpow2.f32 %v4046_v44 }
 0x21f   : > { %v5077_v25 = vpop.eup %5076  ;;  %v3392_v37 = vmul.f32 %v5075_v19, %v6634_v48  ;;  %5096 = vpow2.f32 %v4047_v60  ;;  %v4048_v0 = vmul.f32 -1.442695, %v6706_v41  ;;  %v4164_v20 = vpack.c.bf16 %v3394_v32, %v3393_v40 }
 0x220   : > { %v5079_v3 = vpop.eup %5078  ;;  %v3305_v12 = vadd.f32 1.0, %v5077_v25 }
 0x221   : > { %v5081_v26 = vpop.eup %5080  ;;  %v4159_v45 = vpack.c.bf16 %v3392_v37, %v3391_v1  ;;  %v3303_v22 = vadd.f32 1.0, %v5079_v3  ;;  %5098 = vpow2.f32 %v4048_v0  ;;  %4204 = vst [vmem:[%s6616_s7 + $0x48] sm:$0xff] %v4164_v20  }
 0x222   : > { %v5083_v54 = vpop.eup %5082  ;;  %5100 = vrcp.f32 %v3305_v12  ;;  %v3306_v43 = vadd.f32 1.0, %v5081_v26 }
 0x223   : > { %v5085_v2 = vpop.eup %5084  ;;  %4203 = vst [vmem:[%s6616_s7 + $0x40] sm:$0xff] %v4159_v45   ;;  %5102 = vrcp.f32 %v3303_v22  ;;  %v3304_v50 = vadd.f32 1.0, %v5083_v54 }
 0x224   : > { %v5087_v63 = vpop.eup %5086  ;;  %5104 = vrcp.f32 %v3306_v43  ;;  %v3397_v55 = vmul.f32 %v5085_v2, %v6648_v30 }
 0x225   : > { %v5089_v48 = vpop.eup %5088  ;;  %5106 = vrcp.f32 %v3304_v50  ;;  %v3395_v33 = vmul.f32 %v5087_v63, %v6653_v8 }
 0x226   : > { %v5091_v18 = vpop.eup %5090  ;;  %v3398_v21 = vmul.f32 %v5089_v48, %v6657_v36 }
 0x227   : > { %v5093_v15 = vpop.eup %5092  ;;  %v3396_v14 = vmul.f32 %v5091_v18, %v6661_v53 }
 0x228   : > { %v5095_v7 = vpop.eup %5094  ;;  %v4174_v13 = vpack.c.bf16 %v3398_v21, %v3397_v55  ;;  %v3307_v23 = vadd.f32 1.0, %v5093_v15 }
 0x229   : > { %v5097_v61 = vpop.eup %5096  ;;  %v4169_v59 = vpack.c.bf16 %v3396_v14, %v3395_v33  ;;  %v3308_v49 = vadd.f32 1.0, %v5095_v7 }
 0x22a   : > { %4206 = vst [vmem:[%s6616_s7 + $0x58] sm:$0xff] %v4174_v13   ;;  %v3309_v35 = vadd.f32 1.0, %v5097_v61  ;;  %5108 = vrcp.f32 %v3307_v23 }
 0x22b   : > { %v5099_v62 = vpop.eup %5098  ;;  %4205 = vst [vmem:[%s6616_s7 + $0x50] sm:$0xff] %v4169_v59   ;;  %5110 = vrcp.f32 %v3308_v49 }
 0x22c   : > { %v5101_v30 = vpop.eup %5100  ;;  %5112 = vrcp.f32 %v3309_v35  ;;  %v3310_v36 = vadd.f32 1.0, %v5099_v62 }
 0x22d   : > { %v5103_v8 = vpop.eup %5102  ;;  %v3401_v56 = vmul.f32 %v5101_v30, %v6671_v17 }
 0x22e   : > { %v5105_v57 = vpop.eup %5104  ;;  %5114 = vrcp.f32 %v3310_v36  ;;  %v3399_v46 = vmul.f32 %v5103_v8, %v6675_v39 }
 0x22f   : > { %v5107_v53 = vpop.eup %5106  ;;  %v3402_v52 = vmul.f32 %v5105_v57, %v6678_v5 }
 0x230   : > { %v3400_v10 = vmul.f32 %v5107_v53, %v6683_v24 }
 0x231   : > { %v4184_v4 = vpack.c.bf16 %v3402_v52, %v3401_v56 }
 0x232   : > { %v4179_v38 = vpack.c.bf16 %v3400_v10, %v3399_v46 }
 0x233   : > { %4208 = vst [vmem:[%s6616_s7 + $0x68] sm:$0xff] %v4184_v4  }
 0x234   : > { %v5109_v34 = vpop.eup %5108  ;;  %4207 = vst [vmem:[%s6616_s7 + $0x60] sm:$0xff] %v4179_v38  }
 0x235   : > { %v5111_v28 = vpop.eup %5110  ;;  %v3403_v42 = vmul.f32 %v5109_v34, %v6693_v6 }
 0x236   : > { %v5113_v51 = vpop.eup %5112  ;;  %v3404_v9 = vmul.f32 %v5111_v28, %v6699_v29 }
 0x237   : > { %v3405_v5 = vmul.f32 %v5113_v51, %v6701_v16 }
 0x238   : > { %v5115_v17 = vpop.eup %5114  ;;  %v4189_v11 = vpack.c.bf16 %v3404_v9, %v3403_v42 }
 0x239   : > { %v3406_v39 = vmul.f32 %v5115_v17, %v6706_v41 }
 0x23a   : > { %4209 = vst [vmem:[%s6616_s7 + $0x70] sm:$0xff] %v4189_v11  }
 0x23b   : > { %v4194_v24 = vpack.c.bf16 %v3406_v39, %v3405_v5 }
 0x23d   : > { %4210 = vst [vmem:[%s6616_s7 + $0x78] sm:$0xff] %v4194_v24  }
 0x23e PF: > { %s13_s14 = sadd.s32 1, %s5146_s14   ;;  %s6746_s12 = smov %s5142_s13 }
 0x23f   : > { %p10_p5 = scmp.ge.s32.totalorder %s13_s14, 4   ;;  %s6747_s13 = smov %s6749_s15 }
 0x241   :  { %12 = sbr.rel (!%p10_p5) target bundleno = 2 (0x2), region = 65 }

// kernel: resnet_block_forward.3
= control target key start
LH: loop header
LB: loop body
LE: loop exit
PB: predicated region body
PF: predicated region fallthrough
CT: control target
= control target key end

     0   :  { %s6234_s21 = smov 0   ;;  %s6236_s22 = smov 0   ;;  %s8454_s0 = inlined_call_operand.vmem [shape: bf16[2,18,18,128], index: 0, kind: input, shape index: {}]   ;;  %s8455_s1 = inlined_call_operand.vmem [shape: bf16[9,128,128], index: 1, kind: input, shape index: {}]   ;;  %s8456_s2 = inlined_call_operand.vmem [shape: f32[1,128], index: 2, kind: input, shape index: {}]   ;;  %s8457_s3 = inlined_call_operand.vmem [shape: bf16[2,18,18,128], index: 3, kind: input, shape index: {}]   ;;  %s8458_s4 = inlined_call_operand.vmem [shape: bf16[128,128], index: 4, kind: input, shape index: {}]   ;;  %s8459_s5 = inlined_call_operand.vmem [shape: f32[1,128], index: 5, kind: input, shape index: {}]   ;;  %s8460_s6 = inlined_call_operand.vmem [shape: bf16[2,16,16,128], index: 6, kind: output, shape index: {}]  }
   0x1   :  { %s6238_s23 = smov 0  }
   0x2 LB: > { %s28_s24 = sadd.s32 1, %s6193_s22  ;;  %p4582_p0 = scmp.ge.s32.totalorder %s6197_s23, 1  ;;  %s6197_s23 = sphi %s6238_s23, %s16_s23   ;;  %s6193_s22 = sphi %s6236_s22, %s8584_s22   ;;  %s6189_s21 = sphi %s6234_s21, %s8583_s21  }
   0x3   : > { %p30_p1 = scmp.ge.s32.totalorder %s28_s24, 2  ;;  %p236_p2 = scmp.lt.s32.totalorder %s6197_s23, 3 }
   0x5   : > { %s8586_s24 = smov (%p30_p1, %s28_s24), 0  ;;  %p237_p3 = pnand %p4582_p0, %p236_p2 }
   0x7   : > { %240 = sbr.rel (%p237_p3) target bundleno = 617 (0x269), region = 44 }
   0xe   : > { %v5816_v0 = vld [vmem:[%s8455_s1 + $0x40] sm:$0xff]   ;;  %v5820_v4 = vld [vmem:[%s8455_s1 + $0x48] sm:$0xff]   ;;  %v5824_v8 = vld [vmem:[%s8455_s1 + $0x50] sm:$0xff]   ;;  %p276_p4 = scmp.lt.s32.totalorder %s6189_s21, 1  ;;  %vm646_vm0 = vsmask.f32 7424 }
   0xf   : > { %v5817_v1 = vld [vmem:[%s8455_s1] sm:$0xff]   ;;  %5199 = vmatprep.subr.bf16.mxu0 %v5816_v0  ;;  %v5821_v5 = vld [vmem:[%s8455_s1 + $0x8] sm:$0xff]   ;;  %v5825_v9 = vld [vmem:[%s8455_s1 + $0x10] sm:$0xff]   ;;  %vm903_vm1 = vcmask 1046528   ;;  %vm3558_vm2 = vsmask.f32 3328 }
  0x10   : > { %v5818_v2 = vld [vmem:[%s8455_s1 + $0xc0] sm:$0xff]   ;;  %5200 = vmatpush3.bf16.msra.mxu0 %v5817_v1  ;;  %v5822_v6 = vld [vmem:[%s8455_s1 + $0xc8] sm:$0xff]   ;;  %v5826_v10 = vld [vmem:[%s8455_s1 + $0xd0] sm:$0xff]   ;;  %s8588_s21 = smov (!%p276_p4, %s6189_s21), 1  ;;  %vm3559_vm3 = vsmask.f32 7440 }
  0x11   : > { %v5819_v3 = vld [vmem:[%s8455_s1 + $0x80] sm:$0xff]   ;;  %5311 = vmatprep.subr.bf16.mxu1 %v5818_v2  ;;  %5201 = vmatprep.subr.bf16.mxu0 %v5820_v4  ;;  %v5823_v7 = vld [vmem:[%s8455_s1 + $0x88] sm:$0xff]   ;;  %v5827_v11 = vld [vmem:[%s8455_s1 + $0x90] sm:$0xff]   ;;  %s5791_s11 = smul.u32 216, %s8588_s21  ;;  %s5071_s28 = sshll.u32 %s8588_s21, 7 }
  0x12   : > { %5312 = vmatpush3.bf16.msra.mxu1 %v5819_v3  ;;  %v5828_v12 = vld [vmem:[%s8455_s1 + $0x58] sm:$0xff]   ;;  %v5832_v16 = vld [vmem:[%s8455_s1 + $0x60] sm:$0xff]   ;;  %v5836_v20 = vld [vmem:[%s8455_s1 + $0x68] sm:$0xff]   ;;  %s8258_s30 = scalar_lea.vmem %s8460_s6, %s5071_s28 }
  0x13   : > { %5313 = vmatprep.subr.bf16.mxu1 %v5822_v6  ;;  %v5829_v13 = vld [vmem:[%s8455_s1 + $0x18] sm:$0xff]   ;;  %v5833_v17 = vld [vmem:[%s8455_s1 + $0x20] sm:$0xff]   ;;  %v5837_v21 = vld [vmem:[%s8455_s1 + $0x28] sm:$0xff]   ;;  %s6351_s26 = scalar_lea.vmem %s8454_s0, %s5791_s11  ;;  %s7473_s18 = scalar_lea.vmem %s8457_s3, %s5791_s11 }
  0x14   : > { %5202 = vmatpush3.bf16.msra.mxu0 %v5821_v5  ;;  %v5830_v14 = vld [vmem:[%s8455_s1 + $0xd8] sm:$0xff]   ;;  %v5834_v18 = vld [vmem:[%s8455_s1 + $0xe0] sm:$0xff]   ;;  %v5838_v22 = vld [vmem:[%s8455_s1 + $0xe8] sm:$0xff]  }
  0x15   : > { %5203 = vmatprep.subr.bf16.mxu0 %v5824_v8  ;;  %v5831_v15 = vld [vmem:[%s8455_s1 + $0x98] sm:$0xff]   ;;  %v5835_v19 = vld [vmem:[%s8455_s1 + $0xa0] sm:$0xff]   ;;  %v5839_v23 = vld [vmem:[%s8455_s1 + $0xa8] sm:$0xff]  }
  0x16   : > { %5314 = vmatpush3.bf16.msra.mxu1 %v5823_v7  ;;  %v5840_v24 = vld [vmem:[%s8455_s1 + $0x70] sm:$0xff]   ;;  %v5844_v28 = vld [vmem:[%s8455_s1 + $0x78] sm:$0xff]   ;;  %v302_v31 = vld [vmem:[%s6351_s26] sm:$0xf] }
  0x17   : > { %5315 = vmatprep.subr.bf16.mxu1 %v5826_v10  ;;  %v5841_v25 = vld [vmem:[%s8455_s1 + $0x30] sm:$0xff]   ;;  %v5845_v29 = vld [vmem:[%s8455_s1 + $0x38] sm:$0xff]   ;;  %v303_v32 = vld [vmem:[%s6351_s26 + $0x4] sm:$0xf] }
  0x18   : > { %5204 = vmatpush3.bf16.msra.mxu0 %v5825_v9  ;;  %v5842_v26 = vld [vmem:[%s8455_s1 + $0xf0] sm:$0xff]   ;;  %v5846_v30 = vld [vmem:[%s8455_s1 + $0xf8] sm:$0xff]   ;;  %v4715_v33 = vcombine.low %v302_v31, %v303_v32  ;;  %v5848_v34 = vld [vmem:[%s6351_s26 + $0x8] ss:$0 sps:$4 sm:$0x11]  }
  0x19   : > { %5205 = vmatprep.subr.bf16.mxu0 %v5828_v12  ;;  %v5843_v27 = vld [vmem:[%s8455_s1 + $0xb0] sm:$0xff]   ;;  %v5849_v35 = vld [vmem:[%s8455_s1 + $0xb8] sm:$0xff]   ;;  %v655_v38 = vshll.u32 %v5848_v34, 16  ;;  %v5850_v39 = vld [vmem:[%s8455_s1 + $0x140] sm:$0xff]   ;;  %v905_v49 = vrot.slane %v5848_v34, 1 }
  0x1a   : > { %5316 = vmatpush3.bf16.msra.mxu1 %v5827_v11  ;;  %v648_v36 = vshrl.u32 %v4715_v33, 16  ;;  %v650_v37 = vshll.u32 %v4715_v33, 16  ;;  %v4587_v40 = vld [vmem:[%s6351_s26 + $0xc] sm:$0xf]  ;;  %v4588_v41 = vld [vmem:[%s6351_s26 + $0x10] sm:$0xf]  ;;  %vm7607_vm4 = vmor %vm3558_vm2, %vm3559_vm3 }
  0x1b   : > { %5317 = vmatprep.subr.bf16.mxu1 %v5830_v14  ;;  %v657_v43 = vrot.slane %v655_v38, 1  ;;  %v6370_v44 = vcombine.low %v4587_v40, %v4588_v41  ;;  %v350_v45 = vld [vmem:[%s6351_s26] sm:$0xe]  ;;  %v304_v46 = vld [vmem:[%s6351_s26 + $0xc] sm:$0xf]  ;;  %v5890_v40 = vld [vmem:[%s8455_s1 + $0x158] sm:$0xff]  }
  0x1c   : > { %5206 = vmatpush3.bf16.msra.mxu0 %v5829_v13  ;;  %v652_v42 = vrot.slane %v650_v37, 1  ;;  %v4747_v48 = vcombine.low %v350_v45, %v303_v32  ;;  %v305_v50 = vld [vmem:[%s6351_s26 + $0x10] sm:$0xf]  ;;  %v5853_v51 = vld [vmem:[%s8455_s1 + $0x100] sm:$0xff]   ;;  %v4589_v54 = vld [vmem:[%s6351_s26 + $0x18] sm:$0xf] }
  0x1d   : > { %5207 = vmatprep.subr.bf16.mxu0 %v5832_v16  ;;  %2672 = vmatprep.mubr.bf16.mxu1 %v6370_v44  ;;  %v4716_v52 = vcombine.low %v304_v46, %v305_v50  ;;  %v5856_v53 = vld [vmem:[%s6351_s26 + $0x14] ss:$0 sps:$4 sm:$0x11]   ;;  %v6383_v57 = vld [vmem:[%s6351_s26 + $0x1c] sm:$0xf]  ;;  %v5862_v58 = vld [vmem:[%s8455_s1 + $0x148] sm:$0xff]  }
  0x1e   : > { %5318 = vmatpush3.bf16.msra.mxu1 %v5831_v15  ;;  %v653_v47 = vor.u32 %v652_v42, %v648_v36  ;;  %v904_v56 = vrot.slane %v4747_v48, 1  ;;  %v667_v61 = vshll.u32 %v5856_v53, 16  ;;  %v6389_v62 = vcombine.low %v4589_v54, %v6383_v57  ;;  %v351_v63 = vld [vmem:[%s6351_s26 + $0xc] sm:$0xe]  ;;  %v306_v3 = vld [vmem:[%s6351_s26 + $0x18] sm:$0xf] }
  0x1f   : > { %5319 = vmatprep.subr.bf16.mxu1 %v5834_v18  ;;  %v660_v59 = vshrl.u32 %v4716_v52, 16  ;;  %v662_v60 = vshll.u32 %v4716_v52, 16  ;;  %v5865_v0 = vld [vmem:[%s8455_s1 + $0x108] sm:$0xff]   ;;  %v4748_v2 = vcombine.low %v351_v63, %v305_v50  ;;  %v307_v4 = vld [vmem:[%s6351_s26 + $0x1c] sm:$0xf]  ;;  %v5872_v5 = vld [vmem:[%s8455_s1 + $0x1c0] sm:$0xff]  }
  0x20   : > { %5208 = vmatpush3.bf16.msra.mxu0 %v5833_v17  ;;  %v658_v55 = vsel %vm646_vm0, %v653_v47, %v657_v43  ;;  %v906_v1 = vsel %vm903_vm1, %v904_v56, %v905_v49  ;;  %v669_v7 = vrot.slane %v667_v61, 1  ;;  %v908_v8 = vrot.slane %v5856_v53, 1  ;;  %v5875_v10 = vld [vmem:[%s8455_s1 + $0x180] sm:$0xff]   ;;  %v6412_v18 = vld [vmem:[%s6351_s26 + $0x28] sm:$0xf]  ;;  %v5893_v46 = vld [vmem:[%s8455_s1 + $0x118] sm:$0xff]  }
  0x21   : > { %5209 = vmatprep.subr.bf16.mxu0 %v5836_v20  ;;  %2511 = vmatprep.mubr.bf16.mxu0 %v658_v55  ;;  %v664_v6 = vrot.slane %v662_v60, 1  ;;  %v6401_v9 = vcombine.low %v306_v3, %v307_v4  ;;  %v907_v11 = vrot.slane %v4748_v2, 1  ;;  %v5861_v12 = vld [vmem:[%s6351_s26 + $0x20] ss:$0 sps:$4 sm:$0x11]   ;;  %v5886_v31 = vld [vmem:[%s8455_s1 + $0x1c8] sm:$0xff]  }
  0x22   : > { %5320 = vmatpush3.bf16.msra.mxu1 %v5835_v19  ;;  %v4591_v16 = vld [vmem:[%s6351_s26 + $0x24] sm:$0xf]  ;;  %v679_v17 = vshll.u32 %v5861_v12, 16  ;;  %v911_v32 = vrot.slane %v5861_v12, 1  ;;  %v4593_v38 = vld [vmem:[%s6351_s26 + $0x30] sm:$0xf] }
  0x23   : > { %5321 = vmatprep.subr.bf16.mxu1 %v5838_v22  ;;  %v665_v13 = vor.u32 %v664_v6, %v660_v59  ;;  %v672_v14 = vshrl.u32 %v6401_v9, 16  ;;  %v674_v15 = vshll.u32 %v6401_v9, 16  ;;  %v909_v22 = vsel %vm903_vm1, %v907_v11, %v908_v8  ;;  %v6434_v34 = vld [vmem:[%s6351_s26 + $0x2c] ss:$0 sps:$4 sm:$0x11]   ;;  %v5900_v48 = vld [vmem:[%s8455_s1 + $0x1d0] sm:$0xff]  }
  0x24   : > { %5210 = vmatpush3.bf16.msra.mxu0 %v5837_v21  ;;  %v5876_v21 = vld [vmem:[%s8455_s1 + $0x150] sm:$0xff]   ;;  %v691_v43 = vshll.u32 %v6434_v34, 16  ;;  %v353_v45 = vld [vmem:[%s6351_s26 + $0x24] sm:$0xe]  ;;  %v4595_v6 = vld [vmem:[%s6351_s26 + $0x3c] sm:$0xf] }
  0x25   : > { %5211 = vmatprep.subr.bf16.mxu0 %v5840_v24  ;;  %v670_v19 = vsel %vm646_vm0, %v665_v13, %v669_v7  ;;  %v676_v20 = vrot.slane %v674_v15, 1  ;;  %v6420_v24 = vcombine.low %v4591_v16, %v6412_v18  ;;  %v5903_v53 = vld [vmem:[%s8455_s1 + $0x190] sm:$0xff]   ;;  %v5904_v56 = vld [vmem:[%s8455_s1 + $0x160] sm:$0xff]   ;;  %v6474_v63 = vld [vmem:[%s6351_s26 + $0x38] ss:$0 sps:$4 sm:$0x11]  }
  0x26   : > { %5322 = vmatpush3.bf16.msra.mxu1 %v5839_v23  ;;  %v681_v23 = vrot.slane %v679_v17, 1  ;;  %v693_v50 = vrot.slane %v691_v43, 1  ;;  %v311_v55 = vld [vmem:[%s6351_s26 + $0x34] sm:$0xf]  ;;  %v6489_v7 = vld [vmem:[%s6351_s26 + $0x40] sm:$0xf] }
  0x27   : > { %5323 = vmatprep.subr.bf16.mxu1 %v5842_v26  ;;  %v308_v26 = vld [vmem:[%s6351_s26 + $0x24] sm:$0xf]  ;;  %v312_v11 = vld [vmem:[%s6351_s26 + $0x3c] sm:$0xf]  ;;  %v313_v12 = vld [vmem:[%s6351_s26 + $0x40] sm:$0xf] }
  0x28   : > { %5212 = vmatpush3.bf16.msra.mxu0 %v5841_v25  ;;  %v352_v25 = vld [vmem:[%s6351_s26 + $0x18] sm:$0xe]  ;;  %v6498_v15 = vcombine.low %v312_v11, %v313_v12  ;;  %v6501_v16 = vld [vmem:[%s6351_s26 + $0x44] ss:$0 sps:$4 sm:$0x11]  }
  0x29   : > { %5213 = vmatprep.subr.bf16.mxu0 %v5844_v28  ;;  %v677_v28 = vor.u32 %v676_v20, %v672_v14  ;;  %v5917_v13 = vld [vmem:[%s8455_s1 + $0x198] sm:$0xff]  }
  0x2a   : > { %5324 = vmatpush3.bf16.msra.mxu1 %v5843_v27  ;;  %v5879_v27 = vld [vmem:[%s8455_s1 + $0x110] sm:$0xff]  }
  0x2b   : > { %5325 = vmatprep.subr.bf16.mxu1 %v5846_v30  ;;  %v309_v30 = vld [vmem:[%s6351_s26 + $0x28] sm:$0xf]  ;;  %v682_v36 = vsel %vm646_vm0, %v677_v28, %v681_v23  ;;  %v708_v23 = vshrl.u32 %v6498_v15, 16  ;;  %v355_v28 = vld [vmem:[%s6351_s26 + $0x3c] sm:$0xe] }
  0x2c   : > { %5214 = vmatpush3.bf16.msra.mxu0 %v5845_v29  ;;  %v4749_v29 = vcombine.low %v352_v25, %v307_v4  ;;  %v4750_v47 = vcombine.low %v353_v45, %v309_v30  ;;  %v703_v4 = vshll.u32 %v6474_v63, 16  ;;  %v710_v25 = vshll.u32 %v6498_v15, 16 }
  0x2d   : > { %5423 = vmatprep.subr.bf16.mxu0 %v5850_v39  ;;  %v6442_v39 = vld [vmem:[%s6351_s26 + $0x34] sm:$0xf]  ;;  %v4752_v43 = vcombine.low %v355_v28, %v313_v12 }
  0x2e   : > { %5326 = vmatpush3.bf16.msra.mxu1 %v5849_v35  ;;  %v5889_v35 = vld [vmem:[%s8455_s1 + $0x188] sm:$0xff]   ;;  %v910_v37 = vrot.slane %v4749_v29, 1  ;;  %v913_v54 = vrot.slane %v4750_v47, 1  ;;  %v6469_v60 = vcombine.low %v4593_v38, %v6442_v39  ;;  %v5928_v29 = vld [vmem:[%s8455_s1 + $0x1e0] sm:$0xff]  }
  0x2f   : > { %2512 = vmatmul.mubr.bf16.vlgmr.msra.gmra.mrb[0].mxu0 %v4715_v33  ;;  %5535 = vmatprep.subr.bf16.mxu1 %v5872_v5  ;;  %v6431_v33 = vcombine.low %v308_v26, %v309_v30  ;;  %v5914_v5 = vld [vmem:[%s8455_s1 + $0x1d8] sm:$0xff]   ;;  %v715_v26 = vshll.u32 %v6501_v16, 16  ;;  %v917_v30 = vrot.slane %v6474_v63, 1  ;;  %v5931_v38 = vld [vmem:[%s8455_s1 + $0x1a0] sm:$0xff]   ;;  %v5935_v63 = vld [vmem:[%s8455_s1 + $0x130] sm:$0xff]  }
  0x30   : > { %5424 = vmatpush3.bf16.msra.mxu0 %v5853_v51  ;;  %2519 = vmatprep.mubr.bf16.mxu0 %v670_v19  ;;  %v914_v51 = vrot.slane %v6434_v34, 1  ;;  %v6505_v19 = vcombine.low %v4595_v6, %v6489_v7  ;;  %v5945_v6 = vld [vmem:[%s8455_s1 + $0x1a8] sm:$0xff]  }
  0x31   : > { %2673 = vmatmul.mubr.bf16.vlgmr.msra.gmra.mrb[0].mxu1 %v906_v1  ;;  %5425 = vmatprep.subr.bf16.mxu0 %v5862_v58  ;;  %v684_v41 = vshrl.u32 %v6431_v33, 16  ;;  %v686_v42 = vshll.u32 %v6431_v33, 16  ;;  %v912_v58 = vsel %vm903_vm1, %v910_v37, %v911_v32  ;;  %v314_v32 = vld [vmem:[%s6351_s26 + $0x48] sm:$0xf]  ;;  %v315_v37 = vld [vmem:[%s6351_s26 + $0x4c] sm:$0xf] }
  0x32   : > { %2680 = vmatprep.mubr.bf16.mxu1 %v6389_v62  ;;  %5536 = vmatpush3.bf16.msra.mxu1 %v5875_v10  ;;  %v354_v10 = vld [vmem:[%s6351_s26 + $0x30] sm:$0xe]  ;;  %v915_v17 = vsel %vm903_vm1, %v913_v54, %v914_v51  ;;  %v316_v54 = vld [vmem:[%s6351_s26 + $0x54] sm:$0xf] }
  0x33   : > { %5537 = vmatprep.subr.bf16.mxu1 %v5886_v31  ;;  %v688_v49 = vrot.slane %v686_v42, 1  ;;  %v4751_v20 = vcombine.low %v354_v10, %v311_v55  ;;  %v712_v31 = vrot.slane %v710_v25, 1  ;;  %v6536_v42 = vld [vmem:[%s6351_s26 + $0x50] ss:$0 sps:$4 sm:$0x11]  }
  0x34   : > { %5426 = vmatpush3.bf16.msra.mxu0 %v5865_v0  ;;  %v5907_v0 = vld [vmem:[%s8455_s1 + $0x120] sm:$0xff]   ;;  %v727_v47 = vshll.u32 %v6536_v42, 16  ;;  %v6600_v25 = vld [vmem:[%s6351_s26 + $0x68] ss:$0 sps:$4 sm:$0x11]  }
  0x35   : > { %5427 = vmatprep.subr.bf16.mxu0 %v5876_v21  ;;  %v689_v59 = vor.u32 %v688_v49, %v684_v41  ;;  %v5918_v21 = vld [vmem:[%s8455_s1 + $0x168] sm:$0xff]   ;;  %v916_v34 = vrot.slane %v4751_v20, 1  ;;  %v717_v41 = vrot.slane %v715_v26, 1 }
  0x36   : > { %5538 = vmatpush3.bf16.msra.mxu1 %v5889_v35  ;;  %v4597_v35 = vld [vmem:[%s6351_s26 + $0x48] sm:$0xf] }
  0x37   : > { %2520 = vmatmul.mubr.bf16.gmra.mrb[4].mxu0 %v4716_v52  ;;  %v310_v52 = vld [vmem:[%s6351_s26 + $0x30] sm:$0xf]  ;;  %5539 = vmatprep.subr.bf16.mxu1 %v5900_v48  ;;  %v694_v1 = vsel %vm646_vm0, %v689_v59, %v693_v50  ;;  %v918_v48 = vsel %vm903_vm1, %v916_v34, %v917_v30  ;;  %v320_v34 = vld [vmem:[%s6351_s26 + $0x6c] sm:$0xf] }
  0x38   : > { %5428 = vmatpush3.bf16.msra.mxu0 %v5879_v27  ;;  %2527 = vmatprep.mubr.bf16.mxu0 %v682_v36  ;;  %v6471_v61 = vcombine.low %v310_v52, %v311_v55  ;;  %v5921_v27 = vld [vmem:[%s8455_s1 + $0x128] sm:$0xff]   ;;  %v5932_v52 = vld [vmem:[%s8455_s1 + $0x170] sm:$0xff]   ;;  %v6552_v55 = vld [vmem:[%s6351_s26 + $0x58] sm:$0xf] }
  0x39   : > { %2681 = vmatmul.mubr.bf16.gmra.mrb[4].mxu1 %v909_v22  ;;  %5429 = vmatprep.subr.bf16.mxu0 %v5890_v40  ;;  %v6526_v36 = vld [vmem:[%s6351_s26 + $0x4c] sm:$0xf]  ;;  %v713_v40 = vor.u32 %v712_v31, %v708_v23  ;;  %v6557_v59 = vcombine.low %v316_v54, %v6552_v55  ;;  %v923_v23 = vrot.slane %v6536_v42, 1  ;;  %v4601_v31 = vld [vmem:[%s6351_s26 + $0x60] sm:$0xf] }
  0x3a   : > { %2688 = vmatprep.mubr.bf16.mxu1 %v6420_v24  ;;  %v696_v2 = vshrl.u32 %v6471_v61, 16  ;;  %v698_v3 = vshll.u32 %v6471_v61, 16  ;;  %5540 = vmatpush3.bf16.msra.mxu1 %v5903_v53  ;;  %v6544_v50 = vcombine.low %v4597_v35, %v6526_v36  ;;  %v920_v53 = vrot.slane %v6501_v16, 1  ;;  %v5949_v16 = vld [vmem:[%s8455_s1 + $0x138] sm:$0xff]   ;;  %v6614_v35 = vld [vmem:[%s6351_s26 + $0x70] sm:$0xf] }
  0x3b   : > { %5541 = vmatprep.subr.bf16.mxu1 %v5914_v5  ;;  %v718_v49 = vsel %vm646_vm0, %v713_v40, %v717_v41  ;;  %v734_v5 = vshll.u32 %v6557_v59, 16  ;;  %v5957_v40 = vld [vmem:[%s8455_s1 + $0x1b0] sm:$0xff]  }
  0x3c   : > { %5430 = vmatpush3.bf16.msra.mxu0 %v5893_v46  ;;  %v700_v8 = vrot.slane %v698_v3, 1  ;;  %v356_v3 = vld [vmem:[%s6351_s26 + $0x48] sm:$0xe] }
  0x3d   : > { %5431 = vmatprep.subr.bf16.mxu0 %v5904_v56  ;;  %v919_v56 = vrot.slane %v4752_v43, 1  ;;  %v736_v20 = vrot.slane %v734_v5, 1  ;;  %v6623_v43 = vcombine.low %v320_v34, %v6614_v35 }
  0x3e   : > { %v701_v14 = vor.u32 %v700_v8, %v696_v2  ;;  %5542 = vmatpush3.bf16.msra.mxu1 %v5917_v13  ;;  %v6563_v2 = vld [vmem:[%s6351_s26 + $0x58] sm:$0xf]  ;;  %v4753_v13 = vcombine.low %v356_v3, %v315_v37 }
  0x3f   : > { %2528 = vmatmul.mubr.bf16.gmra.mrb[8].mxu0 %v6401_v9  ;;  %v705_v9 = vrot.slane %v703_v4, 1  ;;  %5543 = vmatprep.subr.bf16.mxu1 %v5928_v29  ;;  %v6571_v4 = vld [vmem:[%s6351_s26 + $0x5c] ss:$0 sps:$4 sm:$0x11]   ;;  %v921_v10 = vsel %vm903_vm1, %v919_v56, %v920_v53  ;;  %v6645_v56 = vld [vmem:[%s6351_s26 + $0x70] sm:$0xf] }
  0x40   : > { %2535 = vmatprep.mubr.bf16.mxu0 %v694_v1  ;;  %5432 = vmatpush3.bf16.msra.mxu0 %v5907_v0  ;;  %v729_v1 = vrot.slane %v727_v47, 1  ;;  %v5946_v8 = vld [vmem:[%s8455_s1 + $0x178] sm:$0xff]   ;;  %v922_v26 = vrot.slane %v4753_v13, 1  ;;  %v929_v13 = vrot.slane %v6600_v25, 1 }
  0x41   : > { %2689 = vmatmul.mubr.bf16.gmra.mrb[8].mxu1 %v912_v58  ;;  %v706_v22 = vsel %vm646_vm0, %v701_v14, %v705_v9  ;;  %5433 = vmatprep.subr.bf16.mxu0 %v5918_v21  ;;  %v4599_v58 = vld [vmem:[%s6351_s26 + $0x54] sm:$0xf]  ;;  %v318_v9 = vld [vmem:[%s6351_s26 + $0x60] sm:$0xf]  ;;  %v6587_v14 = vld [vmem:[%s6351_s26 + $0x64] sm:$0xf] }
  0x42   : > { %2696 = vmatprep.mubr.bf16.mxu1 %v6469_v60  ;;  %5544 = vmatpush3.bf16.msra.mxu1 %v5931_v38  ;;  %v6584_v12 = vcombine.low %v4599_v58, %v6563_v2  ;;  %v739_v21 = vshll.u32 %v6571_v4, 16  ;;  %v751_v38 = vshll.u32 %v6600_v25, 16  ;;  %v358_v58 = vld [vmem:[%s6351_s26 + $0x60] sm:$0xe]  ;;  %v322_v3 = vld [vmem:[%s6351_s26 + $0x78] sm:$0xf] }
  0x44   : > { %5434 = vmatpush3.bf16.msra.mxu0 %v5921_v27  ;;  %v357_v27 = vld [vmem:[%s6351_s26 + $0x54] sm:$0xe]  ;;  %v741_v30 = vrot.slane %v739_v21, 1  ;;  %v753_v54 = vrot.slane %v751_v38, 1 }
  0x45   : > { %5435 = vmatprep.subr.bf16.mxu0 %v5932_v52  ;;  %v6640_v52 = vld [vmem:[%s8455_s1 + $0x200] sm:$0xff]  }
  0x46   : > { %v5916_v21 = vld [vmem:[%s6351_s26 + $0x80] ss:$0 sps:$4 sm:$0x11]  }
  0x47   : > { %2536 = vmatmul.mubr.bf16.gmra.mrb[12].mxu0 %v6431_v33  ;;  %v6533_v33 = vcombine.low %v314_v32, %v315_v37  ;;  %v5956_v32 = vld [vmem:[%s8455_s1 + $0x1f0] sm:$0xff]   ;;  %v4754_v37 = vcombine.low %v357_v27, %v6552_v55  ;;  %v4603_v55 = vld [vmem:[%s6351_s26 + $0x6c] sm:$0xf]  ;;  %v324_v27 = vld [vmem:[%s6351_s26 + $0x84] sm:$0xf] }
  0x48   : > { %2543 = vmatprep.mubr.bf16.mxu0 %v706_v22  ;;  %5436 = vmatpush3.bf16.msra.mxu0 %v5935_v63  ;;  %v6595_v22 = vcombine.low %v318_v9, %v6587_v14  ;;  %v6657_v5 = vcombine.low %v4603_v55, %v6645_v56  ;;  %v6699_v55 = vld [vmem:[%s6351_s26 + $0x88] sm:$0xf] }
  0x49   : > { %2697 = vmatmul.mubr.bf16.gmra.mrb[12].mxu1 %v915_v17  ;;  %v722_v45 = vshll.u32 %v6533_v33, 16  ;;  %v720_v46 = vshrl.u32 %v6533_v33, 16  ;;  %5437 = vmatprep.subr.bf16.mxu0 %v5946_v8  ;;  %v732_v17 = vshrl.u32 %v6557_v59, 16  ;;  %v925_v53 = vrot.slane %v4754_v37, 1 }
  0x4a   : > { %2704 = vmatprep.mubr.bf16.mxu1 %v6505_v19  ;;  %v746_v28 = vshll.u32 %v6595_v22, 16  ;;  %v744_v41 = vshrl.u32 %v6595_v22, 16  ;;  %v756_v8 = vshrl.u32 %v6623_v43, 16 }
  0x4b   : > { %v724_v51 = vrot.slane %v722_v45, 1  ;;  %v737_v29 = vor.u32 %v736_v20, %v732_v17  ;;  %v5958_v45 = vld [vmem:[%s8455_s1 + $0x1f8] sm:$0xff]   ;;  %v359_v20 = vld [vmem:[%s6351_s26 + $0x6c] sm:$0xe] }
  0x4c   : > { %5438 = vmatpush3.bf16.msra.mxu0 %v5949_v16  ;;  %v748_v42 = vrot.slane %v746_v28, 1  ;;  %v4605_v17 = vld [vmem:[%s6351_s26 + $0x78] sm:$0xf]  ;;  %v325_v28 = vld [vmem:[%s6351_s26 + $0x88] sm:$0xf]  ;;  %v4756_v25 = vcombine.low %v359_v20, %v6614_v35 }
  0x4d   : > { %v725_v0 = vor.u32 %v724_v51, %v720_v46  ;;  %v924_v46 = vsel %vm903_vm1, %v922_v26, %v923_v23  ;;  %v742_v47 = vsel %vm646_vm0, %v737_v29, %v741_v30  ;;  %v926_v51 = vrot.slane %v6571_v4, 1  ;;  %5695 = vmatprep.subr.bf16.mxu0 %v6640_v52  ;;  %v6673_v29 = vld [vmem:[%s6351_s26 + $0x7c] sm:$0xf] }
  0x4e   : > { %v749_v63 = vor.u32 %v748_v42, %v744_v41  ;;  %v6687_v37 = vcombine.low %v4605_v17, %v6673_v29  ;;  %v5924_v42 = vld [vmem:[%s6351_s26 + $0x8c] ss:$0 sps:$4 sm:$0x11]   ;;  %v5930_v17 = vld [vmem:[%s6351_s26 + $0x98] ss:$0 sps:$4 sm:$0x11]  }
  0x4f   : > { %2544 = vmatmul.mubr.bf16.gmra.mrb[16].mxu0 %v6471_v61  ;;  %v5942_v61 = vld [vmem:[%s8455_s1 + $0x1e8] sm:$0xff]   ;;  %v730_v11 = vsel %vm646_vm0, %v725_v0, %v729_v1  ;;  %v5910_v0 = vld [vmem:[%s6351_s26 + $0x74] ss:$0 sps:$4 sm:$0x11]   ;;  %v758_v1 = vshll.u32 %v6623_v43, 16 }
  0x50   : > { %2551 = vmatprep.mubr.bf16.mxu0 %v718_v49  ;;  %5545 = vmatprep.subr.bf16.mxu1 %v5942_v61  ;;  %v5960_v49 = vld [vmem:[%s8455_s1 + $0x1b8] sm:$0xff]   ;;  %v754_v4 = vsel %vm646_vm0, %v749_v63, %v753_v54  ;;  %v932_v41 = vrot.slane %v5910_v0, 1  ;;  %v4607_v54 = vld [vmem:[%s6351_s26 + $0x84] sm:$0xf] }
  0x51   : > { %2705 = vmatmul.mubr.bf16.gmra.mrb[16].mxu1 %v918_v48  ;;  %v323_v61 = vld [vmem:[%s6351_s26 + $0x7c] sm:$0xf]  ;;  %v760_v9 = vrot.slane %v758_v1, 1 }
  0x52   : > { %2712 = vmatprep.mubr.bf16.mxu1 %v6544_v50  ;;  %5546 = vmatpush3.bf16.msra.mxu1 %v5945_v6  ;;  %v4755_v6 = vcombine.low %v358_v58, %v6587_v14  ;;  %v787_v58 = vshll.u32 %v5924_v42, 16 }
  0x53   : > { %5547 = vmatprep.subr.bf16.mxu1 %v5956_v32  ;;  %v761_v14 = vor.u32 %v760_v9, %v756_v8  ;;  %v6682_v32 = vcombine.low %v324_v27, %v325_v28  ;;  %v4609_v9 = vld [vmem:[%s6351_s26 + $0x90] sm:$0xf] }
  0x54   : > { %v928_v16 = vrot.slane %v4755_v6, 1  ;;  %v935_v6 = vrot.slane %v5916_v21, 1  ;;  %v789_v8 = vrot.slane %v787_v58, 1 }
  0x55   : > { %v780_v63 = vshrl.u32 %v6682_v32, 16 }
  0x56   : > { %5548 = vmatpush3.bf16.msra.mxu1 %v5957_v40  ;;  %v930_v30 = vsel %vm903_vm1, %v928_v16, %v929_v13  ;;  %v931_v40 = vrot.slane %v4756_v25, 1  ;;  %v361_v13 = vld [vmem:[%s6351_s26 + $0x84] sm:$0xe] }
  0x57   : > { %2552 = vmatmul.mubr.bf16.gmra.mrb[20].mxu0 %v6498_v15  ;;  %v6610_v15 = vld [vmem:[%s6351_s26 + $0x64] sm:$0xf]  ;;  %5549 = vmatprep.subr.bf16.mxu1 %v5958_v45 }
  0x58   : > { %2559 = vmatprep.mubr.bf16.mxu0 %v730_v11  ;;  %v6631_v48 = vcombine.low %v4601_v31, %v6610_v15  ;;  %v6661_v11 = vcombine.low %v322_v3, %v323_v61  ;;  %v775_v31 = vshll.u32 %v5916_v21, 16  ;;  %v933_v3 = vsel %vm903_vm1, %v931_v40, %v932_v41  ;;  %v329_v21 = vld [vmem:[%s6351_s26 + $0xa0] sm:$0xf]  ;;  %v362_v41 = vld [vmem:[%s6351_s26 + $0x90] sm:$0xe] }
  0x59   : > { %2713 = vmatmul.mubr.bf16.gmra.mrb[20].mxu1 %v921_v10  ;;  %v763_v10 = vshll.u32 %v5910_v0, 16  ;;  %v6731_v40 = vld [vmem:[%s6351_s26 + $0xa0] sm:$0xf] }
  0x5a   : > { %2720 = vmatprep.mubr.bf16.mxu1 %v6584_v12  ;;  %5550 = vmatpush3.bf16.msra.mxu1 %v5960_v49  ;;  %v770_v26 = vshll.u32 %v6661_v11, 16  ;;  %v768_v38 = vshrl.u32 %v6661_v11, 16  ;;  %v777_v45 = vrot.slane %v775_v31, 1  ;;  %v799_v31 = vshll.u32 %v5930_v17, 16 }
  0x5b   : > { %v765_v23 = vrot.slane %v763_v10, 1  ;;  %v6712_v10 = vld [vmem:[%s6351_s26 + $0x94] sm:$0xf] }
  0x5c   : > { %v772_v35 = vrot.slane %v770_v26, 1  ;;  %v6723_v27 = vcombine.low %v4609_v9, %v6712_v10  ;;  %v6756_v9 = vld [vmem:[%s6351_s26 + $0xb0] ss:$0 sps:$4 sm:$0x11]  }
  0x5d   : > { %v766_v34 = vsel %vm646_vm0, %v761_v14, %v765_v23  ;;  %v328_v14 = vld [vmem:[%s6351_s26 + $0x9c] sm:$0xf] }
  0x5e   : > { %v773_v49 = vor.u32 %v772_v35, %v768_v38  ;;  %v4611_v35 = vld [vmem:[%s6351_s26 + $0x9c] sm:$0xf] }
  0x5f   : > { %2560 = vmatmul.mubr.bf16.gmra.mrb[24].mxu0 %v6533_v33  ;;  %v927_v33 = vsel %vm903_vm1, %v925_v53, %v926_v51  ;;  %v326_v51 = vld [vmem:[%s6351_s26 + $0x90] sm:$0xf]  ;;  %v327_v53 = vld [vmem:[%s6351_s26 + $0x94] sm:$0xf] }
  0x60   : > { %2567 = vmatprep.mubr.bf16.mxu0 %v742_v47  ;;  %v782_v47 = vshll.u32 %v6682_v32, 16  ;;  %v6702_v1 = vcombine.low %v326_v51, %v327_v53  ;;  %v330_v51 = vld [vmem:[%s6351_s26 + $0xa8] sm:$0xf] }
  0x61   : > { %2721 = vmatmul.mubr.bf16.gmra.mrb[24].mxu1 %v924_v46  ;;  %v360_v46 = vld [vmem:[%s6351_s26 + $0x78] sm:$0xe] }
  0x62   : > { %2728 = vmatprep.mubr.bf16.mxu1 %v6631_v48  ;;  %v784_v0 = vrot.slane %v782_v47, 1  ;;  %v794_v20 = vshll.u32 %v6702_v1, 16  ;;  %v792_v25 = vshrl.u32 %v6702_v1, 16  ;;  %v5938_v47 = vld [vmem:[%s6351_s26 + $0xa4] ss:$0 sps:$4 sm:$0x11]  }
  0x64   : > { %v785_v16 = vor.u32 %v784_v0, %v780_v63 }
  0x66   : > { %v790_v26 = vsel %vm646_vm0, %v785_v16, %v789_v8 }
  0x67   : > { %2568 = vmatmul.mubr.bf16.gmra.mrb[28].mxu0 %v6557_v59  ;;  %v6678_v59 = vld [vmem:[%s8458_s4] sm:$0xff]  }
  0x68   : > { %2575 = vmatprep.mubr.bf16.mxu0 %v754_v4  ;;  %5743 = vmatprep.subr.bf16.mxu1 %v6678_v59  ;;  %v6707_v4 = vcombine.low %v4607_v54, %v6699_v55  ;;  %v6739_v54 = vld [vmem:[%s6351_s26 + $0xac] sm:$0xf] }
  0x69   : > { %2729 = vmatmul.mubr.bf16.gmra.mrb[28].mxu1 %v927_v33  ;;  %v778_v33 = vsel %vm646_vm0, %v773_v49, %v777_v45 }
  0x6a   : > { %2736 = vmatprep.mubr.bf16.mxu1 %v6657_v5 }
  0x6f   : > { %2576 = vmatmul.mubr.bf16.gmra.mrb[32].mxu0 %v6595_v22  ;;  %v4757_v22 = vcombine.low %v360_v46, %v323_v61  ;;  %v801_v46 = vrot.slane %v799_v31, 1 }
  0x70   : > { %2583 = vmatprep.mubr.bf16.mxu0 %v766_v34  ;;  %v6726_v34 = vcombine.low %v328_v14, %v329_v21 }
  0x71   : > { %2737 = vmatmul.mubr.bf16.gmra.mrb[32].mxu1 %v930_v30  ;;  %v934_v61 = vrot.slane %v4757_v22, 1  ;;  %v796_v30 = vrot.slane %v794_v20, 1  ;;  %v4759_v22 = vcombine.low %v362_v41, %v327_v53  ;;  %v6753_v53 = vld [vmem:[%s6351_s26 + $0xac] sm:$0xf]  ;;  %v363_v20 = vld [vmem:[%s6351_s26 + $0x9c] sm:$0xe] }
  0x72   : > { %2744 = vmatprep.mubr.bf16.mxu1 %v6687_v37  ;;  %v806_v49 = vshll.u32 %v6726_v34, 16  ;;  %v804_v58 = vshrl.u32 %v6726_v34, 16 }
  0x73   : > { %v936_v23 = vsel %vm903_vm1, %v934_v61, %v935_v6  ;;  %v797_v45 = vor.u32 %v796_v30, %v792_v25  ;;  %v941_v6 = vrot.slane %v5930_v17, 1  ;;  %v4613_v61 = vld [vmem:[%s6351_s26 + $0xa8] sm:$0xf]  ;;  %v940_v8 = vrot.slane %v4759_v22, 1  ;;  %v4615_v22 = vld [vmem:[%s6351_s26 + $0xb4] sm:$0xf] }
  0x74   : > { %v808_v0 = vrot.slane %v806_v49, 1  ;;  %v6767_v17 = vcombine.low %v4613_v61, %v6753_v53  ;;  %v823_v25 = vshll.u32 %v6756_v9, 16 }
  0x75   : > { %v802_v63 = vsel %vm646_vm0, %v797_v45, %v801_v46  ;;  %v364_v46 = vld [vmem:[%s6351_s26 + $0xa8] sm:$0xe] }
  0x76   : > { %8487 = vst [vmem:[#allocation3_spill] sm:$0xff] %v6767_v17  ;;  %v825_v45 = vrot.slane %v823_v25, 1  ;;  %v6806_v25 = vld [vmem:[%s6351_s26 + $0xc4] sm:$0xf] }
  0x77   : > { %2584 = vmatmul.mubr.bf16.gmra.mrb[36].mxu0 %v6623_v43  ;;  %v4758_v43 = vcombine.low %v361_v13, %v325_v28  ;;  %v938_v28 = vrot.slane %v5924_v42, 1  ;;  %v6743_v42 = vcombine.low %v4611_v35, %v6731_v40  ;;  %v809_v13 = vor.u32 %v808_v0, %v804_v58  ;;  %v6785_v58 = vld [vmem:[%s6351_s26 + $0xb8] sm:$0xf]  ;;  %8490 = vst [vmem:[#allocation6_spill] sm:$0xff] %v6806_v25 }
  0x78   : > { %2591 = vmatprep.mubr.bf16.mxu0 %v778_v33  ;;  %v6748_v33 = vcombine.low %v330_v51, %v6739_v54  ;;  %v1115_v35 = vshll.u32 %v6370_v44, 16  ;;  %v6780_v51 = vld [vmem:[%s6351_s26 + $0xbc] ss:$0 sps:$4 sm:$0x11]   ;;  %8488 = vst [vmem:[#allocation4_spill] sm:$0xff] %v6785_v58  ;;  %v4761_v0 = vcombine.low %v364_v46, %v6739_v54  ;;  %v6794_v61 = vcombine.low %v4615_v22, %v6785_v58 }
  0x79   : > { %2745 = vmatmul.mubr.bf16.gmra.mrb[36].mxu1 %v933_v3  ;;  %v937_v38 = vrot.slane %v4758_v43, 1  ;;  %8486 = vst [vmem:[#allocation2_spill] sm:$0xff] %v6743_v42  ;;  %v811_v3 = vshll.u32 %v5938_v47, 16  ;;  %v332_v43 = vld [vmem:[%s6351_s26 + $0xb4] sm:$0xf]  ;;  %v1151_v22 = vshll.u32 %v6469_v60, 16 }
  0x7a   : > { %2752 = vmatprep.mubr.bf16.mxu1 %v6707_v4  ;;  %v818_v14 = vshll.u32 %v6748_v33, 16  ;;  %v816_v31 = vshrl.u32 %v6748_v33, 16  ;;  %8489 = vst [vmem:[#allocation5_spill] sm:$0xff] %v6794_v61  ;;  %v6168_v46 = vld [vmem:[%s6351_s26 + $0x10] sm:$0xf] }
  0x7b   : > { %v813_v16 = vrot.slane %v811_v3, 1 }
  0x7d   : > { %v814_v30 = vsel %vm646_vm0, %v809_v13, %v813_v16  ;;  %v835_v13 = vshll.u32 %v6780_v51, 16  ;;  %v4635_v16 = vld [vmem:[%s6351_s26 + $0xc] sm:$0xe] }
  0x7f   : > { %2592 = vmatmul.mubr.bf16.gmra.mrb[40].mxu0 %v6661_v11  ;;  %v939_v11 = vsel %vm903_vm1, %v937_v38, %v938_v28  ;;  %v820_v38 = vrot.slane %v818_v14, 1  ;;  %v1117_v14 = vrot.slane %v1115_v35, 1  ;;  %v837_v35 = vrot.slane %v835_v13, 1 }
  0x80   : > { %2599 = vmatprep.mubr.bf16.mxu0 %v790_v26  ;;  %v4760_v26 = vcombine.low %v363_v20, %v329_v21  ;;  %v944_v21 = vrot.slane %v5938_v47, 1  ;;  %v1113_v20 = vshrl.u32 %v6370_v44, 16  ;;  %v5963_v44 = vld [vmem:[%s6351_s26 + $0x20] ss:$0 sps:$4 sm:$0x11]  }
  0x81   : > { %2753 = vmatmul.mubr.bf16.gmra.mrb[40].mxu1 %v936_v23  ;;  %v6763_v23 = vld [vmem:[%s6351_s26 + $0xb8] sm:$0xf]  ;;  %v821_v49 = vor.u32 %v820_v38, %v816_v31  ;;  %v365_v31 = vld [vmem:[%s6351_s26 + $0xb4] sm:$0xe]  ;;  %v1127_v38 = vshll.u32 %v6389_v62, 16 }
  0x82   : > { %2760 = vmatprep.mubr.bf16.mxu1 %v6723_v27  ;;  %v6773_v28 = vcombine.low %v332_v43, %v6763_v23  ;;  %v943_v41 = vrot.slane %v4760_v26, 1  ;;  %v4636_v43 = vld [vmem:[%s6351_s26 + $0x18] sm:$0xe]  ;;  %v4617_v26 = vld [vmem:[%s6351_s26 + $0xc0] sm:$0xf] }
  0x84   : > { %v945_v47 = vsel %vm903_vm1, %v943_v41, %v944_v21  ;;  %v828_v3 = vshrl.u32 %v6773_v28, 16  ;;  %v1139_v21 = vshll.u32 %v6420_v24, 16  ;;  %v4653_v41 = vld [vmem:[%s6351_s26 + $0x24] sm:$0xf] }
  0x87   : > { %2600 = vmatmul.mubr.bf16.gmra.mrb[44].mxu0 %v6682_v32  ;;  %v942_v32 = vsel %vm903_vm1, %v940_v8, %v941_v6  ;;  %v826_v6 = vsel %vm646_vm0, %v821_v49, %v825_v45  ;;  %v4654_v45 = vld [vmem:[%s6351_s26 + $0x28] sm:$0xf]  ;;  %v4795_v49 = vcombine.low %v4635_v16, %v6168_v46  ;;  %v5959_v16 = vld [vmem:[%s6351_s26 + $0x14] ss:$0 sps:$4 sm:$0x11]  }
  0x88   : > { %2607 = vmatprep.mubr.bf16.mxu0 %v802_v63  ;;  %v4651_v63 = vld [vmem:[%s6351_s26 + $0x18] sm:$0xf]  ;;  %v6831_v46 = vcombine.low %v4653_v41, %v4654_v45 }
  0x89   : > { %2761 = vmatmul.mubr.bf16.gmra.mrb[44].mxu1 %v939_v11  ;;  %v830_v11 = vshll.u32 %v6773_v28, 16 }
  0x8a   : > { %2768 = vmatprep.mubr.bf16.mxu1 %v6743_v42 }
  0x8b   : > { %v832_v8 = vrot.slane %v830_v11, 1  ;;  %v4796_v11 = vcombine.low %v4636_v43, %v6383_v57  ;;  %v4762_v57 = vcombine.low %v365_v31, %v6763_v23  ;;  %v1584_v43 = vshll.u32 %v5963_v44, 16  ;;  %v5966_v44 = vld [vmem:[%s6351_s26 + $0x2c] ss:$0 sps:$4 sm:$0x11]  }
  0x8c   : > { %v1368_v23 = vrot.slane %v4795_v49, 1  ;;  %v1118_v49 = vor.u32 %v1117_v14, %v1113_v20  ;;  %v4640_v20 = vld [vmem:[%s6351_s26 + $0x48] sm:$0xe]  ;;  %v8496_v14 = vshll.u32 %v6544_v50, 16 }
  0x8d   : > { %v1371_v31 = vrot.slane %v4796_v11, 1  ;;  %v1586_v41 = vrot.slane %v1584_v43, 1  ;;  %v1120_v43 = vshll.u32 %v5959_v16, 16 }
  0x8f   : > { %2608 = vmatmul.mubr.bf16.gmra.mrb[48].mxu0 %v6702_v1  ;;  %v4652_v1 = vld [vmem:[%s6351_s26 + $0x1c] sm:$0xf] }
  0x90   : > { %2615 = vmatprep.mubr.bf16.mxu0 %v814_v30  ;;  %v6801_v54 = vcombine.low %v4651_v63, %v4652_v1  ;;  %v946_v30 = vrot.slane %v4761_v0, 1  ;;  %v4637_v1 = vld [vmem:[%s6351_s26 + $0x24] sm:$0xe]  ;;  %v1596_v63 = vshll.u32 %v5966_v44, 16 }
  0x91   : > { %2769 = vmatmul.mubr.bf16.gmra.mrb[48].mxu1 %v942_v32  ;;  %v947_v32 = vrot.slane %v6756_v9, 1  ;;  %v833_v9 = vor.u32 %v832_v8, %v828_v3  ;;  %v4638_v8 = vld [vmem:[%s6351_s26 + $0x30] sm:$0xe] }
  0x92   : > { %2776 = vmatprep.mubr.bf16.mxu1 %v6767_v17  ;;  %v1577_v0 = vshrl.u32 %v6801_v54, 16  ;;  %v4798_v45 = vcombine.low %v4638_v8, %v6442_v39  ;;  %v1137_v39 = vshrl.u32 %v6420_v24, 16  ;;  %v5998_v24 = vld [vmem:[%s8458_s4 + $0x18] sm:$0xff]   ;;  %v7060_v17 = vld [vmem:[%s6351_s26 + $0x90] sm:$0xe] }
  0x93   : > { %v948_v3 = vsel %vm903_vm1, %v946_v30, %v947_v32  ;;  %v838_v13 = vsel %vm646_vm0, %v833_v9, %v837_v35  ;;  %v6838_v30 = vld [vmem:[%s6351_s26 + $0x3c] sm:$0xe]  ;;  %v950_v35 = vrot.slane %v6780_v51, 1  ;;  %v1129_v51 = vrot.slane %v1127_v38, 1 }
  0x94   : > { %v6871_v44 = vrot.slane %v4798_v45, 1  ;;  %v4657_v45 = vld [vmem:[%s6351_s26 + $0x3c] sm:$0xf] }
  0x97   : > { %2616 = vmatmul.mubr.bf16.gmra.mrb[52].mxu0 %v6726_v34  ;;  %v1579_v34 = vshll.u32 %v6801_v54, 16 }
  0x98   : > { %2623 = vmatprep.mubr.bf16.mxu0 %v826_v6  ;;  %v6825_v6 = vcombine.low %v4617_v26, %v6806_v25  ;;  %v4797_v26 = vcombine.low %v4637_v1, %v6412_v18  ;;  %v949_v18 = vrot.slane %v4762_v57, 1  ;;  %v4655_v1 = vld [vmem:[%s6351_s26 + $0x30] sm:$0xf]  ;;  %v4656_v25 = vld [vmem:[%s6351_s26 + $0x34] sm:$0xf]  ;;  %v4799_v57 = vcombine.low %v6838_v30, %v6489_v7 }
  0x99   : > { %2777 = vmatmul.mubr.bf16.gmra.mrb[52].mxu1 %v945_v47  ;;  %v1581_v32 = vrot.slane %v1579_v34, 1  ;;  %v1369_v34 = vrot.slane %v5959_v16, 1  ;;  %v5964_v47 = vld [vmem:[%s6351_s26 + $0x20] ss:$0 sps:$4 sm:$0x11]   ;;  %v6866_v7 = vrot.slane %v1139_v21, 1 }
  0x9a   : > { %2784 = vmatprep.mubr.bf16.mxu1 %v6794_v61  ;;  %8491 = vst [vmem:[#allocation7_spill] sm:$0xff] %v6825_v6  ;;  %v6852_v9 = vrot.slane %v4797_v26, 1  ;;  %v4641_v16 = vld [vmem:[%s6351_s26 + $0x54] sm:$0xe]  ;;  %v1122_v21 = vrot.slane %v1120_v43, 1 }
  0x9b   : > { %v1582_v11 = vor.u32 %v1581_v32, %v1577_v0  ;;  %v951_v0 = vsel %vm903_vm1, %v949_v18, %v950_v35  ;;  %v1370_v8 = vsel %vm903_vm1, %v1368_v23, %v1369_v34  ;;  %v1589_v32 = vshrl.u32 %v6831_v46, 16  ;;  %v5976_v43 = vld [vmem:[%s8455_s1 + $0x210] sm:$0xff]   ;;  %v6925_v30 = vld [vmem:[%s6351_s26 + $0x44] ss:$0 sps:$4 sm:$0x11]  }
  0x9c   : > { %v6874_v23 = vrot.slane %v1151_v22, 1  ;;  %v1372_v18 = vrot.slane %v5964_v47, 1  ;;  %v1598_v34 = vrot.slane %v1596_v63, 1  ;;  %v6884_v22 = vld [vmem:[%s6351_s26 + $0x40] sm:$0xf]  ;;  %v1132_v35 = vshll.u32 %v5964_v47, 16 }
  0x9d   : > { %v1587_v38 = vsel %vm646_vm0, %v1582_v11, %v1586_v41  ;;  %v4800_v41 = vcombine.low %v4640_v20, %v6526_v36  ;;  %8493 = vst [vmem:[#allocation9_spill] sm:$0xff] %v6884_v22  ;;  %v1123_v63 = vsel %vm646_vm0, %v1118_v49, %v1122_v21  ;;  %v6907_v49 = vld [vmem:[%s6351_s26 + $0x60] sm:$0xe]  ;;  %8495 = vst [vmem:[#allocation10_spill] sm:$0xff] %v6925_v30  ;;  %v7042_v61 = vld [vmem:[%s6351_s26 + $0x70] sm:$0xf] }
  0x9e   : > { %v1373_v20 = vsel %vm903_vm1, %v1371_v31, %v1372_v18  ;;  %v5982_v18 = vld [vmem:[%s8458_s4 + $0x8] sm:$0xff]   ;;  %8503 = vst [vmem:[#allocation15_spill] sm:$0xff] %v7042_v61 }
  0x9f   : > { %2624 = vmatmul.mubr.bf16.gmra.mrb[56].mxu0 %v6748_v33  ;;  %v1591_v33 = vshll.u32 %v6831_v46, 16 }
  0xa0   : > { %2631 = vmatprep.mubr.bf16.mxu0 %v838_v13  ;;  %v1125_v13 = vshrl.u32 %v6389_v62, 16  ;;  %v6862_v62 = vcombine.low %v4655_v1, %v4656_v25  ;;  %v4801_v1 = vcombine.low %v4641_v16, %v6563_v2  ;;  %v8494_v2 = vshll.u32 %v6505_v19, 16 }
  0xa1   : > { %2785 = vmatmul.mubr.bf16.gmra.mrb[56].mxu1 %v948_v3  ;;  %v1593_v26 = vrot.slane %v1591_v33, 1  ;;  %v6879_v33 = vld [vmem:[%s6351_s26 + $0x38] ss:$0 sps:$4 sm:$0x11]   ;;  %v6934_v3 = vrot.slane %v8496_v14, 1 }
  0xa2   : > { %2792 = vmatprep.mubr.bf16.mxu1 %v6825_v6  ;;  %8492 = vst [vmem:[#allocation8_spill] sm:$0xff] %v6879_v33  ;;  %v6902_v47 = vrot.slane %v8494_v2, 1  ;;  %v1601_v31 = vshrl.u32 %v6862_v62, 16  ;;  %v1608_v21 = vshll.u32 %v6879_v33, 16 }
  0xa3   : > { %v1594_v11 = vor.u32 %v1593_v26, %v1589_v32  ;;  %v6898_v32 = vcombine.low %v4657_v45, %v6884_v22  ;;  %v6904_v26 = vrot.slane %v4800_v41, 1  ;;  %v1134_v41 = vrot.slane %v1132_v35, 1  ;;  %v7003_v33 = vld [vmem:[%s6351_s26 + $0x5c] ss:$0 sps:$4 sm:$0x11]  }
  0xa4   : > { %v7035_v22 = vld [vmem:[%s6351_s26 + $0x78] sm:$0xe] }
  0xa5   : > { %v1615_v35 = vshll.u32 %v6898_v32, 16 }
  0xa7   : > { %2632 = vmatmul.mubr.bf16.gmra.mrb[60].mxu0 %v6773_v28  ;;  %v1603_v28 = vshll.u32 %v6862_v62, 16 }
  0xa8   : > { %2833 = vmatprep.mubr.bf16.mxu0 %v1370_v8  ;;  %v6890_v8 = vrot.slane %v4799_v57, 1  ;;  %v1599_v57 = vsel %vm646_vm0, %v1594_v11, %v1598_v34  ;;  %v6922_v11 = vld [vmem:[%s6351_s26 + $0x38] ss:$0 sps:$4 sm:$0x11]  }
  0xa9   : > { %2793 = vmatmul.mubr.bf16.gmra.mrb[60].mxu1 %v951_v0  ;;  %v5967_v0 = vld [vmem:[%s6351_s26 + $0x2c] ss:$0 sps:$4 sm:$0x11]   ;;  %v1605_v16 = vrot.slane %v1603_v28, 1  ;;  %v1130_v28 = vor.u32 %v1129_v51, %v1125_v13  ;;  %v1610_v13 = vrot.slane %v1608_v21, 1  ;;  %v6940_v51 = vrot.slane %v4801_v1, 1 }
  0xaa   : > { %2994 = vmatprep.mubr.bf16.mxu1 %v1587_v38  ;;  %v5968_v38 = vld [vmem:[%s8455_s1 + $0x208] sm:$0xff]   ;;  %v1375_v45 = vrot.slane %v5967_v0, 1  ;;  %v1144_v2 = vshll.u32 %v5967_v0, 16  ;;  %v6948_v34 = vld [vmem:[%s6351_s26 + $0x50] ss:$0 sps:$4 sm:$0x11]  }
  0xab   : > { %v4659_v0 = vld [vmem:[%s6351_s26 + $0x48] sm:$0xf]  ;;  %v1135_v14 = vsel %vm646_vm0, %v1130_v28, %v1134_v41  ;;  %v1156_v1 = vshll.u32 %v6922_v11, 16  ;;  %v1617_v21 = vrot.slane %v1615_v35, 1  ;;  %v1620_v41 = vshll.u32 %v6925_v30, 16 }
  0xac   : > { %v4661_v28 = vld [vmem:[%s6351_s26 + $0x54] sm:$0xf]  ;;  %v4643_v35 = vld [vmem:[%s6351_s26 + $0x6c] sm:$0xe] }
  0xad   : > { %v6990_v36 = vrot.slane %v1156_v1, 1 }
  0xaf   : > { %2834 = vmatmul.mubr.bf16.vlgmr.msra.gmra.mrb[64].mxu0 %v1123_v63  ;;  %v6930_v63 = vld [vmem:[%s6351_s26 + $0x4c] sm:$0xf] }
  0xb0   : > { %5696 = vmatpush3.bf16.msra.mxu0 %v6640_v52  ;;  %2841 = vmatprep.mubr.bf16.mxu0 %v1373_v20  ;;  %v5990_v52 = vld [vmem:[%s8458_s4 + $0x10] sm:$0xff]   ;;  %v4802_v20 = vcombine.low %v6907_v49, %v6610_v15  ;;  %v5984_v15 = vld [vmem:[%s8455_s1 + $0x218] sm:$0xff]   ;;  %v1613_v49 = vshrl.u32 %v6898_v32, 16 }
  0xb1   : > { %2995 = vmatmul.mubr.bf16.vlgmr.msra.gmra.mrb[64].mxu1 %v6801_v54  ;;  %5697 = vmatprep.subr.bf16.mxu0 %v5968_v38  ;;  %v1606_v54 = vor.u32 %v1605_v16, %v1601_v31  ;;  %v1376_v31 = vsel %vm903_vm1, %v6852_v9, %v1375_v45  ;;  %v1146_v16 = vrot.slane %v1144_v2, 1  ;;  %v1142_v9 = vor.u32 %v6866_v7, %v1137_v39  ;;  %v6968_v45 = vld [vmem:[%s6351_s26 + $0x58] sm:$0xf] }
  0xb2   : > { %3002 = vmatprep.mubr.bf16.mxu1 %v1599_v57  ;;  %5744 = vmatpush3.bf16.msra.mxu1 %v6678_v59  ;;  %v6945_v57 = vld [vmem:[%s6351_s26 + $0x44] ss:$0 sps:$4 sm:$0x11]   ;;  %v6954_v59 = vcombine.low %v4659_v0, %v6930_v63  ;;  %8497 = vst [vmem:[#allocation11_spill] sm:$0xff] %v6968_v45  ;;  %v1378_v39 = vrot.slane %v6922_v11, 1  ;;  %v6993_v11 = vcombine.low %v4661_v28, %v6968_v45  ;;  %v6998_v25 = vrot.slane %v4802_v20, 1 }
  0xb3   : > { %5745 = vmatprep.subr.bf16.mxu1 %v5982_v18  ;;  %v1168_v2 = vshll.u32 %v6945_v57, 16  ;;  %v6972_v0 = vld [vmem:[%s6351_s26 + $0x50] ss:$0 sps:$4 sm:$0x11]   ;;  %v1618_v30 = vor.u32 %v1617_v21, %v1613_v49  ;;  %v4667_v45 = vld [vmem:[%s6351_s26 + $0x78] sm:$0xf] }
  0xb4   : > { %5698 = vmatpush3.bf16.msra.mxu0 %v5968_v38  ;;  %v1611_v38 = vsel %vm646_vm0, %v1606_v54, %v1610_v13  ;;  %v1627_v7 = vshll.u32 %v6954_v59, 16  ;;  %v8498_v54 = vshll.u32 %v6584_v12, 16  ;;  %8499 = vst [vmem:[#allocation12_spill] sm:$0xff] %v6993_v11  ;;  %v1180_v28 = vshll.u32 %v6972_v0, 16 }
  0xb5   : > { %5699 = vmatprep.subr.bf16.mxu0 %v5976_v43  ;;  %v7005_v1 = vrot.slane %v1168_v2, 1  ;;  %v1379_v2 = vsel %vm903_vm1, %v6871_v44, %v1378_v39  ;;  %v1639_v20 = vshll.u32 %v6993_v11, 16  ;;  %v1192_v39 = vshll.u32 %v7003_v33, 16 }
  0xb6   : > { %5746 = vmatpush3.bf16.msra.mxu1 %v5982_v18  ;;  %v1632_v18 = vshll.u32 %v6948_v34, 16  ;;  %v6984_v13 = vrot.slane %v8498_v54, 1  ;;  %v1147_v54 = vsel %vm646_vm0, %v1142_v9, %v1146_v16  ;;  %v6006_v16 = vld [vmem:[%s8458_s4 + $0x20] sm:$0xff]   ;;  %v1629_v49 = vrot.slane %v1627_v7, 1 }
  0xb7   : > { %2842 = vmatmul.mubr.bf16.gmra.mrb[68].mxu0 %v1135_v14  ;;  %5747 = vmatprep.subr.bf16.mxu1 %v5990_v52  ;;  %v5992_v14 = vld [vmem:[%s8455_s1 + $0x220] sm:$0xff]  }
  0xb8   : > { %2849 = vmatprep.mubr.bf16.mxu0 %v1376_v31  ;;  %5700 = vmatpush3.bf16.msra.mxu0 %v5976_v43  ;;  %v6996_v31 = vld [vmem:[%s6351_s26 + $0x5c] ss:$0 sps:$4 sm:$0x11]   ;;  %v1625_v43 = vshrl.u32 %v6954_v59, 16  ;;  %v7013_v21 = vrot.slane %v1632_v18, 1 }
  0xb9   : > { %3003 = vmatmul.mubr.bf16.gmra.mrb[68].mxu1 %v6831_v46  ;;  %v1622_v46 = vrot.slane %v1620_v41, 1  ;;  %8500 = vst [vmem:[#allocation13_spill] sm:$0xff] %v6996_v31  ;;  %5701 = vmatprep.subr.bf16.mxu0 %v5984_v15  ;;  %v4663_v7 = vld [vmem:[%s6351_s26 + $0x60] sm:$0xf]  ;;  %v7028_v18 = vld [vmem:[%s6351_s26 + $0x64] sm:$0xf]  ;;  %v4803_v41 = vcombine.low %v4643_v35, %v6645_v56 }
  0xba   : > { %3010 = vmatprep.mubr.bf16.mxu1 %v1611_v38  ;;  %5748 = vmatpush3.bf16.msra.mxu1 %v5990_v52  ;;  %v8501_v52 = vshll.u32 %v6631_v48, 16  ;;  %v6000_v38 = vld [vmem:[%s8455_s1 + $0x228] sm:$0xff]   ;;  %8502 = vst [vmem:[#allocation14_spill] sm:$0xff] %v7028_v18  ;;  %v1644_v44 = vshll.u32 %v6996_v31, 16  ;;  %v8504_v56 = vshrl.u32 %v6469_v60, 16  ;;  %v7048_v35 = vrot.slane %v1180_v28, 1 }
  0xbb   : > { %5749 = vmatprep.subr.bf16.mxu1 %v5998_v24  ;;  %v1623_v6 = vsel %vm646_vm0, %v1618_v30, %v1622_v46  ;;  %v7054_v46 = vld [vmem:[%s6351_s26 + $0x68] ss:$0 sps:$4 sm:$0x11]   ;;  %v1630_v42 = vor.u32 %v1629_v49, %v1625_v43  ;;  %v7067_v60 = vld [vmem:[%s6351_s26 + $0x9c] sm:$0xe]  ;;  %v4804_v43 = vcombine.low %v7035_v22, %v6673_v29 }
  0xbc   : > { %v7018_v9 = vrot.slane %v8501_v52, 1  ;;  %5702 = vmatpush3.bf16.msra.mxu0 %v5984_v15  ;;  %v6014_v52 = vld [vmem:[%s8458_s4 + $0x28] sm:$0xff]   ;;  %v1154_v30 = vor.u32 %v6874_v23, %v8504_v56  ;;  %8505 = vst [vmem:[#allocation16_spill] sm:$0xff] %v7054_v46  ;;  %v7073_v28 = vld [vmem:[%s6351_s26 + $0xb4] sm:$0xe]  ;;  %v7075_v56 = vrot.slane %v1644_v44, 1 }
  0xbd   : > { %5703 = vmatprep.subr.bf16.mxu0 %v5992_v14  ;;  %v4665_v15 = vld [vmem:[%s6351_s26 + $0x6c] sm:$0xf]  ;;  %v7070_v23 = vld [vmem:[%s6351_s26 + $0xa8] sm:$0xe]  ;;  %8506 = vst [vmem:[#allocation17_spill] sm:$0xff] %v7073_v28  ;;  %v7091_v44 = vrot.slane %v1192_v39, 1 }
  0xbe   : > { %5750 = vmatpush3.bf16.msra.mxu1 %v5998_v24  ;;  %v7051_v24 = vcombine.low %v4663_v7, %v7028_v18  ;;  %v1641_v7 = vrot.slane %v1639_v20, 1  ;;  %v7078_v18 = vcombine.low %v4665_v15, %v7042_v61  ;;  %v7088_v49 = vld [vmem:[%s6351_s26 + $0xc0] sm:$0xe]  ;;  %v1159_v15 = vsel %vm646_vm0, %v1154_v30, %v6990_v36  ;;  %v7103_v61 = vld [vmem:[%s6351_s26 + $0x74] ss:$0 sps:$4 sm:$0x11]  }
  0xbf   : > { %2850 = vmatmul.mubr.bf16.gmra.mrb[72].mxu0 %v1147_v54  ;;  %5751 = vmatprep.subr.bf16.mxu1 %v6006_v16  ;;  %v7057_v54 = vld [vmem:[%s6351_s26 + $0x84] sm:$0xe]  ;;  %8508 = vst [vmem:[#allocation19_spill] sm:$0xff] %v7088_v49  ;;  %v1656_v20 = vshll.u32 %v7054_v46, 16  ;;  %v6016_v39 = vld [vmem:[%s8455_s1 + $0x238] sm:$0xff]   ;;  %v8510_v36 = vshrl.u32 %v6505_v19, 16  ;;  %v1635_v19 = vsel %vm646_vm0, %v1630_v42, %v7013_v21 }
  0xc0   : > { %2857 = vmatprep.mubr.bf16.mxu0 %v1379_v2  ;;  %v7064_v2 = vld [vmem:[%s6351_s26 + $0x68] ss:$0 sps:$4 sm:$0x11]   ;;  %5704 = vmatpush3.bf16.msra.mxu0 %v5992_v14  ;;  %8507 = vst [vmem:[#allocation18_spill] sm:$0xff] %v7078_v18  ;;  %v6008_v14 = vld [vmem:[%s8455_s1 + $0x230] sm:$0xff]   ;;  %v1651_v22 = vshll.u32 %v7051_v24, 16 }
  0xc1   : > { %3011 = vmatmul.mubr.bf16.gmra.mrb[72].mxu1 %v6862_v62  ;;  %v1637_v62 = vshrl.u32 %v6993_v11, 16  ;;  %5705 = vmatprep.subr.bf16.mxu0 %v6000_v38  ;;  %v1166_v30 = vor.u32 %v6902_v47, %v8510_v36  ;;  %v1204_v46 = vshll.u32 %v7064_v2, 16  ;;  %v7119_v11 = vld [vmem:[%s6351_s26 + $0x7c] sm:$0xf]  ;;  %v1663_v47 = vshll.u32 %v7078_v18, 16 }
  0xc2   : > { %3018 = vmatprep.mubr.bf16.mxu1 %v1623_v6  ;;  %v7080_v6 = vrot.slane %v4803_v41, 1  ;;  %5752 = vmatpush3.bf16.msra.mxu1 %v6006_v16  ;;  %v6022_v16 = vld [vmem:[%s8458_s4 + $0x30] sm:$0xff]   ;;  %v8509_v41 = vrot.slane %v6945_v57, 1  ;;  %v4669_v42 = vld [vmem:[%s6351_s26 + $0x84] sm:$0xf]  ;;  %v6027_v21 = vld [vmem:[%s8458_s4 + $0x38] sm:$0xff]  }
  0xc3   : > { %5753 = vmatprep.subr.bf16.mxu1 %v6014_v52  ;;  %v7154_v36 = vld [vmem:[%s6351_s26 + $0x88] sm:$0xf]  ;;  %v1171_v58 = vsel %vm646_vm0, %v1166_v30, %v7005_v1  ;;  %v1642_v28 = vor.u32 %v1641_v7, %v1637_v62  ;;  %v8513_v57 = vshrl.u32 %v6584_v12, 16  ;;  %v8515_v1 = vrot.slane %v6972_v0, 1 }
  0xc4   : > { %v1382_v31 = vsel %vm903_vm1, %v6890_v8, %v8509_v41  ;;  %5706 = vmatpush3.bf16.msra.mxu0 %v6000_v38  ;;  %v7129_v41 = vld [vmem:[%s6351_s26 + $0x74] ss:$0 sps:$4 sm:$0x11]   ;;  %v7138_v8 = vld [vmem:[%s6351_s26 + $0x80] ss:$0 sps:$4 sm:$0x11]  }
  0xc5   : > { %5707 = vmatprep.subr.bf16.mxu0 %v6008_v14  ;;  %v8512_v38 = vshrl.u32 %v6544_v50, 16  ;;  %v7163_v50 = vld [vmem:[%s6351_s26 + $0x80] ss:$0 sps:$4 sm:$0x11]   ;;  %v1385_v12 = vsel %vm903_vm1, %v6904_v26, %v8515_v1  ;;  %v1216_v7 = vshll.u32 %v7129_v41, 16  ;;  %v1680_v26 = vshll.u32 %v7138_v8, 16 }
  0xc6   : > { %5754 = vmatpush3.bf16.msra.mxu1 %v6014_v52  ;;  %v8514_v52 = vshll.u32 %v6657_v5, 16  ;;  %v1228_v30 = vshll.u32 %v7163_v50, 16 }
  0xc7   : > { %2858 = vmatmul.mubr.bf16.gmra.mrb[76].mxu0 %v1159_v15  ;;  %5755 = vmatprep.subr.bf16.mxu1 %v6022_v16  ;;  %v1178_v29 = vor.u32 %v6934_v3, %v8512_v38  ;;  %v7151_v15 = vcombine.low %v4667_v45, %v7119_v11  ;;  %v1653_v3 = vrot.slane %v1651_v22, 1  ;;  %v1658_v45 = vrot.slane %v1656_v20, 1 }
  0xc8   : > { %2865 = vmatprep.mubr.bf16.mxu0 %v1382_v31  ;;  %v1668_v31 = vshll.u32 %v7103_v61, 16  ;;  %5708 = vmatpush3.bf16.msra.mxu0 %v6008_v14  ;;  %v1206_v38 = vrot.slane %v1204_v46, 1  ;;  %v1213_v49 = vrot.slane %v8514_v52, 1  ;;  %v7176_v14 = vcombine.low %v4669_v42, %v7154_v36  ;;  %v7179_v46 = vld [vmem:[%s6351_s26 + $0x8c] ss:$0 sps:$4 sm:$0x11]  }
  0xc9   : > { %3019 = vmatmul.mubr.bf16.gmra.mrb[76].mxu1 %v6898_v32  ;;  %v1190_v32 = vor.u32 %v6984_v13, %v8513_v57  ;;  %5709 = vmatprep.subr.bf16.mxu0 %v6016_v39  ;;  %v8516_v13 = vshrl.u32 %v6631_v48, 16  ;;  %v1661_v20 = vshrl.u32 %v7078_v18, 16  ;;  %v1675_v0 = vshll.u32 %v7151_v15, 16 }
  0xca   : > { %3026 = vmatprep.mubr.bf16.mxu1 %v1635_v19  ;;  %5756 = vmatpush3.bf16.msra.mxu1 %v6022_v16  ;;  %v1395_v16 = vrot.slane %v4804_v43, 1  ;;  %v1665_v48 = vrot.slane %v1663_v47, 1  ;;  %v1670_v22 = vrot.slane %v1668_v31, 1  ;;  %v1183_v57 = vsel %vm646_vm0, %v1178_v29, %v7048_v35  ;;  %v4671_v43 = vld [vmem:[%s6351_s26 + $0x90] sm:$0xf] }
  0xcb   : > { %v1202_v62 = vor.u32 %v7018_v9, %v8516_v13  ;;  %5757 = vmatprep.subr.bf16.mxu1 %v6027_v21  ;;  %v1221_v9 = vshrl.u32 %v6687_v37, 16  ;;  %v1647_v19 = vsel %vm646_vm0, %v1642_v28, %v7075_v56  ;;  %v1393_v42 = vrot.slane %v7129_v41, 1  ;;  %v7195_v47 = vld [vmem:[%s6351_s26 + $0x94] sm:$0xf] }
  0xcc   : > { %5710 = vmatpush3.bf16.msra.mxu0 %v6016_v39  ;;  %v8517_v52 = vshll.u32 %v6687_v37, 16  ;;  %v8518_v31 = vshrl.u32 %v7051_v24, 16  ;;  %v1218_v39 = vrot.slane %v1216_v7, 1  ;;  %v1687_v18 = vshll.u32 %v7176_v14, 16 }
  0xcd   : > { %v1692_v35 = vshll.u32 %v7179_v46, 16  ;;  %v7202_v29 = vld [vmem:[%s6351_s26 + $0x8c] ss:$0 sps:$4 sm:$0x11]   ;;  %v1673_v37 = vshrl.u32 %v7151_v15, 16  ;;  %v1677_v28 = vrot.slane %v1675_v0, 1  ;;  %v1666_v7 = vor.u32 %v1665_v48, %v1661_v20 }
  0xce   : > { %v1225_v1 = vrot.slane %v8517_v52, 1  ;;  %5758 = vmatpush3.bf16.msra.mxu1 %v6027_v21  ;;  %v1654_v13 = vor.u32 %v1653_v3, %v8518_v31  ;;  %v7206_v56 = vrot.slane %v1680_v26, 1  ;;  %v7209_v41 = vrot.slane %v1228_v30, 1 }
  0xcf   : > { %2866 = vmatmul.mubr.bf16.gmra.mrb[80].mxu0 %v1171_v58  ;;  %v1396_v58 = vrot.slane %v7163_v50, 1  ;;  %v8519_v21 = vcombine.low %v7057_v54, %v6699_v55  ;;  %v8520_v0 = vshrl.u32 %v6657_v5, 16  ;;  %v1685_v50 = vshrl.u32 %v7176_v14, 16 }
  0xd0   : > { %2873 = vmatprep.mubr.bf16.mxu0 %v1385_v12  ;;  %v7218_v12 = vcombine.low %v4671_v43, %v7195_v47  ;;  %v8521_v30 = vshll.u32 %v6707_v4, 16  ;;  %v1689_v55 = vrot.slane %v1687_v18, 1  ;;  %v7225_v54 = vrot.slane %v1692_v35, 1 }
  0xd1   : > { %3027 = vmatmul.mubr.bf16.gmra.mrb[80].mxu1 %v6954_v59  ;;  %v7214_v3 = vrot.slane %v8519_v21, 1  ;;  %v1233_v59 = vshrl.u32 %v6707_v4, 16  ;;  %v1214_v26 = vor.u32 %v1213_v49, %v8520_v0  ;;  %v1399_v52 = vrot.slane %v7202_v29, 1 }
  0xd2   : > { %3034 = vmatprep.mubr.bf16.mxu1 %v1647_v19  ;;  %v1237_v19 = vrot.slane %v8521_v30, 1  ;;  %v8522_v31 = vcombine.low %v7060_v17, %v6712_v10  ;;  %v8523_v20 = vrot.slane %v7003_v33, 1  ;;  %v1195_v4 = vsel %vm646_vm0, %v1190_v32, %v7091_v44  ;;  %v7249_v17 = vld [vmem:[%s6351_s26 + $0x98] ss:$0 sps:$4 sm:$0x11]  }
  0xd3   : > { %v8524_v18 = vrot.slane %v7064_v2, 1  ;;  %v7246_v10 = vsel %vm646_vm0, %v1202_v62, %v1206_v38  ;;  %v7252_v33 = vld [vmem:[%s6351_s26 + $0x98] ss:$0 sps:$4 sm:$0x11]   ;;  %v1659_v48 = vsel %vm646_vm0, %v1654_v13, %v1658_v45  ;;  %v1240_v2 = vshll.u32 %v7202_v29, 16 }
  0xd4   : > { %v7231_v43 = vrot.slane %v8522_v31, 1  ;;  %v1388_v5 = vsel %vm903_vm1, %v6940_v51, %v8523_v20  ;;  %v7257_v51 = vsel %vm903_vm1, %v7080_v6, %v1393_v42  ;;  %v4673_v44 = vld [vmem:[%s6351_s26 + $0x9c] sm:$0xf]  ;;  %v1671_v32 = vsel %vm646_vm0, %v1666_v7, %v1670_v22  ;;  %v7270_v13 = vld [vmem:[%s6351_s26 + $0xa0] sm:$0xf] }
  0xd5   : > { %v7243_v49 = vsel %vm903_vm1, %v6998_v25, %v8524_v18  ;;  %v1699_v25 = vshll.u32 %v7218_v12, 16  ;;  %v7264_v38 = vsel %vm646_vm0, %v1214_v26, %v1218_v39  ;;  %v7267_v62 = vsel %vm903_vm1, %v1395_v16, %v1396_v58  ;;  %v4703_v6 = vld [vmem:[%s6351_s26 + $0x48] sm:$0xe]  ;;  %v4704_v22 = vld [vmem:[%s6351_s26 + $0x54] sm:$0xe]  ;;  %v8529_v31 = vld [vmem:[#allocation14_spill] sm:$0xff] }
  0xd6   : > { %v1226_v45 = vor.u32 %v1225_v1, %v1221_v9  ;;  %v1678_v42 = vor.u32 %v1677_v28, %v1673_v37  ;;  %v1245_v35 = vshrl.u32 %v6723_v27, 16  ;;  %v4847_v21 = vcombine.low %v4703_v6, %v6930_v63  ;;  %v4705_v7 = vld [vmem:[%s6351_s26 + $0x60] sm:$0xe]  ;;  %v8525_v39 = vld [vmem:[#allocation12_spill] sm:$0xff]  ;;  %v8527_v58 = vld [vmem:[#allocation11_spill] sm:$0xff] }
  0xd7   : > { %2874 = vmatmul.mubr.bf16.gmra.mrb[84].mxu0 %v1183_v57  ;;  %v1845_v0 = vrot.slane %v6948_v34, 1  ;;  %v1697_v16 = vshrl.u32 %v7218_v12, 16  ;;  %v8526_v9 = vshll.u32 %v6723_v27, 16  ;;  %v4848_v26 = vcombine.low %v4704_v22, %v8527_v58  ;;  %v8528_v57 = vld [vmem:[#allocation13_spill] sm:$0xff]  ;;  %v4706_v28 = vld [vmem:[%s6351_s26 + $0x6c] sm:$0xe] }
  0xd8   : > { %2881 = vmatprep.mubr.bf16.mxu0 %v1388_v5  ;;  %v1848_v37 = vrot.slane %v8528_v57, 1  ;;  %v1704_v63 = vshll.u32 %v7249_v17, 16  ;;  %v1252_v34 = vshll.u32 %v7252_v33, 16  ;;  %v1844_v30 = vrot.slane %v4847_v21, 1  ;;  %v8530_v6 = vld [vmem:[#allocation16_spill] sm:$0xff] }
  0xd9   : > { %3035 = vmatmul.mubr.bf16.gmra.mrb[84].mxu1 %v8525_v39  ;;  %v1249_v1 = vrot.slane %v8526_v9, 1  ;;  %v4849_v20 = vcombine.low %v4705_v7, %v8529_v31  ;;  %v1701_v5 = vrot.slane %v1699_v25, 1  ;;  %v7289_v18 = vcombine.low %v4673_v44, %v7270_v13  ;;  %v8531_v9 = vld [vmem:[#allocation15_spill] sm:$0xff]  ;;  %v7298_v25 = vld [vmem:[%s6351_s26 + $0xa4] ss:$0 sps:$4 sm:$0x11]  }
  0xda   : > { %3042 = vmatprep.mubr.bf16.mxu1 %v1659_v48  ;;  %v1847_v27 = vrot.slane %v4848_v26, 1  ;;  %v1851_v22 = vrot.slane %v8530_v6, 1  ;;  %v7293_v39 = vsel %vm903_vm1, %v1844_v30, %v1845_v0  ;;  %v4850_v58 = vcombine.low %v4706_v28, %v8531_v9  ;;  %v7305_v30 = vld [vmem:[%s6351_s26 + $0xa4] ss:$0 sps:$4 sm:$0x11]  }
  0xdb   : > { %v1850_v48 = vrot.slane %v4849_v20, 1  ;;  %v1854_v57 = vrot.slane %v7103_v61, 1  ;;  %v1690_v21 = vor.u32 %v1689_v55, %v1685_v50  ;;  %v1238_v7 = vor.u32 %v1237_v19, %v1233_v59  ;;  %v7360_v20 = vld [vmem:[%s6351_s26 + $0xb0] ss:$0 sps:$4 sm:$0x11]  }
  0xdc   : > { %v1242_v31 = vrot.slane %v1240_v2, 1  ;;  %v7301_v44 = vsel %vm903_vm1, %v1847_v27, %v1848_v37  ;;  %v1706_v26 = vrot.slane %v1704_v63, 1  ;;  %v1402_v0 = vrot.slane %v7252_v33, 1  ;;  %v4675_v2 = vld [vmem:[%s6351_s26 + $0xa8] sm:$0xf] }
  0xdd   : > { %v7308_v28 = vsel %vm903_vm1, %v1850_v48, %v1851_v22  ;;  %v1853_v61 = vrot.slane %v4850_v58, 1  ;;  %v7312_v59 = vsel %vm646_vm0, %v1678_v42, %v7206_v56  ;;  %v7316_v50 = vsel %vm646_vm0, %v1226_v45, %v7209_v41  ;;  %v7321_v33 = vld [vmem:[%s6351_s26 + $0xac] sm:$0xf]  ;;  %v4677_v42 = vld [vmem:[%s6351_s26 + $0xb4] sm:$0xf] }
  0xde   : > { %8532 = vst [vmem:[#allocation12_spill] sm:$0xff] %v7308_v28  ;;  %v1254_v19 = vrot.slane %v1252_v34, 1  ;;  %v1711_v55 = vshll.u32 %v7289_v18, 16  ;;  %v7327_v37 = vsel %vm903_vm1, %v7214_v3, %v1399_v52  ;;  %v1702_v63 = vor.u32 %v1701_v5, %v1697_v16  ;;  %v7331_v41 = vld [vmem:[%s6351_s26 + $0xb8] sm:$0xf] }
  0xdf   : > { %2882 = vmatmul.mubr.bf16.gmra.mrb[88].mxu0 %v1195_v4  ;;  %v1250_v56 = vor.u32 %v1249_v1, %v1245_v35  ;;  %v7334_v45 = vsel %vm903_vm1, %v1853_v61, %v1854_v57  ;;  %v4707_v34 = vld [vmem:[%s6351_s26 + $0x78] sm:$0xe]  ;;  %v7341_v29 = vsel %vm646_vm0, %v1690_v21, %v7225_v54  ;;  %v1716_v3 = vshll.u32 %v7298_v25, 16  ;;  %v8535_v35 = vld [vmem:[#allocation2_spill] sm:$0xff] }
  0xe0   : > { %8533 = vst [vmem:[#allocation11_spill] sm:$0xff] %v7334_v45  ;;  %2889 = vmatprep.mubr.bf16.mxu0 %v7243_v49  ;;  %v8534_v52 = vcombine.low %v7067_v60, %v6731_v40  ;;  %v1257_v16 = vshrl.u32 %v8535_v35, 16  ;;  %v7349_v1 = vsel %vm646_vm0, %v1238_v7, %v1242_v31  ;;  %v1709_v54 = vshrl.u32 %v7289_v18, 16  ;;  %v4708_v40 = vld [vmem:[%s6351_s26 + $0x84] sm:$0xe] }
  0xe1   : > { %3043 = vmatmul.mubr.bf16.gmra.mrb[88].mxu1 %v7051_v24  ;;  %v7353_v24 = vsel %vm903_vm1, %v7231_v43, %v1402_v0  ;;  %v7357_v49 = vcombine.low %v4675_v2, %v7321_v33  ;;  %v1264_v60 = vshll.u32 %v7305_v30, 16  ;;  %v4851_v5 = vcombine.low %v4707_v34, %v7119_v11  ;;  %v7378_v58 = vld [vmem:[%s6351_s26 + $0xb0] ss:$0 sps:$4 sm:$0x11]  }
  0xe2   : > { %v1404_v4 = vrot.slane %v8534_v52, 1  ;;  %3050 = vmatprep.mubr.bf16.mxu1 %v1671_v32  ;;  %v7365_v32 = vcombine.low %v4677_v42, %v7331_v41  ;;  %v1857_v27 = vrot.slane %v7138_v8, 1  ;;  %v7370_v43 = vsel %vm646_vm0, %v1702_v63, %v1706_v26  ;;  %v7381_v21 = vld [vmem:[%s6351_s26 + $0xbc] ss:$0 sps:$4 sm:$0x11]   ;;  %v8539_v42 = vld [vmem:[#allocation3_spill] sm:$0xff] }
  0xe3   : > { %v7373_v6 = vsel %vm646_vm0, %v1250_v56, %v1254_v19  ;;  %v1713_v22 = vrot.slane %v1711_v55, 1  ;;  %v8536_v48 = vshll.u32 %v8535_v35, 16  ;;  %v1718_v57 = vrot.slane %v1716_v3, 1  ;;  %v7395_v63 = vld [vmem:[%s6351_s26 + $0xbc] ss:$0 sps:$4 sm:$0x11]  }
  0xe4   : > { %v1856_v7 = vrot.slane %v4851_v5, 1  ;;  %v4852_v11 = vcombine.low %v4708_v40, %v7154_v36  ;;  %v1860_v8 = vrot.slane %v7179_v46, 1  ;;  %v1405_v31 = vrot.slane %v7305_v30, 1  ;;  %v8540_v52 = vld [vmem:[#allocation18_spill] sm:$0xff] }
  0xe5   : > { %v1261_v9 = vrot.slane %v8536_v48, 1  ;;  %v1723_v26 = vshll.u32 %v7357_v49, 16  ;;  %v1728_v0 = vshll.u32 %v7360_v20, 16  ;;  %v8537_v61 = vcombine.low %v7070_v23, %v6753_v53  ;;  %v4679_v53 = vld [vmem:[%s6351_s26 + $0xc0] sm:$0xf] }
  0xe6   : > { %v1266_v55 = vrot.slane %v1264_v60, 1  ;;  %v1735_v2 = vshll.u32 %v7365_v32, 16  ;;  %v7398_v36 = vsel %vm903_vm1, %v1856_v7, %v1857_v27  ;;  %v1859_v46 = vrot.slane %v4852_v11, 1  ;;  %v7405_v23 = vld [vmem:[%s6351_s26 + $0xc4] sm:$0xf] }
  0xe7   : > { %v7391_v19 = vrot.slane %v8537_v61, 1  ;;  %8538 = vst [vmem:[#allocation13_spill] sm:$0xff] %v7398_v36  ;;  %2890 = vmatmul.mubr.bf16.gmra.mrb[92].mxu0 %v7246_v10  ;;  %v1714_v30 = vor.u32 %v1713_v22, %v1709_v54  ;;  %v1262_v56 = vor.u32 %v1261_v9, %v1257_v16  ;;  %v1269_v34 = vshrl.u32 %v8539_v42, 16  ;;  %v8543_v22 = vld [vmem:[#allocation5_spill] sm:$0xff]  ;;  %v8546_v61 = vld [vmem:[#allocation4_spill] sm:$0xff] }
  0xe8   : > { %v1276_v3 = vshll.u32 %v7378_v58, 16  ;;  %2897 = vmatprep.mubr.bf16.mxu0 %v7257_v51  ;;  %v1721_v35 = vshrl.u32 %v7357_v49, 16  ;;  %v8541_v40 = vshll.u32 %v8539_v42, 16  ;;  %v1740_v10 = vshll.u32 %v7381_v21, 16  ;;  %v4681_v36 = vld [vmem:[%s6351_s26 + $0xcc] sm:$0xf] }
  0xe9   : > { %3051 = vmatmul.mubr.bf16.gmra.mrb[92].mxu1 %v8540_v52  ;;  %v7414_v16 = vsel %vm903_vm1, %v1859_v46, %v1860_v8  ;;  %v1725_v54 = vrot.slane %v1723_v26, 1  ;;  %v1730_v5 = vrot.slane %v1728_v0, 1  ;;  %v1408_v27 = vrot.slane %v7378_v58, 1  ;;  %v8545_v0 = vld [vmem:[#allocation17_spill] sm:$0xff] }
  0xea   : > { %v1273_v60 = vrot.slane %v8541_v40, 1  ;;  %8542 = vst [vmem:[#allocation14_spill] sm:$0xff] %v7414_v16  ;;  %3058 = vmatprep.mubr.bf16.mxu1 %v7312_v59  ;;  %v1281_v51 = vshrl.u32 %v8543_v22, 16  ;;  %v1733_v48 = vshrl.u32 %v7365_v32, 16  ;;  %v1737_v9 = vrot.slane %v1735_v2, 1 }
  0xeb   : > { %v8544_v7 = vshll.u32 %v8543_v22, 16  ;;  %v7423_v8 = vcombine.low %v4679_v53, %v7405_v23  ;;  %v4709_v59 = vld [vmem:[%s6351_s26 + $0x90] sm:$0xe]  ;;  %v7427_v26 = vsel %vm903_vm1, %v1404_v4, %v1405_v31  ;;  %v1278_v58 = vrot.slane %v1276_v3, 1  ;;  %v4710_v4 = vld [vmem:[%s6351_s26 + $0x9c] sm:$0xe] }
  0xec   : > { %v8547_v46 = vcombine.low %v8545_v0, %v8546_v61  ;;  %v1288_v52 = vshll.u32 %v7395_v63, 16  ;;  %v7434_v2 = vld [vmem:[%s6351_s26 + $0xc8] ss:$0 sps:$4 sm:$0x11]   ;;  %v7437_v40 = vsel %vm646_vm0, %v1714_v30, %v1718_v57  ;;  %v7440_v53 = vsel %vm646_vm0, %v1262_v56, %v1266_v55  ;;  %v7447_v0 = vld [vmem:[%s6351_s26 + $0xd0] sm:$0xf] }
  0xed   : > { %v1285_v11 = vrot.slane %v8544_v7, 1  ;;  %v1274_v22 = vor.u32 %v1273_v60, %v1269_v34  ;;  %v1742_v7 = vrot.slane %v1740_v10, 1  ;;  %v6019_v16 = vld [vmem:[%s6351_s26 + $0xc8] ss:$0 sps:$4 sm:$0x11]   ;;  %v1726_v31 = vor.u32 %v1725_v54, %v1721_v35  ;;  %v8549_v56 = vld [vmem:[#allocation6_spill] sm:$0xff] }
  0xee   : > { %v1410_v42 = vrot.slane %v8547_v46, 1  ;;  %v1411_v3 = vrot.slane %v7395_v63, 1  ;;  %v4853_v61 = vcombine.low %v4709_v59, %v7195_v47  ;;  %v1863_v46 = vrot.slane %v7249_v17, 1  ;;  %v8548_v55 = vld [vmem:[#allocation19_spill] sm:$0xff] }
  0xef   : > { %v1738_v45 = vor.u32 %v1737_v9, %v1733_v48  ;;  %v1286_v57 = vor.u32 %v1285_v11, %v1281_v51  ;;  %v1747_v30 = vshll.u32 %v7423_v8, 16  ;;  %v8550_v34 = vcombine.low %v8548_v55, %v8549_v56  ;;  %2898 = vmatmul.mubr.bf16.gmra.mrb[96].mxu0 %v7264_v38  ;;  %v8551_v47 = vld [vmem:[#allocation7_spill] sm:$0xff]  ;;  %v7487_v59 = vld [vmem:[%s6351_s26 + $0xd4] ss:$0 sps:$4 sm:$0x11]  }
  0xf0   : > { %v1290_v35 = vrot.slane %v1288_v52, 1  ;;  %v1862_v63 = vrot.slane %v4853_v61, 1  ;;  %v4854_v10 = vcombine.low %v4710_v4, %v7270_v13  ;;  %v1866_v54 = vrot.slane %v7298_v25, 1  ;;  %2905 = vmatprep.mubr.bf16.mxu0 %v7267_v62  ;;  %v4700_v55 = vld [vmem:[%s6351_s26 + $0x24] sm:$0xe] }
  0xf1   : > { %v1413_v60 = vrot.slane %v8550_v34, 1  ;;  %3059 = vmatmul.mubr.bf16.gmra.mrb[96].mxu1 %v7151_v15  ;;  %v1293_v17 = vshrl.u32 %v8551_v47, 16  ;;  %v8552_v51 = vshll.u32 %v8551_v47, 16  ;;  %v1300_v9 = vshll.u32 %v6019_v16, 16  ;;  %v4965_v47 = vld [vmem:[%s7473_s18 + $0x10] sm:$0xf] }
  0xf2   : > { %v7464_v38 = vcombine.low %v4681_v36, %v7447_v0  ;;  %3066 = vmatprep.mubr.bf16.mxu1 %v7341_v29  ;;  %v1752_v13 = vshll.u32 %v7434_v2, 16  ;;  %v1414_v25 = vrot.slane %v6019_v16, 1  ;;  %v7476_v15 = vsel %vm903_vm1, %v1862_v63, %v1863_v46  ;;  %v7514_v56 = vld [vmem:[%s6351_s26 + $0x2c] ss:$0 sps:$4 sm:$0x11]  }
  0xf3   : > { %v1297_v48 = vrot.slane %v8552_v51, 1  ;;  %8553 = vst [vmem:[#allocation16_spill] sm:$0xff] %v7476_v15  ;;  %v1865_v62 = vrot.slane %v4854_v10, 1  ;;  %v7480_v36 = vsel %vm903_vm1, %v7391_v19, %v1408_v27  ;;  %v7483_v29 = vsel %vm646_vm0, %v1274_v22, %v1278_v58  ;;  %v4699_v27 = vld [vmem:[%s6351_s26 + $0x18] sm:$0xe] }
  0xf4   : > { %v1745_v16 = vshrl.u32 %v7423_v8, 16  ;;  %v1749_v11 = vrot.slane %v1747_v30, 1  ;;  %v7490_v52 = vsel %vm646_vm0, %v1726_v31, %v1730_v5  ;;  %v7493_v4 = vsel %vm646_vm0, %v1738_v45, %v1742_v7  ;;  %v4964_v31 = vld [vmem:[%s7473_s18 + $0xc] sm:$0xf]  ;;  %v4711_v45 = vld [vmem:[%s6351_s26 + $0xa8] sm:$0xe] }
  0xf5   : > { %v7496_v19 = vsel %vm903_vm1, %v1410_v42, %v1411_v3  ;;  %v7500_v58 = vsel %vm903_vm1, %v1865_v62, %v1866_v54  ;;  %v7503_v22 = vsel %vm646_vm0, %v1286_v57, %v1290_v35  ;;  %v1298_v61 = vor.u32 %v1297_v48, %v1293_v17  ;;  %v6169_v3 = vld [vmem:[%s6351_s26 + $0x20] ss:$0 sps:$4 sm:$0x11]   ;;  %v6171_v10 = vld [vmem:[%s6351_s26 + $0x1c] sm:$0xf] }
  0xf6   : > { %8554 = vst [vmem:[#allocation15_spill] sm:$0xff] %v7500_v58  ;;  %v1302_v46 = vrot.slane %v1300_v9, 1  ;;  %v1759_v5 = vshll.u32 %v7464_v38, 16  ;;  %v1754_v7 = vrot.slane %v1752_v13, 1  ;;  %v7509_v42 = vsel %vm903_vm1, %v1413_v60, %v1414_v25  ;;  %v4712_v17 = vld [vmem:[%s6351_s26 + $0xb4] sm:$0xe] }
  0xf7   : > { %v1833_v30 = vrot.slane %v6169_v3, 1  ;;  %v1836_v57 = vrot.slane %v7514_v56, 1  ;;  %v1750_v34 = vor.u32 %v1749_v11, %v1745_v16  ;;  %v1757_v35 = vshrl.u32 %v7464_v38, 16  ;;  %2906 = vmatmul.mubr.bf16.gmra.mrb[100].mxu0 %v7316_v50  ;;  %v4701_v60 = vld [vmem:[%s6351_s26 + $0x30] sm:$0xe] }
  0xf8   : > { %v1764_v63 = vshll.u32 %v7487_v59, 16  ;;  %v4843_v54 = vcombine.low %v4699_v27, %v6171_v10  ;;  %v3562_v51 = vshrl.u32 %v4964_v31, 16  ;;  %v3565_v48 = vshll.u32 %v4964_v31, 16  ;;  %2913 = vmatprep.mubr.bf16.mxu0 %v7327_v37  ;;  %v6172_v16 = vld [vmem:[%s6351_s26 + $0x28] sm:$0xf]  ;;  %v8555_v11 = vld [vmem:[#allocation8_spill] sm:$0xff] }
  0xf9   : > { %v4855_v9 = vcombine.low %v4711_v45, %v7321_v33  ;;  %v1869_v13 = vrot.slane %v7360_v20, 1  ;;  %3067 = vmatmul.mubr.bf16.gmra.mrb[100].mxu1 %v7176_v14  ;;  %v7529_v25 = vsel %vm646_vm0, %v1298_v61, %v1302_v46  ;;  %v1761_v62 = vrot.slane %v1759_v5, 1  ;;  %v4702_v31 = vld [vmem:[%s6351_s26 + $0x3c] sm:$0xe]  ;;  %v4967_v45 = vld [vmem:[%s7473_s18 + $0x18] sm:$0xf] }
  0xfa   : > { %v4844_v50 = vcombine.low %v4700_v55, %v6172_v16  ;;  %3074 = vmatprep.mubr.bf16.mxu1 %v7370_v43  ;;  %v3571_v33 = vshll.u32 %v4965_v47, 16  ;;  %v3575_v20 = vshrl.u32 %v4965_v47, 16  ;;  %v4856_v3 = vcombine.low %v4712_v17, %v7331_v41  ;;  %v6173_v61 = vld [vmem:[%s6351_s26 + $0x34] sm:$0xf]  ;;  %v4968_v27 = vld [vmem:[%s7473_s18 + $0x1c] sm:$0xf] }
  0xfb   : > { %v1868_v14 = vrot.slane %v4855_v9, 1  ;;  %v1766_v37 = vrot.slane %v1764_v63, 1  ;;  %v1832_v56 = vrot.slane %v4843_v54, 1  ;;  %v4845_v46 = vcombine.low %v4701_v60, %v6173_v61  ;;  %v4966_v10 = vld [vmem:[%s7473_s18 + $0x14] sm:$0x1]  ;;  %v8557_v9 = vld [vmem:[#allocation9_spill] sm:$0xff] }
  0xfc   : > { %v1872_v5 = vrot.slane %v7381_v21, 1  ;;  %v3564_v55 = vrot.slane %v3562_v51, 4  ;;  %v3567_v16 = vrot.slane %v3565_v48, 5  ;;  %v1871_v43 = vrot.slane %v4856_v3, 1  ;;  %v8559_v51 = vld [vmem:[#allocation10_spill] sm:$0xff] }
  0xfd   : > { %v7542_v58 = vsel %vm903_vm1, %v1868_v14, %v1869_v13  ;;  %v1762_v15 = vor.u32 %v1761_v62, %v1757_v35  ;;  %v1835_v47 = vrot.slane %v4844_v50, 1  ;;  %v4846_v28 = vcombine.low %v4702_v31, %v8557_v9  ;;  %v7576_v14 = vld [vmem:[%s8456_s2] ss:$0 sm:$0xff] }
  0xfe   : > { %8556 = vst [vmem:[#allocation2_spill] sm:$0xff] %v7542_v58  ;;  %v3586_v41 = vshrl.u32 %v4967_v45, 16  ;;  %v7545_v63 = vrot.slane %v3571_v33, 5  ;;  %v3577_v54 = vrot.slane %v3575_v20, 4  ;;  %v3589_v17 = vshll.u32 %v4967_v45, 16 }
  0xff   : > { %v7548_v21 = vsel %vm903_vm1, %v1871_v43, %v1872_v5  ;;  %v7551_v60 = vsel %vm646_vm0, %v1750_v34, %v1754_v7  ;;  %v3581_v35 = vshll.u32 %v4966_v10, 16  ;;  %v3595_v13 = vshll.u32 %v4968_v27, 16  ;;  %2914 = vmatmul.mubr.bf16.gmra.mrb[104].mxu0 %v7349_v1  ;;  %v7561_v33 = vld [vmem:[%s7473_s18 + $0x20] sm:$0x1]  ;;  %v4713_v45 = vld [vmem:[%s6351_s26 + $0xc0] sm:$0xe] }
 0x100   : > { %8558 = vst [vmem:[#allocation3_spill] sm:$0xff] %v7548_v21  ;;  %v7556_v62 = vsel %vm903_vm1, %v1832_v56, %v1833_v30  ;;  %v7558_v50 = vrot.slane %v4845_v46, 1  ;;  %v3568_v31 = vor.u32 %v3567_v16, %v3564_v55  ;;  %v3599_v20 = vshrl.u32 %v4968_v27, 16  ;;  %2921 = vmatprep.mubr.bf16.mxu0 %v7353_v24  ;;  %v4970_v34 = vld [vmem:[%s7473_s18 + $0x24] sm:$0xf] }
 0x101   : > { %3075 = vmatmul.mubr.bf16.gmra.mrb[104].mxu1 %v7218_v12  ;;  %v7567_v7 = vsel %vm646_vm0, %v1762_v15, %v1766_v37  ;;  %v7570_v1 = vsel %vm903_vm1, %v1835_v47, %v1836_v57  ;;  %v1841_v30 = vrot.slane %v4846_v28, 1  ;;  %v3578_v12 = vor.u32 %v3577_v54, %v7545_v63  ;;  %v4714_v27 = vld [vmem:[%s6351_s26 + $0xcc] sm:$0xe]  ;;  %v4971_v56 = vld [vmem:[%s7473_s18 + $0x28] sm:$0xf] }
 0x102   : > { %3082 = vmatprep.mubr.bf16.mxu1 %v7437_v40  ;;  %v3588_v24 = vrot.slane %v3586_v41, 4  ;;  %v3591_v15 = vrot.slane %v3589_v17, 5  ;;  %v5215_v3 = vpop.f32.mrb[0].mxu0  ;;  %v7581_v37 = vrot.slane %v3581_v35, 5  ;;  %v7583_v57 = vrot.slane %v3595_v13, 5 }
 0x103   : > { %v3605_v28 = vshll.u32 %v7561_v33, 16  ;;  %v4857_v61 = vcombine.low %v4713_v45, %v7405_v23  ;;  %v5216_v46 = vpop.f32.mrb[1].mxu0  ;;  %v7588_v5 = vrot.slane %v3568_v31, 4  ;;  %v3601_v40 = vrot.slane %v3599_v20, 4 }
 0x104   : > { %v5327_v10 = vpop.f32.mrb[0].mxu1  ;;  %v3610_v55 = vshrl.u32 %v4970_v34, 16  ;;  %v1875_v16 = vrot.slane %v7434_v2, 1  ;;  %v5217_v43 = vadd.f32 %v5216_v46, %v5215_v3  ;;  %v5218_v47 = vpop.f32.mrb[2].mxu0  ;;  %v3613_v41 = vshll.u32 %v4970_v34, 16 }
 0x105   : > { %v5328_v9 = vpop.f32.mrb[1].mxu1  ;;  %v1874_v54 = vrot.slane %v4857_v61, 1  ;;  %v4858_v17 = vcombine.low %v4714_v27, %v7447_v0  ;;  %v5219_v35 = vpop.f32.mrb[3].mxu0  ;;  %v3579_v23 = vrot.slane %v3578_v12, 4  ;;  %v3592_v45 = vor.u32 %v3591_v15, %v3588_v24  ;;  %v4973_v46 = vld [vmem:[%s7473_s18 + $0x30] sm:$0xf] }
 0x106   : > { %v5329_v13 = vadd.f32 %v5328_v9, %v5327_v10  ;;  %v5330_v33 = vpop.f32.mrb[2].mxu1  ;;  %v1878_v31 = vrot.slane %v7487_v59, 1  ;;  %v2514_v20 = vadd.f32 %v5217_v43, %v7576_v14  ;;  %v5220_v48 = vadd.f32 %v5219_v35, %v5218_v47 }
 0x107   : > { %v5331_v21 = vpop.f32.mrb[3].mxu1  ;;  %v3619_v2 = vshll.u32 %v4971_v56, 16  ;;  %v3623_v3 = vshrl.u32 %v4971_v56, 16  ;;  %2922 = vmatmul.mubr.bf16.gmra.mrb[108].mxu0 %v7373_v6  ;;  %v3602_v0 = vor.u32 %v3601_v40, %v7583_v57  ;;  %v7598_v34 = vsel %vm903_vm1, %v1874_v54, %v1875_v16 }
 0x108   : > { %v5332_v58 = vadd.f32 %v5331_v21, %v5330_v33  ;;  %v1877_v12 = vrot.slane %v4858_v17, 1  ;;  %v2517_v24 = vadd.f32 %v5220_v48, %v7576_v14  ;;  %v7601_v59 = vadd.f32 %v5329_v13, %v2514_v20  ;;  %2929 = vmatprep.mubr.bf16.mxu0 %v7427_v26 }
 0x109   : > { %3083 = vmatmul.mubr.bf16.gmra.mrb[108].mxu1 %v7289_v18  ;;  %v3612_v6 = vrot.slane %v3610_v55, 4  ;;  %v3615_v15 = vrot.slane %v3613_v41, 5  ;;  %v8562_v27 = vrot.slane %v8555_v11, 1  ;;  %v4972_v18 = vld [vmem:[%s7473_s18 + $0x2c] sm:$0x1]  ;;  %v3634_v56 = vshrl.u32 %v4973_v46, 16 }
 0x10a   : > { %3090 = vmatprep.mubr.bf16.mxu1 %v7490_v52  ;;  %v3637_v61 = vshll.u32 %v4973_v46, 16  ;;  %v7620_v26 = vsel %vm903_vm1, %v1877_v12, %v1878_v31  ;;  %v7622_v10 = vadd.f32 %v5332_v58, %v2517_v24  ;;  %v5221_v40 = vpop.f32.mrb[4].mxu0  ;;  %v8563_v55 = vrot.slane %v8559_v51, 1  ;;  %v4976_v31 = vld [vmem:[%s7473_s18 + $0x3c] sm:$0xf] }
 0x10b   : > { %v7616_v48 = vsel %vm903_vm1, %v7558_v50, %v8562_v27  ;;  %v7629_v52 = vrot.slane %v3619_v2, 5  ;;  %v3625_v11 = vrot.slane %v3623_v3, 4  ;;  %v4974_v50 = vld [vmem:[%s7473_s18 + $0x34] sm:$0xf]  ;;  %v5222_v43 = vpop.f32.mrb[5].mxu0  ;;  %v3574_v9 = vsel %vm7607_vm4, %v7588_v5, %v7545_v63 }
 0x10c   : > { %v7627_v16 = vsel %vm903_vm1, %v1841_v30, %v8563_v55  ;;  %v5333_v47 = vpop.f32.mrb[4].mxu1  ;;  %v3584_v58 = vsel %vm7607_vm4, %v3579_v23, %v7581_v37  ;;  %v3593_v51 = vrot.slane %v3592_v45, 4  ;;  %v3607_v41 = vrot.slane %v3605_v28, 5  ;;  %v5224_v54 = vpop.f32.mrb[6].mxu0 }
 0x10d   : > { %v5223_v30 = vadd.f32 %v5222_v43, %v5221_v40  ;;  %v5334_v17 = vpop.f32.mrb[5].mxu1  ;;  %v3603_v35 = vrot.slane %v3602_v0, 4  ;;  %v3616_v13 = vor.u32 %v3615_v15, %v3612_v6  ;;  %v3629_v33 = vshll.u32 %v4972_v18, 16  ;;  %v5225_v20 = vpop.f32.mrb[7].mxu0 }
 0x10e   : > { %v5335_v2 = vadd.f32 %v5334_v17, %v5333_v47  ;;  %v5336_v3 = vpop.f32.mrb[6].mxu1  ;;  %v3636_v46 = vrot.slane %v3634_v56, 4  ;;  %v3639_v12 = vrot.slane %v3637_v61, 5  ;;  %v3643_v24 = vshll.u32 %v4974_v50, 16  ;;  %v4977_v61 = vld [vmem:[%s7473_s18 + $0x40] sm:$0xf] }
 0x10f   : > { %v2522_v63 = vadd.f32 %v5223_v30, %v7576_v14  ;;  %v5226_v5 = vadd.f32 %v5225_v20, %v5224_v54  ;;  %v5337_v37 = vpop.f32.mrb[7].mxu1  ;;  %v3626_v28 = vor.u32 %v3625_v11, %v7629_v52  ;;  %v3647_v23 = vshrl.u32 %v4974_v50, 16  ;;  %2930 = vmatmul.mubr.bf16.gmra.mrb[112].mxu0 %v7440_v53  ;;  %v4979_v50 = vld [vmem:[%s7473_s18 + $0x48] sm:$0xf] }
 0x110   : > { %v5338_v45 = vadd.f32 %v5337_v37, %v5336_v3  ;;  %v7643_v0 = vcombine.low %v3574_v9, %v3584_v58  ;;  %v3658_v6 = vshrl.u32 %v4976_v31, 16  ;;  %v3661_v15 = vshll.u32 %v4976_v31, 16  ;;  %2937 = vmatprep.mubr.bf16.mxu0 %v7480_v36  ;;  %v4975_v9 = vld [vmem:[%s7473_s18 + $0x38] sm:$0x1] }
 0x111   : > { %v2525_v27 = vadd.f32 %v5226_v5, %v7576_v14  ;;  %v7646_v18 = vadd.f32 %v5335_v2, %v2522_v63  ;;  %3091 = vmatmul.mubr.bf16.gmra.mrb[112].mxu1 %v7357_v49  ;;  %v3598_v56 = vsel %vm7607_vm4, %v3593_v51, %v7583_v57  ;;  %v3608_v53 = vsel %vm7607_vm4, %v3603_v35, %v3607_v41 }
 0x112   : > { %3098 = vmatprep.mubr.bf16.mxu1 %v7493_v4  ;;  %v3617_v40 = vrot.slane %v3616_v13, 4  ;;  %v3631_v55 = vrot.slane %v3629_v33, 5  ;;  %v3640_v11 = vor.u32 %v3639_v12, %v3636_v46  ;;  %v5227_v47 = vpop.f32.mrb[8].mxu0  ;;  %v3627_v49 = vrot.slane %v3626_v28, 4 }
 0x113   : > { %v7658_v43 = vadd.f32 %v5338_v45, %v2525_v27  ;;  %v7661_v36 = vrot.slane %v3643_v24, 5  ;;  %v3649_v58 = vrot.slane %v3647_v23, 4  ;;  %v5228_v30 = vpop.f32.mrb[9].mxu0  ;;  %v3660_v51 = vrot.slane %v3658_v6, 4  ;;  %v4980_v6 = vld [vmem:[%s7473_s18 + $0x4c] sm:$0xf] }
 0x114   : > { %v5339_v57 = vpop.f32.mrb[8].mxu1  ;;  %v3663_v54 = vrot.slane %v3661_v15, 5  ;;  %v3667_v4 = vshll.u32 %v4977_v61, 16  ;;  %v3671_v17 = vshrl.u32 %v4977_v61, 16  ;;  %v5229_v31 = vadd.f32 %v5228_v30, %v5227_v47  ;;  %v5230_v41 = vpop.f32.mrb[10].mxu0 }
 0x115   : > { %v5340_v35 = vpop.f32.mrb[9].mxu1  ;;  %v7663_v13 = vcombine.low %v3598_v56, %v3608_v53  ;;  %v3682_v33 = vshrl.u32 %v4979_v50, 16  ;;  %v3685_v20 = vshll.u32 %v4979_v50, 16  ;;  %v5231_v2 = vpop.f32.mrb[11].mxu0  ;;  %v3622_v12 = vsel %vm7607_vm4, %v3617_v40, %v7629_v52  ;;  %v4982_v15 = vld [vmem:[%s7473_s18 + $0x54] sm:$0xf] }
 0x116   : > { %v5341_v3 = vadd.f32 %v5340_v35, %v5339_v57  ;;  %v5342_v46 = vpop.f32.mrb[10].mxu1  ;;  %v7668_v24 = vrot.slane %v3640_v11, 4  ;;  %v3653_v63 = vshll.u32 %v4975_v9, 16  ;;  %v2530_v5 = vadd.f32 %v5229_v31, %v7576_v14  ;;  %v4983_v47 = vld [vmem:[%s7473_s18 + $0x58] sm:$0xf] }
 0x117   : > { %v5232_v37 = vadd.f32 %v5231_v2, %v5230_v41  ;;  %v5343_v28 = vpop.f32.mrb[11].mxu1  ;;  %v3632_v23 = vsel %vm7607_vm4, %v3627_v49, %v3631_v55  ;;  %v3650_v45 = vor.u32 %v3649_v58, %v7661_v36  ;;  %2938 = vmatmul.mubr.bf16.gmra.mrb[116].mxu0 %v7483_v29  ;;  %v3664_v52 = vor.u32 %v3663_v54, %v3660_v51  ;;  %v4978_v55 = vld [vmem:[%s7473_s18 + $0x44] sm:$0x1]  ;;  %v4985_v54 = vld [vmem:[%s7473_s18 + $0x60] sm:$0xf] }
 0x118   : > { %v5344_v27 = vadd.f32 %v5343_v28, %v5342_v46  ;;  %v7677_v56 = vrot.slane %v3667_v4, 5  ;;  %v3673_v61 = vrot.slane %v3671_v17, 4  ;;  %v7680_v40 = vadd.f32 %v5341_v3, %v2530_v5  ;;  %2945 = vmatprep.mubr.bf16.mxu0 %v7496_v19 }
 0x119   : > { %v2533_v53 = vadd.f32 %v5232_v37, %v7576_v14  ;;  %3099 = vmatmul.mubr.bf16.gmra.mrb[116].mxu1 %v7365_v32  ;;  %v3684_v11 = vrot.slane %v3682_v33, 4  ;;  %v3687_v50 = vrot.slane %v3685_v20, 5  ;;  %v7687_v29 = vrot.slane %v3653_v63, 5  ;;  %v4986_v63 = vld [vmem:[%s7473_s18 + $0x64] sm:$0xf] }
 0x11a   : > { %3106 = vmatprep.mubr.bf16.mxu1 %v7551_v60  ;;  %v3691_v49 = vshll.u32 %v4980_v6, 16  ;;  %v3695_v9 = vshrl.u32 %v4980_v6, 16  ;;  %v3706_v58 = vshrl.u32 %v4982_v15, 16  ;;  %v5233_v57 = vpop.f32.mrb[12].mxu0  ;;  %v7691_v51 = vcombine.low %v3622_v12, %v3632_v23 }
 0x11b   : > { %v7689_v30 = vadd.f32 %v5344_v27, %v2533_v53  ;;  %v3709_v19 = vshll.u32 %v4982_v15, 16  ;;  %v5234_v4 = vpop.f32.mrb[13].mxu0  ;;  %v7698_v17 = vrot.slane %v3650_v45, 4  ;;  %v3677_v31 = vshll.u32 %v4978_v55, 16  ;;  %v4981_v55 = vld [vmem:[%s7473_s18 + $0x50] sm:$0x1] }
 0x11c   : > { %v5345_v60 = vpop.f32.mrb[12].mxu1  ;;  %v3715_v41 = vshll.u32 %v4983_v47, 16  ;;  %v3719_v35 = vshrl.u32 %v4983_v47, 16  ;;  %v5235_v33 = vadd.f32 %v5234_v4, %v5233_v57  ;;  %v5236_v20 = vpop.f32.mrb[14].mxu0  ;;  %v7700_v3 = vrot.slane %v3664_v52, 4 }
 0x11d   : > { %v5346_v2 = vpop.f32.mrb[13].mxu1  ;;  %v3674_v46 = vor.u32 %v3673_v61, %v7677_v56  ;;  %v3688_v12 = vor.u32 %v3687_v50, %v3684_v11  ;;  %v5237_v5 = vpop.f32.mrb[15].mxu0  ;;  %v7704_v23 = vrot.slane %v3691_v49, 5  ;;  %v3697_v45 = vrot.slane %v3695_v9, 4  ;;  %v4984_v9 = vld [vmem:[%s7473_s18 + $0x5c] sm:$0x1] }
 0x11e   : > { %v5347_v37 = vadd.f32 %v5346_v2, %v5345_v60  ;;  %v5348_v28 = vpop.f32.mrb[14].mxu1  ;;  %v3708_v6 = vrot.slane %v3706_v58, 4  ;;  %v2538_v15 = vadd.f32 %v5235_v33, %v7576_v14  ;;  %v5238_v27 = vadd.f32 %v5237_v5, %v5236_v20 }
 0x11f   : > { %v5349_v53 = vpop.f32.mrb[15].mxu1  ;;  %v3711_v47 = vrot.slane %v3709_v19, 5  ;;  %v3730_v52 = vshrl.u32 %v4985_v54, 16  ;;  %2946 = vmatmul.mubr.bf16.gmra.mrb[120].mxu0 %v7503_v22  ;;  %v7709_v61 = vrot.slane %v3715_v41, 5  ;;  %v3721_v11 = vrot.slane %v3719_v35, 4 }
 0x120   : > { %v5350_v57 = vadd.f32 %v5349_v53, %v5348_v28  ;;  %v3733_v50 = vshll.u32 %v4985_v54, 16  ;;  %v2541_v49 = vadd.f32 %v5238_v27, %v7576_v14  ;;  %v7712_v4 = vadd.f32 %v5347_v37, %v2538_v15  ;;  %2953 = vmatprep.mubr.bf16.mxu0 %v7509_v42 }
 0x121   : > { %3107 = vmatmul.mubr.bf16.gmra.mrb[120].mxu1 %v7423_v8  ;;  %v3739_v58 = vshll.u32 %v4986_v63, 16  ;;  %v3743_v60 = vshrl.u32 %v4986_v63, 16  ;;  %v7718_v19 = vrot.slane %v3674_v46, 4  ;;  %v7720_v22 = vrot.slane %v3677_v31, 5  ;;  %v4992_v31 = vld [vmem:[%s7473_s18 + $0x7c] sm:$0xf] }
 0x122   : > { %3114 = vmatprep.mubr.bf16.mxu1 %v7567_v7  ;;  %v3698_v41 = vor.u32 %v3697_v45, %v7704_v23  ;;  %v3701_v54 = vshll.u32 %v4981_v55, 16  ;;  %v7723_v35 = vadd.f32 %v5350_v57, %v2541_v49  ;;  %v5239_v33 = vpop.f32.mrb[16].mxu0  ;;  %v7729_v42 = vrot.slane %v3688_v12, 4  ;;  %v4987_v12 = vld [vmem:[%s7473_s18 + $0x68] sm:$0x1] }
 0x123   : > { %v3712_v20 = vor.u32 %v3711_v47, %v3708_v6  ;;  %v5240_v7 = vpop.f32.mrb[17].mxu0  ;;  %v3725_v46 = vshll.u32 %v4984_v9, 16  ;;  %v3732_v63 = vrot.slane %v3730_v52, 4  ;;  %v3735_v5 = vrot.slane %v3733_v50, 5 }
 0x124   : > { %v5351_v2 = vpop.f32.mrb[16].mxu1  ;;  %v5241_v37 = vadd.f32 %v5240_v7, %v5239_v33  ;;  %v5242_v28 = vpop.f32.mrb[18].mxu0  ;;  %v3722_v15 = vor.u32 %v3721_v11, %v7709_v61  ;;  %v7737_v27 = vrot.slane %v3739_v58, 5  ;;  %v3745_v6 = vrot.slane %v3743_v60, 4  ;;  %v4988_v33 = vld [vmem:[%s7473_s18 + $0x6c] sm:$0xf] }
 0x125   : > { %v5352_v45 = vpop.f32.mrb[17].mxu1  ;;  %v5243_v53 = vpop.f32.mrb[19].mxu0  ;;  %v7743_v57 = vrot.slane %v3698_v41, 4  ;;  %v7745_v50 = vrot.slane %v3701_v54, 5  ;;  %v7752_v60 = vrot.slane %v3712_v20, 4  ;;  %v7757_v41 = vrot.slane %v3725_v46, 5 }
 0x126   : > { %v5353_v55 = vadd.f32 %v5352_v45, %v5351_v2  ;;  %v5354_v47 = vpop.f32.mrb[18].mxu1  ;;  %v2546_v11 = vadd.f32 %v5241_v37, %v7576_v14  ;;  %v5244_v49 = vadd.f32 %v5243_v53, %v5242_v28  ;;  %v4989_v7 = vld [vmem:[%s7473_s18 + $0x70] sm:$0xf]  ;;  %v3736_v54 = vor.u32 %v3735_v5, %v3732_v63  ;;  %v4991_v37 = vld [vmem:[%s7473_s18 + $0x78] sm:$0xf] }
 0x127   : > { %v5355_v9 = vpop.f32.mrb[19].mxu1  ;;  %2954 = vmatmul.mubr.bf16.gmra.mrb[124].mxu0 %v7529_v25  ;;  %v3749_v45 = vshll.u32 %v4987_v12, 16  ;;  %v3723_v20 = vrot.slane %v3722_v15, 4  ;;  %v3746_v58 = vor.u32 %v3745_v6, %v7737_v27  ;;  %v3704_v25 = vsel %vm7607_vm4, %v7743_v57, %v7745_v50 }
 0x128   : > { %v5356_v2 = vadd.f32 %v5355_v9, %v5354_v47  ;;  %v2549_v28 = vadd.f32 %v5244_v49, %v7576_v14  ;;  %v7761_v53 = vadd.f32 %v5353_v55, %v2546_v11  ;;  %5711 = vmatprep.mubr.bf16.mxu0 %v7556_v62  ;;  %v3754_v46 = vshrl.u32 %v4988_v33, 16 }
 0x129   : > { %3115 = vmatmul.mubr.bf16.gmra.mrb[124].mxu1 %v7464_v38  ;;  %v3757_v63 = vshll.u32 %v4988_v33, 16  ;;  %v3763_v5 = vshll.u32 %v4989_v7, 16  ;;  %v3718_v38 = vsel %vm7607_vm4, %v7752_v60, %v7709_v61  ;;  %v3767_v62 = vshrl.u32 %v4989_v7, 16  ;;  %v4994_v60 = vld [vmem:[%s7473_s18 + $0x84] sm:$0xf] }
 0x12a   : > { %8564 = vst [vmem:[#allocation18_spill] sm:$0xff] %v7761_v53  ;;  %5759 = vmatprep.mubr.bf16.mxu1 %v7643_v0  ;;  %v7772_v12 = vadd.f32 %v5356_v2, %v2549_v28  ;;  %v5245_v55 = vpop.f32.mrb[20].mxu0  ;;  %v3778_v15 = vshrl.u32 %v4991_v37, 16  ;;  %v7778_v47 = vrot.slane %v3749_v45, 5  ;;  %v3781_v11 = vshll.u32 %v4991_v37, 16 }
 0x12b   : > { %v5246_v0 = vpop.f32.mrb[21].mxu0  ;;  %v3787_v57 = vshll.u32 %v4992_v31, 16  ;;  %v3791_v50 = vshrl.u32 %v4992_v31, 16  ;;  %v3728_v2 = vsel %vm7607_vm4, %v3723_v20, %v7757_v41  ;;  %v7783_v28 = vrot.slane %v3736_v54, 4 }
 0x12c   : > { %8565 = vst [vmem:[#allocation5_spill] sm:$0xff] %v7772_v12  ;;  %v5357_v6 = vpop.f32.mrb[20].mxu1  ;;  %v5247_v49 = vadd.f32 %v5246_v0, %v5245_v55  ;;  %v5248_v9 = vpop.f32.mrb[22].mxu0  ;;  %v7785_v61 = vrot.slane %v3746_v58, 4  ;;  %v3756_v32 = vrot.slane %v3754_v46, 4  ;;  %v3759_v37 = vrot.slane %v3757_v63, 5 }
 0x12d   : > { %v5358_v33 = vpop.f32.mrb[21].mxu1  ;;  %v5249_v7 = vpop.f32.mrb[23].mxu0  ;;  %v7788_v8 = vrot.slane %v3763_v5, 5  ;;  %v3769_v12 = vrot.slane %v3767_v62, 4  ;;  %v3780_v41 = vrot.slane %v3778_v15, 4  ;;  %v3783_v20 = vrot.slane %v3781_v11, 5 }
 0x12e   : > { %v5359_v52 = vadd.f32 %v5358_v33, %v5357_v6  ;;  %v5360_v45 = vpop.f32.mrb[22].mxu1  ;;  %v2554_v31 = vadd.f32 %v5247_v49, %v7576_v14  ;;  %v5250_v55 = vadd.f32 %v5249_v7, %v5248_v9  ;;  %v4990_v58 = vld [vmem:[%s7473_s18 + $0x74] sm:$0x1]  ;;  %v7793_v53 = vrot.slane %v3787_v57, 5  ;;  %v4993_v5 = vld [vmem:[%s7473_s18 + $0x80] sm:$0x1] }
 0x12f   : > { %v5361_v0 = vpop.f32.mrb[23].mxu1  ;;  %5712 = vmatmul.mubr.bf16.vlgmr.msra.gmra.mrb[128].mxu0 %v7570_v1  ;;  %v3793_v6 = vrot.slane %v3791_v50, 4  ;;  %v3802_v62 = vshrl.u32 %v4994_v60, 16  ;;  %v3805_v15 = vshll.u32 %v4994_v60, 16  ;;  %v8566_v1 = vsel %vm7607_vm4, %v7698_v17, %v7687_v29  ;;  %v4995_v49 = vld [vmem:[%s7473_s18 + $0x88] sm:$0xf] }
 0x130   : > { %v5362_v54 = vadd.f32 %v5361_v0, %v5360_v45  ;;  %v2557_v46 = vadd.f32 %v5250_v55, %v7576_v14  ;;  %v7796_v63 = vadd.f32 %v5359_v52, %v2554_v31  ;;  %5715 = vmatprep.mubr.bf16.mxu0 %v7616_v48  ;;  %v8567_v52 = vsel %vm7607_vm4, %v7668_v24, %v7661_v36 }
 0x131   : > { %5760 = vmatmul.mubr.bf16.vlgmr.msra.gmra.mrb[128].mxu1 %v7663_v13  ;;  %v5015_v11 = vcombine.low %v8567_v52, %v8566_v1  ;;  %v8568_v48 = vsel %vm7607_vm4, %v7718_v19, %v7720_v22  ;;  %v8569_v13 = vsel %vm7607_vm4, %v7700_v3, %v7677_v56  ;;  %v8570_v29 = vsel %vm7607_vm4, %v7729_v42, %v7704_v23  ;;  %v4998_v52 = vld [vmem:[%s7473_s18 + $0x94] sm:$0xf] }
 0x132   : > { %5763 = vmatprep.mubr.bf16.mxu1 %v7691_v51  ;;  %v5016_v51 = vcombine.low %v8569_v13, %v8568_v48  ;;  %v7827_v17 = vcombine.low %v8570_v29, %v3704_v25  ;;  %v3760_v36 = vor.u32 %v3759_v37, %v3756_v32  ;;  %v7829_v24 = vadd.f32 %v5362_v54, %v2557_v46  ;;  %v5251_v57 = vpop.f32.mrb[24].mxu0  ;;  %v4997_v46 = vld [vmem:[%s7473_s18 + $0x90] sm:$0xf]  ;;  %v4996_v29 = vld [vmem:[%s7473_s18 + $0x8c] sm:$0x1] }
 0x133   : > { %v7831_v50 = vcombine.low %v3718_v38, %v3728_v2  ;;  %v3770_v19 = vor.u32 %v3769_v12, %v7788_v8  ;;  %v3773_v22 = vshll.u32 %v4990_v58, 16  ;;  %v5252_v9 = vpop.f32.mrb[25].mxu0  ;;  %v3742_v3 = vsel %vm7607_vm4, %v7783_v28, %v7737_v27 }
 0x134   : > { %v5363_v56 = vpop.f32.mrb[24].mxu1  ;;  %v3784_v23 = vor.u32 %v3783_v20, %v3780_v41  ;;  %v3794_v42 = vor.u32 %v3793_v6, %v7793_v53  ;;  %v3797_v32 = vshll.u32 %v4993_v5, 16  ;;  %v5253_v25 = vadd.f32 %v5252_v9, %v5251_v57  ;;  %v5254_v33 = vpop.f32.mrb[26].mxu0 }
 0x135   : > { %v5364_v38 = vpop.f32.mrb[25].mxu1  ;;  %v3752_v12 = vsel %vm7607_vm4, %v7785_v61, %v7778_v47  ;;  %v3804_v2 = vrot.slane %v3802_v62, 4  ;;  %v3807_v60 = vrot.slane %v3805_v15, 5  ;;  %v5255_v7 = vpop.f32.mrb[27].mxu0  ;;  %v7844_v31 = vrot.slane %v3760_v36, 4 }
 0x136   : > { %v5365_v45 = vadd.f32 %v5364_v38, %v5363_v56  ;;  %v5366_v37 = vpop.f32.mrb[26].mxu1  ;;  %v3811_v55 = vshll.u32 %v4995_v49, 16  ;;  %v3815_v0 = vshrl.u32 %v4995_v49, 16  ;;  %v2562_v41 = vadd.f32 %v5253_v25, %v7576_v14  ;;  %v5000_v49 = vld [vmem:[%s7473_s18 + $0x9c] sm:$0xf] }
 0x137   : > { %v5256_v54 = vadd.f32 %v5255_v7, %v5254_v33  ;;  %v5367_v58 = vpop.f32.mrb[27].mxu1  ;;  %v7847_v20 = vrot.slane %v3770_v19, 4  ;;  %v7849_v6 = vrot.slane %v3773_v22, 5  ;;  %5716 = vmatmul.mubr.bf16.gmra.mrb[132].mxu0 %v7627_v16  ;;  %v7853_v62 = vrot.slane %v3784_v23, 4  ;;  %v5002_v47 = vld [vmem:[%s7473_s18 + $0xa4] sm:$0x1] }
 0x138   : > { %v5368_v5 = vadd.f32 %v5367_v58, %v5366_v37  ;;  %v7855_v15 = vrot.slane %v3794_v42, 4  ;;  %v7857_v1 = vrot.slane %v3797_v32, 5  ;;  %v7861_v13 = vadd.f32 %v5365_v45, %v2562_v41  ;;  %5719 = vmatprep.mubr.bf16.mxu0 %v7293_v39 }
 0x139   : > { %v2565_v48 = vadd.f32 %v5256_v54, %v7576_v14  ;;  %5764 = vmatmul.mubr.bf16.gmra.mrb[132].mxu1 %v5015_v11  ;;  %v3808_v36 = vor.u32 %v3807_v60, %v3804_v2  ;;  %v3766_v16 = vsel %vm7607_vm4, %v7844_v31, %v7788_v8  ;;  %v7869_v57 = vrot.slane %v3811_v55, 5  ;;  %v4999_v11 = vld [vmem:[%s7473_s18 + $0x98] sm:$0x1]  ;;  %v5001_v2 = vld [vmem:[%s7473_s18 + $0xa0] sm:$0xf] }
 0x13a   : > { %5767 = vmatprep.mubr.bf16.mxu1 %v5016_v51  ;;  %v3817_v19 = vrot.slane %v3815_v0, 4  ;;  %v3826_v22 = vshrl.u32 %v4997_v46, 16  ;;  %v5257_v56 = vpop.f32.mrb[28].mxu0  ;;  %v3776_v39 = vsel %vm7607_vm4, %v7847_v20, %v7849_v6  ;;  %v3829_v51 = vshll.u32 %v4997_v46, 16 }
 0x13b   : > { %v7872_v9 = vadd.f32 %v5368_v5, %v2565_v48  ;;  %v3835_v23 = vshll.u32 %v4998_v52, 16  ;;  %v5258_v42 = vpop.f32.mrb[29].mxu0  ;;  %v3790_v8 = vsel %vm7607_vm4, %v7853_v62, %v7793_v53  ;;  %v3800_v25 = vsel %vm7607_vm4, %v7855_v15, %v7857_v1 }
 0x13c   : > { %v5369_v32 = vpop.f32.mrb[28].mxu1  ;;  %v3821_v33 = vshll.u32 %v4996_v29, 16  ;;  %v3839_v38 = vshrl.u32 %v4998_v52, 16  ;;  %v5259_v60 = vadd.f32 %v5258_v42, %v5257_v56  ;;  %v5260_v7 = vpop.f32.mrb[30].mxu0  ;;  %v7888_v37 = vrot.slane %v3808_v36, 4 }
 0x13d   : > { %v5370_v45 = vpop.f32.mrb[29].mxu1  ;;  %v3850_v31 = vshrl.u32 %v5000_v49, 16  ;;  %v3853_v55 = vshll.u32 %v5000_v49, 16  ;;  %v5261_v0 = vpop.f32.mrb[31].mxu0  ;;  %v3818_v53 = vor.u32 %v3817_v19, %v7869_v57  ;;  %v3828_v58 = vrot.slane %v3826_v22, 4  ;;  %v8571_v19 = vld [vmem:[#allocation12_spill] sm:$0xff] }
 0x13e   : > { %v5371_v41 = vadd.f32 %v5370_v45, %v5369_v32  ;;  %v5372_v54 = vpop.f32.mrb[30].mxu1  ;;  %v3845_v20 = vshll.u32 %v4999_v11, 16  ;;  %v2570_v6 = vadd.f32 %v5259_v60, %v7576_v14  ;;  %v5262_v46 = vadd.f32 %v5261_v0, %v5260_v7 }
 0x13f   : > { %v5373_v5 = vpop.f32.mrb[31].mxu1  ;;  %v3831_v62 = vrot.slane %v3829_v51, 5  ;;  %v7892_v15 = vrot.slane %v3835_v23, 5  ;;  %5720 = vmatmul.mubr.bf16.gmra.mrb[136].mxu0 %v7301_v44  ;;  %v3841_v52 = vrot.slane %v3839_v38, 4  ;;  %v3859_v48 = vshll.u32 %v5001_v2, 16 }
 0x140   : > { %v5374_v1 = vadd.f32 %v5373_v5, %v5372_v54  ;;  %v3863_v29 = vshrl.u32 %v5001_v2, 16  ;;  %v2573_v36 = vadd.f32 %v5262_v46, %v7576_v14  ;;  %v7896_v49 = vadd.f32 %v5371_v41, %v2570_v6  ;;  %5723 = vmatprep.mubr.bf16.mxu0 %v8571_v19  ;;  %v8572_v46 = vld [vmem:[#allocation11_spill] sm:$0xff] }
 0x141   : > { %5768 = vmatmul.mubr.bf16.gmra.mrb[136].mxu1 %v7827_v17  ;;  %v3852_v22 = vrot.slane %v3850_v31, 4  ;;  %v3855_v56 = vrot.slane %v3853_v55, 5  ;;  %v3819_v11 = vrot.slane %v3818_v53, 4  ;;  %v3823_v51 = vrot.slane %v3821_v33, 5 }
 0x142   : > { %5771 = vmatprep.mubr.bf16.mxu1 %v7831_v50  ;;  %v7901_v44 = vadd.f32 %v5374_v1, %v2573_v36  ;;  %v5263_v23 = vpop.f32.mrb[32].mxu0  ;;  %v5019_v17 = vcombine.low %v3742_v3, %v3752_v12  ;;  %v5020_v42 = vcombine.low %v3766_v16, %v3776_v39  ;;  %v3832_v32 = vor.u32 %v3831_v62, %v3828_v58  ;;  %v5003_v50 = vld [vmem:[%s7473_s18 + $0xa8] sm:$0xf]  ;;  %v5004_v39 = vld [vmem:[%s7473_s18 + $0xac] sm:$0xf]  ;;  %v8573_v36 = vld [vmem:[#allocation13_spill] sm:$0xff] }
 0x143   : > { %v5264_v38 = vpop.f32.mrb[33].mxu0  ;;  %v7914_v2 = vcombine.low %v3790_v8, %v3800_v25  ;;  %v3814_v60 = vsel %vm7607_vm4, %v7888_v37, %v7869_v57  ;;  %v7921_v61 = vrot.slane %v3859_v48, 5  ;;  %v3865_v7 = vrot.slane %v3863_v29, 4 }
 0x144   : > { %v5375_v33 = vpop.f32.mrb[32].mxu1  ;;  %v5265_v45 = vadd.f32 %v5264_v38, %v5263_v23  ;;  %v5266_v27 = vpop.f32.mrb[34].mxu0  ;;  %v3842_v3 = vor.u32 %v3841_v52, %v7892_v15  ;;  %v7924_v12 = vrot.slane %v3845_v20, 5  ;;  %v3856_v16 = vor.u32 %v3855_v56, %v3852_v22  ;;  %v5006_v20 = vld [vmem:[%s7473_s18 + $0xb4] sm:$0xf] }
 0x145   : > { %v5376_v28 = vpop.f32.mrb[33].mxu1  ;;  %v5267_v8 = vpop.f32.mrb[35].mxu0  ;;  %v3824_v57 = vsel %vm7607_vm4, %v3819_v11, %v3823_v51  ;;  %v3874_v37 = vshrl.u32 %v5003_v50, 16  ;;  %v3877_v55 = vshll.u32 %v5003_v50, 16  ;;  %v7930_v53 = vrot.slane %v3832_v32, 4 }
 0x146   : > { %v5377_v25 = vadd.f32 %v5376_v28, %v5375_v33  ;;  %v5378_v31 = vpop.f32.mrb[34].mxu1  ;;  %v2578_v0 = vadd.f32 %v5265_v45, %v7576_v14  ;;  %v5268_v41 = vadd.f32 %v5267_v8, %v5266_v27  ;;  %v3869_v58 = vshll.u32 %v5002_v47, 16  ;;  %v5007_v52 = vld [vmem:[%s7473_s18 + $0xb8] sm:$0xf] }
 0x147   : > { %v5379_v54 = vpop.f32.mrb[35].mxu1  ;;  %5724 = vmatmul.mubr.bf16.gmra.mrb[140].mxu0 %v8572_v46  ;;  %v3866_v5 = vor.u32 %v3865_v7, %v7921_v61  ;;  %v3883_v62 = vshll.u32 %v5004_v39, 16  ;;  %v3887_v1 = vshrl.u32 %v5004_v39, 16  ;;  %v3843_v19 = vrot.slane %v3842_v3, 4 }
 0x148   : > { %v5380_v6 = vadd.f32 %v5379_v54, %v5378_v31  ;;  %v2581_v48 = vadd.f32 %v5268_v41, %v7576_v14  ;;  %v7937_v29 = vadd.f32 %v5377_v25, %v2578_v0  ;;  %5727 = vmatprep.mubr.bf16.mxu0 %v8573_v36  ;;  %v3857_v22 = vrot.slane %v3856_v16, 4  ;;  %v5005_v31 = vld [vmem:[%s7473_s18 + $0xb0] sm:$0x1] }
 0x149   : > { %5772 = vmatmul.mubr.bf16.gmra.mrb[140].mxu1 %v5019_v17  ;;  %v3876_v56 = vrot.slane %v3874_v37, 4  ;;  %v3879_v11 = vrot.slane %v3877_v55, 5  ;;  %v3898_v51 = vshrl.u32 %v5006_v20, 16  ;;  %v3901_v23 = vshll.u32 %v5006_v20, 16  ;;  %v5009_v20 = vld [vmem:[%s7473_s18 + $0xc0] sm:$0xf] }
 0x14a   : > { %5775 = vmatprep.mubr.bf16.mxu1 %v5020_v42  ;;  %v7940_v32 = vadd.f32 %v5380_v6, %v2581_v48  ;;  %v5269_v50 = vpop.f32.mrb[36].mxu0  ;;  %v5022_v38 = vcombine.low %v3814_v60, %v3824_v57  ;;  %v3907_v33 = vshll.u32 %v5007_v52, 16  ;;  %v3911_v47 = vshrl.u32 %v5007_v52, 16  ;;  %v5008_v57 = vld [vmem:[%s7473_s18 + $0xbc] sm:$0x1] }
 0x14b   : > { %v5270_v7 = vpop.f32.mrb[37].mxu0  ;;  %v3867_v27 = vrot.slane %v3866_v5, 4  ;;  %v3871_v28 = vrot.slane %v3869_v58, 5  ;;  %v7942_v17 = vrot.slane %v3883_v62, 5  ;;  %v3889_v42 = vrot.slane %v3887_v1, 4  ;;  %v8574_v1 = vld [vmem:[#allocation14_spill] sm:$0xff] }
 0x14c   : > { %v5381_v45 = vpop.f32.mrb[36].mxu1  ;;  %v5271_v3 = vadd.f32 %v5270_v7, %v5269_v50  ;;  %v5272_v16 = vpop.f32.mrb[38].mxu0  ;;  %v3838_v8 = vsel %vm7607_vm4, %v7930_v53, %v7892_v15  ;;  %v3848_v60 = vsel %vm7607_vm4, %v3843_v19, %v7924_v12  ;;  %v3862_v25 = vsel %vm7607_vm4, %v3857_v22, %v7921_v61  ;;  %v5010_v5 = vld [vmem:[%s7473_s18 + $0xc4] sm:$0xf]  ;;  %v8575_v22 = vld [vmem:[#allocation16_spill] sm:$0xff] }
 0x14d   : > { %v5382_v39 = vpop.f32.mrb[37].mxu1  ;;  %v5273_v37 = vpop.f32.mrb[39].mxu0  ;;  %v3880_v41 = vor.u32 %v3879_v11, %v3876_v56  ;;  %v3900_v54 = vrot.slane %v3898_v51, 4  ;;  %v3903_v58 = vrot.slane %v3901_v23, 5  ;;  %v7958_v46 = vrot.slane %v3907_v33, 5 }
 0x14e   : > { %v5383_v55 = vadd.f32 %v5382_v39, %v5381_v45  ;;  %v5384_v0 = vpop.f32.mrb[38].mxu1  ;;  %v2586_v15 = vadd.f32 %v5271_v3, %v7576_v14  ;;  %v5274_v53 = vadd.f32 %v5273_v37, %v5272_v16  ;;  %v3913_v12 = vrot.slane %v3911_v47, 4 }
 0x14f   : > { %v5385_v6 = vpop.f32.mrb[39].mxu1  ;;  %5728 = vmatmul.mubr.bf16.gmra.mrb[144].mxu0 %v8574_v1  ;;  %v3872_v61 = vsel %vm7607_vm4, %v3867_v27, %v3871_v28  ;;  %v3890_v52 = vor.u32 %v3889_v42, %v7942_v17  ;;  %v3893_v48 = vshll.u32 %v5005_v31, 16  ;;  %v3917_v56 = vshll.u32 %v5008_v57, 16  ;;  %v7979_v1 = vld [vmem:[%s8456_s2] ss:$0 sm:$0xff] }
 0x150   : > { %v5386_v62 = vadd.f32 %v5385_v6, %v5384_v0  ;;  %v2589_v36 = vadd.f32 %v5274_v53, %v7576_v14  ;;  %v7966_v19 = vadd.f32 %v5383_v55, %v2586_v15  ;;  %5731 = vmatprep.mubr.bf16.mxu0 %v8575_v22  ;;  %v3922_v11 = vshrl.u32 %v5009_v20, 16 }
 0x151   : > { %5776 = vmatmul.mubr.bf16.gmra.mrb[144].mxu1 %v7914_v2  ;;  %v3925_v51 = vshll.u32 %v5009_v20, 16  ;;  %v3931_v23 = vshll.u32 %v5010_v5, 16  ;;  %v3935_v50 = vshrl.u32 %v5010_v5, 16  ;;  %v3904_v7 = vor.u32 %v3903_v58, %v3900_v54  ;;  %v5011_v2 = vld [vmem:[%s7473_s18 + $0xc8] sm:$0x1] }
 0x152   : > { %5779 = vmatprep.mubr.bf16.mxu1 %v5022_v38  ;;  %v7970_v33 = vadd.f32 %v5386_v62, %v2589_v36  ;;  %v5275_v47 = vpop.f32.mrb[40].mxu0  ;;  %v3914_v45 = vor.u32 %v3913_v12, %v7958_v46  ;;  %v5023_v42 = vcombine.low %v3838_v8, %v3848_v60  ;;  %v5024_v3 = vcombine.low %v3862_v25, %v3872_v61  ;;  %v8576_v62 = vld [vmem:[#allocation15_spill] sm:$0xff] }
 0x153   : > { %v5276_v27 = vpop.f32.mrb[41].mxu0  ;;  %v3881_v16 = vrot.slane %v3880_v41, 4  ;;  %v3895_v39 = vrot.slane %v3893_v48, 5  ;;  %v3891_v38 = vrot.slane %v3890_v52, 4  ;;  %v3919_v55 = vrot.slane %v3917_v56, 5  ;;  %v8577_v48 = vld [vmem:[#allocation2_spill] sm:$0xff] }
 0x154   : > { %v5387_v28 = vpop.f32.mrb[40].mxu1  ;;  %v5277_v31 = vadd.f32 %v5276_v27, %v5275_v47  ;;  %v5278_v57 = vpop.f32.mrb[42].mxu0  ;;  %v3924_v0 = vrot.slane %v3922_v11, 4  ;;  %v3927_v6 = vrot.slane %v3925_v51, 5  ;;  %v3933_v54 = vrot.slane %v3931_v23, 5 }
 0x155   : > { %v5388_v37 = vpop.f32.mrb[41].mxu1  ;;  %v5279_v20 = vpop.f32.mrb[43].mxu0  ;;  %v3937_v58 = vrot.slane %v3935_v50, 4  ;;  %v3905_v60 = vrot.slane %v3904_v7, 4  ;;  %v3915_v25 = vrot.slane %v3914_v45, 4  ;;  %v3886_v36 = vsel %vm7607_vm4, %v3881_v16, %v7942_v17 }
 0x156   : > { %v5389_v15 = vadd.f32 %v5388_v37, %v5387_v28  ;;  %v5390_v53 = vpop.f32.mrb[42].mxu1  ;;  %v2594_v12 = vadd.f32 %v5277_v31, %v7576_v14  ;;  %v5280_v5 = vadd.f32 %v5279_v20, %v5278_v57  ;;  %v3941_v14 = vshll.u32 %v5011_v2, 16 }
 0x157   : > { %v5391_v8 = vpop.f32.mrb[43].mxu1  ;;  %5732 = vmatmul.mubr.bf16.gmra.mrb[148].mxu0 %v8576_v62  ;;  %v3896_v22 = vsel %vm7607_vm4, %v3891_v38, %v3895_v39  ;;  %v3928_v56 = vor.u32 %v3927_v6, %v3924_v0  ;;  %v3938_v11 = vor.u32 %v3937_v58, %v3933_v54  ;;  %v3910_v50 = vsel %vm7607_vm4, %v3905_v60, %v7958_v46 }
 0x158   : > { %v5392_v41 = vadd.f32 %v5391_v8, %v5390_v53  ;;  %v2597_v61 = vadd.f32 %v7979_v1, %v5280_v5  ;;  %v7982_v52 = vadd.f32 %v5389_v15, %v2594_v12  ;;  %5735 = vmatprep.mubr.bf16.mxu0 %v8577_v48  ;;  %v3920_v47 = vsel %vm7607_vm4, %v3915_v25, %v3919_v55  ;;  %v8578_v15 = vld [vmem:[#allocation3_spill] sm:$0xff] }
 0x159   : > { %5780 = vmatmul.mubr.bf16.gmra.mrb[148].mxu1 %v5023_v42  ;;  %v5025_v42 = vcombine.low %v3886_v36, %v3896_v22  ;;  %v5026_v31 = vcombine.low %v3910_v50, %v3920_v47  ;;  %v3929_v57 = vrot.slane %v3928_v56, 4  ;;  %v3939_v37 = vrot.slane %v3938_v11, 4 }
 0x15a   : > { %5783 = vmatprep.mubr.bf16.mxu1 %v5024_v3  ;;  %v7990_v51 = vadd.f32 %v5392_v41, %v2597_v61  ;;  %v5281_v23 = vpop.f32.mrb[44].mxu0  ;;  %v3943_v3 = vrot.slane %v3941_v14, 5 }
 0x15b   : > { %v5282_v7 = vpop.f32.mrb[45].mxu0  ;;  %v3934_v6 = vsel %vm7607_vm4, %v3929_v57, %v3933_v54 }
 0x15c   : > { %v5393_v45 = vpop.f32.mrb[44].mxu1  ;;  %v5283_v27 = vadd.f32 %v5282_v7, %v5281_v23  ;;  %v5284_v28 = vpop.f32.mrb[46].mxu0  ;;  %v3944_v58 = vsel %vm7607_vm4, %v3939_v37, %v3943_v3 }
 0x15d   : > { %v5394_v17 = vpop.f32.mrb[45].mxu1  ;;  %v5285_v16 = vpop.f32.mrb[47].mxu0  ;;  %v5027_v61 = vcombine.low %v3934_v6, %v3944_v58 }
 0x15e   : > { %v5395_v39 = vadd.f32 %v5394_v17, %v5393_v45  ;;  %v5396_v2 = vpop.f32.mrb[46].mxu1  ;;  %v2602_v38 = vadd.f32 %v7979_v1, %v5283_v27  ;;  %v5286_v0 = vadd.f32 %v5285_v16, %v5284_v28 }
 0x15f   : > { %v5397_v46 = vpop.f32.mrb[47].mxu1  ;;  %5736 = vmatmul.mubr.bf16.gmra.mrb[152].mxu0 %v8578_v15 }
 0x160   : > { %v5398_v20 = vadd.f32 %v5397_v46, %v5396_v2  ;;  %v2605_v55 = vadd.f32 %v7979_v1, %v5286_v0  ;;  %v8000_v53 = vadd.f32 %v5395_v39, %v2602_v38  ;;  %5739 = vmatprep.mubr.bf16.mxu0 %v7598_v34 }
 0x161   : > { %5784 = vmatmul.mubr.bf16.gmra.mrb[152].mxu1 %v5025_v42 }
 0x162   : > { %5787 = vmatprep.mubr.bf16.mxu1 %v5026_v31  ;;  %v8007_v12 = vadd.f32 %v5398_v20, %v2605_v55  ;;  %v5287_v5 = vpop.f32.mrb[48].mxu0 }
 0x163   : > { %v5288_v8 = vpop.f32.mrb[49].mxu0 }
 0x164   : > { %v5399_v60 = vpop.f32.mrb[48].mxu1  ;;  %v5289_v25 = vadd.f32 %v5288_v8, %v5287_v5  ;;  %v5290_v41 = vpop.f32.mrb[50].mxu0 }
 0x165   : > { %v5400_v62 = vpop.f32.mrb[49].mxu1  ;;  %v5291_v48 = vpop.f32.mrb[51].mxu0 }
 0x166   : > { %v5401_v14 = vadd.f32 %v5400_v62, %v5399_v60  ;;  %v5402_v34 = vpop.f32.mrb[50].mxu1  ;;  %v2610_v36 = vadd.f32 %v7979_v1, %v5289_v25  ;;  %v5292_v22 = vadd.f32 %v5291_v48, %v5290_v41 }
 0x167   : > { %v5403_v56 = vpop.f32.mrb[51].mxu1  ;;  %5740 = vmatmul.mubr.bf16.gmra.mrb[156].mxu0 %v7620_v26 }
 0x168   : > { %v5404_v54 = vadd.f32 %v5403_v56, %v5402_v34  ;;  %v2613_v21 = vadd.f32 %v7979_v1, %v5292_v22  ;;  %v8012_v11 = vadd.f32 %v5401_v14, %v2610_v36 }
 0x169   : > { %5788 = vmatmul.mubr.bf16.gmra.mrb[156].mxu1 %v5027_v61 }
 0x16a   : > { %v8014_v23 = vadd.f32 %v5404_v54, %v2613_v21  ;;  %v5293_v50 = vpop.f32.mrb[52].mxu0 }
 0x16b   : > { %v5294_v47 = vpop.f32.mrb[53].mxu0 }
 0x16c   : > { %v5405_v7 = vpop.f32.mrb[52].mxu1  ;;  %v5295_v45 = vadd.f32 %v5294_v47, %v5293_v50  ;;  %v5296_v27 = vpop.f32.mrb[54].mxu0 }
 0x16d   : > { %v5406_v28 = vpop.f32.mrb[53].mxu1  ;;  %v5297_v17 = vpop.f32.mrb[55].mxu0 }
 0x16e   : > { %v5407_v42 = vadd.f32 %v5406_v28, %v5405_v7  ;;  %v5408_v3 = vpop.f32.mrb[54].mxu1  ;;  %v2618_v16 = vadd.f32 %v7979_v1, %v5295_v45  ;;  %v5298_v39 = vadd.f32 %v5297_v17, %v5296_v27 }
 0x16f   : > { %v5409_v26 = vpop.f32.mrb[55].mxu1 }
 0x170   : > { %v5410_v2 = vadd.f32 %v5409_v26, %v5408_v3  ;;  %v2621_v31 = vadd.f32 %v7979_v1, %v5298_v39  ;;  %v8018_v57 = vadd.f32 %v5407_v42, %v2618_v16 }
 0x172   : > { %v8020_v37 = vadd.f32 %v5410_v2, %v2621_v31  ;;  %v5299_v38 = vpop.f32.mrb[56].mxu0 }
 0x173   : > { %v5300_v0 = vpop.f32.mrb[57].mxu0 }
 0x174   : > { %v5411_v46 = vpop.f32.mrb[56].mxu1  ;;  %v5301_v20 = vadd.f32 %v5300_v0, %v5299_v38  ;;  %v5302_v15 = vpop.f32.mrb[58].mxu0 }
 0x175   : > { %v5412_v55 = vpop.f32.mrb[57].mxu1  ;;  %v5303_v6 = vpop.f32.mrb[59].mxu0 }
 0x176   : > { %v5413_v58 = vadd.f32 %v5412_v55, %v5411_v46  ;;  %v5414_v5 = vpop.f32.mrb[58].mxu1  ;;  %v2626_v8 = vadd.f32 %v7979_v1, %v5301_v20  ;;  %v5304_v60 = vadd.f32 %v5303_v6, %v5302_v15 }
 0x177   : > { %v5415_v25 = vpop.f32.mrb[59].mxu1 }
 0x178   : > { %v5416_v41 = vadd.f32 %v5415_v25, %v5414_v5  ;;  %v2629_v62 = vadd.f32 %v7979_v1, %v5304_v60  ;;  %v8024_v61 = vadd.f32 %v5413_v58, %v2626_v8 }
 0x17a   : > { %v8026_v48 = vadd.f32 %v5416_v41, %v2629_v62  ;;  %v5305_v14 = vpop.f32.mrb[60].mxu0 }
 0x17b   : > { %v5306_v34 = vpop.f32.mrb[61].mxu0 }
 0x17c   : > { %v5417_v36 = vpop.f32.mrb[60].mxu1  ;;  %v5307_v22 = vadd.f32 %v5306_v34, %v5305_v14  ;;  %v5308_v56 = vpop.f32.mrb[62].mxu0 }
 0x17d   : > { %v5418_v54 = vpop.f32.mrb[61].mxu1  ;;  %v5309_v21 = vpop.f32.mrb[63].mxu0 }
 0x17e   : > { %v5419_v50 = vadd.f32 %v5418_v54, %v5417_v36  ;;  %v5420_v47 = vpop.f32.mrb[62].mxu1  ;;  %v2634_v7 = vadd.f32 %v7979_v1, %v5307_v22  ;;  %v5310_v45 = vadd.f32 %v5309_v21, %v5308_v56 }
 0x17f   : > { %v5421_v27 = vpop.f32.mrb[63].mxu1 }
 0x180   : > { %v5422_v28 = vadd.f32 %v5421_v27, %v5420_v47  ;;  %v2637_v17 = vadd.f32 %v7979_v1, %v5310_v45  ;;  %v8030_v42 = vadd.f32 %v5419_v50, %v2634_v7 }
 0x182   : > { %v8032_v3 = vadd.f32 %v5422_v28, %v2637_v17  ;;  %v5439_v16 = vpop.f32.mrb[64].mxu0 }
 0x183   : > { %v5440_v39 = vpop.f32.mrb[65].mxu0 }
 0x184   : > { %v5551_v26 = vpop.f32.mrb[64].mxu1  ;;  %v5441_v2 = vadd.f32 %v5440_v39, %v5439_v16  ;;  %v5442_v31 = vpop.f32.mrb[66].mxu0 }
 0x185   : > { %v5552_v38 = vpop.f32.mrb[65].mxu1  ;;  %v5443_v0 = vpop.f32.mrb[67].mxu0 }
 0x186   : > { %v5553_v46 = vadd.f32 %v5552_v38, %v5551_v26  ;;  %v5554_v20 = vpop.f32.mrb[66].mxu1  ;;  %v2836_v15 = vadd.f32 %v5441_v2, %v7601_v59  ;;  %v5444_v55 = vadd.f32 %v5443_v0, %v5442_v31 }
 0x187   : > { %v5555_v6 = vpop.f32.mrb[67].mxu1 }
 0x188   : > { %v5556_v58 = vadd.f32 %v5555_v6, %v5554_v20  ;;  %v2839_v1 = vadd.f32 %v5444_v55, %v7622_v10  ;;  %v8036_v5 = vadd.f32 %v5553_v46, %v2836_v15 }
 0x18a   : > { %v5445_v8 = vpop.f32.mrb[68].mxu0  ;;  %v8038_v60 = vadd.f32 %v5556_v58, %v2839_v1 }
 0x18b   : > { %v5446_v25 = vpop.f32.mrb[69].mxu0 }
 0x18c   : > { %v5557_v41 = vpop.f32.mrb[68].mxu1  ;;  %v5447_v62 = vadd.f32 %v5446_v25, %v5445_v8  ;;  %v5448_v14 = vpop.f32.mrb[70].mxu0 }
 0x18d   : > { %v5558_v34 = vpop.f32.mrb[69].mxu1  ;;  %v5449_v36 = vpop.f32.mrb[71].mxu0 }
 0x18e   : > { %v5559_v22 = vadd.f32 %v5558_v34, %v5557_v41  ;;  %v5560_v56 = vpop.f32.mrb[70].mxu1  ;;  %v2844_v59 = vadd.f32 %v5447_v62, %v7646_v18  ;;  %v5450_v54 = vadd.f32 %v5449_v36, %v5448_v14 }
 0x18f   : > { %v5561_v21 = vpop.f32.mrb[71].mxu1 }
 0x190   : > { %v5562_v50 = vadd.f32 %v5561_v21, %v5560_v56  ;;  %v2847_v10 = vadd.f32 %v5450_v54, %v7658_v43  ;;  %v8042_v47 = vadd.f32 %v5559_v22, %v2844_v59 }
 0x192   : > { %v5451_v7 = vpop.f32.mrb[72].mxu0  ;;  %v8044_v45 = vadd.f32 %v5562_v50, %v2847_v10 }
 0x193   : > { %v5452_v27 = vpop.f32.mrb[73].mxu0 }
 0x194   : > { %v5563_v28 = vpop.f32.mrb[72].mxu1  ;;  %v5453_v17 = vadd.f32 %v5452_v27, %v5451_v7  ;;  %v5454_v16 = vpop.f32.mrb[74].mxu0 }
 0x195   : > { %v5564_v39 = vpop.f32.mrb[73].mxu1  ;;  %v5455_v26 = vpop.f32.mrb[75].mxu0 }
 0x196   : > { %v5565_v2 = vadd.f32 %v5564_v39, %v5563_v28  ;;  %v5566_v31 = vpop.f32.mrb[74].mxu1  ;;  %v2852_v18 = vadd.f32 %v5453_v17, %v7680_v40  ;;  %v5456_v38 = vadd.f32 %v5455_v26, %v5454_v16  ;;  %v8579_v39 = vld [vmem:[#allocation18_spill] sm:$0xff] }
 0x197   : > { %v5567_v0 = vpop.f32.mrb[75].mxu1 }
 0x198   : > { %v5568_v46 = vadd.f32 %v5567_v0, %v5566_v31  ;;  %v2855_v43 = vadd.f32 %v5456_v38, %v7689_v30  ;;  %v8048_v20 = vadd.f32 %v5565_v2, %v2852_v18  ;;  %v8580_v18 = vld [vmem:[#allocation5_spill] sm:$0xff] }
 0x19a   : > { %v5457_v15 = vpop.f32.mrb[76].mxu0  ;;  %v8050_v55 = vadd.f32 %v5568_v46, %v2855_v43 }
 0x19b   : > { %v5458_v6 = vpop.f32.mrb[77].mxu0 }
 0x19c   : > { %v5569_v58 = vpop.f32.mrb[76].mxu1  ;;  %v5459_v1 = vadd.f32 %v5458_v6, %v5457_v15  ;;  %v5460_v8 = vpop.f32.mrb[78].mxu0 }
 0x19d   : > { %v5570_v25 = vpop.f32.mrb[77].mxu1  ;;  %v5461_v41 = vpop.f32.mrb[79].mxu0 }
 0x19e   : > { %v5571_v62 = vadd.f32 %v5570_v25, %v5569_v58  ;;  %v5572_v14 = vpop.f32.mrb[78].mxu1  ;;  %v2860_v40 = vadd.f32 %v5459_v1, %v7712_v4  ;;  %v5462_v34 = vadd.f32 %v5461_v41, %v5460_v8 }
 0x19f   : > { %v5573_v36 = vpop.f32.mrb[79].mxu1 }
 0x1a0   : > { %v5574_v22 = vadd.f32 %v5573_v36, %v5572_v14  ;;  %v2863_v30 = vadd.f32 %v5462_v34, %v7723_v35  ;;  %v8054_v56 = vadd.f32 %v5571_v62, %v2860_v40 }
 0x1a2   : > { %v5463_v59 = vpop.f32.mrb[80].mxu0  ;;  %v8056_v54 = vadd.f32 %v5574_v22, %v2863_v30 }
 0x1a3   : > { %v5464_v21 = vpop.f32.mrb[81].mxu0 }
 0x1a4   : > { %v5575_v50 = vpop.f32.mrb[80].mxu1  ;;  %v5465_v10 = vadd.f32 %v5464_v21, %v5463_v59  ;;  %v5466_v7 = vpop.f32.mrb[82].mxu0 }
 0x1a5   : > { %v5576_v27 = vpop.f32.mrb[81].mxu1  ;;  %v5467_v28 = vpop.f32.mrb[83].mxu0 }
 0x1a6   : > { %v5577_v17 = vadd.f32 %v5576_v27, %v5575_v50  ;;  %v5578_v16 = vpop.f32.mrb[82].mxu1  ;;  %v2868_v4 = vadd.f32 %v5465_v10, %v8579_v39  ;;  %v5468_v26 = vadd.f32 %v5467_v28, %v5466_v7 }
 0x1a7   : > { %v5579_v2 = vpop.f32.mrb[83].mxu1 }
 0x1a8   : > { %v5580_v31 = vadd.f32 %v5579_v2, %v5578_v16  ;;  %v2871_v35 = vadd.f32 %v5468_v26, %v8580_v18  ;;  %v8060_v38 = vadd.f32 %v5577_v17, %v2868_v4 }
 0x1aa   : > { %v5469_v0 = vpop.f32.mrb[84].mxu0  ;;  %v8062_v46 = vadd.f32 %v5580_v31, %v2871_v35 }
 0x1ab   : > { %v5470_v43 = vpop.f32.mrb[85].mxu0 }
 0x1ac   : > { %v5581_v15 = vpop.f32.mrb[84].mxu1  ;;  %v5471_v6 = vadd.f32 %v5470_v43, %v5469_v0  ;;  %v5472_v58 = vpop.f32.mrb[86].mxu0 }
 0x1ad   : > { %v5582_v1 = vpop.f32.mrb[85].mxu1  ;;  %v5473_v8 = vpop.f32.mrb[87].mxu0 }
 0x1ae   : > { %v5583_v25 = vadd.f32 %v5582_v1, %v5581_v15  ;;  %v5584_v41 = vpop.f32.mrb[86].mxu1  ;;  %v2876_v62 = vadd.f32 %v5471_v6, %v7796_v63  ;;  %v5474_v14 = vadd.f32 %v5473_v8, %v5472_v58 }
 0x1af   : > { %v5585_v40 = vpop.f32.mrb[87].mxu1 }
 0x1b0   : > { %v5586_v34 = vadd.f32 %v5585_v40, %v5584_v41  ;;  %v2879_v36 = vadd.f32 %v5474_v14, %v7829_v24  ;;  %v8066_v22 = vadd.f32 %v5583_v25, %v2876_v62 }
 0x1b2   : > { %v5475_v30 = vpop.f32.mrb[88].mxu0  ;;  %v8068_v59 = vadd.f32 %v5586_v34, %v2879_v36 }
 0x1b3   : > { %v5476_v21 = vpop.f32.mrb[89].mxu0 }
 0x1b4   : > { %v5587_v50 = vpop.f32.mrb[88].mxu1  ;;  %v5477_v10 = vadd.f32 %v5476_v21, %v5475_v30  ;;  %v5478_v7 = vpop.f32.mrb[90].mxu0 }
 0x1b5   : > { %v5588_v27 = vpop.f32.mrb[89].mxu1  ;;  %v5479_v28 = vpop.f32.mrb[91].mxu0 }
 0x1b6   : > { %v5589_v17 = vadd.f32 %v5588_v27, %v5587_v50  ;;  %v5590_v16 = vpop.f32.mrb[90].mxu1  ;;  %v2884_v63 = vadd.f32 %v5477_v10, %v7861_v13  ;;  %v5480_v39 = vadd.f32 %v5479_v28, %v5478_v7 }
 0x1b7   : > { %v5591_v4 = vpop.f32.mrb[91].mxu1 }
 0x1b8   : > { %v5592_v26 = vadd.f32 %v5591_v4, %v5590_v16  ;;  %v2887_v24 = vadd.f32 %v5480_v39, %v7872_v9  ;;  %v8072_v2 = vadd.f32 %v5589_v17, %v2884_v63 }
 0x1ba   : > { %v5481_v31 = vpop.f32.mrb[92].mxu0  ;;  %v8074_v18 = vadd.f32 %v5592_v26, %v2887_v24 }
 0x1bb   : > { %v5482_v35 = vpop.f32.mrb[93].mxu0 }
 0x1bc   : > { %v5593_v0 = vpop.f32.mrb[92].mxu1  ;;  %v5483_v43 = vadd.f32 %v5482_v35, %v5481_v31  ;;  %v5484_v15 = vpop.f32.mrb[94].mxu0 }
 0x1bd   : > { %v5594_v6 = vpop.f32.mrb[93].mxu1  ;;  %v5485_v58 = vpop.f32.mrb[95].mxu0 }
 0x1be   : > { %v5595_v1 = vadd.f32 %v5594_v6, %v5593_v0  ;;  %v5596_v8 = vpop.f32.mrb[94].mxu1  ;;  %v2892_v13 = vadd.f32 %v5483_v43, %v7896_v49  ;;  %v5486_v25 = vadd.f32 %v5485_v58, %v5484_v15 }
 0x1bf   : > { %v5597_v41 = vpop.f32.mrb[95].mxu1 }
 0x1c0   : > { %v5598_v62 = vadd.f32 %v5597_v41, %v5596_v8  ;;  %v2895_v9 = vadd.f32 %v5486_v25, %v7901_v44  ;;  %v8078_v14 = vadd.f32 %v5595_v1, %v2892_v13 }
 0x1c2   : > { %v5487_v40 = vpop.f32.mrb[96].mxu0  ;;  %v8080_v34 = vadd.f32 %v5598_v62, %v2895_v9 }
 0x1c3   : > { %v5488_v36 = vpop.f32.mrb[97].mxu0 }
 0x1c4   : > { %v5599_v30 = vpop.f32.mrb[96].mxu1  ;;  %v5489_v21 = vadd.f32 %v5488_v36, %v5487_v40  ;;  %v5490_v50 = vpop.f32.mrb[98].mxu0 }
 0x1c5   : > { %v5600_v10 = vpop.f32.mrb[97].mxu1  ;;  %v5491_v7 = vpop.f32.mrb[99].mxu0 }
 0x1c6   : > { %v5601_v27 = vadd.f32 %v5600_v10, %v5599_v30  ;;  %v5602_v28 = vpop.f32.mrb[98].mxu1  ;;  %v2900_v49 = vadd.f32 %v5489_v21, %v7937_v29  ;;  %v5492_v17 = vadd.f32 %v5491_v7, %v5490_v50 }
 0x1c7   : > { %v5603_v16 = vpop.f32.mrb[99].mxu1 }
 0x1c8   : > { %v5604_v63 = vadd.f32 %v5603_v16, %v5602_v28  ;;  %v2903_v44 = vadd.f32 %v5492_v17, %v7940_v32  ;;  %v8084_v39 = vadd.f32 %v5601_v27, %v2900_v49 }
 0x1ca   : > { %v5493_v4 = vpop.f32.mrb[100].mxu0  ;;  %v8086_v26 = vadd.f32 %v5604_v63, %v2903_v44 }
 0x1cb   : > { %v5494_v24 = vpop.f32.mrb[101].mxu0 }
 0x1cc   : > { %v5605_v31 = vpop.f32.mrb[100].mxu1  ;;  %v5495_v35 = vadd.f32 %v5494_v24, %v5493_v4  ;;  %v5496_v0 = vpop.f32.mrb[102].mxu0 }
 0x1cd   : > { %v5606_v43 = vpop.f32.mrb[101].mxu1  ;;  %v5497_v15 = vpop.f32.mrb[103].mxu0 }
 0x1ce   : > { %v5607_v6 = vadd.f32 %v5606_v43, %v5605_v31  ;;  %v5608_v58 = vpop.f32.mrb[102].mxu1  ;;  %v2908_v29 = vadd.f32 %v5495_v35, %v7966_v19  ;;  %v5498_v1 = vadd.f32 %v5497_v15, %v5496_v0 }
 0x1cf   : > { %v5609_v8 = vpop.f32.mrb[103].mxu1 }
 0x1d0   : > { %v5610_v13 = vadd.f32 %v5609_v8, %v5608_v58  ;;  %v2911_v32 = vadd.f32 %v5498_v1, %v7970_v33  ;;  %v8090_v25 = vadd.f32 %v5607_v6, %v2908_v29 }
 0x1d2   : > { %v5499_v41 = vpop.f32.mrb[104].mxu0  ;;  %v8092_v62 = vadd.f32 %v5610_v13, %v2911_v32 }
 0x1d3   : > { %v5500_v9 = vpop.f32.mrb[105].mxu0 }
 0x1d4   : > { %v5611_v40 = vpop.f32.mrb[104].mxu1  ;;  %v5501_v36 = vadd.f32 %v5500_v9, %v5499_v41  ;;  %v5502_v30 = vpop.f32.mrb[106].mxu0 }
 0x1d5   : > { %v5612_v21 = vpop.f32.mrb[105].mxu1  ;;  %v5503_v50 = vpop.f32.mrb[107].mxu0 }
 0x1d6   : > { %v5613_v10 = vadd.f32 %v5612_v21, %v5611_v40  ;;  %v5614_v7 = vpop.f32.mrb[106].mxu1  ;;  %v2916_v19 = vadd.f32 %v5501_v36, %v7982_v52  ;;  %v5504_v27 = vadd.f32 %v5503_v50, %v5502_v30 }
 0x1d7   : > { %v5615_v28 = vpop.f32.mrb[107].mxu1 }
 0x1d8   : > { %v5616_v49 = vadd.f32 %v5615_v28, %v5614_v7  ;;  %v2919_v33 = vadd.f32 %v5504_v27, %v7990_v51  ;;  %v8096_v17 = vadd.f32 %v5613_v10, %v2916_v19 }
 0x1da   : > { %v5505_v16 = vpop.f32.mrb[108].mxu0  ;;  %v8098_v63 = vadd.f32 %v5616_v49, %v2919_v33 }
 0x1db   : > { %v5506_v44 = vpop.f32.mrb[109].mxu0 }
 0x1dc   : > { %v5617_v4 = vpop.f32.mrb[108].mxu1  ;;  %v5507_v24 = vadd.f32 %v5506_v44, %v5505_v16  ;;  %v5508_v31 = vpop.f32.mrb[110].mxu0 }
 0x1dd   : > { %v5618_v35 = vpop.f32.mrb[109].mxu1  ;;  %v5509_v0 = vpop.f32.mrb[111].mxu0 }
 0x1de   : > { %v5619_v43 = vadd.f32 %v5618_v35, %v5617_v4  ;;  %v5620_v15 = vpop.f32.mrb[110].mxu1  ;;  %v2924_v52 = vadd.f32 %v5507_v24, %v8000_v53  ;;  %v5510_v6 = vadd.f32 %v5509_v0, %v5508_v31 }
 0x1df   : > { %v5621_v58 = vpop.f32.mrb[111].mxu1 }
 0x1e0   : > { %v5622_v29 = vadd.f32 %v5621_v58, %v5620_v15  ;;  %v2927_v51 = vadd.f32 %v5510_v6, %v8007_v12  ;;  %v8102_v1 = vadd.f32 %v5619_v43, %v2924_v52 }
 0x1e2   : > { %v5511_v8 = vpop.f32.mrb[112].mxu0  ;;  %v8104_v13 = vadd.f32 %v5622_v29, %v2927_v51 }
 0x1e3   : > { %v5512_v32 = vpop.f32.mrb[113].mxu0 }
 0x1e4   : > { %v5623_v41 = vpop.f32.mrb[112].mxu1  ;;  %v5513_v9 = vadd.f32 %v5512_v32, %v5511_v8  ;;  %v5514_v40 = vpop.f32.mrb[114].mxu0 }
 0x1e5   : > { %v5624_v36 = vpop.f32.mrb[113].mxu1  ;;  %v5515_v30 = vpop.f32.mrb[115].mxu0 }
 0x1e6   : > { %v5625_v21 = vadd.f32 %v5624_v36, %v5623_v41  ;;  %v5626_v50 = vpop.f32.mrb[114].mxu1  ;;  %v2932_v53 = vadd.f32 %v5513_v9, %v8012_v11  ;;  %v5516_v10 = vadd.f32 %v5515_v30, %v5514_v40 }
 0x1e7   : > { %v5627_v7 = vpop.f32.mrb[115].mxu1 }
 0x1e8   : > { %v5628_v19 = vadd.f32 %v5627_v7, %v5626_v50  ;;  %v2935_v12 = vadd.f32 %v5516_v10, %v8014_v23  ;;  %v8108_v27 = vadd.f32 %v5625_v21, %v2932_v53 }
 0x1ea   : > { %v5517_v28 = vpop.f32.mrb[116].mxu0  ;;  %v8110_v49 = vadd.f32 %v5628_v19, %v2935_v12 }
 0x1eb   : > { %v5518_v33 = vpop.f32.mrb[117].mxu0 }
 0x1ec   : > { %v5629_v16 = vpop.f32.mrb[116].mxu1  ;;  %v5519_v44 = vadd.f32 %v5518_v33, %v5517_v28  ;;  %v5520_v4 = vpop.f32.mrb[118].mxu0 }
 0x1ed   : > { %v5630_v24 = vpop.f32.mrb[117].mxu1  ;;  %v5521_v31 = vpop.f32.mrb[119].mxu0 }
 0x1ee   : > { %v5631_v35 = vadd.f32 %v5630_v24, %v5629_v16  ;;  %v5632_v0 = vpop.f32.mrb[118].mxu1  ;;  %v2940_v11 = vadd.f32 %v5519_v44, %v8018_v57  ;;  %v5522_v43 = vadd.f32 %v5521_v31, %v5520_v4 }
 0x1ef   : > { %v5633_v15 = vpop.f32.mrb[119].mxu1 }
 0x1f0   : > { %v5634_v52 = vadd.f32 %v5633_v15, %v5632_v0  ;;  %v2943_v23 = vadd.f32 %v5522_v43, %v8020_v37  ;;  %v8114_v6 = vadd.f32 %v5631_v35, %v2940_v11 }
 0x1f2   : > { %v5523_v58 = vpop.f32.mrb[120].mxu0  ;;  %v8116_v29 = vadd.f32 %v5634_v52, %v2943_v23 }
 0x1f3   : > { %v5524_v51 = vpop.f32.mrb[121].mxu0 }
 0x1f4   : > { %v5635_v8 = vpop.f32.mrb[120].mxu1  ;;  %v5525_v32 = vadd.f32 %v5524_v51, %v5523_v58  ;;  %v5526_v41 = vpop.f32.mrb[122].mxu0 }
 0x1f5   : > { %v5636_v9 = vpop.f32.mrb[121].mxu1  ;;  %v5527_v40 = vpop.f32.mrb[123].mxu0 }
 0x1f6   : > { %v5637_v36 = vadd.f32 %v5636_v9, %v5635_v8  ;;  %v5638_v30 = vpop.f32.mrb[122].mxu1  ;;  %v2948_v57 = vadd.f32 %v5525_v32, %v8024_v61  ;;  %v5528_v21 = vadd.f32 %v5527_v40, %v5526_v41 }
 0x1f7   : > { %v5639_v50 = vpop.f32.mrb[123].mxu1 }
 0x1f8   : > { %v5640_v53 = vadd.f32 %v5639_v50, %v5638_v30  ;;  %v2951_v37 = vadd.f32 %v5528_v21, %v8026_v48  ;;  %v8120_v10 = vadd.f32 %v5637_v36, %v2948_v57 }
 0x1fa   : > { %v5529_v7 = vpop.f32.mrb[124].mxu0  ;;  %v8122_v19 = vadd.f32 %v5640_v53, %v2951_v37 }
 0x1fb   : > { %v5530_v12 = vpop.f32.mrb[125].mxu0 }
 0x1fc   : > { %8581 = vst [vmem:[#allocation17_spill] sm:$0xff] %v8122_v19  ;;  %v5641_v28 = vpop.f32.mrb[124].mxu1  ;;  %v5531_v33 = vadd.f32 %v5530_v12, %v5529_v7  ;;  %v5532_v16 = vpop.f32.mrb[126].mxu0 }
 0x1fd   : > { %v5642_v44 = vpop.f32.mrb[125].mxu1  ;;  %v5533_v4 = vpop.f32.mrb[127].mxu0 }
 0x1fe   : > { %v5643_v24 = vadd.f32 %v5642_v44, %v5641_v28  ;;  %v5644_v31 = vpop.f32.mrb[126].mxu1  ;;  %v2956_v61 = vadd.f32 %v5531_v33, %v8030_v42  ;;  %v5534_v35 = vadd.f32 %v5533_v4, %v5532_v16 }
 0x1ff   : > { %v5645_v0 = vpop.f32.mrb[127].mxu1 }
 0x200   : > { %v5646_v11 = vadd.f32 %v5645_v0, %v5644_v31  ;;  %v2959_v48 = vadd.f32 %v5534_v35, %v8032_v3  ;;  %v8126_v43 = vadd.f32 %v5643_v24, %v2956_v61 }
 0x202   : > { %v5713_v15 = vpop.f32.mrb[128].mxu0  ;;  %v8128_v52 = vadd.f32 %v5646_v11, %v2959_v48 }
 0x203   : > { %v8131_v23 = vadd.f32 %v5713_v15, %v8042_v47  ;;  %v3157_v58 = vpop.f32.mrb[129].mxu0 }
 0x204   : > { %v8133_v51 = vpop.f32.mrb[128].mxu1  ;;  %v8136_v8 = vadd.f32 %v3157_v58, %v8036_v5  ;;  %v5714_v42 = vpop.f32.mrb[130].mxu0 }
 0x205   : > { %v8138_v32 = vpop.f32.mrb[129].mxu1  ;;  %v4934_v41 = vmul.f32 -1.442695, %v8131_v23  ;;  %v8142_v3 = vadd.f32 %v5714_v42, %v8044_v45  ;;  %v3160_v9 = vpop.f32.mrb[131].mxu0 }
 0x206   : > { %v8144_v40 = vpop.f32.mrb[130].mxu1  ;;  %v4932_v47 = vmul.f32 -1.442695, %v8136_v8  ;;  %v8148_v36 = vadd.f32 %v3160_v9, %v8038_v60 }
 0x207   : > { %v8150_v30 = vpop.f32.mrb[131].mxu1  ;;  %6040 = vpow2.f32 %v4934_v41  ;;  %v4935_v5 = vmul.f32 -1.442695, %v8142_v3 }
 0x208   : > { %6042 = vpow2.f32 %v4932_v47  ;;  %v4933_v57 = vmul.f32 -1.442695, %v8148_v36 }
 0x209   : > { %6044 = vpow2.f32 %v4935_v5 }
 0x20a   : > { %6046 = vpow2.f32 %v4933_v57  ;;  %v5717_v45 = vpop.f32.mrb[132].mxu0 }
 0x20b   : > { %v8155_v21 = vadd.f32 %v5717_v45, %v8054_v56  ;;  %v3173_v50 = vpop.f32.mrb[133].mxu0 }
 0x20c   : > { %v8157_v53 = vpop.f32.mrb[132].mxu1  ;;  %v8160_v60 = vadd.f32 %v3173_v50, %v8048_v20  ;;  %v5718_v37 = vpop.f32.mrb[134].mxu0 }
 0x20d   : > { %v8162_v7 = vpop.f32.mrb[133].mxu1  ;;  %v4938_v12 = vmul.f32 -1.442695, %v8155_v21  ;;  %v8166_v28 = vadd.f32 %v5718_v37, %v8056_v54  ;;  %v3176_v33 = vpop.f32.mrb[135].mxu0 }
 0x20e   : > { %v8168_v16 = vpop.f32.mrb[134].mxu1  ;;  %v4936_v56 = vmul.f32 -1.442695, %v8160_v60  ;;  %v8172_v44 = vadd.f32 %v3176_v33, %v8050_v55 }
 0x20f   : > { %v8174_v4 = vpop.f32.mrb[135].mxu1  ;;  %6048 = vpow2.f32 %v4938_v12  ;;  %v4939_v20 = vmul.f32 -1.442695, %v8166_v28 }
 0x210   : > { %6050 = vpow2.f32 %v4936_v56  ;;  %v4937_v24 = vmul.f32 -1.442695, %v8172_v44 }
 0x211   : > { %v6041_v31 = vpop.eup %6040  ;;  %6052 = vpow2.f32 %v4939_v20 }
 0x212   : > { %v6043_v54 = vpop.eup %6042  ;;  %v3382_v61 = vadd.f32 1.0, %v6041_v31  ;;  %6054 = vpow2.f32 %v4937_v24  ;;  %v5721_v35 = vpop.f32.mrb[136].mxu0 }
 0x213   : > { %v6045_v0 = vpop.eup %6044  ;;  %v3380_v11 = vadd.f32 1.0, %v6043_v54  ;;  %v8179_v48 = vadd.f32 %v5721_v35, %v8066_v22  ;;  %v3189_v55 = vpop.f32.mrb[137].mxu0 }
 0x214   : > { %v8181_v15 = vpop.f32.mrb[136].mxu1  ;;  %v6047_v58 = vpop.eup %6046  ;;  %6056 = vrcp.f32 %v3382_v61  ;;  %v3383_v42 = vadd.f32 1.0, %v6045_v0  ;;  %v8184_v41 = vadd.f32 %v3189_v55, %v8060_v38 }
 0x215   : > { %v5722_v9 = vpop.f32.mrb[138].mxu0  ;;  %v8186_v47 = vpop.f32.mrb[137].mxu1  ;;  %6058 = vrcp.f32 %v3380_v11  ;;  %v3381_v5 = vadd.f32 1.0, %v6047_v58  ;;  %v4942_v57 = vmul.f32 -1.442695, %v8179_v48 }
 0x216   : > { %v8190_v45 = vadd.f32 %v5722_v9, %v8068_v59  ;;  %v3192_v22 = vpop.f32.mrb[139].mxu0  ;;  %v8192_v50 = vpop.f32.mrb[138].mxu1  ;;  %6060 = vrcp.f32 %v3383_v42  ;;  %v4940_v37 = vmul.f32 -1.442695, %v8184_v41 }
 0x217   : > { %v8196_v12 = vadd.f32 %v3192_v22, %v8062_v46  ;;  %v8198_v38 = vpop.f32.mrb[139].mxu1  ;;  %6062 = vrcp.f32 %v3381_v5 }
 0x218   : > { %v4943_v33 = vmul.f32 -1.442695, %v8190_v45  ;;  %6064 = vpow2.f32 %v4942_v57 }
 0x219   : > { %v4941_v56 = vmul.f32 -1.442695, %v8196_v12  ;;  %v6049_v20 = vpop.eup %6048  ;;  %6066 = vpow2.f32 %v4940_v37 }
 0x21a   : > { %v6051_v59 = vpop.eup %6050  ;;  %v3386_v24 = vadd.f32 1.0, %v6049_v20  ;;  %6068 = vpow2.f32 %v4943_v33  ;;  %v5725_v31 = vpop.f32.mrb[140].mxu0 }
 0x21b   : > { %v6053_v54 = vpop.eup %6052  ;;  %v3384_v61 = vadd.f32 1.0, %v6051_v59  ;;  %6070 = vpow2.f32 %v4941_v56  ;;  %v8203_v46 = vadd.f32 %v5725_v31, %v8078_v14  ;;  %v3205_v35 = vpop.f32.mrb[141].mxu0 }
 0x21c   : > { %v8205_v0 = vpop.f32.mrb[140].mxu1  ;;  %v6055_v11 = vpop.eup %6054  ;;  %6072 = vrcp.f32 %v3386_v24  ;;  %v3387_v55 = vadd.f32 1.0, %v6053_v54  ;;  %v8208_v58 = vadd.f32 %v3205_v35, %v8072_v2 }
 0x21d   : > { %v5726_v42 = vpop.f32.mrb[142].mxu0  ;;  %v8210_v9 = vpop.f32.mrb[141].mxu1  ;;  %6074 = vrcp.f32 %v3384_v61  ;;  %v3385_v5 = vadd.f32 1.0, %v6055_v11  ;;  %v4946_v57 = vmul.f32 -1.442695, %v8203_v46 }
 0x21e   : > { %v8214_v22 = vadd.f32 %v5726_v42, %v8080_v34  ;;  %v3208_v14 = vpop.f32.mrb[143].mxu0  ;;  %v8216_v37 = vpop.f32.mrb[142].mxu1  ;;  %6076 = vrcp.f32 %v3387_v55  ;;  %v4944_v56 = vmul.f32 -1.442695, %v8208_v58  ;;  %v8230_v61 = vld [vmem:[%s8459_s5] ss:$0 sm:$0xff] }
 0x21f   : > { %v6057_v33 = vpop.eup %6056  ;;  %v8220_v2 = vadd.f32 %v3208_v14, %v8074_v18  ;;  %v8222_v20 = vpop.f32.mrb[143].mxu1  ;;  %6078 = vrcp.f32 %v3385_v5 }
 0x220   : > { %v6059_v59 = vpop.eup %6058  ;;  %v4947_v24 = vmul.f32 -1.442695, %v8214_v22  ;;  %v3478_v31 = vmul.f32 %v6057_v33, %v8131_v23  ;;  %6080 = vpow2.f32 %v4946_v57 }
 0x221   : > { %v6061_v34 = vpop.eup %6060  ;;  %v4945_v54 = vmul.f32 -1.442695, %v8220_v2  ;;  %v3476_v18 = vmul.f32 %v6059_v59, %v8136_v8  ;;  %6082 = vpow2.f32 %v4944_v56 }
 0x222   : > { %v6063_v35 = vpop.eup %6062  ;;  %v4236_v11 = vadd.f32 %v8133_v51, %v3478_v31  ;;  %v3479_v55 = vmul.f32 %v6061_v34, %v8142_v3  ;;  %6084 = vpow2.f32 %v4947_v24  ;;  %v5729_v57 = vpop.f32.mrb[144].mxu0 }
 0x223   : > { %v6065_v42 = vpop.eup %6064  ;;  %v4234_v23 = vadd.f32 %v8138_v32, %v3476_v18  ;;  %v3477_v5 = vmul.f32 %v6063_v35, %v8148_v36  ;;  %6086 = vpow2.f32 %v4945_v54  ;;  %v3221_v56 = vpop.f32.mrb[145].mxu0  ;;  %v8245_v36 = vadd.f32 %v5729_v57, %v8090_v25 }
 0x224   : > { %v6067_v14 = vpop.eup %6066  ;;  %v3390_v33 = vadd.f32 1.0, %v6065_v42  ;;  %v4275_v19 = vadd.f32 %v8230_v61, %v4236_v11  ;;  %v4237_v8 = vadd.f32 %v8144_v40, %v3479_v55  ;;  %v8240_v59 = vpop.f32.mrb[144].mxu1  ;;  %v8251_v35 = vadd.f32 %v3221_v56, %v8084_v39 }
 0x225   : > { %v6069_v51 = vpop.eup %6068  ;;  %v3388_v3 = vadd.f32 1.0, %v6067_v14  ;;  %v4273_v24 = vadd.f32 %v8230_v61, %v4234_v23  ;;  %v4235_v32 = vadd.f32 %v8150_v30, %v3477_v5  ;;  %v5730_v31 = vpop.f32.mrb[146].mxu0  ;;  %v4950_v23 = vmul.f32 -1.442695, %v8245_v36 }
 0x226   : > { %v8247_v34 = vpop.f32.mrb[145].mxu1  ;;  %v6071_v54 = vpop.eup %6070  ;;  %6088 = vrcp.f32 %v3390_v33  ;;  %v3391_v18 = vadd.f32 1.0, %v6069_v51  ;;  %v4276_v40 = vadd.f32 %v8230_v61, %v4237_v8  ;;  %v4948_v14 = vmul.f32 -1.442695, %v8251_v35 }
 0x227   : > { %v3224_v11 = vpop.f32.mrb[147].mxu0  ;;  %v8253_v55 = vpop.f32.mrb[146].mxu1  ;;  %6090 = vrcp.f32 %v3388_v3  ;;  %v3389_v30 = vadd.f32 1.0, %v6071_v54  ;;  %v4274_v25 = vadd.f32 %v8230_v61, %v4235_v32  ;;  %v8266_v33 = vadd.f32 %v5730_v31, %v8092_v62 }
 0x228   : > { %v6073_v42 = vpop.eup %6072  ;;  %v8262_v5 = vpop.f32.mrb[147].mxu1  ;;  %6092 = vrcp.f32 %v3391_v18  ;;  %v5112_v57 = vpack.c.bf16 %v4276_v40, %v4275_v19  ;;  %v8269_v51 = vadd.f32 %v3224_v11, %v8086_v26 }
 0x229   : > { %v6075_v39 = vpop.eup %6074  ;;  %6094 = vrcp.f32 %v3389_v30  ;;  %v5107_v56 = vpack.c.bf16 %v4274_v25, %v4273_v24  ;;  %v3482_v3 = vmul.f32 %v6073_v42, %v8155_v21  ;;  %v4951_v54 = vmul.f32 -1.442695, %v8266_v33 }
 0x22a   : > { %v6077_v8 = vpop.eup %6076  ;;  %5184 = vst [vmem:[%s8258_s30 + $0x8] sm:$0xff] %v5112_v57   ;;  %6096 = vpow2.f32 %v4950_v23  ;;  %v3480_v19 = vmul.f32 %v6075_v39, %v8160_v60  ;;  %v4949_v62 = vmul.f32 -1.442695, %v8269_v51  ;;  %v5733_v31 = vpop.f32.mrb[148].mxu0 }
 0x22b   : > { %v6079_v32 = vpop.eup %6078  ;;  %v3483_v18 = vmul.f32 %v6077_v8, %v8166_v28  ;;  %5108 = vst [vmem:[%s8258_s30] sm:$0xff] %v5107_v56   ;;  %6098 = vpow2.f32 %v4948_v14  ;;  %v4240_v24 = vadd.f32 %v8157_v53, %v3482_v3  ;;  %v3237_v60 = vpop.f32.mrb[149].mxu0 }
 0x22c   : > { %v6081_v40 = vpop.eup %6080  ;;  %v3481_v26 = vmul.f32 %v6079_v32, %v8172_v44  ;;  %6100 = vpow2.f32 %v4951_v54  ;;  %v4238_v42 = vadd.f32 %v8162_v7, %v3480_v19  ;;  %v8282_v25 = vpop.f32.mrb[148].mxu1 }
 0x22d   : > { %v6083_v21 = vpop.eup %6082  ;;  %v3394_v11 = vadd.f32 1.0, %v6081_v40  ;;  %v4241_v30 = vadd.f32 %v8168_v16, %v3483_v18  ;;  %6102 = vpow2.f32 %v4949_v62  ;;  %v4279_v39 = vadd.f32 %v8230_v61, %v4240_v24  ;;  %v5734_v57 = vpop.f32.mrb[150].mxu0 }
 0x22e   : > { %v6085_v28 = vpop.eup %6084  ;;  %v3392_v23 = vadd.f32 1.0, %v6083_v21  ;;  %v4239_v53 = vadd.f32 %v8174_v4, %v3481_v26  ;;  %v8286_v44 = vpop.f32.mrb[149].mxu1  ;;  %v4277_v7 = vadd.f32 %v8230_v61, %v4238_v42  ;;  %v8294_v4 = vadd.f32 %v5733_v31, %v8102_v1 }
 0x22f   : > { %v6087_v14 = vpop.eup %6086  ;;  %6104 = vrcp.f32 %v3394_v11  ;;  %v3395_v8 = vadd.f32 1.0, %v6085_v28  ;;  %v4280_v16 = vadd.f32 %v8230_v61, %v4241_v30  ;;  %v3240_v56 = vpop.f32.mrb[151].mxu0  ;;  %v8299_v62 = vadd.f32 %v3237_v60, %v8096_v17 }
 0x230   : > { %v8290_v3 = vpop.f32.mrb[150].mxu1  ;;  %6106 = vrcp.f32 %v3392_v23  ;;  %v3393_v32 = vadd.f32 1.0, %v6087_v14  ;;  %v4278_v54 = vadd.f32 %v8230_v61, %v4239_v53  ;;  %v6089_v18 = vpop.eup %6088  ;;  %v8302_v24 = vadd.f32 %v5734_v57, %v8104_v13 }
 0x231   : > { %v8296_v19 = vpop.f32.mrb[151].mxu1  ;;  %6108 = vrcp.f32 %v3395_v8  ;;  %v5122_v40 = vpack.c.bf16 %v4280_v16, %v4279_v39  ;;  %v6091_v26 = vpop.eup %6090  ;;  %v4954_v11 = vmul.f32 -1.442695, %v8294_v4  ;;  %v8306_v1 = vadd.f32 %v3240_v56, %v8098_v63 }
 0x232   : > { %6110 = vrcp.f32 %v3393_v32  ;;  %v5117_v21 = vpack.c.bf16 %v4278_v54, %v4277_v7  ;;  %v6093_v31 = vpop.eup %6092  ;;  %v4952_v42 = vmul.f32 -1.442695, %v8299_v62  ;;  %v4955_v30 = vmul.f32 -1.442695, %v8302_v24  ;;  %v5737_v39 = vpop.f32.mrb[152].mxu0 }
 0x233   : > { %5186 = vst [vmem:[%s8258_s30 + $0x18] sm:$0xff] %v5122_v40   ;;  %v3486_v17 = vmul.f32 %v6089_v18, %v8179_v48  ;;  %v3484_v60 = vmul.f32 %v6091_v26, %v8184_v41  ;;  %v6095_v13 = vpop.eup %6094  ;;  %6112 = vpow2.f32 %v4954_v11  ;;  %v4953_v28 = vmul.f32 -1.442695, %v8306_v1  ;;  %v3253_v8 = vpop.f32.mrb[153].mxu0 }
 0x234   : > { %5185 = vst [vmem:[%s8258_s30 + $0x10] sm:$0xff] %v5117_v21   ;;  %v3487_v23 = vmul.f32 %v6093_v31, %v8190_v45  ;;  %v6097_v63 = vpop.eup %6096  ;;  %6114 = vpow2.f32 %v4952_v42  ;;  %v3485_v14 = vmul.f32 %v6095_v13, %v8196_v12  ;;  %v8319_v48 = vpop.f32.mrb[152].mxu1  ;;  %v8323_v56 = vadd.f32 %v5737_v39, %v8114_v6 }
 0x235   : > { %v4244_v53 = vadd.f32 %v8181_v15, %v3486_v17  ;;  %v4242_v57 = vadd.f32 %v8186_v47, %v3484_v60  ;;  %v6099_v41 = vpop.eup %6098  ;;  %v3398_v7 = vadd.f32 1.0, %v6097_v63  ;;  %6116 = vpow2.f32 %v4955_v30  ;;  %v5738_v45 = vpop.f32.mrb[154].mxu0 }
 0x236   : > { %v4245_v16 = vadd.f32 %v8192_v50, %v3487_v23  ;;  %v8325_v32 = vpop.f32.mrb[153].mxu1  ;;  %v6101_v54 = vpop.eup %6100  ;;  %v3396_v15 = vadd.f32 1.0, %v6099_v41  ;;  %6118 = vpow2.f32 %v4953_v28  ;;  %v4243_v6 = vadd.f32 %v8198_v38, %v3485_v14 }
 0x237   : > { %v4283_v47 = vadd.f32 %v8230_v61, %v4244_v53  ;;  %v4281_v12 = vadd.f32 %v8230_v61, %v4242_v57  ;;  %v3256_v18 = vpop.f32.mrb[155].mxu0  ;;  %v8329_v40 = vpop.f32.mrb[154].mxu1  ;;  %6120 = vrcp.f32 %v3398_v7  ;;  %v3399_v21 = vadd.f32 1.0, %v6101_v54 }
 0x238   : > { %v6103_v26 = vpop.eup %6102  ;;  %v4284_v50 = vadd.f32 %v8230_v61, %v4245_v16  ;;  %v8333_v11 = vpop.f32.mrb[155].mxu1  ;;  %6122 = vrcp.f32 %v3396_v15  ;;  %v4958_v30 = vmul.f32 -1.442695, %v8323_v56  ;;  %v8337_v17 = vadd.f32 %v3253_v8, %v8108_v27 }
 0x239   : > { %v6105_v31 = vpop.eup %6104  ;;  %v3397_v42 = vadd.f32 1.0, %v6103_v26  ;;  %6124 = vrcp.f32 %v3399_v21  ;;  %v4282_v28 = vadd.f32 %v8230_v61, %v4243_v6  ;;  %v8341_v23 = vadd.f32 %v5738_v45, %v8116_v29 }
 0x23a   : > { %v6107_v60 = vpop.eup %6106  ;;  %v5132_v13 = vpack.c.bf16 %v4284_v50, %v4283_v47  ;;  %v4956_v39 = vmul.f32 -1.442695, %v8337_v17  ;;  %v8345_v63 = vadd.f32 %v3256_v18, %v8110_v49  ;;  %v3490_v53 = vmul.f32 %v6105_v31, %v8203_v46  ;;  %v5741_v29 = vpop.f32.mrb[156].mxu0 }
 0x23b   : > { %v6109_v38 = vpop.eup %6108  ;;  %6126 = vrcp.f32 %v3397_v42  ;;  %v5127_v57 = vpack.c.bf16 %v4282_v28, %v4281_v12  ;;  %v4959_v14 = vmul.f32 -1.442695, %v8341_v23  ;;  %v3488_v8 = vmul.f32 %v6107_v60, %v8208_v58  ;;  %v3269_v16 = vpop.f32.mrb[157].mxu0 }
 0x23c   : > { %v6111_v27 = vpop.eup %6110  ;;  %5188 = vst [vmem:[%s8258_s30 + $0x28] sm:$0xff] %v5132_v13   ;;  %6128 = vpow2.f32 %v4958_v30  ;;  %v4957_v41 = vmul.f32 -1.442695, %v8345_v63  ;;  %v4248_v7 = vadd.f32 %v8205_v0, %v3490_v53  ;;  %v3491_v49 = vmul.f32 %v6109_v38, %v8214_v22  ;;  %v8354_v45 = vpop.f32.mrb[156].mxu1 }
 0x23d   : > { %6130 = vpow2.f32 %v4956_v39  ;;  %v6113_v46 = vpop.eup %6112  ;;  %5187 = vst [vmem:[%s8258_s30 + $0x20] sm:$0xff] %v5127_v57   ;;  %v4246_v54 = vadd.f32 %v8210_v9, %v3488_v8  ;;  %v3489_v15 = vmul.f32 %v6111_v27, %v8220_v2  ;;  %v8360_v58 = vadd.f32 %v5741_v29, %v8126_v43  ;;  %v5742_v47 = vpop.f32.mrb[158].mxu0 }
 0x23e   : > { %6132 = vpow2.f32 %v4959_v14  ;;  %v8362_v12 = vpop.f32.mrb[157].mxu1  ;;  %v6115_v18 = vpop.eup %6114  ;;  %v3402_v0 = vadd.f32 1.0, %v6113_v46  ;;  %v4287_v22 = vadd.f32 %v8230_v61, %v4248_v7  ;;  %v4249_v26 = vadd.f32 %v8216_v37, %v3491_v49  ;;  %v8582_v14 = vld [vmem:[#allocation17_spill] sm:$0xff] }
 0x23f   : > { %6134 = vpow2.f32 %v4957_v41  ;;  %v3272_v21 = vpop.f32.mrb[159].mxu0  ;;  %v8366_v50 = vpop.f32.mrb[158].mxu1  ;;  %v3400_v9 = vadd.f32 1.0, %v6115_v18  ;;  %v4285_v2 = vadd.f32 %v8230_v61, %v4246_v54  ;;  %v4247_v43 = vadd.f32 %v8222_v20, %v3489_v15 }
 0x240   : > { %v6117_v6 = vpop.eup %6116  ;;  %v4962_v31 = vmul.f32 -1.442695, %v8360_v58  ;;  %v8371_v42 = vpop.f32.mrb[159].mxu1  ;;  %6136 = vrcp.f32 %v3402_v0  ;;  %v4288_v13 = vadd.f32 %v8230_v61, %v4249_v26  ;;  %v8375_v37 = vadd.f32 %v3269_v16, %v8120_v10 }
 0x241   : > { %v6119_v30 = vpop.eup %6118  ;;  %v3403_v60 = vadd.f32 1.0, %v6117_v6  ;;  %6138 = vrcp.f32 %v3400_v9  ;;  %v4286_v39 = vadd.f32 %v8230_v61, %v4247_v43  ;;  %v8379_v20 = vadd.f32 %v5742_v47, %v8128_v52 }
 0x242   : > { %v6121_v28 = vpop.eup %6120  ;;  %v3401_v38 = vadd.f32 1.0, %v6119_v30  ;;  %v5142_v27 = vpack.c.bf16 %v4288_v13, %v4287_v22  ;;  %v4960_v57 = vmul.f32 -1.442695, %v8375_v37  ;;  %v8383_v8 = vadd.f32 %v3272_v21, %v8582_v14 }
 0x243   : > { %v6123_v53 = vpop.eup %6122  ;;  %6140 = vrcp.f32 %v3403_v60  ;;  %v5137_v29 = vpack.c.bf16 %v4286_v39, %v4285_v2  ;;  %v4963_v41 = vmul.f32 -1.442695, %v8379_v20  ;;  %v3494_v7 = vmul.f32 %v6121_v28, %v8245_v36 }
 0x244   : > { %v6125_v10 = vpop.eup %6124  ;;  %6142 = vrcp.f32 %v3401_v38  ;;  %5190 = vst [vmem:[%s8258_s30 + $0x38] sm:$0xff] %v5142_v27   ;;  %v4961_v52 = vmul.f32 -1.442695, %v8383_v8  ;;  %v3492_v16 = vmul.f32 %v6123_v53, %v8251_v35 }
 0x245   : > { %v6127_v49 = vpop.eup %6126  ;;  %6144 = vpow2.f32 %v4962_v31  ;;  %v3495_v46 = vmul.f32 %v6125_v10, %v8266_v33  ;;  %5189 = vst [vmem:[%s8258_s30 + $0x30] sm:$0xff] %v5137_v29   ;;  %v4252_v15 = vadd.f32 %v8240_v59, %v3494_v7 }
 0x246   : > { %v6129_v54 = vpop.eup %6128  ;;  %6146 = vpow2.f32 %v4960_v57  ;;  %v3493_v47 = vmul.f32 %v6127_v49, %v8269_v51  ;;  %v4250_v36 = vadd.f32 %v8247_v34, %v3492_v16 }
 0x247   : > { %v6131_v18 = vpop.eup %6130  ;;  %v3406_v0 = vadd.f32 1.0, %v6129_v54  ;;  %6148 = vpow2.f32 %v4963_v41  ;;  %v4253_v22 = vadd.f32 %v8253_v55, %v3495_v46  ;;  %v4291_v59 = vadd.f32 %v8230_v61, %v4252_v15 }
 0x248   : > { %v6133_v26 = vpop.eup %6132  ;;  %v3404_v21 = vadd.f32 1.0, %v6131_v18  ;;  %6150 = vpow2.f32 %v4961_v52  ;;  %v4251_v35 = vadd.f32 %v8262_v5, %v3493_v47  ;;  %v4289_v34 = vadd.f32 %v8230_v61, %v4250_v36 }
 0x249   : > { %v6135_v33 = vpop.eup %6134  ;;  %6152 = vrcp.f32 %v3406_v0  ;;  %v3407_v6 = vadd.f32 1.0, %v6133_v26  ;;  %v4292_v51 = vadd.f32 %v8230_v61, %v4253_v22 }
 0x24a   : > { %6154 = vrcp.f32 %v3404_v21  ;;  %v3405_v9 = vadd.f32 1.0, %v6135_v33  ;;  %v4290_v55 = vadd.f32 %v8230_v61, %v4251_v35  ;;  %v6137_v2 = vpop.eup %6136 }
 0x24b   : > { %6156 = vrcp.f32 %v3407_v6  ;;  %v5152_v43 = vpack.c.bf16 %v4292_v51, %v4291_v59  ;;  %v6139_v31 = vpop.eup %6138  ;;  %v3498_v30 = vmul.f32 %v6137_v2, %v8294_v4 }
 0x24c   : > { %6158 = vrcp.f32 %v3405_v9  ;;  %v5147_v5 = vpack.c.bf16 %v4290_v55, %v4289_v34  ;;  %v3496_v13 = vmul.f32 %v6139_v31, %v8299_v62 }
 0x24d   : > { %v6141_v60 = vpop.eup %6140  ;;  %5192 = vst [vmem:[%s8258_s30 + $0x48] sm:$0xff] %v5152_v43   ;;  %v4256_v38 = vadd.f32 %v8282_v25, %v3498_v30 }
 0x24e   : > { %v6143_v28 = vpop.eup %6142  ;;  %5191 = vst [vmem:[%s8258_s30 + $0x40] sm:$0xff] %v5147_v5   ;;  %v3499_v39 = vmul.f32 %v6141_v60, %v8302_v24  ;;  %v4254_v27 = vadd.f32 %v8286_v44, %v3496_v13 }
 0x24f   : > { %v6145_v53 = vpop.eup %6144  ;;  %v3497_v57 = vmul.f32 %v6143_v28, %v8306_v1  ;;  %v4295_v25 = vadd.f32 %v8230_v61, %v4256_v38 }
 0x250   : > { %v6147_v14 = vpop.eup %6146  ;;  %v3410_v10 = vadd.f32 1.0, %v6145_v53  ;;  %v4257_v29 = vadd.f32 %v8290_v3, %v3499_v39  ;;  %v4293_v1 = vadd.f32 %v8230_v61, %v4254_v27 }
 0x251   : > { %v6149_v4 = vpop.eup %6148  ;;  %v3408_v41 = vadd.f32 1.0, %v6147_v14  ;;  %v4255_v7 = vadd.f32 %v8296_v19, %v3497_v57 }
 0x252   : > { %v6151_v62 = vpop.eup %6150  ;;  %6160 = vrcp.f32 %v3410_v10  ;;  %v3411_v49 = vadd.f32 1.0, %v6149_v4  ;;  %v4296_v24 = vadd.f32 %v8230_v61, %v4257_v29 }
 0x253   : > { %v6153_v52 = vpop.eup %6152  ;;  %6162 = vrcp.f32 %v3408_v41  ;;  %v3409_v44 = vadd.f32 1.0, %v6151_v62  ;;  %v4294_v3 = vadd.f32 %v8230_v61, %v4255_v7 }
 0x254   : > { %v6155_v16 = vpop.eup %6154  ;;  %6164 = vrcp.f32 %v3411_v49  ;;  %v5162_v46 = vpack.c.bf16 %v4296_v24, %v4295_v25  ;;  %v3502_v19 = vmul.f32 %v6153_v52, %v8323_v56 }
 0x255   : > { %v6157_v54 = vpop.eup %6156  ;;  %6166 = vrcp.f32 %v3409_v44  ;;  %v5157_v15 = vpack.c.bf16 %v4294_v3, %v4293_v1  ;;  %v3500_v47 = vmul.f32 %v6155_v16, %v8337_v17 }
 0x256   : > { %v6159_v18 = vpop.eup %6158  ;;  %5194 = vst [vmem:[%s8258_s30 + $0x58] sm:$0xff] %v5162_v46   ;;  %v4260_v0 = vadd.f32 %v8319_v48, %v3502_v19  ;;  %v3503_v36 = vmul.f32 %v6157_v54, %v8341_v23 }
 0x257   : > { %5193 = vst [vmem:[%s8258_s30 + $0x50] sm:$0xff] %v5157_v15   ;;  %v4258_v22 = vadd.f32 %v8325_v32, %v3500_v47  ;;  %v3501_v26 = vmul.f32 %v6159_v18, %v8345_v63 }
 0x258   : > { %v4261_v56 = vadd.f32 %v8329_v40, %v3503_v36  ;;  %v4299_v35 = vadd.f32 %v8230_v61, %v4260_v0 }
 0x259   : > { %v4259_v21 = vadd.f32 %v8333_v11, %v3501_v26  ;;  %v4297_v33 = vadd.f32 %v8230_v61, %v4258_v22 }
 0x25a   : > { %v4300_v17 = vadd.f32 %v8230_v61, %v4261_v56 }
 0x25b   : > { %v4298_v48 = vadd.f32 %v8230_v61, %v4259_v21 }
 0x25c   : > { %v6161_v23 = vpop.eup %6160  ;;  %v5172_v6 = vpack.c.bf16 %v4300_v17, %v4299_v35 }
 0x25d   : > { %v6163_v59 = vpop.eup %6162  ;;  %v5167_v51 = vpack.c.bf16 %v4298_v48, %v4297_v33  ;;  %v3506_v32 = vmul.f32 %v6161_v23, %v8360_v58 }
 0x25e   : > { %v6165_v63 = vpop.eup %6164  ;;  %5196 = vst [vmem:[%s8258_s30 + $0x68] sm:$0xff] %v5172_v6   ;;  %v3504_v40 = vmul.f32 %v6163_v59, %v8375_v37 }
 0x25f   : > { %v6167_v11 = vpop.eup %6166  ;;  %5195 = vst [vmem:[%s8258_s30 + $0x60] sm:$0xff] %v5167_v51   ;;  %v4264_v9 = vadd.f32 %v8354_v45, %v3506_v32  ;;  %v3507_v34 = vmul.f32 %v6165_v63, %v8379_v20 }
 0x260   : > { %v4262_v55 = vadd.f32 %v8362_v12, %v3504_v40  ;;  %v3505_v2 = vmul.f32 %v6167_v11, %v8383_v8 }
 0x261   : > { %v4265_v43 = vadd.f32 %v8366_v50, %v3507_v34  ;;  %v4303_v31 = vadd.f32 %v8230_v61, %v4264_v9 }
 0x262   : > { %v4263_v58 = vadd.f32 %v8371_v42, %v3505_v2  ;;  %v4301_v37 = vadd.f32 %v8230_v61, %v4262_v55 }
 0x263   : > { %v4304_v5 = vadd.f32 %v8230_v61, %v4265_v43 }
 0x264   : > { %v4302_v30 = vadd.f32 %v8230_v61, %v4263_v58 }
 0x265   : > { %v5182_v60 = vpack.c.bf16 %v4304_v5, %v4303_v31 }
 0x266   : > { %v5177_v45 = vpack.c.bf16 %v4302_v30, %v4301_v37 }
 0x267   : > { %5198 = vst [vmem:[%s8258_s30 + $0x78] sm:$0xff] %v5182_v60  }
 0x268   : > { %5197 = vst [vmem:[%s8258_s30 + $0x70] sm:$0xff] %v5177_v45  }
 0x269 PF: > { %s16_s23 = sadd.s32 1, %s6197_s23   ;;  %s8583_s21 = smov %s6193_s22 }
 0x26a   : > { %p13_p5 = scmp.ge.s32.totalorder %s16_s23, 4   ;;  %s8584_s22 = smov %s8586_s24 }
 0x26c   :  { %15 = sbr.rel (!%p13_p5) target bundleno = 2 (0x2), region = 81 }

</bundles_post_ra>
